<compile_context>
chip_gen: v6e
topology: v6e:2x2x1
jax: 0.10.0
libtpu: 0.0.40
codegen_flags: <defaults>
</compile_context>

<pallas_src>
import functools

import jax
import jax.numpy as jnp
from jax.experimental import pallas as pl
from jax.experimental.pallas import tpu as pltpu

IN_DIM = 176 * 144        # 25344 = 198 * 128
HID = 64
OUT = 4
OUT_PAD = 128             # lane-dense output width (slice back to 4 in wrapper)


def ann_kernel(x_ref, w1_ref, b1_ref, w2_ref, b2_ref, o_ref, acc_ref, *, tk, k_steps):
    """Fused 2-layer MLP.

    Grid: (batch blocks [parallel], K steps of the layer-1 reduction [arbitrary]).
    x is streamed f32 and cast to bf16 in-kernel; W1 is a resident bf16 slab that
    is sliced per K step; acc_ref holds the f32 partial sums of layer 1.
    """
    k = pl.program_id(1)

    @pl.when(k == 0)
    def _():
        acc_ref[...] = jnp.zeros_like(acc_ref)

    # x tile arrives as f32 (4 B/elt over HBM, no wrapper cast); bf16 cast on VPU.
    x_bf16 = x_ref[...].astype(jnp.bfloat16)

    if k_steps == 1:
        w1_blk = w1_ref[...]                       # whole reduction in one dot
    else:
        start = pl.multiple_of(k * tk, 128)        # tk is a multiple of 128
        w1_blk = w1_ref[pl.ds(start, tk), :]       # slice the resident W1 slab

    # bf16 x bf16 -> f32 accumulate on the MXU.
    acc_ref[...] += jnp.dot(x_bf16, w1_blk, preferred_element_type=jnp.float32)

    @pl.when(k == k_steps - 1)
    def _():
        h = jnp.maximum(acc_ref[...] + b1_ref[...], 0.0)                 # ReLU(layer1)
        out = jnp.dot(h, w2_ref[...], preferred_element_type=jnp.float32)
        o_ref[...] = (out + b2_ref[...]).astype(o_ref.dtype)             # layer2 (padded)


@jax.jit
def ann_forward(img, params):
    """img: (B, 176, 144) float32 -> (B, 4) float32.

    `params` must come from prepare_params() (one-time prep, not per call).
    """
    w1_bf16, b1, w2_pad, b2_pad = params
    x = img.reshape(-1, IN_DIM)                    # metadata-only reshape, stays f32
    B = x.shape[0]

    TB = min(B, 128)                               # batch tile (ragged tail OK)
    # Single K step (one big dot) when the f32 x double-buffer + resident W1 fit
    # comfortably in VMEM; otherwise 6 steps (TK = 4224 = 33*128, ~11 MB total).
    k_steps = 1 if TB <= 64 else 6
    tk = IN_DIM // k_steps
    grid = (pl.cdiv(B, TB), k_steps)

    out_pad = pl.pallas_call(
        functools.partial(ann_kernel, tk=tk, k_steps=k_steps),
        out_shape=jax.ShapeDtypeStruct((B, OUT_PAD), jnp.float32),
        grid_spec=pltpu.PrefetchScalarGridSpec(
            num_scalar_prefetch=0,
            grid=grid,
            in_specs=[
                pl.BlockSpec((TB, tk), lambda b, k: (b, k)),        # x (f32, streamed)
                pl.BlockSpec((IN_DIM, HID), lambda b, k: (0, 0)),   # W1 (bf16, resident)
                pl.BlockSpec((1, HID), lambda b, k: (0, 0)),        # b1 (resident)
                pl.BlockSpec((HID, OUT_PAD), lambda b, k: (0, 0)),  # W2 padded (resident)
                pl.BlockSpec((1, OUT_PAD), lambda b, k: (0, 0)),    # b2 padded (resident)
            ],
            out_specs=pl.BlockSpec((TB, OUT_PAD), lambda b, k: (b, 0)),
            scratch_shapes=[pltpu.VMEM((TB, HID), jnp.float32)],
        ),
        compiler_params=pltpu.CompilerParams(
            dimension_semantics=("parallel", "arbitrary"),   # batch parallel, K reduce
            vmem_limit_bytes=32 * 1024 * 1024,               # headroom; safe on v5e..v7x
        ),
    )(x, w1_bf16, b1, w2_pad, b2_pad)

    return out_pad[:, :OUT]


def init_params(key):
    """Deterministic init matching nn.Linear shapes (weights stored transposed)."""
    k1, k2, k3, k4 = jax.random.split(key, 4)
    bound1 = 1.0 / jnp.sqrt(jnp.float32(IN_DIM))
    bound2 = 1.0 / jnp.sqrt(jnp.float32(HID))
    w1 = jax.random.uniform(k1, (IN_DIM, HID), jnp.float32, -bound1, bound1)
    b1 = jax.random.uniform(k2, (HID,), jnp.float32, -bound1, bound1)
    w2 = jax.random.uniform(k3, (HID, OUT), jnp.float32, -bound2, bound2)
    b2 = jax.random.uniform(k4, (OUT,), jnp.float32, -bound2, bound2)
    return w1, b1, w2, b2


def prepare_params(w1, b1, w2, b2):
    """One-time prep (per parameter update, NOT per forward call):
      - cache W1 in bf16 (halves the dominant HBM stream),
      - zero-pad layer-2 weight/bias to 128 output lanes for lane-dense stores."""
    w1_bf16 = w1.astype(jnp.bfloat16)
    b1_2d = b1.reshape(1, HID).astype(jnp.float32)
    w2_pad = jnp.zeros((HID, OUT_PAD), jnp.float32).at[:, :OUT].set(w2)
    b2_pad = jnp.zeros((1, OUT_PAD), jnp.float32).at[:, :OUT].set(b2)
    return w1_bf16, b1_2d, w2_pad, b2_pad


if __name__ == "__main__":
    key = jax.random.PRNGKey(0)
    k_img, k_params = jax.random.split(key)

    B = 2
    img = jax.random.normal(k_img, (B, 176, 144), jnp.float32)
    w1, b1, w2, b2 = init_params(k_params)
    params = prepare_params(w1, b1, w2, b2)        # one-time, outside the forward path

    out = ann_forward(img, params)
    out = jax.block_until_ready(out)
    assert out.shape == (B, OUT)

    # Reference 1: same bf16 rounding of x / W1, f32 accumulation (tight tolerance).
    xb = img.reshape(-1, IN_DIM).astype(jnp.bfloat16).astype(jnp.float32)
    w1b = w1.astype(jnp.bfloat16).astype(jnp.float32)
    ref_bf16 = jnp.maximum(xb @ w1b + b1, 0.0) @ w2 + b2
    assert jnp.allclose(out, ref_bf16, atol=2e-3, rtol=2e-3)

    # Reference 2: full f32 PyTorch-equivalent math (loose tolerance; bf16 streaming
    # of x / W1 with f32 accumulation is an intentional accuracy/bandwidth tradeoff).
    xf = img.reshape(-1, IN_DIM)
    h_f32 = jnp.maximum(jnp.dot(xf, w1, precision=jax.lax.Precision.HIGHEST) + b1, 0.0)
    ref_f32 = jnp.dot(h_f32, w2, precision=jax.lax.Precision.HIGHEST) + b2
    assert jnp.allclose(out, ref_f32, atol=5e-2, rtol=5e-2)

    print("KERNEL_OK")
</pallas_src>

<mosaic_0001>
module attributes {stable_mosaic.version = 11 : i64} {
  func.func @ann_kernel(%arg0: i32, %arg1: i32, %arg2: memref<2x25344xf32, #tpu.memory_space<vmem>>, %arg3: memref<25344x64xbf16, #tpu.memory_space<vmem>>, %arg4: memref<1x64xf32, #tpu.memory_space<vmem>>, %arg5: memref<64x128xf32, #tpu.memory_space<vmem>>, %arg6: memref<1x128xf32, #tpu.memory_space<vmem>>, %arg7: memref<2x128xf32, #tpu.memory_space<vmem>>, %arg8: memref<2x64xf32, #tpu.memory_space<vmem>>) attributes {dimension_semantics = [#tpu.dimension_semantics<parallel>, #tpu.dimension_semantics<arbitrary>], iteration_bounds = array<i64: 1, 1>, scalar_prefetch = 0 : i64, scratch_operands = 1 : i64, tpu.core_type = #tpu.core_type<tc>, window_params = [{transform_indices = @transform_0, window_bounds = array<i64: 2, 25344>}, {pipeline_mode = #tpu.pipeline_mode<synchronous>, transform_indices = @transform_1, window_bounds = array<i64: 25344, 64>}, {pipeline_mode = #tpu.pipeline_mode<synchronous>, transform_indices = @transform_2, window_bounds = array<i64: 1, 64>}, {pipeline_mode = #tpu.pipeline_mode<synchronous>, transform_indices = @transform_3, window_bounds = array<i64: 64, 128>}, {pipeline_mode = #tpu.pipeline_mode<synchronous>, transform_indices = @transform_4, window_bounds = array<i64: 1, 128>}, {transform_indices = @transform_5, window_bounds = array<i64: 2, 128>}]} {
    %c0_i32 = arith.constant 0 : i32
    %0 = arith.cmpi eq, %arg1, %c0_i32 : i32
    %1 = arith.extui %0 : i1 to i32
    %c0_i32_0 = arith.constant 0 : i32
    %2 = arith.cmpi ne, %1, %c0_i32_0 : i32
    scf.if %2 {
      %cst_10 = arith.constant 0.000000e+00 : f32
      %13 = vector.broadcast %cst_10 : f32 to vector<2x64xf32>
      %c0_11 = arith.constant 0 : index
      %c0_12 = arith.constant 0 : index
      %14 = vector.load %arg8[%c0_11, %c0_12] : memref<2x64xf32, #tpu.memory_space<vmem>>, vector<2x64xf32>
      tpu.vector_store %arg8[%c0_11, %c0_12], %13 {strides = array<i32>} : memref<2x64xf32, #tpu.memory_space<vmem>>, vector<2x64xf32>,
    } else {
    }
    %c0 = arith.constant 0 : index
    %c0_1 = arith.constant 0 : index
    %3 = vector.load %arg2[%c0, %c0_1] : memref<2x25344xf32, #tpu.memory_space<vmem>>, vector<2x25344xf32>
    %4 = arith.truncf %3 : vector<2x25344xf32> to vector<2x25344xbf16>
    %c0_2 = arith.constant 0 : index
    %c0_3 = arith.constant 0 : index
    %5 = vector.load %arg3[%c0_2, %c0_3] : memref<25344x64xbf16, #tpu.memory_space<vmem>>, vector<25344x64xbf16>
    %c0_4 = arith.constant 0 : index
    %c0_5 = arith.constant 0 : index
    %6 = vector.load %arg8[%c0_4, %c0_5] : memref<2x64xf32, #tpu.memory_space<vmem>>, vector<2x64xf32>
    %cst = arith.constant dense<0.000000e+00> : vector<2x64xf32>
    %7 = tpu.matmul %4, %5, %cst {dimension_numbers = #tpu.dot_dimension_numbers<[1], [0], [0], [1], [0, 0, 1, 1], [], []>} : vector<2x25344xbf16>, vector<25344x64xbf16>, vector<2x64xf32> -> vector<2x64xf32>
    %8 = arith.addf %6, %7 : vector<2x64xf32>
    %c0_6 = arith.constant 0 : index
    %c0_7 = arith.constant 0 : index
    %9 = vector.load %arg8[%c0_6, %c0_7] : memref<2x64xf32, #tpu.memory_space<vmem>>, vector<2x64xf32>
    tpu.vector_store %arg8[%c0_6, %c0_7], %8 {strides = array<i32>} : memref<2x64xf32, #tpu.memory_space<vmem>>, vector<2x64xf32>,
    %c0_i32_8 = arith.constant 0 : i32
    %10 = arith.cmpi eq, %arg1, %c0_i32_8 : i32
    %11 = arith.extui %10 : i1 to i32
    %c0_i32_9 = arith.constant 0 : i32
    %12 = arith.cmpi ne, %11, %c0_i32_9 : i32
    scf.if %12 {
      %c0_10 = arith.constant 0 : index
      %c0_11 = arith.constant 0 : index
      %13 = vector.load %arg8[%c0_10, %c0_11] : memref<2x64xf32, #tpu.memory_space<vmem>>, vector<2x64xf32>
      %c0_12 = arith.constant 0 : index
      %c0_13 = arith.constant 0 : index
      %14 = vector.load %arg4[%c0_12, %c0_13] : memref<1x64xf32, #tpu.memory_space<vmem>>, vector<1x64xf32>
      %15 = vector.broadcast %14 : vector<1x64xf32> to vector<2x64xf32>
      %16 = arith.addf %13, %15 : vector<2x64xf32>
      %cst_14 = arith.constant 0.000000e+00 : f32
      %17 = vector.broadcast %cst_14 : f32 to vector<2x64xf32>
      %18 = arith.maximumf %16, %17 : vector<2x64xf32>
      %c0_15 = arith.constant 0 : index
      %c0_16 = arith.constant 0 : index
      %19 = vector.load %arg5[%c0_15, %c0_16] : memref<64x128xf32, #tpu.memory_space<vmem>>, vector<64x128xf32>
      %cst_17 = arith.constant dense<0.000000e+00> : vector<2x128xf32>
      %20 = tpu.matmul %18, %19, %cst_17 {dimension_numbers = #tpu.dot_dimension_numbers<[1], [0], [0], [1], [0, 0, 1, 1], [], []>} : vector<2x64xf32>, vector<64x128xf32>, vector<2x128xf32> -> vector<2x128xf32>
      %c0_18 = arith.constant 0 : index
      %c0_19 = arith.constant 0 : index
      %21 = vector.load %arg6[%c0_18, %c0_19] : memref<1x128xf32, #tpu.memory_space<vmem>>, vector<1x128xf32>
      %22 = vector.broadcast %21 : vector<1x128xf32> to vector<2x128xf32>
      %23 = arith.addf %20, %22 : vector<2x128xf32>
      %c0_20 = arith.constant 0 : index
      %c0_21 = arith.constant 0 : index
      %24 = vector.load %arg7[%c0_20, %c0_21] : memref<2x128xf32, #tpu.memory_space<vmem>>, vector<2x128xf32>
      tpu.vector_store %arg7[%c0_20, %c0_21], %23 {strides = array<i32>} : memref<2x128xf32, #tpu.memory_space<vmem>>, vector<2x128xf32>,
    } else {
    }
    return
  }
  func.func @transform_0(%arg0: i32, %arg1: i32) -> (i32, i32) {
    %c0_i32 = arith.constant 0 : i32
    return %arg0, %arg1 : i32, i32
  }
  func.func @transform_1(%arg0: i32, %arg1: i32) -> (i32, i32) {
    %c0_i32 = arith.constant 0 : i32
    %c0_i32_0 = arith.constant 0 : i32
    %c0_i32_1 = arith.constant 0 : i32
    return %c0_i32, %c0_i32_0 : i32, i32
  }
  func.func @transform_2(%arg0: i32, %arg1: i32) -> (i32, i32) {
    %c0_i32 = arith.constant 0 : i32
    %c0_i32_0 = arith.constant 0 : i32
    %c0_i32_1 = arith.constant 0 : i32
    return %c0_i32, %c0_i32_0 : i32, i32
  }
  func.func @transform_3(%arg0: i32, %arg1: i32) -> (i32, i32) {
    %c0_i32 = arith.constant 0 : i32
    %c0_i32_0 = arith.constant 0 : i32
    %c0_i32_1 = arith.constant 0 : i32
    return %c0_i32, %c0_i32_0 : i32, i32
  }
  func.func @transform_4(%arg0: i32, %arg1: i32) -> (i32, i32) {
    %c0_i32 = arith.constant 0 : i32
    %c0_i32_0 = arith.constant 0 : i32
    %c0_i32_1 = arith.constant 0 : i32
    return %c0_i32, %c0_i32_0 : i32, i32
  }
  func.func @transform_5(%arg0: i32, %arg1: i32) -> (i32, i32) {
    %c0_i32 = arith.constant 0 : i32
    %c0_i32_0 = arith.constant 0 : i32
    return %arg0, %c0_i32 : i32, i32
  }
}

</mosaic_0001>

<bundles_post_ra>
// kernel: ann_forward.1
= control target key start
LH: loop header
LB: loop body
LE: loop exit
PB: predicated region body
PF: predicated region fallthrough
CT: control target
= control target key end

     0   :  { %v132_v28 = vlaneseq  ;;  %v23571_v36 = vmov 1983009808   ;;  %s28768_s0 = inlined_call_operand.vmem [shape: f32[2,25344], index: 0, kind: input, shape index: {}]   ;;  %s28769_s1 = inlined_call_operand.vmem [shape: bf16[25344,64], index: 1, kind: input, shape index: {}]   ;;  %s28770_s2 = inlined_call_operand.vmem [shape: f32[1,64], index: 2, kind: input, shape index: {}]   ;;  %s28771_s3 = inlined_call_operand.vmem [shape: f32[64,128], index: 3, kind: input, shape index: {}]   ;;  %s28772_s4 = inlined_call_operand.vmem [shape: f32[1,128], index: 4, kind: input, shape index: {}]   ;;  %s28773_s5 = inlined_call_operand.hbm [shape: f32[2,128], index: 5, kind: output, shape index: {}]  }
   0x1   :  { %v21916_v0 = vld [vmem:[%s28769_s1 + $0x78] sm:$0xff]   ;;  %v21920_v4 = vld [vmem:[%s28769_s1 + $0x70] sm:$0xff]   ;;  %v21924_v8 = vld [vmem:[%s28769_s1 + $0x68] sm:$0xff]   ;;  %v130_v37 = vunpack.c.l.s4 %v23571_v36 }
   0x2   :  { %v21917_v1 = vld [vmem:[%s28769_s1 + $0xf8] sm:$0xff]   ;;  %19706 = vmatprep.subr.bf16.mxu0 %v21916_v0  ;;  %v21921_v5 = vld [vmem:[%s28769_s1 + $0xf0] sm:$0xff]   ;;  %v21925_v9 = vld [vmem:[%s28769_s1 + $0xe8] sm:$0xff]   ;;  %v133_v33 = vshrl.u32 %v132_v28, 7 }
   0x3   :  { %v21918_v2 = vld [vmem:[%s28769_s1 + $0x38] sm:$0xff]   ;;  %19728 = vmatprep.subr.bf16.mxu1 %v21917_v1  ;;  %v21922_v6 = vld [vmem:[%s28769_s1 + $0x30] sm:$0xff]   ;;  %v21926_v10 = vld [vmem:[%s28769_s1 + $0x28] sm:$0xff]   ;;  %v131_v38 = vunpack.c.0.s8 %v130_v37 }
   0x4   :  { %v21919_v3 = vld [vmem:[%s28769_s1 + $0xb8] sm:$0xff]   ;;  %19707 = vmatpush3.bf16.msra.mxu0 %v21918_v2  ;;  %v21923_v7 = vld [vmem:[%s28769_s1 + $0xb0] sm:$0xff]   ;;  %v21927_v11 = vld [vmem:[%s28769_s1 + $0xa8] sm:$0xff]  }
   0x5   :  { %19729 = vmatpush3.bf16.msra.mxu1 %v21919_v3  ;;  %19708 = vmatprep.subr.bf16.mxu0 %v21920_v4  ;;  %v21928_v12 = vld [vmem:[%s28769_s1 + $0x60] sm:$0xff]   ;;  %v21932_v16 = vld [vmem:[%s28769_s1 + $0x58] sm:$0xff]   ;;  %v21936_v20 = vld [vmem:[%s28769_s1 + $0x50] sm:$0xff]   ;;  %v23710_v41 = vsub.s32 %v131_v38, %v133_v33 }
   0x6   :  { %19730 = vmatprep.subr.bf16.mxu1 %v21921_v5  ;;  %v21929_v13 = vld [vmem:[%s28769_s1 + $0xe0] sm:$0xff]   ;;  %v21933_v17 = vld [vmem:[%s28769_s1 + $0xd8] sm:$0xff]   ;;  %v21937_v21 = vld [vmem:[%s28769_s1 + $0xd0] sm:$0xff]  }
   0x7   :  { %v21930_v14 = vld [vmem:[%s28769_s1 + $0x20] sm:$0xff]   ;;  %v21934_v18 = vld [vmem:[%s28769_s1 + $0x18] sm:$0xff]   ;;  %v21938_v22 = vld [vmem:[%s28769_s1 + $0x10] sm:$0xff]  }
   0x8   :  { %19709 = vmatpush3.bf16.msra.mxu0 %v21922_v6  ;;  %v21931_v15 = vld [vmem:[%s28769_s1 + $0xa0] sm:$0xff]   ;;  %v21935_v19 = vld [vmem:[%s28769_s1 + $0x98] sm:$0xff]   ;;  %v21939_v23 = vld [vmem:[%s28769_s1 + $0x90] sm:$0xff]  }
   0x9   :  { %19731 = vmatpush3.bf16.msra.mxu1 %v21923_v7  ;;  %19710 = vmatprep.subr.bf16.mxu0 %v21924_v8  ;;  %v21940_v24 = vld [vmem:[%s28769_s1 + $0x48] sm:$0xff]   ;;  %v21944_v29 = vld [vmem:[%s28769_s1 + $0x40] sm:$0xff]   ;;  %v21949_v35 = vld [vmem:[%s28769_s1 + $0x178] sm:$0xff]  }
   0xa   :  { %19732 = vmatprep.subr.bf16.mxu1 %v21925_v9  ;;  %v21941_v25 = vld [vmem:[%s28769_s1 + $0xc8] sm:$0xff]   ;;  %v21945_v30 = vld [vmem:[%s28769_s1 + $0xc0] sm:$0xff]   ;;  %v21951_v40 = vld [vmem:[%s28769_s1 + $0x1f8] sm:$0xff]  }
   0xb   :  { %v21942_v26 = vld [vmem:[%s28769_s1 + $0x8] sm:$0xff]   ;;  %v21946_v31 = vld [vmem:[%s28769_s1] sm:$0xff]   ;;  %v21950_v46 = vld [vmem:[%s28769_s1 + $0x138] sm:$0xff]  }
   0xc   :  { %19711 = vmatpush3.bf16.msra.mxu0 %v21926_v10  ;;  %v21943_v27 = vld [vmem:[%s28769_s1 + $0x88] sm:$0xff]   ;;  %v21947_v32 = vld [vmem:[%s28769_s1 + $0x80] sm:$0xff]   ;;  %v21952_v49 = vld [vmem:[%s28769_s1 + $0x1b8] sm:$0xff]  }
   0xd   :  { %19733 = vmatpush3.bf16.msra.mxu1 %v21927_v11  ;;  %19712 = vmatprep.subr.bf16.mxu0 %v21928_v12  ;;  %v28_v34 = vld [vmem:[%s28768_s0] sm:$0xff]  ;;  %v21953_v52 = vld [vmem:[%s28769_s1 + $0x170] sm:$0xff]   ;;  %v21957_v56 = vld [vmem:[%s28769_s1 + $0x168] sm:$0xff]  }
   0xe   :  { %19734 = vmatprep.subr.bf16.mxu1 %v21929_v13  ;;  %v128_v39 = vcombine.high %v28_v34, %v28_v34  ;;  %v135_v42 = vrot.slane %v28_v34, %v23710_v41  ;;  %v21955_v53 = vld [vmem:[%s28769_s1 + $0x1f0] sm:$0xff]   ;;  %v21959_v57 = vld [vmem:[%s28769_s1 + $0x1e8] sm:$0xff]   ;;  %v21961_v60 = vld [vmem:[%s28769_s1 + $0x160] sm:$0xff]  }
   0xf   :  { %v21954_v54 = vld [vmem:[%s28769_s1 + $0x130] sm:$0xff]   ;;  %v21958_v58 = vld [vmem:[%s28769_s1 + $0x128] sm:$0xff]   ;;  %v21963_v61 = vld [vmem:[%s28769_s1 + $0x1e0] sm:$0xff]  }
  0x10   :  { %19713 = vmatpush3.bf16.msra.mxu0 %v21930_v14  ;;  %v142_v43 = vrot.slane %v128_v39, %v23710_v41  ;;  %v143_v44 = vcombine.high %v135_v42, %v135_v42  ;;  %v1167_v47 = vpack.c.bf16 %v135_v42, %v135_v42  ;;  %v21956_v55 = vld [vmem:[%s28769_s1 + $0x1b0] sm:$0xff]   ;;  %v21960_v59 = vld [vmem:[%s28769_s1 + $0x1a8] sm:$0xff]   ;;  %v21962_v62 = vld [vmem:[%s28769_s1 + $0x120] sm:$0xff]  }
  0x11   :  { %19735 = vmatpush3.bf16.msra.mxu1 %v21931_v15  ;;  %19714 = vmatprep.subr.bf16.mxu0 %v21932_v16  ;;  %v21964_v63 = vld [vmem:[%s28769_s1 + $0x1a0] sm:$0xff]   ;;  %v21965_v0 = vld [vmem:[%s28769_s1 + $0x158] sm:$0xff]   ;;  %v21969_v4 = vld [vmem:[%s28769_s1 + $0x150] sm:$0xff]  }
  0x12   :  { %19736 = vmatprep.subr.bf16.mxu1 %v21933_v17  ;;  %v144_v45 = vcombine.high %v142_v43, %v142_v43  ;;  %v1169_v48 = vpack.c.bf16 %v142_v43, %v142_v43  ;;  %v1168_v50 = vpack.c.bf16 %v143_v44, %v143_v44  ;;  %v21967_v1 = vld [vmem:[%s28769_s1 + $0x1d8] sm:$0xff]   ;;  %v21971_v5 = vld [vmem:[%s28769_s1 + $0x1d0] sm:$0xff]   ;;  %v21973_v8 = vld [vmem:[%s28769_s1 + $0x148] sm:$0xff]  }
  0x13   :  { %v21966_v2 = vld [vmem:[%s28769_s1 + $0x118] sm:$0xff]   ;;  %v21970_v6 = vld [vmem:[%s28769_s1 + $0x110] sm:$0xff]   ;;  %v29_v9 = vld [vmem:[%s28768_s0 + $0x8] sm:$0xff] }
  0x14   :  { %19715 = vmatpush3.bf16.msra.mxu0 %v21934_v18  ;;  %v1170_v51 = vpack.c.bf16 %v144_v45, %v144_v45  ;;  %14070 = vmatprep.mubr.bf16.mxu0 %v1168_v50  ;;  %v21968_v3 = vld [vmem:[%s28769_s1 + $0x198] sm:$0xff]   ;;  %v21972_v7 = vld [vmem:[%s28769_s1 + $0x190] sm:$0xff]   ;;  %v21975_v10 = vld [vmem:[%s28769_s1 + $0x1c8] sm:$0xff]   ;;  %v152_v11 = vrot.slane %v29_v9, %v23710_v41  ;;  %v145_v12 = vcombine.high %v29_v9, %v29_v9 }
  0x15   :  { %19737 = vmatpush3.bf16.msra.mxu1 %v21935_v19  ;;  %19716 = vmatprep.subr.bf16.mxu0 %v21936_v20  ;;  %v21974_v13 = vld [vmem:[%s28769_s1 + $0x108] sm:$0xff]   ;;  %v21977_v17 = vld [vmem:[%s28769_s1 + $0x140] sm:$0xff]   ;;  %v21989_v33 = vld [vmem:[%s28769_s1 + $0x2b0] sm:$0xff]  }
  0x16   :  { %19738 = vmatprep.subr.bf16.mxu1 %v21937_v21  ;;  %14110 = vmatprep.mubr.bf16.mxu1 %v1170_v51  ;;  %v21976_v14 = vld [vmem:[%s28769_s1 + $0x188] sm:$0xff]   ;;  %v160_v15 = vcombine.high %v152_v11, %v152_v11  ;;  %v159_v16 = vrot.slane %v145_v12, %v23710_v41  ;;  %v21979_v18 = vld [vmem:[%s28769_s1 + $0x1c0] sm:$0xff]   ;;  %v21998_v43 = vld [vmem:[%s28769_s1 + $0x258] sm:$0xff]  }
  0x17   :  { %v21978_v21 = vld [vmem:[%s28769_s1 + $0x100] sm:$0xff]   ;;  %v21990_v34 = vld [vmem:[%s28769_s1 + $0x268] sm:$0xff]   ;;  %v22000_v44 = vld [vmem:[%s28769_s1 + $0x2d8] sm:$0xff]  }
  0x18   :  { %19717 = vmatpush3.bf16.msra.mxu0 %v21938_v22  ;;  %v1172_v19 = vpack.c.bf16 %v160_v15, %v160_v15  ;;  %v161_v20 = vcombine.high %v159_v16, %v159_v16  ;;  %v21980_v22 = vld [vmem:[%s28769_s1 + $0x180] sm:$0xff]   ;;  %v1173_v28 = vpack.c.bf16 %v159_v16, %v159_v16  ;;  %v21991_v36 = vld [vmem:[%s28769_s1 + $0x228] sm:$0xff]   ;;  %v21999_v45 = vld [vmem:[%s28769_s1 + $0x218] sm:$0xff]  }
  0x19   :  { %19739 = vmatpush3.bf16.msra.mxu1 %v21939_v23  ;;  %19718 = vmatprep.subr.bf16.mxu0 %v21940_v24  ;;  %v21981_v24 = vld [vmem:[%s28769_s1 + $0x278] sm:$0xff]   ;;  %v21993_v37 = vld [vmem:[%s28769_s1 + $0x2a8] sm:$0xff]   ;;  %v21994_v38 = vld [vmem:[%s28769_s1 + $0x260] sm:$0xff]  }
  0x1a   :  { %19740 = vmatprep.subr.bf16.mxu1 %v21941_v25  ;;  %v1174_v23 = vpack.c.bf16 %v161_v20, %v161_v20  ;;  %v21984_v25 = vld [vmem:[%s28769_s1 + $0x2f8] sm:$0xff]   ;;  %v21996_v39 = vld [vmem:[%s28769_s1 + $0x2e0] sm:$0xff]   ;;  %v22005_v50 = vld [vmem:[%s28769_s1 + $0x290] sm:$0xff]  }
  0x1b   :  { %v21997_v42 = vld [vmem:[%s28769_s1 + $0x2a0] sm:$0xff]   ;;  %v22006_v51 = vld [vmem:[%s28769_s1 + $0x248] sm:$0xff]   ;;  %v22019_v9 = vld [vmem:[%s28769_s1 + $0x370] sm:$0xff]  }
  0x1c   :  { %19719 = vmatpush3.bf16.msra.mxu0 %v21942_v26  ;;  %v21983_v26 = vld [vmem:[%s28769_s1 + $0x238] sm:$0xff]   ;;  %v22022_v12 = vld [vmem:[%s28769_s1 + $0x3b0] sm:$0xff]   ;;  %v22024_v15 = vld [vmem:[%s28769_s1 + $0x328] sm:$0xff]  }
  0x1d   :  { %19741 = vmatpush3.bf16.msra.mxu1 %v21943_v27  ;;  %19720 = vmatprep.subr.bf16.mxu0 %v21944_v29  ;;  %v1171_v27 = vpack.c.bf16 %v152_v11, %v152_v11  ;;  %v21985_v29 = vld [vmem:[%s28769_s1 + $0x2b8] sm:$0xff]   ;;  %v22020_v11 = vld [vmem:[%s28769_s1 + $0x330] sm:$0xff]   ;;  %v22026_v16 = vld [vmem:[%s28769_s1 + $0x3a8] sm:$0xff]  }
  0x1e   :  { %19742 = vmatprep.subr.bf16.mxu1 %v21945_v30  ;;  %v21986_v30 = vld [vmem:[%s28769_s1 + $0x270] sm:$0xff]   ;;  %v22030_v20 = vld [vmem:[%s28769_s1 + $0x3a0] sm:$0xff]  }
  0x20   :  { %19721 = vmatpush3.bf16.msra.mxu0 %v21946_v31  ;;  %v21988_v31 = vld [vmem:[%s28769_s1 + $0x2f0] sm:$0xff]  }
  0x21   :  { %19743 = vmatpush3.bf16.msra.mxu1 %v21947_v32  ;;  %19750 = vmatprep.subr.bf16.mxu0 %v21949_v35  ;;  %v21987_v32 = vld [vmem:[%s28769_s1 + $0x230] sm:$0xff]   ;;  %v21992_v35 = vld [vmem:[%s28769_s1 + $0x2e8] sm:$0xff]  }
  0x22   :  { %19772 = vmatprep.subr.bf16.mxu1 %v21951_v40  ;;  %v21995_v40 = vld [vmem:[%s28769_s1 + $0x220] sm:$0xff]  }
  0x23   :  { %14071 = vmatmul.mubr.bf16.vlgmr.msra.gmra.mxu0 %v1167_v47  ;;  %v22002_v47 = vld [vmem:[%s28769_s1 + $0x250] sm:$0xff]  }
  0x24   :  { %14111 = vmatmul.mubr.bf16.vlgmr.msra.gmra.mxu1 %v1169_v48  ;;  %19751 = vmatpush3.bf16.msra.mxu0 %v21950_v46  ;;  %v22001_v46 = vld [vmem:[%s28769_s1 + $0x298] sm:$0xff]   ;;  %v22004_v48 = vld [vmem:[%s28769_s1 + $0x2d0] sm:$0xff]  }
  0x25   :  { %19773 = vmatpush3.bf16.msra.mxu1 %v21952_v49  ;;  %19752 = vmatprep.subr.bf16.mxu0 %v21953_v52  ;;  %v22003_v49 = vld [vmem:[%s28769_s1 + $0x210] sm:$0xff]  }
  0x26   :  { %19774 = vmatprep.subr.bf16.mxu1 %v21955_v53  ;;  %14150 = vmatprep.mubr.bf16.mxu0 %v1172_v19  ;;  %v30_v52 = vld [vmem:[%s28768_s0 + $0x10] sm:$0xff]  ;;  %v22008_v53 = vld [vmem:[%s28769_s1 + $0x2c8] sm:$0xff]   ;;  %v22028_v19 = vld [vmem:[%s28769_s1 + $0x320] sm:$0xff]  }
  0x27   :  { %14190 = vmatprep.mubr.bf16.mxu1 %v1174_v23  ;;  %v22032_v23 = vld [vmem:[%s28769_s1 + $0x318] sm:$0xff]  }
  0x28   :  { %19753 = vmatpush3.bf16.msra.mxu0 %v21954_v54  ;;  %v169_v54 = vrot.slane %v30_v52, %v23710_v41 }
  0x29   :  { %19775 = vmatpush3.bf16.msra.mxu1 %v21956_v55  ;;  %19754 = vmatprep.subr.bf16.mxu0 %v21957_v56  ;;  %v162_v55 = vcombine.high %v30_v52, %v30_v52  ;;  %v22007_v56 = vld [vmem:[%s28769_s1 + $0x208] sm:$0xff]   ;;  %v22052_v52 = vld [vmem:[%s28769_s1 + $0x470] sm:$0xff]  }
  0x2a   :  { %19776 = vmatprep.subr.bf16.mxu1 %v21959_v57  ;;  %v22009_v57 = vld [vmem:[%s28769_s1 + $0x288] sm:$0xff]  }
  0x2c   :  { %19755 = vmatpush3.bf16.msra.mxu0 %v21958_v58  ;;  %v177_v58 = vcombine.high %v169_v54, %v169_v54 }
  0x2d   :  { %19777 = vmatpush3.bf16.msra.mxu1 %v21960_v59  ;;  %19756 = vmatprep.subr.bf16.mxu0 %v21961_v60  ;;  %v176_v59 = vrot.slane %v162_v55, %v23710_v41  ;;  %v22010_v60 = vld [vmem:[%s28769_s1 + $0x240] sm:$0xff]   ;;  %v22055_v55 = vld [vmem:[%s28769_s1 + $0x4b0] sm:$0xff]  }
  0x2e   :  { %19778 = vmatprep.subr.bf16.mxu1 %v21963_v61  ;;  %v22012_v61 = vld [vmem:[%s28769_s1 + $0x2c0] sm:$0xff]  }
  0x30   :  { %19757 = vmatpush3.bf16.msra.mxu0 %v21962_v62  ;;  %v1176_v62 = vpack.c.bf16 %v177_v58, %v177_v58  ;;  %v22057_v58 = vld [vmem:[%s28769_s1 + $0x428] sm:$0xff]  }
  0x31   :  { %19779 = vmatpush3.bf16.msra.mxu1 %v21964_v63  ;;  %19758 = vmatprep.subr.bf16.mxu0 %v21965_v0  ;;  %v178_v63 = vcombine.high %v176_v59, %v176_v59  ;;  %v22011_v0 = vld [vmem:[%s28769_s1 + $0x200] sm:$0xff]  }
  0x32   :  { %19780 = vmatprep.subr.bf16.mxu1 %v21967_v1  ;;  %v22013_v1 = vld [vmem:[%s28769_s1 + $0x280] sm:$0xff]  }
  0x34   :  { %19759 = vmatpush3.bf16.msra.mxu0 %v21966_v2  ;;  %v1178_v2 = vpack.c.bf16 %v178_v63, %v178_v63  ;;  %v22063_v63 = vld [vmem:[%s28769_s1 + $0x4a0] sm:$0xff]  }
  0x35   :  { %19781 = vmatpush3.bf16.msra.mxu1 %v21968_v3  ;;  %19760 = vmatprep.subr.bf16.mxu0 %v21969_v4  ;;  %v22014_v3 = vld [vmem:[%s28769_s1 + $0x378] sm:$0xff]  }
  0x36   :  { %19782 = vmatprep.subr.bf16.mxu1 %v21971_v5  ;;  %v22017_v4 = vld [vmem:[%s28769_s1 + $0x3f8] sm:$0xff]  }
  0x37   :  { %v22016_v5 = vld [vmem:[%s28769_s1 + $0x338] sm:$0xff]  }
  0x38   :  { %19761 = vmatpush3.bf16.msra.mxu0 %v21970_v6  ;;  %v1175_v6 = vpack.c.bf16 %v169_v54, %v169_v54  ;;  %v22053_v54 = vld [vmem:[%s28769_s1 + $0x430] sm:$0xff]  }
  0x39   :  { %19783 = vmatpush3.bf16.msra.mxu1 %v21972_v7  ;;  %19762 = vmatprep.subr.bf16.mxu0 %v21973_v8  ;;  %v1177_v7 = vpack.c.bf16 %v176_v59, %v176_v59  ;;  %v22018_v8 = vld [vmem:[%s28769_s1 + $0x3b8] sm:$0xff]   ;;  %v22059_v59 = vld [vmem:[%s28769_s1 + $0x4a8] sm:$0xff]  }
  0x3a   :  { %19784 = vmatprep.subr.bf16.mxu1 %v21975_v10  ;;  %v22021_v10 = vld [vmem:[%s28769_s1 + $0x3f0] sm:$0xff]  }
  0x3c   :  { %19763 = vmatpush3.bf16.msra.mxu0 %v21974_v13  ;;  %v22023_v13 = vld [vmem:[%s28769_s1 + $0x368] sm:$0xff]  }
  0x3d   :  { %19785 = vmatpush3.bf16.msra.mxu1 %v21976_v14  ;;  %19764 = vmatprep.subr.bf16.mxu0 %v21977_v17  ;;  %v22025_v14 = vld [vmem:[%s28769_s1 + $0x3e8] sm:$0xff]   ;;  %v22027_v17 = vld [vmem:[%s28769_s1 + $0x360] sm:$0xff]  }
  0x3e   :  { %19786 = vmatprep.subr.bf16.mxu1 %v21979_v18  ;;  %v22029_v18 = vld [vmem:[%s28769_s1 + $0x3e0] sm:$0xff]  }
  0x40   :  { %19765 = vmatpush3.bf16.msra.mxu0 %v21978_v21  ;;  %v22031_v21 = vld [vmem:[%s28769_s1 + $0x358] sm:$0xff]  }
  0x41   :  { %19787 = vmatpush3.bf16.msra.mxu1 %v21980_v22  ;;  %19794 = vmatprep.subr.bf16.mxu0 %v21981_v24  ;;  %v22033_v22 = vld [vmem:[%s28769_s1 + $0x3d8] sm:$0xff]  }
  0x42   :  { %19816 = vmatprep.subr.bf16.mxu1 %v21984_v25  ;;  %v22034_v24 = vld [vmem:[%s28769_s1 + $0x398] sm:$0xff]   ;;  %v22035_v25 = vld [vmem:[%s28769_s1 + $0x350] sm:$0xff]  }
  0x43   :  { %14151 = vmatmul.mubr.bf16.vlgmr.msra.gmra.mxu0 %v1171_v27  ;;  %v22036_v27 = vld [vmem:[%s28769_s1 + $0x310] sm:$0xff]  }
  0x44   :  { %14191 = vmatmul.mubr.bf16.vlgmr.msra.gmra.mxu1 %v1173_v28  ;;  %19795 = vmatpush3.bf16.msra.mxu0 %v21983_v26  ;;  %v22037_v26 = vld [vmem:[%s28769_s1 + $0x3d0] sm:$0xff]  }
  0x45   :  { %19817 = vmatpush3.bf16.msra.mxu1 %v21985_v29  ;;  %19796 = vmatprep.subr.bf16.mxu0 %v21986_v30  ;;  %v22038_v28 = vld [vmem:[%s28769_s1 + $0x390] sm:$0xff]   ;;  %v22039_v29 = vld [vmem:[%s28769_s1 + $0x348] sm:$0xff]  }
  0x46   :  { %19818 = vmatprep.subr.bf16.mxu1 %v21988_v31  ;;  %14230 = vmatprep.mubr.bf16.mxu0 %v1176_v62  ;;  %v22041_v30 = vld [vmem:[%s28769_s1 + $0x3c8] sm:$0xff]   ;;  %v31_v31 = vld [vmem:[%s28768_s0 + $0x18] sm:$0xff]  ;;  %v22061_v62 = vld [vmem:[%s28769_s1 + $0x420] sm:$0xff]  }
  0x47   :  { %14270 = vmatprep.mubr.bf16.mxu1 %v1178_v2  ;;  %v22065_v2 = vld [vmem:[%s28769_s1 + $0x418] sm:$0xff]  }
  0x48   :  { %19797 = vmatpush3.bf16.msra.mxu0 %v21987_v32  ;;  %v22040_v32 = vld [vmem:[%s28769_s1 + $0x308] sm:$0xff]  }
  0x49   :  { %19819 = vmatpush3.bf16.msra.mxu1 %v21989_v33  ;;  %19798 = vmatprep.subr.bf16.mxu0 %v21990_v34  ;;  %v186_v33 = vrot.slane %v31_v31, %v23710_v41  ;;  %v179_v34 = vcombine.high %v31_v31, %v31_v31  ;;  %v22087_v31 = vld [vmem:[%s28769_s1 + $0x5f0] sm:$0xff]  }
  0x4a   :  { %19820 = vmatprep.subr.bf16.mxu1 %v21992_v35  ;;  %v22042_v35 = vld [vmem:[%s28769_s1 + $0x388] sm:$0xff]  }
  0x4c   :  { %19799 = vmatpush3.bf16.msra.mxu0 %v21991_v36  ;;  %v22043_v36 = vld [vmem:[%s28769_s1 + $0x340] sm:$0xff]  }
  0x4d   :  { %19821 = vmatpush3.bf16.msra.mxu1 %v21993_v37  ;;  %19800 = vmatprep.subr.bf16.mxu0 %v21994_v38  ;;  %v194_v37 = vcombine.high %v186_v33, %v186_v33  ;;  %v193_v38 = vrot.slane %v179_v34, %v23710_v41  ;;  %v22089_v34 = vld [vmem:[%s28769_s1 + $0x568] sm:$0xff]  }
  0x4e   :  { %19822 = vmatprep.subr.bf16.mxu1 %v21996_v39  ;;  %v22045_v39 = vld [vmem:[%s28769_s1 + $0x3c0] sm:$0xff]  }
  0x50   :  { %19801 = vmatpush3.bf16.msra.mxu0 %v21995_v40  ;;  %v22044_v40 = vld [vmem:[%s28769_s1 + $0x300] sm:$0xff]  }
  0x51   :  { %19823 = vmatpush3.bf16.msra.mxu1 %v21997_v42  ;;  %19802 = vmatprep.subr.bf16.mxu0 %v21998_v43  ;;  %v1180_v42 = vpack.c.bf16 %v194_v37, %v194_v37  ;;  %v195_v43 = vcombine.high %v193_v38, %v193_v38  ;;  %v22092_v37 = vld [vmem:[%s28769_s1 + $0x5a8] sm:$0xff]  }
  0x52   :  { %19824 = vmatprep.subr.bf16.mxu1 %v22000_v44  ;;  %v22046_v44 = vld [vmem:[%s28769_s1 + $0x380] sm:$0xff]  }
  0x54   :  { %19803 = vmatpush3.bf16.msra.mxu0 %v21999_v45  ;;  %v22047_v45 = vld [vmem:[%s28769_s1 + $0x478] sm:$0xff]  }
  0x55   :  { %19825 = vmatpush3.bf16.msra.mxu1 %v22001_v46  ;;  %19804 = vmatprep.subr.bf16.mxu0 %v22002_v47  ;;  %v1182_v46 = vpack.c.bf16 %v195_v43, %v195_v43  ;;  %v22050_v47 = vld [vmem:[%s28769_s1 + $0x4f8] sm:$0xff]  }
  0x56   :  { %19826 = vmatprep.subr.bf16.mxu1 %v22004_v48  ;;  %v22049_v48 = vld [vmem:[%s28769_s1 + $0x438] sm:$0xff]  }
  0x57   :  { %v22097_v43 = vld [vmem:[%s28769_s1 + $0x558] sm:$0xff]  }
  0x58   :  { %19805 = vmatpush3.bf16.msra.mxu0 %v22003_v49  ;;  %v1179_v49 = vpack.c.bf16 %v186_v33, %v186_v33  ;;  %v22088_v33 = vld [vmem:[%s28769_s1 + $0x5b0] sm:$0xff]  }
  0x59   :  { %19827 = vmatpush3.bf16.msra.mxu1 %v22005_v50  ;;  %19806 = vmatprep.subr.bf16.mxu0 %v22006_v51  ;;  %v1181_v50 = vpack.c.bf16 %v193_v38, %v193_v38  ;;  %v22051_v51 = vld [vmem:[%s28769_s1 + $0x4b8] sm:$0xff]   ;;  %v22093_v38 = vld [vmem:[%s28769_s1 + $0x560] sm:$0xff]  }
  0x5a   :  { %19828 = vmatprep.subr.bf16.mxu1 %v22008_v53  ;;  %v22054_v53 = vld [vmem:[%s28769_s1 + $0x4f0] sm:$0xff]  }
  0x5c   :  { %19807 = vmatpush3.bf16.msra.mxu0 %v22007_v56  ;;  %v22056_v56 = vld [vmem:[%s28769_s1 + $0x468] sm:$0xff]  }
  0x5d   :  { %19829 = vmatpush3.bf16.msra.mxu1 %v22009_v57  ;;  %19808 = vmatprep.subr.bf16.mxu0 %v22010_v60  ;;  %v22058_v57 = vld [vmem:[%s28769_s1 + $0x4e8] sm:$0xff]   ;;  %v22060_v60 = vld [vmem:[%s28769_s1 + $0x460] sm:$0xff]  }
  0x5e   :  { %19830 = vmatprep.subr.bf16.mxu1 %v22012_v61  ;;  %v22062_v61 = vld [vmem:[%s28769_s1 + $0x4e0] sm:$0xff]  }
  0x60   :  { %19809 = vmatpush3.bf16.msra.mxu0 %v22011_v0  ;;  %v22064_v0 = vld [vmem:[%s28769_s1 + $0x458] sm:$0xff]  }
  0x61   :  { %19831 = vmatpush3.bf16.msra.mxu1 %v22013_v1  ;;  %19838 = vmatprep.subr.bf16.mxu0 %v22014_v3  ;;  %v22066_v1 = vld [vmem:[%s28769_s1 + $0x4d8] sm:$0xff]  }
  0x62   :  { %19860 = vmatprep.subr.bf16.mxu1 %v22017_v4  ;;  %v22067_v3 = vld [vmem:[%s28769_s1 + $0x498] sm:$0xff]   ;;  %v22068_v4 = vld [vmem:[%s28769_s1 + $0x450] sm:$0xff]  }
  0x63   :  { %14231 = vmatmul.mubr.bf16.vlgmr.msra.gmra.mxu0 %v1175_v6  ;;  %v22069_v6 = vld [vmem:[%s28769_s1 + $0x410] sm:$0xff]  }
  0x64   :  { %14271 = vmatmul.mubr.bf16.vlgmr.msra.gmra.mxu1 %v1177_v7  ;;  %19839 = vmatpush3.bf16.msra.mxu0 %v22016_v5  ;;  %v22070_v5 = vld [vmem:[%s28769_s1 + $0x4d0] sm:$0xff]  }
  0x65   :  { %19861 = vmatpush3.bf16.msra.mxu1 %v22018_v8  ;;  %19840 = vmatprep.subr.bf16.mxu0 %v22019_v9  ;;  %v22071_v7 = vld [vmem:[%s28769_s1 + $0x490] sm:$0xff]   ;;  %v22072_v8 = vld [vmem:[%s28769_s1 + $0x448] sm:$0xff]  }
  0x66   :  { %19862 = vmatprep.subr.bf16.mxu1 %v22021_v10  ;;  %14310 = vmatprep.mubr.bf16.mxu0 %v1180_v42  ;;  %v22074_v9 = vld [vmem:[%s28769_s1 + $0x4c8] sm:$0xff]   ;;  %v32_v10 = vld [vmem:[%s28768_s0 + $0x20] sm:$0xff] }
  0x67   :  { %14350 = vmatprep.mubr.bf16.mxu1 %v1182_v46  ;;  %v22096_v42 = vld [vmem:[%s28769_s1 + $0x5a0] sm:$0xff]   ;;  %v22100_v46 = vld [vmem:[%s28769_s1 + $0x598] sm:$0xff]  }
  0x68   :  { %19841 = vmatpush3.bf16.msra.mxu0 %v22020_v11  ;;  %v22073_v11 = vld [vmem:[%s28769_s1 + $0x408] sm:$0xff]  }
  0x69   :  { %19863 = vmatpush3.bf16.msra.mxu1 %v22022_v12  ;;  %19842 = vmatprep.subr.bf16.mxu0 %v22023_v13  ;;  %v203_v12 = vrot.slane %v32_v10, %v23710_v41  ;;  %v196_v13 = vcombine.high %v32_v10, %v32_v10  ;;  %v22120_v10 = vld [vmem:[%s28769_s1 + $0x6f0] sm:$0xff]  }
  0x6a   :  { %19864 = vmatprep.subr.bf16.mxu1 %v22025_v14  ;;  %v22075_v14 = vld [vmem:[%s28769_s1 + $0x488] sm:$0xff]  }
  0x6c   :  { %19843 = vmatpush3.bf16.msra.mxu0 %v22024_v15  ;;  %v22076_v15 = vld [vmem:[%s28769_s1 + $0x440] sm:$0xff]  }
  0x6d   :  { %19865 = vmatpush3.bf16.msra.mxu1 %v22026_v16  ;;  %19844 = vmatprep.subr.bf16.mxu0 %v22027_v17  ;;  %v211_v16 = vcombine.high %v203_v12, %v203_v12  ;;  %v210_v17 = vrot.slane %v196_v13, %v23710_v41  ;;  %v22122_v13 = vld [vmem:[%s28769_s1 + $0x668] sm:$0xff]  }
  0x6e   :  { %19866 = vmatprep.subr.bf16.mxu1 %v22029_v18  ;;  %v22078_v18 = vld [vmem:[%s28769_s1 + $0x4c0] sm:$0xff]  }
  0x70   :  { %19845 = vmatpush3.bf16.msra.mxu0 %v22028_v19  ;;  %v22077_v19 = vld [vmem:[%s28769_s1 + $0x400] sm:$0xff]  }
  0x71   :  { %19867 = vmatpush3.bf16.msra.mxu1 %v22030_v20  ;;  %19846 = vmatprep.subr.bf16.mxu0 %v22031_v21  ;;  %v1184_v20 = vpack.c.bf16 %v211_v16, %v211_v16  ;;  %v212_v21 = vcombine.high %v210_v17, %v210_v17  ;;  %v22125_v16 = vld [vmem:[%s28769_s1 + $0x6a8] sm:$0xff]  }
  0x72   :  { %19868 = vmatprep.subr.bf16.mxu1 %v22033_v22  ;;  %v22079_v22 = vld [vmem:[%s28769_s1 + $0x480] sm:$0xff]  }
  0x74   :  { %19847 = vmatpush3.bf16.msra.mxu0 %v22032_v23  ;;  %v22080_v23 = vld [vmem:[%s28769_s1 + $0x578] sm:$0xff]  }
  0x75   :  { %19869 = vmatpush3.bf16.msra.mxu1 %v22034_v24  ;;  %19848 = vmatprep.subr.bf16.mxu0 %v22035_v25  ;;  %v1186_v24 = vpack.c.bf16 %v212_v21, %v212_v21  ;;  %v22083_v25 = vld [vmem:[%s28769_s1 + $0x5f8] sm:$0xff]  }
  0x76   :  { %19870 = vmatprep.subr.bf16.mxu1 %v22037_v26  ;;  %v22082_v26 = vld [vmem:[%s28769_s1 + $0x538] sm:$0xff]  }
  0x77   :  { %v22130_v21 = vld [vmem:[%s28769_s1 + $0x658] sm:$0xff]  }
  0x78   :  { %19849 = vmatpush3.bf16.msra.mxu0 %v22036_v27  ;;  %v1183_v27 = vpack.c.bf16 %v203_v12, %v203_v12  ;;  %v22121_v12 = vld [vmem:[%s28769_s1 + $0x6b0] sm:$0xff]  }
  0x79   :  { %19871 = vmatpush3.bf16.msra.mxu1 %v22038_v28  ;;  %19850 = vmatprep.subr.bf16.mxu0 %v22039_v29  ;;  %v1185_v28 = vpack.c.bf16 %v210_v17, %v210_v17  ;;  %v22084_v29 = vld [vmem:[%s28769_s1 + $0x5b8] sm:$0xff]   ;;  %v22126_v17 = vld [vmem:[%s28769_s1 + $0x660] sm:$0xff]  }
  0x7a   :  { %19872 = vmatprep.subr.bf16.mxu1 %v22041_v30  ;;  %v22085_v30 = vld [vmem:[%s28769_s1 + $0x570] sm:$0xff]  }
  0x7c   :  { %19851 = vmatpush3.bf16.msra.mxu0 %v22040_v32  ;;  %v22086_v32 = vld [vmem:[%s28769_s1 + $0x530] sm:$0xff]  }
  0x7d   :  { %19873 = vmatpush3.bf16.msra.mxu1 %v22042_v35  ;;  %19852 = vmatprep.subr.bf16.mxu0 %v22043_v36  ;;  %v22091_v35 = vld [vmem:[%s28769_s1 + $0x5e8] sm:$0xff]  }
  0x7e   :  { %19874 = vmatprep.subr.bf16.mxu1 %v22045_v39  ;;  %v22090_v36 = vld [vmem:[%s28769_s1 + $0x528] sm:$0xff]   ;;  %v22095_v39 = vld [vmem:[%s28769_s1 + $0x5e0] sm:$0xff]  }
  0x80   :  { %19853 = vmatpush3.bf16.msra.mxu0 %v22044_v40  ;;  %v22094_v40 = vld [vmem:[%s28769_s1 + $0x520] sm:$0xff]  }
  0x81   :  { %19875 = vmatpush3.bf16.msra.mxu1 %v22046_v44  ;;  %19882 = vmatprep.subr.bf16.mxu0 %v22047_v45  ;;  %v22099_v44 = vld [vmem:[%s28769_s1 + $0x5d8] sm:$0xff]  }
  0x82   :  { %19904 = vmatprep.subr.bf16.mxu1 %v22050_v47  ;;  %v22098_v45 = vld [vmem:[%s28769_s1 + $0x518] sm:$0xff]   ;;  %v22101_v47 = vld [vmem:[%s28769_s1 + $0x550] sm:$0xff]  }
  0x83   :  { %14311 = vmatmul.mubr.bf16.vlgmr.msra.gmra.mxu0 %v1179_v49  ;;  %v22102_v49 = vld [vmem:[%s28769_s1 + $0x510] sm:$0xff]  }
  0x84   :  { %14351 = vmatmul.mubr.bf16.vlgmr.msra.gmra.mxu1 %v1181_v50  ;;  %19883 = vmatpush3.bf16.msra.mxu0 %v22049_v48  ;;  %v22103_v48 = vld [vmem:[%s28769_s1 + $0x5d0] sm:$0xff]  }
  0x85   :  { %19905 = vmatpush3.bf16.msra.mxu1 %v22051_v51  ;;  %19884 = vmatprep.subr.bf16.mxu0 %v22052_v52  ;;  %v22104_v50 = vld [vmem:[%s28769_s1 + $0x590] sm:$0xff]   ;;  %v22105_v51 = vld [vmem:[%s28769_s1 + $0x548] sm:$0xff]  }
  0x86   :  { %19906 = vmatprep.subr.bf16.mxu1 %v22054_v53  ;;  %14390 = vmatprep.mubr.bf16.mxu0 %v1184_v20  ;;  %v22107_v52 = vld [vmem:[%s28769_s1 + $0x5c8] sm:$0xff]   ;;  %v22129_v20 = vld [vmem:[%s28769_s1 + $0x6a0] sm:$0xff]  }
  0x87   :  { %14430 = vmatprep.mubr.bf16.mxu1 %v1186_v24  ;;  %v33_v53 = vld [vmem:[%s28768_s0 + $0x28] sm:$0xff]  ;;  %v22133_v24 = vld [vmem:[%s28769_s1 + $0x698] sm:$0xff]  }
  0x88   :  { %19885 = vmatpush3.bf16.msra.mxu0 %v22053_v54  ;;  %v22106_v54 = vld [vmem:[%s28769_s1 + $0x508] sm:$0xff]  }
  0x89   :  { %19907 = vmatpush3.bf16.msra.mxu1 %v22055_v55  ;;  %19886 = vmatprep.subr.bf16.mxu0 %v22056_v56  ;;  %v220_v55 = vrot.slane %v33_v53, %v23710_v41  ;;  %v213_v56 = vcombine.high %v33_v53, %v33_v53  ;;  %v22153_v53 = vld [vmem:[%s28769_s1 + $0x7f0] sm:$0xff]  }
  0x8a   :  { %19908 = vmatprep.subr.bf16.mxu1 %v22058_v57  ;;  %v22108_v57 = vld [vmem:[%s28769_s1 + $0x588] sm:$0xff]  }
  0x8c   :  { %19887 = vmatpush3.bf16.msra.mxu0 %v22057_v58  ;;  %v22109_v58 = vld [vmem:[%s28769_s1 + $0x540] sm:$0xff]  }
  0x8d   :  { %19909 = vmatpush3.bf16.msra.mxu1 %v22059_v59  ;;  %19888 = vmatprep.subr.bf16.mxu0 %v22060_v60  ;;  %v228_v59 = vcombine.high %v220_v55, %v220_v55  ;;  %v227_v60 = vrot.slane %v213_v56, %v23710_v41 }
  0x8e   :  { %19910 = vmatprep.subr.bf16.mxu1 %v22062_v61  ;;  %v22111_v61 = vld [vmem:[%s28769_s1 + $0x5c0] sm:$0xff]  }
  0x90   :  { %19889 = vmatpush3.bf16.msra.mxu0 %v22061_v62  ;;  %v22110_v62 = vld [vmem:[%s28769_s1 + $0x500] sm:$0xff]  }
  0x91   :  { %19911 = vmatpush3.bf16.msra.mxu1 %v22063_v63  ;;  %19890 = vmatprep.subr.bf16.mxu0 %v22064_v0  ;;  %v1188_v63 = vpack.c.bf16 %v228_v59, %v228_v59  ;;  %v229_v0 = vcombine.high %v227_v60, %v227_v60 }
  0x92   :  { %19912 = vmatprep.subr.bf16.mxu1 %v22066_v1  ;;  %v22112_v1 = vld [vmem:[%s28769_s1 + $0x580] sm:$0xff]  }
  0x94   :  { %19891 = vmatpush3.bf16.msra.mxu0 %v22065_v2  ;;  %v22113_v2 = vld [vmem:[%s28769_s1 + $0x678] sm:$0xff]  }
  0x95   :  { %19913 = vmatpush3.bf16.msra.mxu1 %v22067_v3  ;;  %19892 = vmatprep.subr.bf16.mxu0 %v22068_v4  ;;  %v1190_v3 = vpack.c.bf16 %v229_v0, %v229_v0  ;;  %v22116_v4 = vld [vmem:[%s28769_s1 + $0x6f8] sm:$0xff]   ;;  %v22156_v0 = vld [vmem:[%s28769_s1 + $0x728] sm:$0xff]  }
  0x96   :  { %19914 = vmatprep.subr.bf16.mxu1 %v22070_v5  ;;  %v22115_v5 = vld [vmem:[%s28769_s1 + $0x638] sm:$0xff]  }
  0x98   :  { %19893 = vmatpush3.bf16.msra.mxu0 %v22069_v6  ;;  %v1187_v6 = vpack.c.bf16 %v220_v55, %v220_v55 }
  0x99   :  { %19915 = vmatpush3.bf16.msra.mxu1 %v22071_v7  ;;  %19894 = vmatprep.subr.bf16.mxu0 %v22072_v8  ;;  %v1189_v7 = vpack.c.bf16 %v227_v60, %v227_v60  ;;  %v22117_v8 = vld [vmem:[%s28769_s1 + $0x6b8] sm:$0xff]  }
  0x9a   :  { %19916 = vmatprep.subr.bf16.mxu1 %v22074_v9  ;;  %v22118_v9 = vld [vmem:[%s28769_s1 + $0x670] sm:$0xff]  }
  0x9c   :  { %19895 = vmatpush3.bf16.msra.mxu0 %v22073_v11  ;;  %v22119_v11 = vld [vmem:[%s28769_s1 + $0x630] sm:$0xff]  }
  0x9d   :  { %19917 = vmatpush3.bf16.msra.mxu1 %v22075_v14  ;;  %19896 = vmatprep.subr.bf16.mxu0 %v22076_v15  ;;  %v22124_v14 = vld [vmem:[%s28769_s1 + $0x6e8] sm:$0xff]  }
  0x9e   :  { %19918 = vmatprep.subr.bf16.mxu1 %v22078_v18  ;;  %v22123_v15 = vld [vmem:[%s28769_s1 + $0x628] sm:$0xff]   ;;  %v22128_v18 = vld [vmem:[%s28769_s1 + $0x6e0] sm:$0xff]  }
  0xa0   :  { %19897 = vmatpush3.bf16.msra.mxu0 %v22077_v19  ;;  %v22127_v19 = vld [vmem:[%s28769_s1 + $0x620] sm:$0xff]  }
  0xa1   :  { %19919 = vmatpush3.bf16.msra.mxu1 %v22079_v22  ;;  %19926 = vmatprep.subr.bf16.mxu0 %v22080_v23  ;;  %v22132_v22 = vld [vmem:[%s28769_s1 + $0x6d8] sm:$0xff]  }
  0xa2   :  { %19948 = vmatprep.subr.bf16.mxu1 %v22083_v25  ;;  %v22131_v23 = vld [vmem:[%s28769_s1 + $0x618] sm:$0xff]   ;;  %v22134_v25 = vld [vmem:[%s28769_s1 + $0x650] sm:$0xff]  }
  0xa3   :  { %14391 = vmatmul.mubr.bf16.vlgmr.msra.gmra.mxu0 %v1183_v27  ;;  %v22135_v27 = vld [vmem:[%s28769_s1 + $0x610] sm:$0xff]  }
  0xa4   :  { %14431 = vmatmul.mubr.bf16.vlgmr.msra.gmra.mxu1 %v1185_v28  ;;  %19927 = vmatpush3.bf16.msra.mxu0 %v22082_v26  ;;  %v22136_v26 = vld [vmem:[%s28769_s1 + $0x6d0] sm:$0xff]  }
  0xa5   :  { %19949 = vmatpush3.bf16.msra.mxu1 %v22084_v29  ;;  %19928 = vmatprep.subr.bf16.mxu0 %v22085_v30  ;;  %v22137_v28 = vld [vmem:[%s28769_s1 + $0x690] sm:$0xff]   ;;  %v22138_v29 = vld [vmem:[%s28769_s1 + $0x648] sm:$0xff]  }
  0xa6   :  { %19950 = vmatprep.subr.bf16.mxu1 %v22087_v31  ;;  %14470 = vmatprep.mubr.bf16.mxu0 %v1188_v63  ;;  %v22140_v30 = vld [vmem:[%s28769_s1 + $0x6c8] sm:$0xff]  }
  0xa7   :  { %14510 = vmatprep.mubr.bf16.mxu1 %v1190_v3  ;;  %v22139_v31 = vld [vmem:[%s28769_s1 + $0x608] sm:$0xff]  }
  0xa8   :  { %19929 = vmatpush3.bf16.msra.mxu0 %v22086_v32  ;;  %v34_v32 = vld [vmem:[%s28768_s0 + $0x30] sm:$0xff] }
  0xa9   :  { %19951 = vmatpush3.bf16.msra.mxu1 %v22088_v33  ;;  %19930 = vmatprep.subr.bf16.mxu0 %v22089_v34  ;;  %v22141_v33 = vld [vmem:[%s28769_s1 + $0x688] sm:$0xff]   ;;  %v237_v34 = vrot.slane %v34_v32, %v23710_v41 }
  0xaa   :  { %19952 = vmatprep.subr.bf16.mxu1 %v22091_v35  ;;  %v230_v35 = vcombine.high %v34_v32, %v34_v32  ;;  %v22178_v32 = vld [vmem:[%s28769_s1 + $0x780] sm:$0xff]  }
  0xac   :  { %19931 = vmatpush3.bf16.msra.mxu0 %v22090_v36  ;;  %v22142_v36 = vld [vmem:[%s28769_s1 + $0x640] sm:$0xff]  }
  0xad   :  { %19953 = vmatpush3.bf16.msra.mxu1 %v22092_v37  ;;  %19932 = vmatprep.subr.bf16.mxu0 %v22093_v38  ;;  %v22144_v37 = vld [vmem:[%s28769_s1 + $0x6c0] sm:$0xff]   ;;  %v245_v38 = vcombine.high %v237_v34, %v237_v34 }
  0xae   :  { %19954 = vmatprep.subr.bf16.mxu1 %v22095_v39  ;;  %v244_v39 = vrot.slane %v230_v35, %v23710_v41 }
  0xb0   :  { %19933 = vmatpush3.bf16.msra.mxu0 %v22094_v40  ;;  %v22143_v40 = vld [vmem:[%s28769_s1 + $0x600] sm:$0xff]  }
  0xb1   :  { %19955 = vmatpush3.bf16.msra.mxu1 %v22096_v42  ;;  %19934 = vmatprep.subr.bf16.mxu0 %v22097_v43  ;;  %v1192_v42 = vpack.c.bf16 %v245_v38, %v245_v38  ;;  %v22145_v43 = vld [vmem:[%s28769_s1 + $0x680] sm:$0xff]  }
  0xb2   :  { %19956 = vmatprep.subr.bf16.mxu1 %v22099_v44  ;;  %v246_v44 = vcombine.high %v244_v39, %v244_v39 }
  0xb4   :  { %19935 = vmatpush3.bf16.msra.mxu0 %v22098_v45  ;;  %v22146_v45 = vld [vmem:[%s28769_s1 + $0x778] sm:$0xff]  }
  0xb5   :  { %19957 = vmatpush3.bf16.msra.mxu1 %v22100_v46  ;;  %19936 = vmatprep.subr.bf16.mxu0 %v22101_v47  ;;  %v1194_v46 = vpack.c.bf16 %v246_v44, %v246_v44  ;;  %v22149_v47 = vld [vmem:[%s28769_s1 + $0x7f8] sm:$0xff]   ;;  %v22185_v44 = vld [vmem:[%s28769_s1 + $0x830] sm:$0xff]  }
  0xb6   :  { %19958 = vmatprep.subr.bf16.mxu1 %v22103_v48  ;;  %v22148_v48 = vld [vmem:[%s28769_s1 + $0x738] sm:$0xff]  }
  0xb8   :  { %19937 = vmatpush3.bf16.msra.mxu0 %v22102_v49  ;;  %v1191_v49 = vpack.c.bf16 %v237_v34, %v237_v34  ;;  %v22179_v34 = vld [vmem:[%s28769_s1 + $0x878] sm:$0xff]  }
  0xb9   :  { %19959 = vmatpush3.bf16.msra.mxu1 %v22104_v50  ;;  %19938 = vmatprep.subr.bf16.mxu0 %v22105_v51  ;;  %v1193_v50 = vpack.c.bf16 %v244_v39, %v244_v39  ;;  %v22150_v51 = vld [vmem:[%s28769_s1 + $0x7b8] sm:$0xff]  }
  0xba   :  { %19960 = vmatprep.subr.bf16.mxu1 %v22107_v52  ;;  %v22151_v52 = vld [vmem:[%s28769_s1 + $0x770] sm:$0xff]  }
  0xbc   :  { %19939 = vmatpush3.bf16.msra.mxu0 %v22106_v54  ;;  %v22152_v54 = vld [vmem:[%s28769_s1 + $0x730] sm:$0xff]  }
  0xbd   :  { %19961 = vmatpush3.bf16.msra.mxu1 %v22108_v57  ;;  %19940 = vmatprep.subr.bf16.mxu0 %v22109_v58  ;;  %v22154_v57 = vld [vmem:[%s28769_s1 + $0x7b0] sm:$0xff]   ;;  %v22155_v58 = vld [vmem:[%s28769_s1 + $0x768] sm:$0xff]  }
  0xbe   :  { %19962 = vmatprep.subr.bf16.mxu1 %v22111_v61  ;;  %v22157_v61 = vld [vmem:[%s28769_s1 + $0x7e8] sm:$0xff]  }
  0xc0   :  { %19941 = vmatpush3.bf16.msra.mxu0 %v22110_v62 }
  0xc1   :  { %19963 = vmatpush3.bf16.msra.mxu1 %v22112_v1  ;;  %19970 = vmatprep.subr.bf16.mxu0 %v22113_v2  ;;  %v22158_v2 = vld [vmem:[%s28769_s1 + $0x7a8] sm:$0xff]  }
  0xc2   :  { %19992 = vmatprep.subr.bf16.mxu1 %v22116_v4 }
  0xc3   :  { %14471 = vmatmul.mubr.bf16.vlgmr.msra.gmra.mxu0 %v1187_v6 }
  0xc4   :  { %14511 = vmatmul.mubr.bf16.vlgmr.msra.gmra.mxu1 %v1189_v7  ;;  %19971 = vmatpush3.bf16.msra.mxu0 %v22115_v5  ;;  %v22159_v5 = vld [vmem:[%s28769_s1 + $0x760] sm:$0xff]  }
  0xc5   :  { %19993 = vmatpush3.bf16.msra.mxu1 %v22117_v8  ;;  %19972 = vmatprep.subr.bf16.mxu0 %v22118_v9  ;;  %v22161_v7 = vld [vmem:[%s28769_s1 + $0x7e0] sm:$0xff]  }
  0xc6   :  { %19994 = vmatprep.subr.bf16.mxu1 %v22120_v10  ;;  %14550 = vmatprep.mubr.bf16.mxu0 %v1192_v42  ;;  %v22160_v9 = vld [vmem:[%s28769_s1 + $0x720] sm:$0xff]   ;;  %v22184_v42 = vld [vmem:[%s28769_s1 + $0x870] sm:$0xff]  }
  0xc7   :  { %14590 = vmatprep.mubr.bf16.mxu1 %v1194_v46  ;;  %v22162_v10 = vld [vmem:[%s28769_s1 + $0x7a0] sm:$0xff]  }
  0xc8   :  { %19973 = vmatpush3.bf16.msra.mxu0 %v22119_v11  ;;  %v22163_v11 = vld [vmem:[%s28769_s1 + $0x758] sm:$0xff]  }
  0xc9   :  { %19995 = vmatpush3.bf16.msra.mxu1 %v22121_v12  ;;  %19974 = vmatprep.subr.bf16.mxu0 %v22122_v13  ;;  %v22165_v12 = vld [vmem:[%s28769_s1 + $0x7d8] sm:$0xff]  }
  0xca   :  { %19996 = vmatprep.subr.bf16.mxu1 %v22124_v14  ;;  %v22164_v13 = vld [vmem:[%s28769_s1 + $0x718] sm:$0xff]  }
  0xcb   :  { %v22166_v14 = vld [vmem:[%s28769_s1 + $0x798] sm:$0xff]  }
  0xcc   :  { %19975 = vmatpush3.bf16.msra.mxu0 %v22123_v15  ;;  %v22167_v15 = vld [vmem:[%s28769_s1 + $0x750] sm:$0xff]  }
  0xcd   :  { %19997 = vmatpush3.bf16.msra.mxu1 %v22125_v16  ;;  %19976 = vmatprep.subr.bf16.mxu0 %v22126_v17  ;;  %v22169_v16 = vld [vmem:[%s28769_s1 + $0x7d0] sm:$0xff]  }
  0xce   :  { %19998 = vmatprep.subr.bf16.mxu1 %v22128_v18  ;;  %v22168_v17 = vld [vmem:[%s28769_s1 + $0x710] sm:$0xff]  }
  0xcf   :  { %v22170_v18 = vld [vmem:[%s28769_s1 + $0x790] sm:$0xff]  }
  0xd0   :  { %19977 = vmatpush3.bf16.msra.mxu0 %v22127_v19  ;;  %v22171_v19 = vld [vmem:[%s28769_s1 + $0x748] sm:$0xff]  }
  0xd1   :  { %19999 = vmatpush3.bf16.msra.mxu1 %v22129_v20  ;;  %19978 = vmatprep.subr.bf16.mxu0 %v22130_v21  ;;  %v22173_v20 = vld [vmem:[%s28769_s1 + $0x7c8] sm:$0xff]  }
  0xd2   :  { %20000 = vmatprep.subr.bf16.mxu1 %v22132_v22  ;;  %v22172_v21 = vld [vmem:[%s28769_s1 + $0x708] sm:$0xff]   ;;  %v35_v22 = vld [vmem:[%s28768_s0 + $0x38] sm:$0xff] }
  0xd4   :  { %19979 = vmatpush3.bf16.msra.mxu0 %v22131_v23  ;;  %v22174_v23 = vld [vmem:[%s28769_s1 + $0x788] sm:$0xff]  }
  0xd5   :  { %20001 = vmatpush3.bf16.msra.mxu1 %v22133_v24  ;;  %19980 = vmatprep.subr.bf16.mxu0 %v22134_v25  ;;  %v254_v24 = vrot.slane %v35_v22, %v23710_v41  ;;  %v247_v25 = vcombine.high %v35_v22, %v35_v22 }
  0xd6   :  { %20002 = vmatprep.subr.bf16.mxu1 %v22136_v26  ;;  %v22175_v26 = vld [vmem:[%s28769_s1 + $0x740] sm:$0xff]  }
  0xd7   :  { %v1195_v38 = vpack.c.bf16 %v254_v24, %v254_v24 }
  0xd8   :  { %19981 = vmatpush3.bf16.msra.mxu0 %v22135_v27  ;;  %v22177_v27 = vld [vmem:[%s28769_s1 + $0x7c0] sm:$0xff]  }
  0xd9   :  { %20003 = vmatpush3.bf16.msra.mxu1 %v22137_v28  ;;  %19982 = vmatprep.subr.bf16.mxu0 %v22138_v29  ;;  %v262_v28 = vcombine.high %v254_v24, %v254_v24  ;;  %v261_v29 = vrot.slane %v247_v25, %v23710_v41  ;;  %v22212_v25 = vld [vmem:[%s28769_s1 + $0x978] sm:$0xff]  }
  0xda   :  { %20004 = vmatprep.subr.bf16.mxu1 %v22140_v30  ;;  %v22176_v30 = vld [vmem:[%s28769_s1 + $0x700] sm:$0xff]  }
  0xdb   :  { %v1197_v39 = vpack.c.bf16 %v261_v29, %v261_v29 }
  0xdc   :  { %19983 = vmatpush3.bf16.msra.mxu0 %v22139_v31  ;;  %v1196_v31 = vpack.c.bf16 %v262_v28, %v262_v28  ;;  %v22214_v28 = vld [vmem:[%s28769_s1 + $0x938] sm:$0xff]  }
  0xdd   :  { %20005 = vmatpush3.bf16.msra.mxu1 %v22141_v33  ;;  %19984 = vmatprep.subr.bf16.mxu0 %v22142_v36  ;;  %v263_v33 = vcombine.high %v261_v29, %v261_v29  ;;  %v22182_v36 = vld [vmem:[%s28769_s1 + $0x8f8] sm:$0xff]  }
  0xde   :  { %20006 = vmatprep.subr.bf16.mxu1 %v22144_v37  ;;  %v22181_v37 = vld [vmem:[%s28769_s1 + $0x838] sm:$0xff]  }
  0xdf   :  { %v1198_v35 = vpack.c.bf16 %v263_v33, %v263_v33  ;;  %v22219_v33 = vld [vmem:[%s28769_s1 + $0x9f0] sm:$0xff]  }
  0xe0   :  { %19985 = vmatpush3.bf16.msra.mxu0 %v22143_v40  ;;  %v22183_v40 = vld [vmem:[%s28769_s1 + $0x8b8] sm:$0xff]  }
  0xe1   :  { %20007 = vmatpush3.bf16.msra.mxu1 %v22145_v43  ;;  %20014 = vmatprep.subr.bf16.mxu0 %v22146_v45  ;;  %v22186_v43 = vld [vmem:[%s28769_s1 + $0x8f0] sm:$0xff]  }
  0xe2   :  { %20036 = vmatprep.subr.bf16.mxu1 %v22149_v47  ;;  %v22187_v47 = vld [vmem:[%s28769_s1 + $0x8b0] sm:$0xff]  }
  0xe3   :  { %v19722_v55 = vpop.f32.mrf.mxu0  ;;  %14551 = vmatmul.mubr.bf16.vlgmr.msra.gmra.mxu0 %v1191_v49 }
  0xe4   :  { %v19744_v56 = vpop.f32.mrf.mxu1  ;;  %14591 = vmatmul.mubr.bf16.vlgmr.msra.gmra.mxu1 %v1193_v50  ;;  %20015 = vmatpush3.bf16.msra.mxu0 %v22148_v48  ;;  %v22188_v48 = vld [vmem:[%s28769_s1 + $0x868] sm:$0xff]  }
  0xe5   :  { %20037 = vmatpush3.bf16.msra.mxu1 %v22150_v51  ;;  %v19723_v59 = vpop.f32.mrf.mxu0  ;;  %20016 = vmatprep.subr.bf16.mxu0 %v22151_v52  ;;  %v22190_v51 = vld [vmem:[%s28769_s1 + $0x8e8] sm:$0xff]  }
  0xe6   :  { %v19745_v60 = vpop.f32.mrf.mxu1  ;;  %20038 = vmatprep.subr.bf16.mxu1 %v22153_v53  ;;  %v19724_v62 = vadd.f32 %v19723_v59, %v19722_v55  ;;  %14630 = vmatprep.mubr.bf16.mxu0 %v1196_v31  ;;  %v22192_v59 = vld [vmem:[%s28769_s1 + $0x860] sm:$0xff]   ;;  %v22216_v31 = vld [vmem:[%s28769_s1 + $0x9b8] sm:$0xff]  }
  0xe7   :  { %v19746_v63 = vadd.f32 %v19745_v60, %v19744_v56  ;;  %v19725_v1 = vpop.f32.mrf.mxu0  ;;  %14670 = vmatprep.mubr.bf16.mxu1 %v1198_v35  ;;  %v22191_v56 = vld [vmem:[%s28769_s1 + $0x8a8] sm:$0xff]  }
  0xe8   :  { %v19747_v3 = vpop.f32.mrf.mxu1  ;;  %20017 = vmatpush3.bf16.msra.mxu0 %v22152_v54  ;;  %v22189_v54 = vld [vmem:[%s28769_s1 + $0x828] sm:$0xff]   ;;  %v22195_v1 = vld [vmem:[%s28769_s1 + $0x8a0] sm:$0xff]  }
  0xe9   :  { %v24350_v4 = vadd.f32 %v19746_v63, %v19724_v62  ;;  %20039 = vmatpush3.bf16.msra.mxu1 %v22154_v57  ;;  %v19726_v6 = vpop.f32.mrf.mxu0  ;;  %20018 = vmatprep.subr.bf16.mxu0 %v22155_v58  ;;  %v22198_v3 = vld [vmem:[%s28769_s1 + $0x8d8] sm:$0xff]  }
  0xea   :  { %20040 = vmatprep.subr.bf16.mxu1 %v22157_v61  ;;  %v19748_v8 = vpop.f32.mrf.mxu1  ;;  %v22194_v61 = vld [vmem:[%s28769_s1 + $0x8e0] sm:$0xff]   ;;  %v22200_v6 = vld [vmem:[%s28769_s1 + $0x850] sm:$0xff]  }
  0xeb   :  { %v22201_v8 = vld [vmem:[%s28769_s1 + $0x810] sm:$0xff]  }
  0xec   :  { %20019 = vmatpush3.bf16.msra.mxu0 %v22156_v0  ;;  %v22193_v0 = vld [vmem:[%s28769_s1 + $0x820] sm:$0xff]  }
  0xed   :  { %20041 = vmatpush3.bf16.msra.mxu1 %v22158_v2  ;;  %20020 = vmatprep.subr.bf16.mxu0 %v22159_v5  ;;  %v22196_v2 = vld [vmem:[%s28769_s1 + $0x858] sm:$0xff]  }
  0xee   :  { %20042 = vmatprep.subr.bf16.mxu1 %v22161_v7  ;;  %v22199_v5 = vld [vmem:[%s28769_s1 + $0x898] sm:$0xff]   ;;  %v22202_v7 = vld [vmem:[%s28769_s1 + $0x8d0] sm:$0xff]  }
  0xf0   :  { %20021 = vmatpush3.bf16.msra.mxu0 %v22160_v9  ;;  %v22203_v9 = vld [vmem:[%s28769_s1 + $0x890] sm:$0xff]  }
  0xf1   :  { %20043 = vmatpush3.bf16.msra.mxu1 %v22162_v10  ;;  %20022 = vmatprep.subr.bf16.mxu0 %v22163_v11  ;;  %v22204_v10 = vld [vmem:[%s28769_s1 + $0x848] sm:$0xff]  }
  0xf2   :  { %20044 = vmatprep.subr.bf16.mxu1 %v22165_v12  ;;  %v22206_v11 = vld [vmem:[%s28769_s1 + $0x8c8] sm:$0xff]  }
  0xf3   :  { %v22205_v12 = vld [vmem:[%s28769_s1 + $0x808] sm:$0xff]  }
  0xf4   :  { %20023 = vmatpush3.bf16.msra.mxu0 %v22164_v13  ;;  %v36_v13 = vld [vmem:[%s28768_s0 + $0x40] sm:$0xff] }
  0xf5   :  { %20045 = vmatpush3.bf16.msra.mxu1 %v22166_v14  ;;  %20024 = vmatprep.subr.bf16.mxu0 %v22167_v15  ;;  %v22207_v14 = vld [vmem:[%s28769_s1 + $0x888] sm:$0xff]   ;;  %v271_v15 = vrot.slane %v36_v13, %v23710_v41 }
  0xf6   :  { %20046 = vmatprep.subr.bf16.mxu1 %v22169_v16  ;;  %v264_v16 = vcombine.high %v36_v13, %v36_v13 }
  0xf7   :  { %v1199_v29 = vpack.c.bf16 %v271_v15, %v271_v15 }
  0xf8   :  { %20025 = vmatpush3.bf16.msra.mxu0 %v22168_v17  ;;  %v22208_v17 = vld [vmem:[%s28769_s1 + $0x840] sm:$0xff]  }
  0xf9   :  { %20047 = vmatpush3.bf16.msra.mxu1 %v22170_v18  ;;  %20026 = vmatprep.subr.bf16.mxu0 %v22171_v19  ;;  %v22210_v18 = vld [vmem:[%s28769_s1 + $0x8c0] sm:$0xff]   ;;  %v279_v19 = vcombine.high %v271_v15, %v271_v15 }
  0xfa   :  { %20048 = vmatprep.subr.bf16.mxu1 %v22173_v20  ;;  %v278_v20 = vrot.slane %v264_v16, %v23710_v41  ;;  %v22245_v16 = vld [vmem:[%s28769_s1 + $0xa78] sm:$0xff]  }
  0xfb   :  { %v1200_v22 = vpack.c.bf16 %v279_v19, %v279_v19  ;;  %v22248_v19 = vld [vmem:[%s28769_s1 + $0xaf8] sm:$0xff]  }
  0xfc   :  { %20027 = vmatpush3.bf16.msra.mxu0 %v22172_v21  ;;  %v22209_v21 = vld [vmem:[%s28769_s1 + $0x800] sm:$0xff]   ;;  %v280_v24 = vcombine.high %v278_v20, %v278_v20 }
  0xfd   :  { %20049 = vmatpush3.bf16.msra.mxu1 %v22174_v23  ;;  %20028 = vmatprep.subr.bf16.mxu0 %v22175_v26  ;;  %v22211_v23 = vld [vmem:[%s28769_s1 + $0x880] sm:$0xff]  }
  0xfe   :  { %20050 = vmatprep.subr.bf16.mxu1 %v22177_v27  ;;  %v1202_v26 = vpack.c.bf16 %v280_v24, %v280_v24  ;;  %v22215_v27 = vld [vmem:[%s28769_s1 + $0x9f8] sm:$0xff]   ;;  %v22252_v24 = vld [vmem:[%s28769_s1 + $0xaf0] sm:$0xff]  }
 0x100   :  { %20029 = vmatpush3.bf16.msra.mxu0 %v22176_v30  ;;  %v1201_v30 = vpack.c.bf16 %v278_v20, %v278_v20 }
 0x101   :  { %20051 = vmatpush3.bf16.msra.mxu1 %v22178_v32  ;;  %20058 = vmatprep.subr.bf16.mxu0 %v22179_v34  ;;  %v22217_v32 = vld [vmem:[%s28769_s1 + $0x970] sm:$0xff]  }
 0x102   :  { %20080 = vmatprep.subr.bf16.mxu1 %v22182_v36  ;;  %v22218_v34 = vld [vmem:[%s28769_s1 + $0x930] sm:$0xff]  }
 0x103   :  { %v19766_v45 = vpop.f32.mrf.mxu0  ;;  %14631 = vmatmul.mubr.bf16.vlgmr.msra.gmra.mxu0 %v1195_v38  ;;  %v22221_v38 = vld [vmem:[%s28769_s1 + $0x968] sm:$0xff]  }
 0x104   :  { %v19788_v46 = vpop.f32.mrf.mxu1  ;;  %14671 = vmatmul.mubr.bf16.vlgmr.msra.gmra.mxu1 %v1197_v39  ;;  %20059 = vmatpush3.bf16.msra.mxu0 %v22181_v37  ;;  %v22220_v37 = vld [vmem:[%s28769_s1 + $0x9b0] sm:$0xff]  }
 0x105   :  { %20081 = vmatpush3.bf16.msra.mxu1 %v22183_v40  ;;  %v19767_v49 = vpop.f32.mrf.mxu0  ;;  %20060 = vmatprep.subr.bf16.mxu0 %v22184_v42  ;;  %v22223_v42 = vld [vmem:[%s28769_s1 + $0x9e8] sm:$0xff]  }
 0x106   :  { %v19789_v50 = vpop.f32.mrf.mxu1  ;;  %20082 = vmatprep.subr.bf16.mxu1 %v22186_v43  ;;  %v19768_v52 = vadd.f32 %v19767_v49, %v19766_v45  ;;  %14710 = vmatprep.mubr.bf16.mxu0 %v1200_v22  ;;  %v22222_v45 = vld [vmem:[%s28769_s1 + $0x928] sm:$0xff]   ;;  %v22249_v22 = vld [vmem:[%s28769_s1 + $0xab8] sm:$0xff]  }
 0x107   :  { %v19790_v53 = vadd.f32 %v19789_v50, %v19788_v46  ;;  %v19769_v55 = vpop.f32.mrf.mxu0  ;;  %14750 = vmatprep.mubr.bf16.mxu1 %v1202_v26  ;;  %v22225_v50 = vld [vmem:[%s28769_s1 + $0x960] sm:$0xff]  }
 0x108   :  { %v19791_v57 = vpop.f32.mrf.mxu1  ;;  %v14153_v58 = vadd.f32 %v19768_v52, %v24350_v4  ;;  %20061 = vmatpush3.bf16.msra.mxu0 %v22185_v44  ;;  %v22197_v4 = vld [vmem:[%s28769_s1 + $0x818] sm:$0xff]   ;;  %v22227_v52 = vld [vmem:[%s28769_s1 + $0x9e0] sm:$0xff]  }
 0x109   :  { %20083 = vmatpush3.bf16.msra.mxu1 %v22187_v47  ;;  %v19770_v60 = vpop.f32.mrf.mxu0  ;;  %20062 = vmatprep.subr.bf16.mxu0 %v22188_v48  ;;  %v22224_v47 = vld [vmem:[%s28769_s1 + $0x9a8] sm:$0xff]   ;;  %v22226_v55 = vld [vmem:[%s28769_s1 + $0x920] sm:$0xff]   ;;  %v22229_v57 = vld [vmem:[%s28769_s1 + $0x958] sm:$0xff]  }
 0x10a   :  { %20084 = vmatprep.subr.bf16.mxu1 %v22190_v51  ;;  %v19792_v62 = vpop.f32.mrf.mxu1  ;;  %v24460_v63 = vadd.f32 %v19790_v53, %v14153_v58  ;;  %v22231_v58 = vld [vmem:[%s28769_s1 + $0x9d8] sm:$0xff]  }
 0x10b   :  { %v22232_v60 = vld [vmem:[%s28769_s1 + $0x998] sm:$0xff]   ;;  %v22235_v62 = vld [vmem:[%s28769_s1 + $0x9d0] sm:$0xff]  }
 0x10c   :  { %20063 = vmatpush3.bf16.msra.mxu0 %v22189_v54 }
 0x10d   :  { %20085 = vmatpush3.bf16.msra.mxu1 %v22191_v56  ;;  %20064 = vmatprep.subr.bf16.mxu0 %v22192_v59  ;;  %v22228_v56 = vld [vmem:[%s28769_s1 + $0x9a0] sm:$0xff]   ;;  %v22230_v59 = vld [vmem:[%s28769_s1 + $0x918] sm:$0xff]  }
 0x10e   :  { %20086 = vmatprep.subr.bf16.mxu1 %v22194_v61  ;;  %v22233_v61 = vld [vmem:[%s28769_s1 + $0x950] sm:$0xff]  }
 0x110   :  { %20065 = vmatpush3.bf16.msra.mxu0 %v22193_v0  ;;  %v22236_v0 = vld [vmem:[%s28769_s1 + $0x990] sm:$0xff]  }
 0x111   :  { %20087 = vmatpush3.bf16.msra.mxu1 %v22195_v1  ;;  %20066 = vmatprep.subr.bf16.mxu0 %v22196_v2  ;;  %v22237_v1 = vld [vmem:[%s28769_s1 + $0x948] sm:$0xff]  }
 0x112   :  { %20088 = vmatprep.subr.bf16.mxu1 %v22198_v3  ;;  %v22239_v2 = vld [vmem:[%s28769_s1 + $0x9c8] sm:$0xff]  }
 0x113   :  { %v22238_v3 = vld [vmem:[%s28769_s1 + $0x908] sm:$0xff]  }
 0x114   :  { %20067 = vmatpush3.bf16.msra.mxu0 %v22197_v4  ;;  %v22240_v4 = vld [vmem:[%s28769_s1 + $0x988] sm:$0xff]  }
 0x115   :  { %20089 = vmatpush3.bf16.msra.mxu1 %v22199_v5  ;;  %20068 = vmatprep.subr.bf16.mxu0 %v22200_v6  ;;  %v37_v5 = vld [vmem:[%s28768_s0 + $0x48] sm:$0xff]  ;;  %v22241_v6 = vld [vmem:[%s28769_s1 + $0x940] sm:$0xff]  }
 0x116   :  { %20090 = vmatprep.subr.bf16.mxu1 %v22202_v7  ;;  %v288_v7 = vrot.slane %v37_v5, %v23710_v41 }
 0x118   :  { %20069 = vmatpush3.bf16.msra.mxu0 %v22201_v8  ;;  %v281_v8 = vcombine.high %v37_v5, %v37_v5  ;;  %v1203_v20 = vpack.c.bf16 %v288_v7, %v288_v7  ;;  %v22277_v5 = vld [vmem:[%s28769_s1 + $0xa80] sm:$0xff]  }
 0x119   :  { %20091 = vmatpush3.bf16.msra.mxu1 %v22203_v9  ;;  %20070 = vmatprep.subr.bf16.mxu0 %v22204_v10  ;;  %v22243_v9 = vld [vmem:[%s28769_s1 + $0x9c0] sm:$0xff]   ;;  %v296_v10 = vcombine.high %v288_v7, %v288_v7  ;;  %v22278_v7 = vld [vmem:[%s28769_s1 + $0xb78] sm:$0xff]  }
 0x11a   :  { %20092 = vmatprep.subr.bf16.mxu1 %v22206_v11  ;;  %v295_v11 = vrot.slane %v281_v8, %v23710_v41 }
 0x11b   :  { %v1204_v13 = vpack.c.bf16 %v296_v10, %v296_v10  ;;  %v22281_v10 = vld [vmem:[%s28769_s1 + $0xbf8] sm:$0xff]  }
 0x11c   :  { %20071 = vmatpush3.bf16.msra.mxu0 %v22205_v12  ;;  %v22242_v12 = vld [vmem:[%s28769_s1 + $0x900] sm:$0xff]   ;;  %v297_v15 = vcombine.high %v295_v11, %v295_v11 }
 0x11d   :  { %20093 = vmatpush3.bf16.msra.mxu1 %v22207_v14  ;;  %20072 = vmatprep.subr.bf16.mxu0 %v22208_v17  ;;  %v22244_v14 = vld [vmem:[%s28769_s1 + $0x980] sm:$0xff]  }
 0x11e   :  { %20094 = vmatprep.subr.bf16.mxu1 %v22210_v18  ;;  %v1206_v17 = vpack.c.bf16 %v297_v15, %v297_v15  ;;  %v22247_v18 = vld [vmem:[%s28769_s1 + $0xa38] sm:$0xff]   ;;  %v22285_v15 = vld [vmem:[%s28769_s1 + $0xbf0] sm:$0xff]  }
 0x120   :  { %20073 = vmatpush3.bf16.msra.mxu0 %v22209_v21  ;;  %v1205_v21 = vpack.c.bf16 %v295_v11, %v295_v11 }
 0x121   :  { %20095 = vmatpush3.bf16.msra.mxu1 %v22211_v23  ;;  %20102 = vmatprep.subr.bf16.mxu0 %v22212_v25  ;;  %v22250_v23 = vld [vmem:[%s28769_s1 + $0xa70] sm:$0xff]  }
 0x122   :  { %20124 = vmatprep.subr.bf16.mxu1 %v22215_v27  ;;  %v22251_v25 = vld [vmem:[%s28769_s1 + $0xa30] sm:$0xff]  }
 0x123   :  { %v19810_v35 = vpop.f32.mrf.mxu0  ;;  %14711 = vmatmul.mubr.bf16.vlgmr.msra.gmra.mxu0 %v1199_v29  ;;  %v22254_v29 = vld [vmem:[%s28769_s1 + $0xa68] sm:$0xff]  }
 0x124   :  { %v19832_v36 = vpop.f32.mrf.mxu1  ;;  %14751 = vmatmul.mubr.bf16.vlgmr.msra.gmra.mxu1 %v1201_v30  ;;  %20103 = vmatpush3.bf16.msra.mxu0 %v22214_v28  ;;  %v22253_v28 = vld [vmem:[%s28769_s1 + $0xab0] sm:$0xff]  }
 0x125   :  { %20125 = vmatpush3.bf16.msra.mxu1 %v22216_v31  ;;  %v19811_v39 = vpop.f32.mrf.mxu0  ;;  %20104 = vmatprep.subr.bf16.mxu0 %v22217_v32  ;;  %v22256_v32 = vld [vmem:[%s28769_s1 + $0xae8] sm:$0xff]  }
 0x126   :  { %v19833_v40 = vpop.f32.mrf.mxu1  ;;  %20126 = vmatprep.subr.bf16.mxu1 %v22219_v33  ;;  %v19812_v43 = vadd.f32 %v19811_v39, %v19810_v35  ;;  %14790 = vmatprep.mubr.bf16.mxu0 %v1204_v13  ;;  %v22255_v35 = vld [vmem:[%s28769_s1 + $0xa28] sm:$0xff]   ;;  %v22282_v13 = vld [vmem:[%s28769_s1 + $0xbb8] sm:$0xff]  }
 0x127   :  { %v19834_v44 = vadd.f32 %v19833_v40, %v19832_v36  ;;  %v19813_v46 = vpop.f32.mrf.mxu0  ;;  %14830 = vmatprep.mubr.bf16.mxu1 %v1206_v17  ;;  %v22258_v40 = vld [vmem:[%s28769_s1 + $0xa60] sm:$0xff]  }
 0x128   :  { %v19835_v48 = vpop.f32.mrf.mxu1  ;;  %v14233_v49 = vadd.f32 %v19812_v43, %v24460_v63  ;;  %20105 = vmatpush3.bf16.msra.mxu0 %v22218_v34  ;;  %v22234_v63 = vld [vmem:[%s28769_s1 + $0x910] sm:$0xff]   ;;  %v22260_v43 = vld [vmem:[%s28769_s1 + $0xae0] sm:$0xff]  }
 0x129   :  { %20127 = vmatpush3.bf16.msra.mxu1 %v22220_v37  ;;  %v19814_v51 = vpop.f32.mrf.mxu0  ;;  %20106 = vmatprep.subr.bf16.mxu0 %v22221_v38  ;;  %v22257_v37 = vld [vmem:[%s28769_s1 + $0xaa8] sm:$0xff]   ;;  %v22259_v46 = vld [vmem:[%s28769_s1 + $0xa20] sm:$0xff]   ;;  %v22262_v48 = vld [vmem:[%s28769_s1 + $0xa58] sm:$0xff]  }
 0x12a   :  { %20128 = vmatprep.subr.bf16.mxu1 %v22223_v42  ;;  %v19836_v53 = vpop.f32.mrf.mxu1  ;;  %v24564_v54 = vadd.f32 %v19834_v44, %v14233_v49  ;;  %v22264_v49 = vld [vmem:[%s28769_s1 + $0xad8] sm:$0xff]  }
 0x12b   :  { %v22265_v51 = vld [vmem:[%s28769_s1 + $0xa98] sm:$0xff]   ;;  %v22268_v53 = vld [vmem:[%s28769_s1 + $0xad0] sm:$0xff]  }
 0x12c   :  { %20107 = vmatpush3.bf16.msra.mxu0 %v22222_v45 }
 0x12d   :  { %20129 = vmatpush3.bf16.msra.mxu1 %v22224_v47  ;;  %20108 = vmatprep.subr.bf16.mxu0 %v22225_v50  ;;  %v22261_v47 = vld [vmem:[%s28769_s1 + $0xaa0] sm:$0xff]   ;;  %v22263_v50 = vld [vmem:[%s28769_s1 + $0xa18] sm:$0xff]  }
 0x12e   :  { %20130 = vmatprep.subr.bf16.mxu1 %v22227_v52  ;;  %v22266_v52 = vld [vmem:[%s28769_s1 + $0xa50] sm:$0xff]  }
 0x130   :  { %20109 = vmatpush3.bf16.msra.mxu0 %v22226_v55  ;;  %v22269_v55 = vld [vmem:[%s28769_s1 + $0xa90] sm:$0xff]  }
 0x131   :  { %20131 = vmatpush3.bf16.msra.mxu1 %v22228_v56  ;;  %20110 = vmatprep.subr.bf16.mxu0 %v22229_v57  ;;  %v22270_v56 = vld [vmem:[%s28769_s1 + $0xa48] sm:$0xff]  }
 0x132   :  { %20132 = vmatprep.subr.bf16.mxu1 %v22231_v58  ;;  %v22272_v57 = vld [vmem:[%s28769_s1 + $0xac8] sm:$0xff]  }
 0x133   :  { %v22271_v58 = vld [vmem:[%s28769_s1 + $0xa08] sm:$0xff]  }
 0x134   :  { %20111 = vmatpush3.bf16.msra.mxu0 %v22230_v59  ;;  %v22273_v59 = vld [vmem:[%s28769_s1 + $0xa88] sm:$0xff]  }
 0x135   :  { %20133 = vmatpush3.bf16.msra.mxu1 %v22232_v60  ;;  %20112 = vmatprep.subr.bf16.mxu0 %v22233_v61  ;;  %v38_v60 = vld [vmem:[%s28768_s0 + $0x50] sm:$0xff]  ;;  %v22274_v61 = vld [vmem:[%s28769_s1 + $0xa40] sm:$0xff]  }
 0x136   :  { %20134 = vmatprep.subr.bf16.mxu1 %v22235_v62  ;;  %v305_v62 = vrot.slane %v38_v60, %v23710_v41 }
 0x138   :  { %20113 = vmatpush3.bf16.msra.mxu0 %v22234_v63  ;;  %v298_v63 = vcombine.high %v38_v60, %v38_v60  ;;  %v1207_v11 = vpack.c.bf16 %v305_v62, %v305_v62  ;;  %v22310_v60 = vld [vmem:[%s28769_s1 + $0xb80] sm:$0xff]  }
 0x139   :  { %20135 = vmatpush3.bf16.msra.mxu1 %v22236_v0  ;;  %20114 = vmatprep.subr.bf16.mxu0 %v22237_v1  ;;  %v22276_v0 = vld [vmem:[%s28769_s1 + $0xac0] sm:$0xff]   ;;  %v313_v1 = vcombine.high %v305_v62, %v305_v62  ;;  %v22311_v62 = vld [vmem:[%s28769_s1 + $0xc78] sm:$0xff]  }
 0x13a   :  { %20136 = vmatprep.subr.bf16.mxu1 %v22239_v2  ;;  %v312_v2 = vrot.slane %v298_v63, %v23710_v41 }
 0x13c   :  { %20115 = vmatpush3.bf16.msra.mxu0 %v22238_v3  ;;  %v22275_v3 = vld [vmem:[%s28769_s1 + $0xa00] sm:$0xff]  }
 0x13d   :  { %20137 = vmatpush3.bf16.msra.mxu1 %v22240_v4  ;;  %20116 = vmatprep.subr.bf16.mxu0 %v22241_v6  ;;  %v1208_v4 = vpack.c.bf16 %v313_v1, %v313_v1  ;;  %v314_v6 = vcombine.high %v312_v2, %v312_v2  ;;  %v22314_v1 = vld [vmem:[%s28769_s1 + $0xcf8] sm:$0xff]  }
 0x13e   :  { %20138 = vmatprep.subr.bf16.mxu1 %v22243_v9  ;;  %v22280_v9 = vld [vmem:[%s28769_s1 + $0xb38] sm:$0xff]  }
 0x13f   :  { %v1210_v8 = vpack.c.bf16 %v314_v6, %v314_v6  ;;  %v22318_v6 = vld [vmem:[%s28769_s1 + $0xcf0] sm:$0xff]  }
 0x140   :  { %20117 = vmatpush3.bf16.msra.mxu0 %v22242_v12  ;;  %v1209_v12 = vpack.c.bf16 %v312_v2, %v312_v2 }
 0x141   :  { %20139 = vmatpush3.bf16.msra.mxu1 %v22244_v14  ;;  %20146 = vmatprep.subr.bf16.mxu0 %v22245_v16  ;;  %v22283_v14 = vld [vmem:[%s28769_s1 + $0xb70] sm:$0xff]  }
 0x142   :  { %20168 = vmatprep.subr.bf16.mxu1 %v22248_v19  ;;  %v22284_v16 = vld [vmem:[%s28769_s1 + $0xb30] sm:$0xff]  }
 0x143   :  { %v19854_v26 = vpop.f32.mrf.mxu0  ;;  %14791 = vmatmul.mubr.bf16.vlgmr.msra.gmra.mxu0 %v1203_v20  ;;  %v22286_v19 = vld [vmem:[%s28769_s1 + $0xbb0] sm:$0xff]   ;;  %v22287_v20 = vld [vmem:[%s28769_s1 + $0xb68] sm:$0xff]  }
 0x144   :  { %v19876_v27 = vpop.f32.mrf.mxu1  ;;  %14831 = vmatmul.mubr.bf16.vlgmr.msra.gmra.mxu1 %v1205_v21  ;;  %20147 = vmatpush3.bf16.msra.mxu0 %v22247_v18 }
 0x145   :  { %20169 = vmatpush3.bf16.msra.mxu1 %v22249_v22  ;;  %v19855_v30 = vpop.f32.mrf.mxu0  ;;  %20148 = vmatprep.subr.bf16.mxu0 %v22250_v23  ;;  %v22289_v23 = vld [vmem:[%s28769_s1 + $0xbe8] sm:$0xff]  }
 0x146   :  { %v19877_v31 = vpop.f32.mrf.mxu1  ;;  %20170 = vmatprep.subr.bf16.mxu1 %v22252_v24  ;;  %v19856_v33 = vadd.f32 %v19855_v30, %v19854_v26  ;;  %14870 = vmatprep.mubr.bf16.mxu0 %v1208_v4  ;;  %v22288_v26 = vld [vmem:[%s28769_s1 + $0xb28] sm:$0xff]   ;;  %v22315_v4 = vld [vmem:[%s28769_s1 + $0xcb8] sm:$0xff]  }
 0x147   :  { %v19878_v34 = vadd.f32 %v19877_v31, %v19876_v27  ;;  %v19857_v36 = vpop.f32.mrf.mxu0  ;;  %14910 = vmatprep.mubr.bf16.mxu1 %v1210_v8  ;;  %v22291_v31 = vld [vmem:[%s28769_s1 + $0xb60] sm:$0xff]  }
 0x148   :  { %v19879_v38 = vpop.f32.mrf.mxu1  ;;  %v14313_v39 = vadd.f32 %v19856_v33, %v24564_v54  ;;  %20149 = vmatpush3.bf16.msra.mxu0 %v22251_v25  ;;  %v22267_v54 = vld [vmem:[%s28769_s1 + $0xa10] sm:$0xff]   ;;  %v22293_v33 = vld [vmem:[%s28769_s1 + $0xbe0] sm:$0xff]  }
 0x149   :  { %20171 = vmatpush3.bf16.msra.mxu1 %v22253_v28  ;;  %v19858_v42 = vpop.f32.mrf.mxu0  ;;  %20150 = vmatprep.subr.bf16.mxu0 %v22254_v29  ;;  %v22290_v28 = vld [vmem:[%s28769_s1 + $0xba8] sm:$0xff]   ;;  %v22292_v36 = vld [vmem:[%s28769_s1 + $0xb20] sm:$0xff]   ;;  %v22295_v38 = vld [vmem:[%s28769_s1 + $0xb58] sm:$0xff]  }
 0x14a   :  { %20172 = vmatprep.subr.bf16.mxu1 %v22256_v32  ;;  %v19880_v44 = vpop.f32.mrf.mxu1  ;;  %v24668_v45 = vadd.f32 %v19878_v34, %v14313_v39  ;;  %v22297_v39 = vld [vmem:[%s28769_s1 + $0xbd8] sm:$0xff]  }
 0x14b   :  { %v22298_v42 = vld [vmem:[%s28769_s1 + $0xb98] sm:$0xff]   ;;  %v22301_v44 = vld [vmem:[%s28769_s1 + $0xbd0] sm:$0xff]  }
 0x14c   :  { %20151 = vmatpush3.bf16.msra.mxu0 %v22255_v35 }
 0x14d   :  { %20173 = vmatpush3.bf16.msra.mxu1 %v22257_v37  ;;  %20152 = vmatprep.subr.bf16.mxu0 %v22258_v40  ;;  %v22294_v37 = vld [vmem:[%s28769_s1 + $0xba0] sm:$0xff]   ;;  %v22296_v40 = vld [vmem:[%s28769_s1 + $0xb18] sm:$0xff]  }
 0x14e   :  { %20174 = vmatprep.subr.bf16.mxu1 %v22260_v43  ;;  %v22299_v43 = vld [vmem:[%s28769_s1 + $0xb50] sm:$0xff]  }
 0x150   :  { %20153 = vmatpush3.bf16.msra.mxu0 %v22259_v46  ;;  %v22302_v46 = vld [vmem:[%s28769_s1 + $0xb90] sm:$0xff]  }
 0x151   :  { %20175 = vmatpush3.bf16.msra.mxu1 %v22261_v47  ;;  %20154 = vmatprep.subr.bf16.mxu0 %v22262_v48  ;;  %v22303_v47 = vld [vmem:[%s28769_s1 + $0xb48] sm:$0xff]  }
 0x152   :  { %20176 = vmatprep.subr.bf16.mxu1 %v22264_v49  ;;  %v22305_v48 = vld [vmem:[%s28769_s1 + $0xbc8] sm:$0xff]  }
 0x153   :  { %v22304_v49 = vld [vmem:[%s28769_s1 + $0xb08] sm:$0xff]  }
 0x154   :  { %20155 = vmatpush3.bf16.msra.mxu0 %v22263_v50  ;;  %v22306_v50 = vld [vmem:[%s28769_s1 + $0xb88] sm:$0xff]  }
 0x155   :  { %20177 = vmatpush3.bf16.msra.mxu1 %v22265_v51  ;;  %20156 = vmatprep.subr.bf16.mxu0 %v22266_v52  ;;  %v39_v51 = vld [vmem:[%s28768_s0 + $0x58] sm:$0xff]  ;;  %v22307_v52 = vld [vmem:[%s28769_s1 + $0xb40] sm:$0xff]  }
 0x156   :  { %20178 = vmatprep.subr.bf16.mxu1 %v22268_v53  ;;  %v322_v53 = vrot.slane %v39_v51, %v23710_v41 }
 0x158   :  { %20157 = vmatpush3.bf16.msra.mxu0 %v22267_v54  ;;  %v315_v54 = vcombine.high %v39_v51, %v39_v51  ;;  %v1211_v2 = vpack.c.bf16 %v322_v53, %v322_v53 }
 0x159   :  { %20179 = vmatpush3.bf16.msra.mxu1 %v22269_v55  ;;  %20158 = vmatprep.subr.bf16.mxu0 %v22270_v56  ;;  %v22309_v55 = vld [vmem:[%s28769_s1 + $0xbc0] sm:$0xff]   ;;  %v330_v56 = vcombine.high %v322_v53, %v322_v53 }
 0x15a   :  { %20180 = vmatprep.subr.bf16.mxu1 %v22272_v57  ;;  %v329_v57 = vrot.slane %v315_v54, %v23710_v41  ;;  %v22346_v54 = vld [vmem:[%s28769_s1 + $0xd38] sm:$0xff]  }
 0x15c   :  { %20159 = vmatpush3.bf16.msra.mxu0 %v22271_v58  ;;  %v22308_v58 = vld [vmem:[%s28769_s1 + $0xb00] sm:$0xff]  }
 0x15d   :  { %20181 = vmatpush3.bf16.msra.mxu1 %v22273_v59  ;;  %20160 = vmatprep.subr.bf16.mxu0 %v22274_v61  ;;  %v1212_v59 = vpack.c.bf16 %v330_v56, %v330_v56  ;;  %v331_v61 = vcombine.high %v329_v57, %v329_v57 }
 0x15e   :  { %20182 = vmatprep.subr.bf16.mxu1 %v22276_v0  ;;  %v22313_v0 = vld [vmem:[%s28769_s1 + $0xc38] sm:$0xff]  }
 0x15f   :  { %v1214_v63 = vpack.c.bf16 %v331_v61, %v331_v61  ;;  %v22351_v61 = vld [vmem:[%s28769_s1 + $0xdf0] sm:$0xff]  }
 0x160   :  { %20161 = vmatpush3.bf16.msra.mxu0 %v22275_v3  ;;  %v1213_v3 = vpack.c.bf16 %v329_v57, %v329_v57 }
 0x161   :  { %20183 = vmatpush3.bf16.msra.mxu1 %v22277_v5  ;;  %20190 = vmatprep.subr.bf16.mxu0 %v22278_v7  ;;  %v22316_v5 = vld [vmem:[%s28769_s1 + $0xc70] sm:$0xff]  }
 0x162   :  { %20212 = vmatprep.subr.bf16.mxu1 %v22281_v10  ;;  %v22317_v7 = vld [vmem:[%s28769_s1 + $0xc30] sm:$0xff]  }
 0x163   :  { %v19898_v17 = vpop.f32.mrf.mxu0  ;;  %14871 = vmatmul.mubr.bf16.vlgmr.msra.gmra.mxu0 %v1207_v11  ;;  %v22319_v10 = vld [vmem:[%s28769_s1 + $0xcb0] sm:$0xff]   ;;  %v22320_v11 = vld [vmem:[%s28769_s1 + $0xc68] sm:$0xff]  }
 0x164   :  { %v19920_v18 = vpop.f32.mrf.mxu1  ;;  %14911 = vmatmul.mubr.bf16.vlgmr.msra.gmra.mxu1 %v1209_v12  ;;  %20191 = vmatpush3.bf16.msra.mxu0 %v22280_v9 }
 0x165   :  { %20213 = vmatpush3.bf16.msra.mxu1 %v22282_v13  ;;  %v19899_v21 = vpop.f32.mrf.mxu0  ;;  %20192 = vmatprep.subr.bf16.mxu0 %v22283_v14  ;;  %v22322_v14 = vld [vmem:[%s28769_s1 + $0xce8] sm:$0xff]  }
 0x166   :  { %v19921_v22 = vpop.f32.mrf.mxu1  ;;  %20214 = vmatprep.subr.bf16.mxu1 %v22285_v15  ;;  %v19900_v24 = vadd.f32 %v19899_v21, %v19898_v17  ;;  %14950 = vmatprep.mubr.bf16.mxu0 %v1212_v59  ;;  %v22321_v17 = vld [vmem:[%s28769_s1 + $0xc28] sm:$0xff]   ;;  %v22348_v59 = vld [vmem:[%s28769_s1 + $0xdb8] sm:$0xff]  }
 0x167   :  { %v19922_v25 = vadd.f32 %v19921_v22, %v19920_v18  ;;  %v19901_v27 = vpop.f32.mrf.mxu0  ;;  %14990 = vmatprep.mubr.bf16.mxu1 %v1214_v63  ;;  %v22324_v22 = vld [vmem:[%s28769_s1 + $0xc60] sm:$0xff]  }
 0x168   :  { %v19923_v29 = vpop.f32.mrf.mxu1  ;;  %v14393_v30 = vadd.f32 %v19900_v24, %v24668_v45  ;;  %20193 = vmatpush3.bf16.msra.mxu0 %v22284_v16  ;;  %v22300_v45 = vld [vmem:[%s28769_s1 + $0xb10] sm:$0xff]   ;;  %v22326_v24 = vld [vmem:[%s28769_s1 + $0xce0] sm:$0xff]  }
 0x169   :  { %20215 = vmatpush3.bf16.msra.mxu1 %v22286_v19  ;;  %v19902_v32 = vpop.f32.mrf.mxu0  ;;  %20194 = vmatprep.subr.bf16.mxu0 %v22287_v20  ;;  %v22323_v19 = vld [vmem:[%s28769_s1 + $0xca8] sm:$0xff]   ;;  %v22325_v27 = vld [vmem:[%s28769_s1 + $0xc20] sm:$0xff]   ;;  %v22328_v29 = vld [vmem:[%s28769_s1 + $0xc58] sm:$0xff]  }
 0x16a   :  { %20216 = vmatprep.subr.bf16.mxu1 %v22289_v23  ;;  %v19924_v34 = vpop.f32.mrf.mxu1  ;;  %v24772_v35 = vadd.f32 %v19922_v25, %v14393_v30  ;;  %v22330_v30 = vld [vmem:[%s28769_s1 + $0xcd8] sm:$0xff]  }
 0x16b   :  { %v22331_v32 = vld [vmem:[%s28769_s1 + $0xc98] sm:$0xff]   ;;  %v22334_v34 = vld [vmem:[%s28769_s1 + $0xcd0] sm:$0xff]  }
 0x16c   :  { %20195 = vmatpush3.bf16.msra.mxu0 %v22288_v26 }
 0x16d   :  { %20217 = vmatpush3.bf16.msra.mxu1 %v22290_v28  ;;  %20196 = vmatprep.subr.bf16.mxu0 %v22291_v31  ;;  %v22327_v28 = vld [vmem:[%s28769_s1 + $0xca0] sm:$0xff]   ;;  %v22329_v31 = vld [vmem:[%s28769_s1 + $0xc18] sm:$0xff]  }
 0x16e   :  { %20218 = vmatprep.subr.bf16.mxu1 %v22293_v33  ;;  %v22332_v33 = vld [vmem:[%s28769_s1 + $0xc50] sm:$0xff]  }
 0x170   :  { %20197 = vmatpush3.bf16.msra.mxu0 %v22292_v36  ;;  %v22335_v36 = vld [vmem:[%s28769_s1 + $0xc90] sm:$0xff]  }
 0x171   :  { %20219 = vmatpush3.bf16.msra.mxu1 %v22294_v37  ;;  %20198 = vmatprep.subr.bf16.mxu0 %v22295_v38  ;;  %v22336_v37 = vld [vmem:[%s28769_s1 + $0xc48] sm:$0xff]  }
 0x172   :  { %20220 = vmatprep.subr.bf16.mxu1 %v22297_v39  ;;  %v22338_v38 = vld [vmem:[%s28769_s1 + $0xcc8] sm:$0xff]  }
 0x173   :  { %v22337_v39 = vld [vmem:[%s28769_s1 + $0xc08] sm:$0xff]  }
 0x174   :  { %20199 = vmatpush3.bf16.msra.mxu0 %v22296_v40  ;;  %v22339_v40 = vld [vmem:[%s28769_s1 + $0xc88] sm:$0xff]  }
 0x175   :  { %20221 = vmatpush3.bf16.msra.mxu1 %v22298_v42  ;;  %20200 = vmatprep.subr.bf16.mxu0 %v22299_v43  ;;  %v22340_v42 = vld [vmem:[%s28769_s1 + $0xc40] sm:$0xff]  }
 0x176   :  { %20222 = vmatprep.subr.bf16.mxu1 %v22301_v44  ;;  %v40_v43 = vld [vmem:[%s28768_s0 + $0x60] sm:$0xff] }
 0x177   :  { %v22342_v44 = vld [vmem:[%s28769_s1 + $0xcc0] sm:$0xff]  }
 0x178   :  { %20201 = vmatpush3.bf16.msra.mxu0 %v22300_v45  ;;  %v339_v45 = vrot.slane %v40_v43, %v23710_v41 }
 0x179   :  { %20223 = vmatpush3.bf16.msra.mxu1 %v22302_v46  ;;  %20202 = vmatprep.subr.bf16.mxu0 %v22303_v47  ;;  %v332_v46 = vcombine.high %v40_v43, %v40_v43  ;;  %v22341_v47 = vld [vmem:[%s28769_s1 + $0xc00] sm:$0xff]   ;;  %v22377_v43 = vld [vmem:[%s28769_s1 + $0xe78] sm:$0xff]  }
 0x17a   :  { %20224 = vmatprep.subr.bf16.mxu1 %v22305_v48  ;;  %v347_v48 = vcombine.high %v339_v45, %v339_v45  ;;  %v1215_v56 = vpack.c.bf16 %v339_v45, %v339_v45  ;;  %v22379_v45 = vld [vmem:[%s28769_s1 + $0xe38] sm:$0xff]  }
 0x17c   :  { %20203 = vmatpush3.bf16.msra.mxu0 %v22304_v49  ;;  %v346_v49 = vrot.slane %v332_v46, %v23710_v41  ;;  %v1216_v51 = vpack.c.bf16 %v347_v48, %v347_v48  ;;  %v22380_v46 = vld [vmem:[%s28769_s1 + $0xef8] sm:$0xff]  }
 0x17d   :  { %20225 = vmatpush3.bf16.msra.mxu1 %v22306_v50  ;;  %20204 = vmatprep.subr.bf16.mxu0 %v22307_v52  ;;  %v22343_v50 = vld [vmem:[%s28769_s1 + $0xc80] sm:$0xff]   ;;  %v22344_v52 = vld [vmem:[%s28769_s1 + $0xd78] sm:$0xff]  }
 0x17e   :  { %20226 = vmatprep.subr.bf16.mxu1 %v22309_v55  ;;  %v348_v53 = vcombine.high %v346_v49, %v346_v49  ;;  %v22347_v55 = vld [vmem:[%s28769_s1 + $0xdf8] sm:$0xff]  }
 0x180   :  { %20205 = vmatpush3.bf16.msra.mxu0 %v22308_v58  ;;  %v1218_v57 = vpack.c.bf16 %v348_v53, %v348_v53  ;;  %v1217_v58 = vpack.c.bf16 %v346_v49, %v346_v49  ;;  %v22383_v53 = vld [vmem:[%s28769_s1 + $0xe30] sm:$0xff]  }
 0x181   :  { %20227 = vmatpush3.bf16.msra.mxu1 %v22310_v60  ;;  %20234 = vmatprep.subr.bf16.mxu0 %v22311_v62  ;;  %v22349_v60 = vld [vmem:[%s28769_s1 + $0xd70] sm:$0xff]  }
 0x182   :  { %20256 = vmatprep.subr.bf16.mxu1 %v22314_v1  ;;  %v22350_v62 = vld [vmem:[%s28769_s1 + $0xd30] sm:$0xff]  }
 0x183   :  { %v19942_v8 = vpop.f32.mrf.mxu0  ;;  %14951 = vmatmul.mubr.bf16.vlgmr.msra.gmra.mxu0 %v1211_v2  ;;  %v22352_v1 = vld [vmem:[%s28769_s1 + $0xdb0] sm:$0xff]   ;;  %v22353_v2 = vld [vmem:[%s28769_s1 + $0xd68] sm:$0xff]  }
 0x184   :  { %v19964_v9 = vpop.f32.mrf.mxu1  ;;  %14991 = vmatmul.mubr.bf16.vlgmr.msra.gmra.mxu1 %v1213_v3  ;;  %20235 = vmatpush3.bf16.msra.mxu0 %v22313_v0 }
 0x185   :  { %20257 = vmatpush3.bf16.msra.mxu1 %v22315_v4  ;;  %v19943_v12 = vpop.f32.mrf.mxu0  ;;  %20236 = vmatprep.subr.bf16.mxu0 %v22316_v5  ;;  %v22355_v5 = vld [vmem:[%s28769_s1 + $0xde8] sm:$0xff]  }
 0x186   :  { %v19965_v13 = vpop.f32.mrf.mxu1  ;;  %20258 = vmatprep.subr.bf16.mxu1 %v22318_v6  ;;  %v19944_v15 = vadd.f32 %v19943_v12, %v19942_v8  ;;  %15030 = vmatprep.mubr.bf16.mxu0 %v1216_v51  ;;  %v22354_v8 = vld [vmem:[%s28769_s1 + $0xd28] sm:$0xff]   ;;  %v22382_v51 = vld [vmem:[%s28769_s1 + $0xe70] sm:$0xff]  }
 0x187   :  { %v19966_v16 = vadd.f32 %v19965_v13, %v19964_v9  ;;  %v19945_v18 = vpop.f32.mrf.mxu0  ;;  %15070 = vmatprep.mubr.bf16.mxu1 %v1218_v57  ;;  %v22357_v13 = vld [vmem:[%s28769_s1 + $0xd60] sm:$0xff]   ;;  %v22386_v57 = vld [vmem:[%s28769_s1 + $0xe68] sm:$0xff]  }
 0x188   :  { %v19967_v20 = vpop.f32.mrf.mxu1  ;;  %v14473_v21 = vadd.f32 %v19944_v15, %v24772_v35  ;;  %20237 = vmatpush3.bf16.msra.mxu0 %v22317_v7  ;;  %v22333_v35 = vld [vmem:[%s28769_s1 + $0xc10] sm:$0xff]   ;;  %v22359_v15 = vld [vmem:[%s28769_s1 + $0xde0] sm:$0xff]  }
 0x189   :  { %20259 = vmatpush3.bf16.msra.mxu1 %v22319_v10  ;;  %v19946_v23 = vpop.f32.mrf.mxu0  ;;  %20238 = vmatprep.subr.bf16.mxu0 %v22320_v11  ;;  %v22356_v10 = vld [vmem:[%s28769_s1 + $0xda8] sm:$0xff]   ;;  %v22358_v18 = vld [vmem:[%s28769_s1 + $0xd20] sm:$0xff]   ;;  %v22361_v20 = vld [vmem:[%s28769_s1 + $0xd58] sm:$0xff]  }
 0x18a   :  { %20260 = vmatprep.subr.bf16.mxu1 %v22322_v14  ;;  %v19968_v25 = vpop.f32.mrf.mxu1  ;;  %v24876_v26 = vadd.f32 %v19966_v16, %v14473_v21  ;;  %v22363_v21 = vld [vmem:[%s28769_s1 + $0xdd8] sm:$0xff]  }
 0x18b   :  { %v22364_v23 = vld [vmem:[%s28769_s1 + $0xd98] sm:$0xff]   ;;  %v22367_v25 = vld [vmem:[%s28769_s1 + $0xdd0] sm:$0xff]  }
 0x18c   :  { %20239 = vmatpush3.bf16.msra.mxu0 %v22321_v17 }
 0x18d   :  { %20261 = vmatpush3.bf16.msra.mxu1 %v22323_v19  ;;  %20240 = vmatprep.subr.bf16.mxu0 %v22324_v22  ;;  %v22360_v19 = vld [vmem:[%s28769_s1 + $0xda0] sm:$0xff]   ;;  %v22362_v22 = vld [vmem:[%s28769_s1 + $0xd18] sm:$0xff]  }
 0x18e   :  { %20262 = vmatprep.subr.bf16.mxu1 %v22326_v24  ;;  %v22365_v24 = vld [vmem:[%s28769_s1 + $0xd50] sm:$0xff]  }
 0x190   :  { %20241 = vmatpush3.bf16.msra.mxu0 %v22325_v27  ;;  %v22368_v27 = vld [vmem:[%s28769_s1 + $0xd90] sm:$0xff]  }
 0x191   :  { %20263 = vmatpush3.bf16.msra.mxu1 %v22327_v28  ;;  %20242 = vmatprep.subr.bf16.mxu0 %v22328_v29  ;;  %v22369_v28 = vld [vmem:[%s28769_s1 + $0xd48] sm:$0xff]  }
 0x192   :  { %20264 = vmatprep.subr.bf16.mxu1 %v22330_v30  ;;  %v22371_v29 = vld [vmem:[%s28769_s1 + $0xdc8] sm:$0xff]  }
 0x193   :  { %v22370_v30 = vld [vmem:[%s28769_s1 + $0xd08] sm:$0xff]  }
 0x194   :  { %20243 = vmatpush3.bf16.msra.mxu0 %v22329_v31  ;;  %v22372_v31 = vld [vmem:[%s28769_s1 + $0xd88] sm:$0xff]  }
 0x195   :  { %20265 = vmatpush3.bf16.msra.mxu1 %v22331_v32  ;;  %20244 = vmatprep.subr.bf16.mxu0 %v22332_v33  ;;  %v22373_v32 = vld [vmem:[%s28769_s1 + $0xd40] sm:$0xff]   ;;  %v41_v33 = vld [vmem:[%s28768_s0 + $0x68] sm:$0xff] }
 0x196   :  { %20266 = vmatprep.subr.bf16.mxu1 %v22334_v34  ;;  %v22375_v34 = vld [vmem:[%s28769_s1 + $0xdc0] sm:$0xff]  }
 0x198   :  { %20245 = vmatpush3.bf16.msra.mxu0 %v22333_v35  ;;  %v356_v35 = vrot.slane %v41_v33, %v23710_v41 }
 0x199   :  { %20267 = vmatpush3.bf16.msra.mxu1 %v22335_v36  ;;  %20246 = vmatprep.subr.bf16.mxu0 %v22336_v37  ;;  %v349_v36 = vcombine.high %v41_v33, %v41_v33  ;;  %v22374_v37 = vld [vmem:[%s28769_s1 + $0xd00] sm:$0xff]   ;;  %v22410_v33 = vld [vmem:[%s28769_s1 + $0xf78] sm:$0xff]  }
 0x19a   :  { %20268 = vmatprep.subr.bf16.mxu1 %v22338_v38  ;;  %v364_v38 = vcombine.high %v356_v35, %v356_v35 }
 0x19c   :  { %20247 = vmatpush3.bf16.msra.mxu0 %v22337_v39  ;;  %v363_v39 = vrot.slane %v349_v36, %v23710_v41  ;;  %v22413_v36 = vld [vmem:[%s28769_s1 + $0xff8] sm:$0xff]  }
 0x19d   :  { %20269 = vmatpush3.bf16.msra.mxu1 %v22339_v40  ;;  %20248 = vmatprep.subr.bf16.mxu0 %v22340_v42  ;;  %v22376_v40 = vld [vmem:[%s28769_s1 + $0xd80] sm:$0xff]   ;;  %v1220_v42 = vpack.c.bf16 %v364_v38, %v364_v38 }
 0x19e   :  { %20270 = vmatprep.subr.bf16.mxu1 %v22342_v44  ;;  %v365_v44 = vcombine.high %v363_v39, %v363_v39  ;;  %v1221_v49 = vpack.c.bf16 %v363_v39, %v363_v39 }
 0x1a0   :  { %20249 = vmatpush3.bf16.msra.mxu0 %v22341_v47  ;;  %v1219_v47 = vpack.c.bf16 %v356_v35, %v356_v35  ;;  %v1222_v48 = vpack.c.bf16 %v365_v44, %v365_v44  ;;  %v22412_v35 = vld [vmem:[%s28769_s1 + $0xf38] sm:$0xff]   ;;  %v22416_v44 = vld [vmem:[%s28769_s1 + $0xf30] sm:$0xff]  }
 0x1a1   :  { %20271 = vmatpush3.bf16.msra.mxu1 %v22343_v50  ;;  %20278 = vmatprep.subr.bf16.mxu0 %v22344_v52  ;;  %v22381_v50 = vld [vmem:[%s28769_s1 + $0xeb8] sm:$0xff]   ;;  %v22384_v52 = vld [vmem:[%s28769_s1 + $0xef0] sm:$0xff]  }
 0x1a2   :  { %20300 = vmatprep.subr.bf16.mxu1 %v22347_v55 }
 0x1a3   :  { %v19986_v63 = vpop.f32.mrf.mxu0  ;;  %15031 = vmatmul.mubr.bf16.vlgmr.msra.gmra.mxu0 %v1215_v56  ;;  %v22385_v56 = vld [vmem:[%s28769_s1 + $0xeb0] sm:$0xff]  }
 0x1a4   :  { %v20008_v0 = vpop.f32.mrf.mxu1  ;;  %15071 = vmatmul.mubr.bf16.vlgmr.msra.gmra.mxu1 %v1217_v58  ;;  %20279 = vmatpush3.bf16.msra.mxu0 %v22346_v54 }
 0x1a5   :  { %20301 = vmatpush3.bf16.msra.mxu1 %v22348_v59  ;;  %v19987_v3 = vpop.f32.mrf.mxu0  ;;  %20280 = vmatprep.subr.bf16.mxu0 %v22349_v60  ;;  %v22388_v60 = vld [vmem:[%s28769_s1 + $0xee8] sm:$0xff]  }
 0x1a6   :  { %v20009_v4 = vpop.f32.mrf.mxu1  ;;  %20302 = vmatprep.subr.bf16.mxu1 %v22351_v61  ;;  %v19988_v6 = vadd.f32 %v19987_v3, %v19986_v63  ;;  %15110 = vmatprep.mubr.bf16.mxu0 %v1220_v42  ;;  %v22387_v63 = vld [vmem:[%s28769_s1 + $0xe28] sm:$0xff]   ;;  %v22415_v42 = vld [vmem:[%s28769_s1 + $0xf70] sm:$0xff]  }
 0x1a7   :  { %v20010_v7 = vadd.f32 %v20009_v4, %v20008_v0  ;;  %v19989_v9 = vpop.f32.mrf.mxu0  ;;  %15150 = vmatprep.mubr.bf16.mxu1 %v1222_v48  ;;  %v22390_v4 = vld [vmem:[%s28769_s1 + $0xe60] sm:$0xff]   ;;  %v22419_v48 = vld [vmem:[%s28769_s1 + $0xf68] sm:$0xff]  }
 0x1a8   :  { %v20011_v11 = vpop.f32.mrf.mxu1  ;;  %v14553_v12 = vadd.f32 %v19988_v6, %v24876_v26  ;;  %20281 = vmatpush3.bf16.msra.mxu0 %v22350_v62  ;;  %v22366_v26 = vld [vmem:[%s28769_s1 + $0xd10] sm:$0xff]   ;;  %v22392_v6 = vld [vmem:[%s28769_s1 + $0xee0] sm:$0xff]  }
 0x1a9   :  { %20303 = vmatpush3.bf16.msra.mxu1 %v22352_v1  ;;  %v19990_v14 = vpop.f32.mrf.mxu0  ;;  %20282 = vmatprep.subr.bf16.mxu0 %v22353_v2  ;;  %v22389_v1 = vld [vmem:[%s28769_s1 + $0xea8] sm:$0xff]   ;;  %v22391_v9 = vld [vmem:[%s28769_s1 + $0xe20] sm:$0xff]   ;;  %v22394_v11 = vld [vmem:[%s28769_s1 + $0xe58] sm:$0xff]  }
 0x1aa   :  { %20304 = vmatprep.subr.bf16.mxu1 %v22355_v5  ;;  %v20012_v16 = vpop.f32.mrf.mxu1  ;;  %v24980_v17 = vadd.f32 %v20010_v7, %v14553_v12  ;;  %v22396_v12 = vld [vmem:[%s28769_s1 + $0xed8] sm:$0xff]  }
 0x1ab   :  { %v22397_v14 = vld [vmem:[%s28769_s1 + $0xe98] sm:$0xff]   ;;  %v22400_v16 = vld [vmem:[%s28769_s1 + $0xed0] sm:$0xff]  }
 0x1ac   :  { %20283 = vmatpush3.bf16.msra.mxu0 %v22354_v8 }
 0x1ad   :  { %20305 = vmatpush3.bf16.msra.mxu1 %v22356_v10  ;;  %20284 = vmatprep.subr.bf16.mxu0 %v22357_v13  ;;  %v22393_v10 = vld [vmem:[%s28769_s1 + $0xea0] sm:$0xff]   ;;  %v22395_v13 = vld [vmem:[%s28769_s1 + $0xe18] sm:$0xff]  }
 0x1ae   :  { %20306 = vmatprep.subr.bf16.mxu1 %v22359_v15  ;;  %v22398_v15 = vld [vmem:[%s28769_s1 + $0xe50] sm:$0xff]  }
 0x1b0   :  { %20285 = vmatpush3.bf16.msra.mxu0 %v22358_v18  ;;  %v22401_v18 = vld [vmem:[%s28769_s1 + $0xe90] sm:$0xff]  }
 0x1b1   :  { %20307 = vmatpush3.bf16.msra.mxu1 %v22360_v19  ;;  %20286 = vmatprep.subr.bf16.mxu0 %v22361_v20  ;;  %v22402_v19 = vld [vmem:[%s28769_s1 + $0xe48] sm:$0xff]  }
 0x1b2   :  { %20308 = vmatprep.subr.bf16.mxu1 %v22363_v21  ;;  %v22404_v20 = vld [vmem:[%s28769_s1 + $0xec8] sm:$0xff]  }
 0x1b3   :  { %v22403_v21 = vld [vmem:[%s28769_s1 + $0xe08] sm:$0xff]  }
 0x1b4   :  { %20287 = vmatpush3.bf16.msra.mxu0 %v22362_v22  ;;  %v22405_v22 = vld [vmem:[%s28769_s1 + $0xe88] sm:$0xff]  }
 0x1b5   :  { %20309 = vmatpush3.bf16.msra.mxu1 %v22364_v23  ;;  %20288 = vmatprep.subr.bf16.mxu0 %v22365_v24  ;;  %v22406_v23 = vld [vmem:[%s28769_s1 + $0xe40] sm:$0xff]   ;;  %v42_v24 = vld [vmem:[%s28768_s0 + $0x70] sm:$0xff] }
 0x1b6   :  { %20310 = vmatprep.subr.bf16.mxu1 %v22367_v25  ;;  %v22408_v25 = vld [vmem:[%s28769_s1 + $0xec0] sm:$0xff]  }
 0x1b8   :  { %20289 = vmatpush3.bf16.msra.mxu0 %v22366_v26  ;;  %v373_v26 = vrot.slane %v42_v24, %v23710_v41 }
 0x1b9   :  { %20311 = vmatpush3.bf16.msra.mxu1 %v22368_v27  ;;  %20290 = vmatprep.subr.bf16.mxu0 %v22369_v28  ;;  %v366_v27 = vcombine.high %v42_v24, %v42_v24  ;;  %v22407_v28 = vld [vmem:[%s28769_s1 + $0xe00] sm:$0xff]  }
 0x1ba   :  { %20312 = vmatprep.subr.bf16.mxu1 %v22371_v29  ;;  %v381_v29 = vcombine.high %v373_v26, %v373_v26 }
 0x1bc   :  { %20291 = vmatpush3.bf16.msra.mxu0 %v22370_v30  ;;  %v380_v30 = vrot.slane %v366_v27, %v23710_v41 }
 0x1bd   :  { %20313 = vmatpush3.bf16.msra.mxu1 %v22372_v31  ;;  %20292 = vmatprep.subr.bf16.mxu0 %v22373_v32  ;;  %v22409_v31 = vld [vmem:[%s28769_s1 + $0xe80] sm:$0xff]   ;;  %v1224_v32 = vpack.c.bf16 %v381_v29, %v381_v29 }
 0x1be   :  { %20314 = vmatprep.subr.bf16.mxu1 %v22375_v34  ;;  %v382_v34 = vcombine.high %v380_v30, %v380_v30  ;;  %v1225_v39 = vpack.c.bf16 %v380_v30, %v380_v30 }
 0x1c0   :  { %20293 = vmatpush3.bf16.msra.mxu0 %v22374_v37  ;;  %v1223_v37 = vpack.c.bf16 %v373_v26, %v373_v26  ;;  %v1226_v38 = vpack.c.bf16 %v382_v34, %v382_v34  ;;  %v22446_v26 = vld [vmem:[%s28769_s1 + $0x10f8] sm:$0xff]  }
 0x1c1   :  { %20315 = vmatpush3.bf16.msra.mxu1 %v22376_v40  ;;  %20322 = vmatprep.subr.bf16.mxu0 %v22377_v43  ;;  %v22414_v40 = vld [vmem:[%s28769_s1 + $0xfb8] sm:$0xff]   ;;  %v22417_v43 = vld [vmem:[%s28769_s1 + $0xff0] sm:$0xff]  }
 0x1c2   :  { %20344 = vmatprep.subr.bf16.mxu1 %v22380_v46 }
 0x1c3   :  { %v20030_v54 = vpop.f32.mrf.mxu0  ;;  %15111 = vmatmul.mubr.bf16.vlgmr.msra.gmra.mxu0 %v1219_v47  ;;  %v22418_v47 = vld [vmem:[%s28769_s1 + $0xfb0] sm:$0xff]  }
 0x1c4   :  { %v20052_v55 = vpop.f32.mrf.mxu1  ;;  %15151 = vmatmul.mubr.bf16.vlgmr.msra.gmra.mxu1 %v1221_v49  ;;  %20323 = vmatpush3.bf16.msra.mxu0 %v22379_v45 }
 0x1c5   :  { %20345 = vmatpush3.bf16.msra.mxu1 %v22381_v50  ;;  %v20031_v58 = vpop.f32.mrf.mxu0  ;;  %20324 = vmatprep.subr.bf16.mxu0 %v22382_v51  ;;  %v22421_v51 = vld [vmem:[%s28769_s1 + $0xfe8] sm:$0xff]  }
 0x1c6   :  { %v20053_v59 = vpop.f32.mrf.mxu1  ;;  %20346 = vmatprep.subr.bf16.mxu1 %v22384_v52  ;;  %v20032_v61 = vadd.f32 %v20031_v58, %v20030_v54  ;;  %15190 = vmatprep.mubr.bf16.mxu0 %v1224_v32  ;;  %v22420_v54 = vld [vmem:[%s28769_s1 + $0xf28] sm:$0xff]   ;;  %v22448_v32 = vld [vmem:[%s28769_s1 + $0x1070] sm:$0xff]  }
 0x1c7   :  { %v20054_v62 = vadd.f32 %v20053_v59, %v20052_v55  ;;  %v20033_v0 = vpop.f32.mrf.mxu0  ;;  %15230 = vmatprep.mubr.bf16.mxu1 %v1226_v38  ;;  %v22423_v59 = vld [vmem:[%s28769_s1 + $0xf60] sm:$0xff]  }
 0x1c8   :  { %v20055_v2 = vpop.f32.mrf.mxu1  ;;  %v14633_v3 = vadd.f32 %v20032_v61, %v24980_v17  ;;  %20325 = vmatpush3.bf16.msra.mxu0 %v22383_v53  ;;  %v22399_v17 = vld [vmem:[%s28769_s1 + $0xe10] sm:$0xff]   ;;  %v22425_v61 = vld [vmem:[%s28769_s1 + $0xfe0] sm:$0xff]  }
 0x1c9   :  { %20347 = vmatpush3.bf16.msra.mxu1 %v22385_v56  ;;  %v20034_v5 = vpop.f32.mrf.mxu0  ;;  %20326 = vmatprep.subr.bf16.mxu0 %v22386_v57  ;;  %v22422_v56 = vld [vmem:[%s28769_s1 + $0xfa8] sm:$0xff]   ;;  %v22424_v0 = vld [vmem:[%s28769_s1 + $0xf20] sm:$0xff]   ;;  %v22427_v2 = vld [vmem:[%s28769_s1 + $0xf58] sm:$0xff]  }
 0x1ca   :  { %20348 = vmatprep.subr.bf16.mxu1 %v22388_v60  ;;  %v20056_v7 = vpop.f32.mrf.mxu1  ;;  %v25084_v8 = vadd.f32 %v20054_v62, %v14633_v3  ;;  %v22429_v3 = vld [vmem:[%s28769_s1 + $0xfd8] sm:$0xff]  }
 0x1cb   :  { %v22430_v5 = vld [vmem:[%s28769_s1 + $0xf98] sm:$0xff]   ;;  %v22433_v7 = vld [vmem:[%s28769_s1 + $0xfd0] sm:$0xff]  }
 0x1cc   :  { %20327 = vmatpush3.bf16.msra.mxu0 %v22387_v63 }
 0x1cd   :  { %20349 = vmatpush3.bf16.msra.mxu1 %v22389_v1  ;;  %20328 = vmatprep.subr.bf16.mxu0 %v22390_v4  ;;  %v22426_v1 = vld [vmem:[%s28769_s1 + $0xfa0] sm:$0xff]   ;;  %v22428_v4 = vld [vmem:[%s28769_s1 + $0xf18] sm:$0xff]  }
 0x1ce   :  { %20350 = vmatprep.subr.bf16.mxu1 %v22392_v6  ;;  %v22431_v6 = vld [vmem:[%s28769_s1 + $0xf50] sm:$0xff]  }
 0x1d0   :  { %20329 = vmatpush3.bf16.msra.mxu0 %v22391_v9  ;;  %v22434_v9 = vld [vmem:[%s28769_s1 + $0xf90] sm:$0xff]  }
 0x1d1   :  { %20351 = vmatpush3.bf16.msra.mxu1 %v22393_v10  ;;  %20330 = vmatprep.subr.bf16.mxu0 %v22394_v11  ;;  %v22435_v10 = vld [vmem:[%s28769_s1 + $0xf48] sm:$0xff]  }
 0x1d2   :  { %20352 = vmatprep.subr.bf16.mxu1 %v22396_v12  ;;  %v22437_v11 = vld [vmem:[%s28769_s1 + $0xfc8] sm:$0xff]  }
 0x1d3   :  { %v22436_v12 = vld [vmem:[%s28769_s1 + $0xf08] sm:$0xff]  }
 0x1d4   :  { %20331 = vmatpush3.bf16.msra.mxu0 %v22395_v13  ;;  %v22438_v13 = vld [vmem:[%s28769_s1 + $0xf88] sm:$0xff]  }
 0x1d5   :  { %20353 = vmatpush3.bf16.msra.mxu1 %v22397_v14  ;;  %20332 = vmatprep.subr.bf16.mxu0 %v22398_v15  ;;  %v22439_v14 = vld [vmem:[%s28769_s1 + $0xf40] sm:$0xff]  }
 0x1d6   :  { %20354 = vmatprep.subr.bf16.mxu1 %v22400_v16  ;;  %v22441_v15 = vld [vmem:[%s28769_s1 + $0xfc0] sm:$0xff]   ;;  %v43_v16 = vld [vmem:[%s28768_s0 + $0x78] sm:$0xff] }
 0x1d8   :  { %20333 = vmatpush3.bf16.msra.mxu0 %v22399_v17  ;;  %v390_v17 = vrot.slane %v43_v16, %v23710_v41 }
 0x1d9   :  { %20355 = vmatpush3.bf16.msra.mxu1 %v22401_v18  ;;  %20334 = vmatprep.subr.bf16.mxu0 %v22402_v19  ;;  %v383_v18 = vcombine.high %v43_v16, %v43_v16  ;;  %v22440_v19 = vld [vmem:[%s28769_s1 + $0xf00] sm:$0xff]  }
 0x1da   :  { %20356 = vmatprep.subr.bf16.mxu1 %v22404_v20  ;;  %v398_v20 = vcombine.high %v390_v17, %v390_v17  ;;  %v1227_v27 = vpack.c.bf16 %v390_v17, %v390_v17  ;;  %v22479_v17 = vld [vmem:[%s28769_s1 + $0x11f8] sm:$0xff]  }
 0x1dc   :  { %20335 = vmatpush3.bf16.msra.mxu0 %v22403_v21  ;;  %v22442_v21 = vld [vmem:[%s28769_s1 + $0xf80] sm:$0xff]   ;;  %v1228_v24 = vpack.c.bf16 %v398_v20, %v398_v20 }
 0x1dd   :  { %20357 = vmatpush3.bf16.msra.mxu1 %v22405_v22  ;;  %20336 = vmatprep.subr.bf16.mxu0 %v22406_v23  ;;  %v397_v22 = vrot.slane %v383_v18, %v23710_v41  ;;  %v22443_v23 = vld [vmem:[%s28769_s1 + $0x1078] sm:$0xff]  }
 0x1de   :  { %20358 = vmatprep.subr.bf16.mxu1 %v22408_v25 }
 0x1df   :  { %v399_v25 = vcombine.high %v397_v22, %v397_v22  ;;  %v1229_v30 = vpack.c.bf16 %v397_v22, %v397_v22  ;;  %v22480_v22 = vld [vmem:[%s28769_s1 + $0x11b8] sm:$0xff]  }
 0x1e0   :  { %20337 = vmatpush3.bf16.msra.mxu0 %v22407_v28  ;;  %v22445_v28 = vld [vmem:[%s28769_s1 + $0x1038] sm:$0xff]  }
 0x1e1   :  { %20359 = vmatpush3.bf16.msra.mxu1 %v22409_v31  ;;  %20366 = vmatprep.subr.bf16.mxu0 %v22410_v33  ;;  %v1230_v29 = vpack.c.bf16 %v399_v25, %v399_v25  ;;  %v22447_v31 = vld [vmem:[%s28769_s1 + $0x10b8] sm:$0xff]   ;;  %v22450_v33 = vld [vmem:[%s28769_s1 + $0x10f0] sm:$0xff]  }
 0x1e2   :  { %20388 = vmatprep.subr.bf16.mxu1 %v22413_v36  ;;  %v22449_v36 = vld [vmem:[%s28769_s1 + $0x1030] sm:$0xff]  }
 0x1e3   :  { %v20074_v45 = vpop.f32.mrf.mxu0  ;;  %15191 = vmatmul.mubr.bf16.vlgmr.msra.gmra.mxu0 %v1223_v37  ;;  %v22451_v37 = vld [vmem:[%s28769_s1 + $0x10b0] sm:$0xff]  }
 0x1e4   :  { %v20096_v46 = vpop.f32.mrf.mxu1  ;;  %15231 = vmatmul.mubr.bf16.vlgmr.msra.gmra.mxu1 %v1225_v39  ;;  %20367 = vmatpush3.bf16.msra.mxu0 %v22412_v35 }
 0x1e5   :  { %20389 = vmatpush3.bf16.msra.mxu1 %v22414_v40  ;;  %v20075_v49 = vpop.f32.mrf.mxu0  ;;  %20368 = vmatprep.subr.bf16.mxu0 %v22415_v42  ;;  %v22452_v40 = vld [vmem:[%s28769_s1 + $0x1068] sm:$0xff]  }
 0x1e6   :  { %v20097_v50 = vpop.f32.mrf.mxu1  ;;  %20390 = vmatprep.subr.bf16.mxu1 %v22417_v43  ;;  %v20076_v52 = vadd.f32 %v20075_v49, %v20074_v45  ;;  %15270 = vmatprep.mubr.bf16.mxu0 %v1228_v24  ;;  %v22455_v49 = vld [vmem:[%s28769_s1 + $0x10a8] sm:$0xff]   ;;  %v22483_v24 = vld [vmem:[%s28769_s1 + $0x11f0] sm:$0xff]  }
 0x1e7   :  { %v20098_v53 = vadd.f32 %v20097_v50, %v20096_v46  ;;  %v20077_v55 = vpop.f32.mrf.mxu0  ;;  %15310 = vmatprep.mubr.bf16.mxu1 %v1230_v29  ;;  %v22453_v46 = vld [vmem:[%s28769_s1 + $0x1028] sm:$0xff]  }
 0x1e8   :  { %v20099_v57 = vpop.f32.mrf.mxu1  ;;  %v14713_v58 = vadd.f32 %v20076_v52, %v25084_v8  ;;  %20369 = vmatpush3.bf16.msra.mxu0 %v22416_v44  ;;  %v22432_v8 = vld [vmem:[%s28769_s1 + $0xf10] sm:$0xff]   ;;  %v22454_v44 = vld [vmem:[%s28769_s1 + $0x10e8] sm:$0xff]   ;;  %v22457_v55 = vld [vmem:[%s28769_s1 + $0x1020] sm:$0xff]  }
 0x1e9   :  { %20391 = vmatpush3.bf16.msra.mxu1 %v22418_v47  ;;  %v20078_v60 = vpop.f32.mrf.mxu0  ;;  %20370 = vmatprep.subr.bf16.mxu0 %v22419_v48  ;;  %v22460_v57 = vld [vmem:[%s28769_s1 + $0x1058] sm:$0xff]  }
 0x1ea   :  { %20392 = vmatprep.subr.bf16.mxu1 %v22421_v51  ;;  %v20100_v62 = vpop.f32.mrf.mxu1  ;;  %v25188_v63 = vadd.f32 %v20098_v53, %v14713_v58  ;;  %v22456_v51 = vld [vmem:[%s28769_s1 + $0x1060] sm:$0xff]   ;;  %v22462_v58 = vld [vmem:[%s28769_s1 + $0x10d8] sm:$0xff]  }
 0x1eb   :  { %v22463_v60 = vld [vmem:[%s28769_s1 + $0x1098] sm:$0xff]   ;;  %v22466_v62 = vld [vmem:[%s28769_s1 + $0x10d0] sm:$0xff]  }
 0x1ec   :  { %20371 = vmatpush3.bf16.msra.mxu0 %v22420_v54  ;;  %v22458_v54 = vld [vmem:[%s28769_s1 + $0x10e0] sm:$0xff]  }
 0x1ed   :  { %20393 = vmatpush3.bf16.msra.mxu1 %v22422_v56  ;;  %20372 = vmatprep.subr.bf16.mxu0 %v22423_v59  ;;  %v22459_v56 = vld [vmem:[%s28769_s1 + $0x10a0] sm:$0xff]   ;;  %v22461_v59 = vld [vmem:[%s28769_s1 + $0x1018] sm:$0xff]  }
 0x1ee   :  { %20394 = vmatprep.subr.bf16.mxu1 %v22425_v61  ;;  %v22464_v61 = vld [vmem:[%s28769_s1 + $0x1050] sm:$0xff]  }
 0x1f0   :  { %20373 = vmatpush3.bf16.msra.mxu0 %v22424_v0  ;;  %v22467_v0 = vld [vmem:[%s28769_s1 + $0x1090] sm:$0xff]  }
 0x1f1   :  { %20395 = vmatpush3.bf16.msra.mxu1 %v22426_v1  ;;  %20374 = vmatprep.subr.bf16.mxu0 %v22427_v2  ;;  %v22468_v1 = vld [vmem:[%s28769_s1 + $0x1048] sm:$0xff]  }
 0x1f2   :  { %20396 = vmatprep.subr.bf16.mxu1 %v22429_v3  ;;  %v22470_v2 = vld [vmem:[%s28769_s1 + $0x10c8] sm:$0xff]  }
 0x1f3   :  { %v22469_v3 = vld [vmem:[%s28769_s1 + $0x1008] sm:$0xff]  }
 0x1f4   :  { %20375 = vmatpush3.bf16.msra.mxu0 %v22428_v4  ;;  %v22471_v4 = vld [vmem:[%s28769_s1 + $0x1088] sm:$0xff]  }
 0x1f5   :  { %20397 = vmatpush3.bf16.msra.mxu1 %v22430_v5  ;;  %20376 = vmatprep.subr.bf16.mxu0 %v22431_v6  ;;  %v22472_v5 = vld [vmem:[%s28769_s1 + $0x1040] sm:$0xff]  }
 0x1f6   :  { %20398 = vmatprep.subr.bf16.mxu1 %v22433_v7  ;;  %v44_v6 = vld [vmem:[%s28768_s0 + $0x80] sm:$0xff] }
 0x1f7   :  { %v22474_v7 = vld [vmem:[%s28769_s1 + $0x10c0] sm:$0xff]  }
 0x1f8   :  { %20377 = vmatpush3.bf16.msra.mxu0 %v22432_v8  ;;  %v407_v8 = vrot.slane %v44_v6, %v23710_v41 }
 0x1f9   :  { %20399 = vmatpush3.bf16.msra.mxu1 %v22434_v9  ;;  %20378 = vmatprep.subr.bf16.mxu0 %v22435_v10  ;;  %v400_v9 = vcombine.high %v44_v6, %v44_v6  ;;  %v22473_v10 = vld [vmem:[%s28769_s1 + $0x1000] sm:$0xff]  }
 0x1fa   :  { %20400 = vmatprep.subr.bf16.mxu1 %v22437_v11  ;;  %v415_v11 = vcombine.high %v407_v8, %v407_v8  ;;  %v1231_v18 = vpack.c.bf16 %v407_v8, %v407_v8  ;;  %v22512_v8 = vld [vmem:[%s28769_s1 + $0x12f8] sm:$0xff]  }
 0x1fc   :  { %20379 = vmatpush3.bf16.msra.mxu0 %v22436_v12  ;;  %v22475_v12 = vld [vmem:[%s28769_s1 + $0x1080] sm:$0xff]  }
 0x1fd   :  { %20401 = vmatpush3.bf16.msra.mxu1 %v22438_v13  ;;  %20380 = vmatprep.subr.bf16.mxu0 %v22439_v14  ;;  %v414_v13 = vrot.slane %v400_v9, %v23710_v41  ;;  %v22476_v14 = vld [vmem:[%s28769_s1 + $0x1178] sm:$0xff]  }
 0x1fe   :  { %20402 = vmatprep.subr.bf16.mxu1 %v22441_v15  ;;  %v1232_v15 = vpack.c.bf16 %v415_v11, %v415_v11 }
 0x1ff   :  { %v416_v16 = vcombine.high %v414_v13, %v414_v13 }
 0x200   :  { %20381 = vmatpush3.bf16.msra.mxu0 %v22440_v19  ;;  %v22478_v19 = vld [vmem:[%s28769_s1 + $0x1138] sm:$0xff]  }
 0x201   :  { %20403 = vmatpush3.bf16.msra.mxu1 %v22442_v21  ;;  %20410 = vmatprep.subr.bf16.mxu0 %v22443_v23  ;;  %v1234_v20 = vpack.c.bf16 %v416_v16, %v416_v16  ;;  %v1233_v21 = vpack.c.bf16 %v414_v13, %v414_v13  ;;  %v22481_v23 = vld [vmem:[%s28769_s1 + $0x1170] sm:$0xff]   ;;  %v22513_v13 = vld [vmem:[%s28769_s1 + $0x12b8] sm:$0xff]  }
 0x202   :  { %20432 = vmatprep.subr.bf16.mxu1 %v22446_v26 }
 0x203   :  { %v20118_v34 = vpop.f32.mrf.mxu0  ;;  %15271 = vmatmul.mubr.bf16.vlgmr.msra.gmra.mxu0 %v1227_v27  ;;  %v22482_v27 = vld [vmem:[%s28769_s1 + $0x1130] sm:$0xff]  }
 0x204   :  { %v20140_v35 = vpop.f32.mrf.mxu1  ;;  %20411 = vmatpush3.bf16.msra.mxu0 %v22445_v28  ;;  %15311 = vmatmul.mubr.bf16.vlgmr.msra.gmra.mxu1 %v1229_v30  ;;  %v22484_v28 = vld [vmem:[%s28769_s1 + $0x11b0] sm:$0xff]  }
 0x205   :  { %v20119_v38 = vpop.f32.mrf.mxu0  ;;  %20433 = vmatpush3.bf16.msra.mxu1 %v22447_v31  ;;  %20412 = vmatprep.subr.bf16.mxu0 %v22448_v32  ;;  %v22485_v31 = vld [vmem:[%s28769_s1 + $0x1168] sm:$0xff]  }
 0x206   :  { %v20141_v39 = vpop.f32.mrf.mxu1  ;;  %v20120_v42 = vadd.f32 %v20119_v38, %v20118_v34  ;;  %20434 = vmatprep.subr.bf16.mxu1 %v22450_v33  ;;  %15350 = vmatprep.mubr.bf16.mxu0 %v1232_v15  ;;  %v22487_v34 = vld [vmem:[%s28769_s1 + $0x11e8] sm:$0xff]   ;;  %v22516_v15 = vld [vmem:[%s28769_s1 + $0x12f0] sm:$0xff]  }
 0x207   :  { %v20142_v43 = vadd.f32 %v20141_v39, %v20140_v35  ;;  %v20121_v45 = vpop.f32.mrf.mxu0  ;;  %15390 = vmatprep.mubr.bf16.mxu1 %v1234_v20  ;;  %v22488_v39 = vld [vmem:[%s28769_s1 + $0x11a8] sm:$0xff]  }
 0x208   :  { %v20143_v47 = vpop.f32.mrf.mxu1  ;;  %v14793_v48 = vadd.f32 %v20120_v42, %v25188_v63  ;;  %20413 = vmatpush3.bf16.msra.mxu0 %v22449_v36  ;;  %v22465_v63 = vld [vmem:[%s28769_s1 + $0x1010] sm:$0xff]   ;;  %v22486_v36 = vld [vmem:[%s28769_s1 + $0x1128] sm:$0xff]   ;;  %v22489_v42 = vld [vmem:[%s28769_s1 + $0x1160] sm:$0xff]  }
 0x209   :  { %v20122_v50 = vpop.f32.mrf.mxu0  ;;  %20435 = vmatpush3.bf16.msra.mxu1 %v22451_v37  ;;  %20414 = vmatprep.subr.bf16.mxu0 %v22452_v40  ;;  %v22491_v45 = vld [vmem:[%s28769_s1 + $0x11e0] sm:$0xff]  }
 0x20a   :  { %v20144_v52 = vpop.f32.mrf.mxu1  ;;  %v25289_v53 = vadd.f32 %v20142_v43, %v14793_v48  ;;  %20436 = vmatprep.subr.bf16.mxu1 %v22454_v44  ;;  %v22492_v47 = vld [vmem:[%s28769_s1 + $0x11a0] sm:$0xff]   ;;  %v22493_v48 = vld [vmem:[%s28769_s1 + $0x1158] sm:$0xff]  }
 0x20b   :  { %v22494_v50 = vld [vmem:[%s28769_s1 + $0x1118] sm:$0xff]   ;;  %v22497_v52 = vld [vmem:[%s28769_s1 + $0x1150] sm:$0xff]  }
 0x20c   :  { %20415 = vmatpush3.bf16.msra.mxu0 %v22453_v46  ;;  %v22490_v46 = vld [vmem:[%s28769_s1 + $0x1120] sm:$0xff]  }
 0x20d   :  { %20437 = vmatpush3.bf16.msra.mxu1 %v22455_v49  ;;  %20416 = vmatprep.subr.bf16.mxu0 %v22456_v51  ;;  %v22495_v49 = vld [vmem:[%s28769_s1 + $0x11d8] sm:$0xff]  }
 0x20e   :  { %20438 = vmatprep.subr.bf16.mxu1 %v22458_v54  ;;  %v22496_v51 = vld [vmem:[%s28769_s1 + $0x1198] sm:$0xff]   ;;  %v22498_v54 = vld [vmem:[%s28769_s1 + $0x1110] sm:$0xff]  }
 0x210   :  { %20417 = vmatpush3.bf16.msra.mxu0 %v22457_v55  ;;  %v22500_v55 = vld [vmem:[%s28769_s1 + $0x1190] sm:$0xff]  }
 0x211   :  { %20439 = vmatpush3.bf16.msra.mxu1 %v22459_v56  ;;  %20418 = vmatprep.subr.bf16.mxu0 %v22460_v57  ;;  %v22501_v56 = vld [vmem:[%s28769_s1 + $0x1148] sm:$0xff]  }
 0x212   :  { %20440 = vmatprep.subr.bf16.mxu1 %v22462_v58  ;;  %v22503_v57 = vld [vmem:[%s28769_s1 + $0x11c8] sm:$0xff]  }
 0x213   :  { %v22502_v58 = vld [vmem:[%s28769_s1 + $0x1108] sm:$0xff]  }
 0x214   :  { %20419 = vmatpush3.bf16.msra.mxu0 %v22461_v59  ;;  %v22504_v59 = vld [vmem:[%s28769_s1 + $0x1188] sm:$0xff]  }
 0x215   :  { %20441 = vmatpush3.bf16.msra.mxu1 %v22463_v60  ;;  %20420 = vmatprep.subr.bf16.mxu0 %v22464_v61  ;;  %v22505_v60 = vld [vmem:[%s28769_s1 + $0x1140] sm:$0xff]   ;;  %v45_v61 = vld [vmem:[%s28768_s0 + $0x88] sm:$0xff] }
 0x216   :  { %20442 = vmatprep.subr.bf16.mxu1 %v22466_v62  ;;  %v22507_v62 = vld [vmem:[%s28769_s1 + $0x11c0] sm:$0xff]  }
 0x218   :  { %20421 = vmatpush3.bf16.msra.mxu0 %v22465_v63  ;;  %v424_v63 = vrot.slane %v45_v61, %v23710_v41 }
 0x219   :  { %20443 = vmatpush3.bf16.msra.mxu1 %v22467_v0  ;;  %20422 = vmatprep.subr.bf16.mxu0 %v22468_v1  ;;  %v417_v0 = vcombine.high %v45_v61, %v45_v61  ;;  %v22506_v1 = vld [vmem:[%s28769_s1 + $0x1100] sm:$0xff]   ;;  %v22545_v61 = vld [vmem:[%s28769_s1 + $0x13f8] sm:$0xff]  }
 0x21a   :  { %20444 = vmatprep.subr.bf16.mxu1 %v22470_v2  ;;  %v432_v2 = vcombine.high %v424_v63, %v424_v63  ;;  %v1235_v9 = vpack.c.bf16 %v424_v63, %v424_v63 }
 0x21c   :  { %20423 = vmatpush3.bf16.msra.mxu0 %v22469_v3  ;;  %v22508_v3 = vld [vmem:[%s28769_s1 + $0x1180] sm:$0xff]   ;;  %v1236_v6 = vpack.c.bf16 %v432_v2, %v432_v2 }
 0x21d   :  { %20445 = vmatpush3.bf16.msra.mxu1 %v22471_v4  ;;  %20424 = vmatprep.subr.bf16.mxu0 %v22472_v5  ;;  %v431_v4 = vrot.slane %v417_v0, %v23710_v41  ;;  %v22509_v5 = vld [vmem:[%s28769_s1 + $0x1278] sm:$0xff]  }
 0x21e   :  { %20446 = vmatprep.subr.bf16.mxu1 %v22474_v7 }
 0x21f   :  { %v433_v7 = vcombine.high %v431_v4, %v431_v4 }
 0x220   :  { %20425 = vmatpush3.bf16.msra.mxu0 %v22473_v10  ;;  %v22511_v10 = vld [vmem:[%s28769_s1 + $0x1238] sm:$0xff]  }
 0x221   :  { %20447 = vmatpush3.bf16.msra.mxu1 %v22475_v12  ;;  %20454 = vmatprep.subr.bf16.mxu0 %v22476_v14  ;;  %v1238_v11 = vpack.c.bf16 %v433_v7, %v433_v7  ;;  %v1237_v12 = vpack.c.bf16 %v431_v4, %v431_v4  ;;  %v22514_v14 = vld [vmem:[%s28769_s1 + $0x1270] sm:$0xff]  }
 0x222   :  { %20476 = vmatprep.subr.bf16.mxu1 %v22479_v17 }
 0x223   :  { %v20162_v25 = vpop.f32.mrf.mxu0  ;;  %15351 = vmatmul.mubr.bf16.vlgmr.msra.gmra.mxu0 %v1231_v18  ;;  %v22515_v18 = vld [vmem:[%s28769_s1 + $0x1230] sm:$0xff]  }
 0x224   :  { %v20184_v26 = vpop.f32.mrf.mxu1  ;;  %20455 = vmatpush3.bf16.msra.mxu0 %v22478_v19  ;;  %15391 = vmatmul.mubr.bf16.vlgmr.msra.gmra.mxu1 %v1233_v21  ;;  %v22517_v19 = vld [vmem:[%s28769_s1 + $0x12b0] sm:$0xff]  }
 0x225   :  { %v20163_v29 = vpop.f32.mrf.mxu0  ;;  %20477 = vmatpush3.bf16.msra.mxu1 %v22480_v22  ;;  %20456 = vmatprep.subr.bf16.mxu0 %v22481_v23  ;;  %v22518_v22 = vld [vmem:[%s28769_s1 + $0x1268] sm:$0xff]  }
 0x226   :  { %v20185_v30 = vpop.f32.mrf.mxu1  ;;  %v20164_v32 = vadd.f32 %v20163_v29, %v20162_v25  ;;  %20478 = vmatprep.subr.bf16.mxu1 %v22483_v24  ;;  %15430 = vmatprep.mubr.bf16.mxu0 %v1236_v6  ;;  %v22520_v25 = vld [vmem:[%s28769_s1 + $0x12e8] sm:$0xff]   ;;  %v22549_v6 = vld [vmem:[%s28769_s1 + $0x13f0] sm:$0xff]  }
 0x227   :  { %v20186_v33 = vadd.f32 %v20185_v30, %v20184_v26  ;;  %v20165_v35 = vpop.f32.mrf.mxu0  ;;  %15470 = vmatprep.mubr.bf16.mxu1 %v1238_v11  ;;  %v22521_v30 = vld [vmem:[%s28769_s1 + $0x12a8] sm:$0xff]  }
 0x228   :  { %v20187_v37 = vpop.f32.mrf.mxu1  ;;  %v14873_v38 = vadd.f32 %v20164_v32, %v25289_v53  ;;  %20457 = vmatpush3.bf16.msra.mxu0 %v22482_v27  ;;  %v22499_v53 = vld [vmem:[%s28769_s1 + $0x11d0] sm:$0xff]   ;;  %v22519_v27 = vld [vmem:[%s28769_s1 + $0x1228] sm:$0xff]   ;;  %v22522_v32 = vld [vmem:[%s28769_s1 + $0x1260] sm:$0xff]  }
 0x229   :  { %v20166_v40 = vpop.f32.mrf.mxu0  ;;  %20479 = vmatpush3.bf16.msra.mxu1 %v22484_v28  ;;  %20458 = vmatprep.subr.bf16.mxu0 %v22485_v31  ;;  %v22524_v35 = vld [vmem:[%s28769_s1 + $0x12e0] sm:$0xff]  }
 0x22a   :  { %v20188_v43 = vpop.f32.mrf.mxu1  ;;  %v25393_v44 = vadd.f32 %v20186_v33, %v14873_v38  ;;  %20480 = vmatprep.subr.bf16.mxu1 %v22487_v34  ;;  %v22525_v37 = vld [vmem:[%s28769_s1 + $0x12a0] sm:$0xff]   ;;  %v22526_v38 = vld [vmem:[%s28769_s1 + $0x1258] sm:$0xff]  }
 0x22b   :  { %v22527_v40 = vld [vmem:[%s28769_s1 + $0x1218] sm:$0xff]   ;;  %v22530_v43 = vld [vmem:[%s28769_s1 + $0x1250] sm:$0xff]  }
 0x22c   :  { %20459 = vmatpush3.bf16.msra.mxu0 %v22486_v36  ;;  %v22523_v36 = vld [vmem:[%s28769_s1 + $0x1220] sm:$0xff]  }
 0x22d   :  { %20481 = vmatpush3.bf16.msra.mxu1 %v22488_v39  ;;  %20460 = vmatprep.subr.bf16.mxu0 %v22489_v42  ;;  %v22528_v39 = vld [vmem:[%s28769_s1 + $0x12d8] sm:$0xff]  }
 0x22e   :  { %20482 = vmatprep.subr.bf16.mxu1 %v22491_v45  ;;  %v22529_v42 = vld [vmem:[%s28769_s1 + $0x1298] sm:$0xff]   ;;  %v22531_v45 = vld [vmem:[%s28769_s1 + $0x1210] sm:$0xff]  }
 0x230   :  { %20461 = vmatpush3.bf16.msra.mxu0 %v22490_v46  ;;  %v22533_v46 = vld [vmem:[%s28769_s1 + $0x1290] sm:$0xff]  }
 0x231   :  { %20483 = vmatpush3.bf16.msra.mxu1 %v22492_v47  ;;  %20462 = vmatprep.subr.bf16.mxu0 %v22493_v48  ;;  %v22534_v47 = vld [vmem:[%s28769_s1 + $0x1248] sm:$0xff]  }
 0x232   :  { %20484 = vmatprep.subr.bf16.mxu1 %v22495_v49  ;;  %v22535_v48 = vld [vmem:[%s28769_s1 + $0x1208] sm:$0xff]  }
 0x233   :  { %v22536_v49 = vld [vmem:[%s28769_s1 + $0x12c8] sm:$0xff]  }
 0x234   :  { %20463 = vmatpush3.bf16.msra.mxu0 %v22494_v50  ;;  %v22537_v50 = vld [vmem:[%s28769_s1 + $0x1288] sm:$0xff]  }
 0x235   :  { %20485 = vmatpush3.bf16.msra.mxu1 %v22496_v51  ;;  %20464 = vmatprep.subr.bf16.mxu0 %v22497_v52  ;;  %v22538_v51 = vld [vmem:[%s28769_s1 + $0x1240] sm:$0xff]  }
 0x236   :  { %20486 = vmatprep.subr.bf16.mxu1 %v22499_v53  ;;  %v22540_v52 = vld [vmem:[%s28769_s1 + $0x12c0] sm:$0xff]   ;;  %v46_v53 = vld [vmem:[%s28768_s0 + $0x90] sm:$0xff] }
 0x238   :  { %20465 = vmatpush3.bf16.msra.mxu0 %v22498_v54  ;;  %v22539_v54 = vld [vmem:[%s28769_s1 + $0x1200] sm:$0xff]  }
 0x239   :  { %20487 = vmatpush3.bf16.msra.mxu1 %v22500_v55  ;;  %20466 = vmatprep.subr.bf16.mxu0 %v22501_v56  ;;  %v441_v55 = vrot.slane %v46_v53, %v23710_v41  ;;  %v434_v56 = vcombine.high %v46_v53, %v46_v53 }
 0x23a   :  { %20488 = vmatprep.subr.bf16.mxu1 %v22503_v57  ;;  %v22541_v57 = vld [vmem:[%s28769_s1 + $0x1280] sm:$0xff]  }
 0x23b   :  { %v1239_v63 = vpack.c.bf16 %v441_v55, %v441_v55 }
 0x23c   :  { %20467 = vmatpush3.bf16.msra.mxu0 %v22502_v58  ;;  %v449_v58 = vcombine.high %v441_v55, %v441_v55 }
 0x23d   :  { %20489 = vmatpush3.bf16.msra.mxu1 %v22504_v59  ;;  %20468 = vmatprep.subr.bf16.mxu0 %v22505_v60  ;;  %v22542_v59 = vld [vmem:[%s28769_s1 + $0x1378] sm:$0xff]   ;;  %v448_v60 = vrot.slane %v434_v56, %v23710_v41 }
 0x23e   :  { %20490 = vmatprep.subr.bf16.mxu1 %v22507_v62  ;;  %v1240_v62 = vpack.c.bf16 %v449_v58, %v449_v58  ;;  %v22577_v56 = vld [vmem:[%s28769_s1 + $0x1438] sm:$0xff]  }
 0x23f   :  { %v450_v0 = vcombine.high %v448_v60, %v448_v60  ;;  %v1241_v2 = vpack.c.bf16 %v448_v60, %v448_v60  ;;  %v22579_v58 = vld [vmem:[%s28769_s1 + $0x14b8] sm:$0xff]   ;;  %v22580_v60 = vld [vmem:[%s28769_s1 + $0x1470] sm:$0xff]  }
 0x240   :  { %20469 = vmatpush3.bf16.msra.mxu0 %v22506_v1  ;;  %v22544_v1 = vld [vmem:[%s28769_s1 + $0x1338] sm:$0xff]  }
 0x241   :  { %20491 = vmatpush3.bf16.msra.mxu1 %v22508_v3  ;;  %20498 = vmatprep.subr.bf16.mxu0 %v22509_v5  ;;  %v22546_v3 = vld [vmem:[%s28769_s1 + $0x13b8] sm:$0xff]   ;;  %v1242_v4 = vpack.c.bf16 %v450_v0, %v450_v0  ;;  %v22547_v5 = vld [vmem:[%s28769_s1 + $0x1370] sm:$0xff]  }
 0x242   :  { %20520 = vmatprep.subr.bf16.mxu1 %v22512_v8  ;;  %v22581_v0 = vld [vmem:[%s28769_s1 + $0x1430] sm:$0xff]  }
 0x243   :  { %v20206_v16 = vpop.f32.mrf.mxu0  ;;  %15431 = vmatmul.mubr.bf16.vlgmr.msra.gmra.mxu0 %v1235_v9  ;;  %v22548_v9 = vld [vmem:[%s28769_s1 + $0x1330] sm:$0xff]  }
 0x244   :  { %v20228_v17 = vpop.f32.mrf.mxu1  ;;  %20499 = vmatpush3.bf16.msra.mxu0 %v22511_v10  ;;  %15471 = vmatmul.mubr.bf16.vlgmr.msra.gmra.mxu1 %v1237_v12  ;;  %v22550_v10 = vld [vmem:[%s28769_s1 + $0x13b0] sm:$0xff]  }
 0x245   :  { %v20207_v20 = vpop.f32.mrf.mxu0  ;;  %20521 = vmatpush3.bf16.msra.mxu1 %v22513_v13  ;;  %20500 = vmatprep.subr.bf16.mxu0 %v22514_v14  ;;  %v22551_v13 = vld [vmem:[%s28769_s1 + $0x1368] sm:$0xff]  }
 0x246   :  { %v20229_v21 = vpop.f32.mrf.mxu1  ;;  %v20208_v23 = vadd.f32 %v20207_v20, %v20206_v16  ;;  %20522 = vmatprep.subr.bf16.mxu1 %v22516_v15  ;;  %15510 = vmatprep.mubr.bf16.mxu0 %v1240_v62  ;;  %v22553_v16 = vld [vmem:[%s28769_s1 + $0x13e8] sm:$0xff]  }
 0x247   :  { %v20230_v24 = vadd.f32 %v20229_v21, %v20228_v17  ;;  %v20209_v26 = vpop.f32.mrf.mxu0  ;;  %15550 = vmatprep.mubr.bf16.mxu1 %v1242_v4  ;;  %v22554_v21 = vld [vmem:[%s28769_s1 + $0x13a8] sm:$0xff]  }
 0x248   :  { %v20231_v28 = vpop.f32.mrf.mxu1  ;;  %v14953_v29 = vadd.f32 %v20208_v23, %v25393_v44  ;;  %20501 = vmatpush3.bf16.msra.mxu0 %v22515_v18  ;;  %v22532_v44 = vld [vmem:[%s28769_s1 + $0x12d0] sm:$0xff]   ;;  %v22552_v18 = vld [vmem:[%s28769_s1 + $0x1328] sm:$0xff]   ;;  %v22555_v23 = vld [vmem:[%s28769_s1 + $0x1360] sm:$0xff]  }
 0x249   :  { %v20210_v31 = vpop.f32.mrf.mxu0  ;;  %20523 = vmatpush3.bf16.msra.mxu1 %v22517_v19  ;;  %20502 = vmatprep.subr.bf16.mxu0 %v22518_v22  ;;  %v22557_v26 = vld [vmem:[%s28769_s1 + $0x13e0] sm:$0xff]   ;;  %v22584_v4 = vld [vmem:[%s28769_s1 + $0x1468] sm:$0xff]  }
 0x24a   :  { %v20232_v33 = vpop.f32.mrf.mxu1  ;;  %v25497_v34 = vadd.f32 %v20230_v24, %v14953_v29  ;;  %20524 = vmatprep.subr.bf16.mxu1 %v22520_v25  ;;  %v22558_v28 = vld [vmem:[%s28769_s1 + $0x13a0] sm:$0xff]   ;;  %v22559_v29 = vld [vmem:[%s28769_s1 + $0x1358] sm:$0xff]  }
 0x24b   :  { %v22560_v31 = vld [vmem:[%s28769_s1 + $0x1318] sm:$0xff]   ;;  %v22563_v33 = vld [vmem:[%s28769_s1 + $0x1350] sm:$0xff]  }
 0x24c   :  { %20503 = vmatpush3.bf16.msra.mxu0 %v22519_v27  ;;  %v22556_v27 = vld [vmem:[%s28769_s1 + $0x1320] sm:$0xff]  }
 0x24d   :  { %20525 = vmatpush3.bf16.msra.mxu1 %v22521_v30  ;;  %20504 = vmatprep.subr.bf16.mxu0 %v22522_v32  ;;  %v22561_v30 = vld [vmem:[%s28769_s1 + $0x13d8] sm:$0xff]  }
 0x24e   :  { %20526 = vmatprep.subr.bf16.mxu1 %v22524_v35  ;;  %v22562_v32 = vld [vmem:[%s28769_s1 + $0x1398] sm:$0xff]   ;;  %v22564_v35 = vld [vmem:[%s28769_s1 + $0x1310] sm:$0xff]  }
 0x250   :  { %20505 = vmatpush3.bf16.msra.mxu0 %v22523_v36  ;;  %v22566_v36 = vld [vmem:[%s28769_s1 + $0x1390] sm:$0xff]  }
 0x251   :  { %20527 = vmatpush3.bf16.msra.mxu1 %v22525_v37  ;;  %20506 = vmatprep.subr.bf16.mxu0 %v22526_v38  ;;  %v22567_v37 = vld [vmem:[%s28769_s1 + $0x1348] sm:$0xff]  }
 0x252   :  { %20528 = vmatprep.subr.bf16.mxu1 %v22528_v39  ;;  %v22569_v38 = vld [vmem:[%s28769_s1 + $0x13c8] sm:$0xff]  }
 0x253   :  { %v22568_v39 = vld [vmem:[%s28769_s1 + $0x1308] sm:$0xff]  }
 0x254   :  { %20507 = vmatpush3.bf16.msra.mxu0 %v22527_v40  ;;  %v22570_v40 = vld [vmem:[%s28769_s1 + $0x1388] sm:$0xff]  }
 0x255   :  { %20529 = vmatpush3.bf16.msra.mxu1 %v22529_v42  ;;  %20508 = vmatprep.subr.bf16.mxu0 %v22530_v43  ;;  %v22571_v42 = vld [vmem:[%s28769_s1 + $0x1340] sm:$0xff]  }
 0x256   :  { %20530 = vmatprep.subr.bf16.mxu1 %v22532_v44  ;;  %v22573_v43 = vld [vmem:[%s28769_s1 + $0x13c0] sm:$0xff]   ;;  %v47_v44 = vld [vmem:[%s28768_s0 + $0x98] sm:$0xff] }
 0x258   :  { %20509 = vmatpush3.bf16.msra.mxu0 %v22531_v45  ;;  %v22572_v45 = vld [vmem:[%s28769_s1 + $0x1300] sm:$0xff]  }
 0x259   :  { %20531 = vmatpush3.bf16.msra.mxu1 %v22533_v46  ;;  %20510 = vmatprep.subr.bf16.mxu0 %v22534_v47  ;;  %v458_v46 = vrot.slane %v47_v44, %v23710_v41  ;;  %v451_v47 = vcombine.high %v47_v44, %v47_v44 }
 0x25a   :  { %20532 = vmatprep.subr.bf16.mxu1 %v22536_v49 }
 0x25b   :  { %v466_v49 = vcombine.high %v458_v46, %v458_v46 }
 0x25c   :  { %20511 = vmatpush3.bf16.msra.mxu0 %v22535_v48  ;;  %v22574_v48 = vld [vmem:[%s28769_s1 + $0x1380] sm:$0xff]  }
 0x25d   :  { %20533 = vmatpush3.bf16.msra.mxu1 %v22537_v50  ;;  %20512 = vmatprep.subr.bf16.mxu0 %v22538_v51  ;;  %v22575_v50 = vld [vmem:[%s28769_s1 + $0x1478] sm:$0xff]   ;;  %v465_v51 = vrot.slane %v451_v47, %v23710_v41  ;;  %v1244_v53 = vpack.c.bf16 %v466_v49, %v466_v49 }
 0x25e   :  { %20534 = vmatprep.subr.bf16.mxu1 %v22540_v52  ;;  %v22578_v52 = vld [vmem:[%s28769_s1 + $0x14f8] sm:$0xff]  }
 0x25f   :  { %v467_v55 = vcombine.high %v465_v51, %v465_v51  ;;  %v22610_v47 = vld [vmem:[%s28769_s1 + $0x1538] sm:$0xff]  }
 0x260   :  { %20513 = vmatpush3.bf16.msra.mxu0 %v22539_v54  ;;  %v1243_v54 = vpack.c.bf16 %v458_v46, %v458_v46  ;;  %v22612_v49 = vld [vmem:[%s28769_s1 + $0x15b8] sm:$0xff]  }
 0x261   :  { %20535 = vmatpush3.bf16.msra.mxu1 %v22541_v57  ;;  %20542 = vmatprep.subr.bf16.mxu0 %v22542_v59  ;;  %v1245_v57 = vpack.c.bf16 %v465_v51, %v465_v51  ;;  %v1246_v59 = vpack.c.bf16 %v467_v55, %v467_v55  ;;  %v22613_v51 = vld [vmem:[%s28769_s1 + $0x1570] sm:$0xff]  }
 0x262   :  { %20564 = vmatprep.subr.bf16.mxu1 %v22545_v61  ;;  %v22582_v61 = vld [vmem:[%s28769_s1 + $0x14f0] sm:$0xff]  }
 0x263   :  { %v20250_v7 = vpop.f32.mrf.mxu0  ;;  %15511 = vmatmul.mubr.bf16.vlgmr.msra.gmra.mxu0 %v1239_v63  ;;  %v22614_v55 = vld [vmem:[%s28769_s1 + $0x1530] sm:$0xff]  }
 0x264   :  { %v20272_v8 = vpop.f32.mrf.mxu1  ;;  %20543 = vmatpush3.bf16.msra.mxu0 %v22544_v1  ;;  %15551 = vmatmul.mubr.bf16.vlgmr.msra.gmra.mxu1 %v1241_v2  ;;  %v22583_v1 = vld [vmem:[%s28769_s1 + $0x14b0] sm:$0xff]  }
 0x265   :  { %v20251_v11 = vpop.f32.mrf.mxu0  ;;  %20565 = vmatpush3.bf16.msra.mxu1 %v22546_v3  ;;  %20544 = vmatprep.subr.bf16.mxu0 %v22547_v5 }
 0x266   :  { %v20273_v12 = vpop.f32.mrf.mxu1  ;;  %v20252_v14 = vadd.f32 %v20251_v11, %v20250_v7  ;;  %20566 = vmatprep.subr.bf16.mxu1 %v22549_v6  ;;  %15590 = vmatprep.mubr.bf16.mxu0 %v1244_v53  ;;  %v22586_v7 = vld [vmem:[%s28769_s1 + $0x14e8] sm:$0xff]  }
 0x267   :  { %v20274_v15 = vadd.f32 %v20273_v12, %v20272_v8  ;;  %v20253_v17 = vpop.f32.mrf.mxu0  ;;  %15630 = vmatprep.mubr.bf16.mxu1 %v1246_v59  ;;  %v22587_v12 = vld [vmem:[%s28769_s1 + $0x14a8] sm:$0xff]  }
 0x268   :  { %v20275_v19 = vpop.f32.mrf.mxu1  ;;  %v15033_v20 = vadd.f32 %v20252_v14, %v25497_v34  ;;  %20545 = vmatpush3.bf16.msra.mxu0 %v22548_v9  ;;  %v22565_v34 = vld [vmem:[%s28769_s1 + $0x13d0] sm:$0xff]   ;;  %v22585_v9 = vld [vmem:[%s28769_s1 + $0x1428] sm:$0xff]   ;;  %v22588_v14 = vld [vmem:[%s28769_s1 + $0x1460] sm:$0xff]  }
 0x269   :  { %v20254_v22 = vpop.f32.mrf.mxu0  ;;  %20567 = vmatpush3.bf16.msra.mxu1 %v22550_v10  ;;  %20546 = vmatprep.subr.bf16.mxu0 %v22551_v13  ;;  %v22590_v17 = vld [vmem:[%s28769_s1 + $0x14e0] sm:$0xff]   ;;  %v22617_v59 = vld [vmem:[%s28769_s1 + $0x1568] sm:$0xff]  }
 0x26a   :  { %v20276_v24 = vpop.f32.mrf.mxu1  ;;  %v25601_v25 = vadd.f32 %v20274_v15, %v15033_v20  ;;  %20568 = vmatprep.subr.bf16.mxu1 %v22553_v16  ;;  %v22591_v19 = vld [vmem:[%s28769_s1 + $0x14a0] sm:$0xff]   ;;  %v22592_v20 = vld [vmem:[%s28769_s1 + $0x1458] sm:$0xff]  }
 0x26b   :  { %v22593_v22 = vld [vmem:[%s28769_s1 + $0x1418] sm:$0xff]   ;;  %v22596_v24 = vld [vmem:[%s28769_s1 + $0x1450] sm:$0xff]  }
 0x26c   :  { %20547 = vmatpush3.bf16.msra.mxu0 %v22552_v18  ;;  %v22589_v18 = vld [vmem:[%s28769_s1 + $0x1420] sm:$0xff]  }
 0x26d   :  { %20569 = vmatpush3.bf16.msra.mxu1 %v22554_v21  ;;  %20548 = vmatprep.subr.bf16.mxu0 %v22555_v23  ;;  %v22594_v21 = vld [vmem:[%s28769_s1 + $0x14d8] sm:$0xff]  }
 0x26e   :  { %20570 = vmatprep.subr.bf16.mxu1 %v22557_v26  ;;  %v22595_v23 = vld [vmem:[%s28769_s1 + $0x1498] sm:$0xff]   ;;  %v22597_v26 = vld [vmem:[%s28769_s1 + $0x1410] sm:$0xff]  }
 0x270   :  { %20549 = vmatpush3.bf16.msra.mxu0 %v22556_v27  ;;  %v22599_v27 = vld [vmem:[%s28769_s1 + $0x1490] sm:$0xff]  }
 0x271   :  { %20571 = vmatpush3.bf16.msra.mxu1 %v22558_v28  ;;  %20550 = vmatprep.subr.bf16.mxu0 %v22559_v29  ;;  %v22600_v28 = vld [vmem:[%s28769_s1 + $0x1448] sm:$0xff]  }
 0x272   :  { %20572 = vmatprep.subr.bf16.mxu1 %v22561_v30  ;;  %v22602_v29 = vld [vmem:[%s28769_s1 + $0x14c8] sm:$0xff]  }
 0x273   :  { %v22601_v30 = vld [vmem:[%s28769_s1 + $0x1408] sm:$0xff]  }
 0x274   :  { %20551 = vmatpush3.bf16.msra.mxu0 %v22560_v31  ;;  %v22603_v31 = vld [vmem:[%s28769_s1 + $0x1488] sm:$0xff]  }
 0x275   :  { %20573 = vmatpush3.bf16.msra.mxu1 %v22562_v32  ;;  %20552 = vmatprep.subr.bf16.mxu0 %v22563_v33  ;;  %v22604_v32 = vld [vmem:[%s28769_s1 + $0x1440] sm:$0xff]  }
 0x276   :  { %20574 = vmatprep.subr.bf16.mxu1 %v22565_v34  ;;  %v22606_v33 = vld [vmem:[%s28769_s1 + $0x14c0] sm:$0xff]  }
 0x277   :  { %v48_v34 = vld [vmem:[%s28768_s0 + $0xa0] sm:$0xff] }
 0x278   :  { %20553 = vmatpush3.bf16.msra.mxu0 %v22564_v35  ;;  %v22605_v35 = vld [vmem:[%s28769_s1 + $0x1400] sm:$0xff]  }
 0x279   :  { %20575 = vmatpush3.bf16.msra.mxu1 %v22566_v36  ;;  %20554 = vmatprep.subr.bf16.mxu0 %v22567_v37  ;;  %v475_v36 = vrot.slane %v48_v34, %v23710_v41  ;;  %v468_v37 = vcombine.high %v48_v34, %v48_v34 }
 0x27a   :  { %20576 = vmatprep.subr.bf16.mxu1 %v22569_v38  ;;  %v22607_v38 = vld [vmem:[%s28769_s1 + $0x1480] sm:$0xff]  }
 0x27c   :  { %20555 = vmatpush3.bf16.msra.mxu0 %v22568_v39  ;;  %v483_v39 = vcombine.high %v475_v36, %v475_v36 }
 0x27d   :  { %20577 = vmatpush3.bf16.msra.mxu1 %v22570_v40  ;;  %20556 = vmatprep.subr.bf16.mxu0 %v22571_v42  ;;  %v22608_v40 = vld [vmem:[%s28769_s1 + $0x1578] sm:$0xff]   ;;  %v482_v42 = vrot.slane %v468_v37, %v23710_v41 }
 0x27e   :  { %20578 = vmatprep.subr.bf16.mxu1 %v22573_v43  ;;  %v22611_v43 = vld [vmem:[%s28769_s1 + $0x15f8] sm:$0xff]   ;;  %v1248_v44 = vpack.c.bf16 %v483_v39, %v483_v39 }
 0x27f   :  { %v484_v46 = vcombine.high %v482_v42, %v482_v42 }
 0x280   :  { %20557 = vmatpush3.bf16.msra.mxu0 %v22572_v45  ;;  %v1247_v45 = vpack.c.bf16 %v475_v36, %v475_v36 }
 0x281   :  { %20579 = vmatpush3.bf16.msra.mxu1 %v22574_v48  ;;  %20586 = vmatprep.subr.bf16.mxu0 %v22575_v50  ;;  %v1249_v48 = vpack.c.bf16 %v482_v42, %v482_v42  ;;  %v1250_v50 = vpack.c.bf16 %v484_v46, %v484_v46 }
 0x282   :  { %20608 = vmatprep.subr.bf16.mxu1 %v22578_v52  ;;  %v22615_v52 = vld [vmem:[%s28769_s1 + $0x15f0] sm:$0xff]  }
 0x283   :  { %v20294_v62 = vpop.f32.mrf.mxu0  ;;  %15591 = vmatmul.mubr.bf16.vlgmr.msra.gmra.mxu0 %v1243_v54 }
 0x284   :  { %v20316_v63 = vpop.f32.mrf.mxu1  ;;  %20587 = vmatpush3.bf16.msra.mxu0 %v22577_v56  ;;  %15631 = vmatmul.mubr.bf16.vlgmr.msra.gmra.mxu1 %v1245_v57  ;;  %v22616_v56 = vld [vmem:[%s28769_s1 + $0x15b0] sm:$0xff]  }
 0x285   :  { %v20295_v2 = vpop.f32.mrf.mxu0  ;;  %20609 = vmatpush3.bf16.msra.mxu1 %v22579_v58  ;;  %20588 = vmatprep.subr.bf16.mxu0 %v22580_v60 }
 0x286   :  { %v20317_v3 = vpop.f32.mrf.mxu1  ;;  %v20296_v5 = vadd.f32 %v20295_v2, %v20294_v62  ;;  %20610 = vmatprep.subr.bf16.mxu1 %v22582_v61  ;;  %15670 = vmatprep.mubr.bf16.mxu0 %v1248_v44  ;;  %v22619_v62 = vld [vmem:[%s28769_s1 + $0x15e8] sm:$0xff]  }
 0x287   :  { %v20318_v6 = vadd.f32 %v20317_v3, %v20316_v63  ;;  %v20297_v8 = vpop.f32.mrf.mxu0  ;;  %15710 = vmatprep.mubr.bf16.mxu1 %v1250_v50  ;;  %v22620_v3 = vld [vmem:[%s28769_s1 + $0x15a8] sm:$0xff]  }
 0x288   :  { %v20319_v10 = vpop.f32.mrf.mxu1  ;;  %v15113_v11 = vadd.f32 %v20296_v5, %v25601_v25  ;;  %20589 = vmatpush3.bf16.msra.mxu0 %v22581_v0  ;;  %v22598_v25 = vld [vmem:[%s28769_s1 + $0x14d0] sm:$0xff]   ;;  %v22618_v0 = vld [vmem:[%s28769_s1 + $0x1528] sm:$0xff]   ;;  %v22621_v5 = vld [vmem:[%s28769_s1 + $0x1560] sm:$0xff]  }
 0x289   :  { %v20298_v13 = vpop.f32.mrf.mxu0  ;;  %20611 = vmatpush3.bf16.msra.mxu1 %v22583_v1  ;;  %20590 = vmatprep.subr.bf16.mxu0 %v22584_v4  ;;  %v22623_v8 = vld [vmem:[%s28769_s1 + $0x15e0] sm:$0xff]  }
 0x28a   :  { %v20320_v15 = vpop.f32.mrf.mxu1  ;;  %v25705_v16 = vadd.f32 %v20318_v6, %v15113_v11  ;;  %20612 = vmatprep.subr.bf16.mxu1 %v22586_v7  ;;  %v22624_v10 = vld [vmem:[%s28769_s1 + $0x15a0] sm:$0xff]   ;;  %v22625_v11 = vld [vmem:[%s28769_s1 + $0x1558] sm:$0xff]  }
 0x28b   :  { %v22626_v13 = vld [vmem:[%s28769_s1 + $0x1518] sm:$0xff]   ;;  %v22629_v15 = vld [vmem:[%s28769_s1 + $0x1550] sm:$0xff]  }
 0x28c   :  { %20591 = vmatpush3.bf16.msra.mxu0 %v22585_v9  ;;  %v22622_v9 = vld [vmem:[%s28769_s1 + $0x1520] sm:$0xff]  }
 0x28d   :  { %20613 = vmatpush3.bf16.msra.mxu1 %v22587_v12  ;;  %20592 = vmatprep.subr.bf16.mxu0 %v22588_v14  ;;  %v22627_v12 = vld [vmem:[%s28769_s1 + $0x15d8] sm:$0xff]  }
 0x28e   :  { %20614 = vmatprep.subr.bf16.mxu1 %v22590_v17  ;;  %v22628_v14 = vld [vmem:[%s28769_s1 + $0x1598] sm:$0xff]   ;;  %v22630_v17 = vld [vmem:[%s28769_s1 + $0x1510] sm:$0xff]  }
 0x290   :  { %20593 = vmatpush3.bf16.msra.mxu0 %v22589_v18  ;;  %v22632_v18 = vld [vmem:[%s28769_s1 + $0x1590] sm:$0xff]  }
 0x291   :  { %20615 = vmatpush3.bf16.msra.mxu1 %v22591_v19  ;;  %20594 = vmatprep.subr.bf16.mxu0 %v22592_v20  ;;  %v22633_v19 = vld [vmem:[%s28769_s1 + $0x1548] sm:$0xff]  }
 0x292   :  { %20616 = vmatprep.subr.bf16.mxu1 %v22594_v21  ;;  %v22635_v20 = vld [vmem:[%s28769_s1 + $0x15c8] sm:$0xff]  }
 0x293   :  { %v22634_v21 = vld [vmem:[%s28769_s1 + $0x1508] sm:$0xff]  }
 0x294   :  { %20595 = vmatpush3.bf16.msra.mxu0 %v22593_v22  ;;  %v22636_v22 = vld [vmem:[%s28769_s1 + $0x1588] sm:$0xff]  }
 0x295   :  { %20617 = vmatpush3.bf16.msra.mxu1 %v22595_v23  ;;  %20596 = vmatprep.subr.bf16.mxu0 %v22596_v24  ;;  %v22637_v23 = vld [vmem:[%s28769_s1 + $0x1540] sm:$0xff]  }
 0x296   :  { %20618 = vmatprep.subr.bf16.mxu1 %v22598_v25  ;;  %v22638_v24 = vld [vmem:[%s28769_s1 + $0x1500] sm:$0xff]  }
 0x297   :  { %v22639_v25 = vld [vmem:[%s28769_s1 + $0x15c0] sm:$0xff]  }
 0x298   :  { %20597 = vmatpush3.bf16.msra.mxu0 %v22597_v26  ;;  %v49_v26 = vld [vmem:[%s28768_s0 + $0xa8] sm:$0xff] }
 0x299   :  { %20619 = vmatpush3.bf16.msra.mxu1 %v22599_v27  ;;  %20598 = vmatprep.subr.bf16.mxu0 %v22600_v28  ;;  %v492_v27 = vrot.slane %v49_v26, %v23710_v41  ;;  %v22640_v28 = vld [vmem:[%s28769_s1 + $0x1580] sm:$0xff]  }
 0x29a   :  { %20620 = vmatprep.subr.bf16.mxu1 %v22602_v29  ;;  %v485_v29 = vcombine.high %v49_v26, %v49_v26  ;;  %v22677_v26 = vld [vmem:[%s28769_s1 + $0x17f8] sm:$0xff]  }
 0x29b   :  { %v1251_v34 = vpack.c.bf16 %v492_v27, %v492_v27 }
 0x29c   :  { %20599 = vmatpush3.bf16.msra.mxu0 %v22601_v30  ;;  %v22641_v30 = vld [vmem:[%s28769_s1 + $0x1678] sm:$0xff]  }
 0x29d   :  { %20621 = vmatpush3.bf16.msra.mxu1 %v22603_v31  ;;  %20600 = vmatprep.subr.bf16.mxu0 %v22604_v32  ;;  %v500_v31 = vcombine.high %v492_v27, %v492_v27  ;;  %v499_v32 = vrot.slane %v485_v29, %v23710_v41  ;;  %v22678_v29 = vld [vmem:[%s28769_s1 + $0x17b8] sm:$0xff]  }
 0x29e   :  { %20622 = vmatprep.subr.bf16.mxu1 %v22606_v33  ;;  %v22643_v33 = vld [vmem:[%s28769_s1 + $0x1638] sm:$0xff]  }
 0x29f   :  { %v1252_v36 = vpack.c.bf16 %v500_v31, %v500_v31  ;;  %v501_v37 = vcombine.high %v499_v32, %v499_v32  ;;  %v1253_v39 = vpack.c.bf16 %v499_v32, %v499_v32  ;;  %v22679_v31 = vld [vmem:[%s28769_s1 + $0x1770] sm:$0xff]  }
 0x2a0   :  { %20601 = vmatpush3.bf16.msra.mxu0 %v22605_v35  ;;  %v22644_v35 = vld [vmem:[%s28769_s1 + $0x16f8] sm:$0xff]  }
 0x2a1   :  { %20623 = vmatpush3.bf16.msra.mxu1 %v22607_v38  ;;  %20630 = vmatprep.subr.bf16.mxu0 %v22608_v40  ;;  %v22645_v38 = vld [vmem:[%s28769_s1 + $0x16b8] sm:$0xff]   ;;  %v22646_v40 = vld [vmem:[%s28769_s1 + $0x1670] sm:$0xff]   ;;  %v1254_v42 = vpack.c.bf16 %v501_v37, %v501_v37 }
 0x2a2   :  { %20652 = vmatprep.subr.bf16.mxu1 %v22611_v43  ;;  %v22647_v43 = vld [vmem:[%s28769_s1 + $0x1630] sm:$0xff]  }
 0x2a3   :  { %v20338_v53 = vpop.f32.mrf.mxu0  ;;  %15671 = vmatmul.mubr.bf16.vlgmr.msra.gmra.mxu0 %v1247_v45  ;;  %v22648_v45 = vld [vmem:[%s28769_s1 + $0x16f0] sm:$0xff]  }
 0x2a4   :  { %v20360_v54 = vpop.f32.mrf.mxu1  ;;  %20631 = vmatpush3.bf16.msra.mxu0 %v22610_v47  ;;  %15711 = vmatmul.mubr.bf16.vlgmr.msra.gmra.mxu1 %v1249_v48  ;;  %v22649_v47 = vld [vmem:[%s28769_s1 + $0x16b0] sm:$0xff]  }
 0x2a5   :  { %v20339_v57 = vpop.f32.mrf.mxu0  ;;  %20653 = vmatpush3.bf16.msra.mxu1 %v22612_v49  ;;  %20632 = vmatprep.subr.bf16.mxu0 %v22613_v51  ;;  %v22650_v49 = vld [vmem:[%s28769_s1 + $0x1668] sm:$0xff]   ;;  %v22682_v37 = vld [vmem:[%s28769_s1 + $0x17b0] sm:$0xff]  }
 0x2a6   :  { %v20361_v58 = vpop.f32.mrf.mxu1  ;;  %v20340_v60 = vadd.f32 %v20339_v57, %v20338_v53  ;;  %20654 = vmatprep.subr.bf16.mxu1 %v22615_v52  ;;  %15750 = vmatprep.mubr.bf16.mxu0 %v1252_v36  ;;  %v22651_v52 = vld [vmem:[%s28769_s1 + $0x1628] sm:$0xff]  }
 0x2a7   :  { %v20362_v61 = vadd.f32 %v20361_v58, %v20360_v54  ;;  %v20341_v63 = vpop.f32.mrf.mxu0  ;;  %15790 = vmatprep.mubr.bf16.mxu1 %v1254_v42  ;;  %v22653_v57 = vld [vmem:[%s28769_s1 + $0x16a8] sm:$0xff]  }
 0x2a8   :  { %v20363_v1 = vpop.f32.mrf.mxu1  ;;  %v15193_v2 = vadd.f32 %v20340_v60, %v25705_v16  ;;  %20633 = vmatpush3.bf16.msra.mxu0 %v22614_v55  ;;  %v22631_v16 = vld [vmem:[%s28769_s1 + $0x15d0] sm:$0xff]   ;;  %v22652_v55 = vld [vmem:[%s28769_s1 + $0x16e8] sm:$0xff]   ;;  %v22654_v60 = vld [vmem:[%s28769_s1 + $0x1660] sm:$0xff]  }
 0x2a9   :  { %v20342_v4 = vpop.f32.mrf.mxu0  ;;  %20655 = vmatpush3.bf16.msra.mxu1 %v22616_v56  ;;  %20634 = vmatprep.subr.bf16.mxu0 %v22617_v59  ;;  %v22657_v1 = vld [vmem:[%s28769_s1 + $0x16a0] sm:$0xff]  }
 0x2aa   :  { %v20364_v6 = vpop.f32.mrf.mxu1  ;;  %v25809_v7 = vadd.f32 %v20362_v61, %v15193_v2  ;;  %20656 = vmatprep.subr.bf16.mxu1 %v22619_v62  ;;  %v22655_v62 = vld [vmem:[%s28769_s1 + $0x1620] sm:$0xff]   ;;  %v22658_v2 = vld [vmem:[%s28769_s1 + $0x1658] sm:$0xff]  }
 0x2ab   :  { %v22660_v4 = vld [vmem:[%s28769_s1 + $0x16d8] sm:$0xff]   ;;  %v22662_v6 = vld [vmem:[%s28769_s1 + $0x1650] sm:$0xff]  }
 0x2ac   :  { %20635 = vmatpush3.bf16.msra.mxu0 %v22618_v0  ;;  %v22656_v0 = vld [vmem:[%s28769_s1 + $0x16e0] sm:$0xff]  }
 0x2ad   :  { %20657 = vmatpush3.bf16.msra.mxu1 %v22620_v3  ;;  %20636 = vmatprep.subr.bf16.mxu0 %v22621_v5  ;;  %v22659_v3 = vld [vmem:[%s28769_s1 + $0x1618] sm:$0xff]  }
 0x2ae   :  { %20658 = vmatprep.subr.bf16.mxu1 %v22623_v8  ;;  %v22661_v5 = vld [vmem:[%s28769_s1 + $0x1698] sm:$0xff]   ;;  %v22664_v8 = vld [vmem:[%s28769_s1 + $0x16d0] sm:$0xff]  }
 0x2b0   :  { %20637 = vmatpush3.bf16.msra.mxu0 %v22622_v9  ;;  %v22665_v9 = vld [vmem:[%s28769_s1 + $0x1690] sm:$0xff]  }
 0x2b1   :  { %20659 = vmatpush3.bf16.msra.mxu1 %v22624_v10  ;;  %20638 = vmatprep.subr.bf16.mxu0 %v22625_v11  ;;  %v22666_v10 = vld [vmem:[%s28769_s1 + $0x1648] sm:$0xff]  }
 0x2b2   :  { %20660 = vmatprep.subr.bf16.mxu1 %v22627_v12  ;;  %v22667_v11 = vld [vmem:[%s28769_s1 + $0x1608] sm:$0xff]  }
 0x2b3   :  { %v22668_v12 = vld [vmem:[%s28769_s1 + $0x16c8] sm:$0xff]  }
 0x2b4   :  { %20639 = vmatpush3.bf16.msra.mxu0 %v22626_v13  ;;  %v22669_v13 = vld [vmem:[%s28769_s1 + $0x1688] sm:$0xff]  }
 0x2b5   :  { %20661 = vmatpush3.bf16.msra.mxu1 %v22628_v14  ;;  %20640 = vmatprep.subr.bf16.mxu0 %v22629_v15  ;;  %v22670_v14 = vld [vmem:[%s28769_s1 + $0x1640] sm:$0xff]  }
 0x2b6   :  { %20662 = vmatprep.subr.bf16.mxu1 %v22631_v16  ;;  %v22671_v15 = vld [vmem:[%s28769_s1 + $0x1600] sm:$0xff]  }
 0x2b7   :  { %v22672_v16 = vld [vmem:[%s28769_s1 + $0x16c0] sm:$0xff]  }
 0x2b8   :  { %20641 = vmatpush3.bf16.msra.mxu0 %v22630_v17  ;;  %v50_v17 = vld [vmem:[%s28768_s0 + $0xb0] sm:$0xff] }
 0x2b9   :  { %20663 = vmatpush3.bf16.msra.mxu1 %v22632_v18  ;;  %20642 = vmatprep.subr.bf16.mxu0 %v22633_v19  ;;  %v509_v18 = vrot.slane %v50_v17, %v23710_v41  ;;  %v22673_v19 = vld [vmem:[%s28769_s1 + $0x1680] sm:$0xff]  }
 0x2ba   :  { %20664 = vmatprep.subr.bf16.mxu1 %v22635_v20  ;;  %v502_v20 = vcombine.high %v50_v17, %v50_v17  ;;  %v22710_v17 = vld [vmem:[%s28769_s1 + $0x18f8] sm:$0xff]  }
 0x2bc   :  { %20643 = vmatpush3.bf16.msra.mxu0 %v22634_v21  ;;  %v22674_v21 = vld [vmem:[%s28769_s1 + $0x1778] sm:$0xff]  }
 0x2bd   :  { %20665 = vmatpush3.bf16.msra.mxu1 %v22636_v22  ;;  %20644 = vmatprep.subr.bf16.mxu0 %v22637_v23  ;;  %v517_v22 = vcombine.high %v509_v18, %v509_v18  ;;  %v516_v23 = vrot.slane %v502_v20, %v23710_v41  ;;  %v22711_v20 = vld [vmem:[%s28769_s1 + $0x18b8] sm:$0xff]  }
 0x2be   :  { %20666 = vmatprep.subr.bf16.mxu1 %v22639_v25  ;;  %v1255_v25 = vpack.c.bf16 %v509_v18, %v509_v18 }
 0x2bf   :  { %v1256_v27 = vpack.c.bf16 %v517_v22, %v517_v22  ;;  %v22712_v22 = vld [vmem:[%s28769_s1 + $0x1870] sm:$0xff]  }
 0x2c0   :  { %20645 = vmatpush3.bf16.msra.mxu0 %v22638_v24  ;;  %v22676_v24 = vld [vmem:[%s28769_s1 + $0x1738] sm:$0xff]  }
 0x2c1   :  { %20667 = vmatpush3.bf16.msra.mxu1 %v22640_v28  ;;  %20674 = vmatprep.subr.bf16.mxu0 %v22641_v30  ;;  %v518_v28 = vcombine.high %v516_v23, %v516_v23  ;;  %v1257_v30 = vpack.c.bf16 %v516_v23, %v516_v23 }
 0x2c2   :  { %20696 = vmatprep.subr.bf16.mxu1 %v22644_v35  ;;  %v22681_v35 = vld [vmem:[%s28769_s1 + $0x17f0] sm:$0xff]  }
 0x2c3   :  { %v20382_v44 = vpop.f32.mrf.mxu0  ;;  %15751 = vmatmul.mubr.bf16.vlgmr.msra.gmra.mxu0 %v1251_v34  ;;  %v1258_v32 = vpack.c.bf16 %v518_v28, %v518_v28  ;;  %v22715_v28 = vld [vmem:[%s28769_s1 + $0x18b0] sm:$0xff]  }
 0x2c4   :  { %20675 = vmatpush3.bf16.msra.mxu0 %v22643_v33  ;;  %v20404_v46 = vpop.f32.mrf.mxu1  ;;  %15791 = vmatmul.mubr.bf16.vlgmr.msra.gmra.mxu1 %v1253_v39  ;;  %v22680_v33 = vld [vmem:[%s28769_s1 + $0x1730] sm:$0xff]   ;;  %v22683_v39 = vld [vmem:[%s28769_s1 + $0x1768] sm:$0xff]  }
 0x2c5   :  { %v20383_v48 = vpop.f32.mrf.mxu0  ;;  %20676 = vmatprep.subr.bf16.mxu0 %v22646_v40  ;;  %20697 = vmatpush3.bf16.msra.mxu1 %v22645_v38 }
 0x2c6   :  { %v20384_v50 = vadd.f32 %v20383_v48, %v20382_v44  ;;  %v20405_v51 = vpop.f32.mrf.mxu1  ;;  %20698 = vmatprep.subr.bf16.mxu1 %v22648_v45  ;;  %15830 = vmatprep.mubr.bf16.mxu0 %v1256_v27  ;;  %v22686_v48 = vld [vmem:[%s28769_s1 + $0x17a8] sm:$0xff]  }
 0x2c7   :  { %v20385_v53 = vpop.f32.mrf.mxu0  ;;  %v20406_v54 = vadd.f32 %v20405_v51, %v20404_v46  ;;  %15870 = vmatprep.mubr.bf16.mxu1 %v1258_v32  ;;  %v22685_v46 = vld [vmem:[%s28769_s1 + $0x17e8] sm:$0xff]   ;;  %v22687_v51 = vld [vmem:[%s28769_s1 + $0x1760] sm:$0xff]  }
 0x2c8   :  { %v15273_v56 = vadd.f32 %v20384_v50, %v25809_v7  ;;  %20677 = vmatpush3.bf16.msra.mxu0 %v22647_v43  ;;  %v20407_v58 = vpop.f32.mrf.mxu1  ;;  %v22663_v7 = vld [vmem:[%s28769_s1 + $0x1610] sm:$0xff]   ;;  %v22684_v43 = vld [vmem:[%s28769_s1 + $0x1728] sm:$0xff]   ;;  %v22688_v53 = vld [vmem:[%s28769_s1 + $0x1720] sm:$0xff]  }
 0x2c9   :  { %v20386_v59 = vpop.f32.mrf.mxu0  ;;  %20678 = vmatprep.subr.bf16.mxu0 %v22650_v49  ;;  %20699 = vmatpush3.bf16.msra.mxu1 %v22649_v47  ;;  %v22692_v58 = vld [vmem:[%s28769_s1 + $0x1718] sm:$0xff]  }
 0x2ca   :  { %v25913_v61 = vadd.f32 %v20406_v54, %v15273_v56  ;;  %v20408_v63 = vpop.f32.mrf.mxu1  ;;  %20700 = vmatprep.subr.bf16.mxu1 %v22652_v55  ;;  %v22689_v55 = vld [vmem:[%s28769_s1 + $0x17e0] sm:$0xff]   ;;  %v22693_v59 = vld [vmem:[%s28769_s1 + $0x17d8] sm:$0xff]  }
 0x2cb   :  { %v22690_v56 = vld [vmem:[%s28769_s1 + $0x17a0] sm:$0xff]   ;;  %v22697_v63 = vld [vmem:[%s28769_s1 + $0x17d0] sm:$0xff]  }
 0x2cc   :  { %20679 = vmatpush3.bf16.msra.mxu0 %v22651_v52 }
 0x2cd   :  { %20680 = vmatprep.subr.bf16.mxu0 %v22654_v60  ;;  %20701 = vmatpush3.bf16.msra.mxu1 %v22653_v57  ;;  %v22691_v57 = vld [vmem:[%s28769_s1 + $0x1758] sm:$0xff]  }
 0x2ce   :  { %20702 = vmatprep.subr.bf16.mxu1 %v22656_v0  ;;  %v22694_v60 = vld [vmem:[%s28769_s1 + $0x1798] sm:$0xff]   ;;  %v22698_v0 = vld [vmem:[%s28769_s1 + $0x1790] sm:$0xff]  }
 0x2d0   :  { %20681 = vmatpush3.bf16.msra.mxu0 %v22655_v62  ;;  %v22696_v62 = vld [vmem:[%s28769_s1 + $0x1710] sm:$0xff]  }
 0x2d1   :  { %20682 = vmatprep.subr.bf16.mxu0 %v22658_v2  ;;  %20703 = vmatpush3.bf16.msra.mxu1 %v22657_v1  ;;  %v22699_v1 = vld [vmem:[%s28769_s1 + $0x1748] sm:$0xff]  }
 0x2d2   :  { %20704 = vmatprep.subr.bf16.mxu1 %v22660_v4  ;;  %v22700_v2 = vld [vmem:[%s28769_s1 + $0x1708] sm:$0xff]  }
 0x2d3   :  { %v22702_v4 = vld [vmem:[%s28769_s1 + $0x1788] sm:$0xff]  }
 0x2d4   :  { %20683 = vmatpush3.bf16.msra.mxu0 %v22659_v3  ;;  %v22701_v3 = vld [vmem:[%s28769_s1 + $0x17c8] sm:$0xff]  }
 0x2d5   :  { %20684 = vmatprep.subr.bf16.mxu0 %v22662_v6  ;;  %20705 = vmatpush3.bf16.msra.mxu1 %v22661_v5  ;;  %v22703_v5 = vld [vmem:[%s28769_s1 + $0x1740] sm:$0xff]  }
 0x2d6   :  { %20706 = vmatprep.subr.bf16.mxu1 %v22664_v8  ;;  %v22704_v6 = vld [vmem:[%s28769_s1 + $0x1700] sm:$0xff]   ;;  %v51_v8 = vld [vmem:[%s28768_s0 + $0xb8] sm:$0xff] }
 0x2d8   :  { %20685 = vmatpush3.bf16.msra.mxu0 %v22663_v7  ;;  %v22705_v7 = vld [vmem:[%s28769_s1 + $0x17c0] sm:$0xff]  }
 0x2d9   :  { %20686 = vmatprep.subr.bf16.mxu0 %v22666_v10  ;;  %20707 = vmatpush3.bf16.msra.mxu1 %v22665_v9  ;;  %v526_v9 = vrot.slane %v51_v8, %v23710_v41  ;;  %v22706_v10 = vld [vmem:[%s28769_s1 + $0x1780] sm:$0xff]  }
 0x2da   :  { %20708 = vmatprep.subr.bf16.mxu1 %v22668_v12  ;;  %v22707_v12 = vld [vmem:[%s28769_s1 + $0x1878] sm:$0xff]  }
 0x2dc   :  { %20687 = vmatpush3.bf16.msra.mxu0 %v22667_v11  ;;  %v519_v11 = vcombine.high %v51_v8, %v51_v8  ;;  %v22743_v8 = vld [vmem:[%s28769_s1 + $0x19f8] sm:$0xff]  }
 0x2dd   :  { %20688 = vmatprep.subr.bf16.mxu0 %v22670_v14  ;;  %20709 = vmatpush3.bf16.msra.mxu1 %v22669_v13  ;;  %v534_v13 = vcombine.high %v526_v9, %v526_v9 }
 0x2de   :  { %20710 = vmatprep.subr.bf16.mxu1 %v22672_v16  ;;  %v533_v14 = vrot.slane %v519_v11, %v23710_v41  ;;  %v1259_v16 = vpack.c.bf16 %v526_v9, %v526_v9  ;;  %v22744_v11 = vld [vmem:[%s28769_s1 + $0x19b8] sm:$0xff]  }
 0x2df   :  { %v1260_v18 = vpack.c.bf16 %v534_v13, %v534_v13  ;;  %v22745_v13 = vld [vmem:[%s28769_s1 + $0x1970] sm:$0xff]  }
 0x2e0   :  { %20689 = vmatpush3.bf16.msra.mxu0 %v22671_v15  ;;  %v22709_v15 = vld [vmem:[%s28769_s1 + $0x1838] sm:$0xff]  }
 0x2e1   :  { %20718 = vmatprep.subr.bf16.mxu0 %v22674_v21  ;;  %20711 = vmatpush3.bf16.msra.mxu1 %v22673_v19  ;;  %v535_v19 = vcombine.high %v533_v14, %v533_v14  ;;  %v1261_v21 = vpack.c.bf16 %v533_v14, %v533_v14 }
 0x2e2   :  { %20740 = vmatprep.subr.bf16.mxu1 %v22677_v26  ;;  %v22714_v26 = vld [vmem:[%s28769_s1 + $0x18f0] sm:$0xff]  }
 0x2e3   :  { %v20426_v34 = vpop.f32.mrf.mxu0  ;;  %15831 = vmatmul.mubr.bf16.vlgmr.msra.gmra.mxu0 %v1255_v25  ;;  %v1262_v23 = vpack.c.bf16 %v535_v19, %v535_v19 }
 0x2e4   :  { %20719 = vmatpush3.bf16.msra.mxu0 %v22676_v24  ;;  %v20448_v36 = vpop.f32.mrf.mxu1  ;;  %15871 = vmatmul.mubr.bf16.vlgmr.msra.gmra.mxu1 %v1257_v30  ;;  %v22713_v24 = vld [vmem:[%s28769_s1 + $0x1830] sm:$0xff]   ;;  %v22716_v30 = vld [vmem:[%s28769_s1 + $0x1868] sm:$0xff]  }
 0x2e5   :  { %v20427_v38 = vpop.f32.mrf.mxu0  ;;  %20720 = vmatprep.subr.bf16.mxu0 %v22679_v31  ;;  %20741 = vmatpush3.bf16.msra.mxu1 %v22678_v29 }
 0x2e6   :  { %v20428_v40 = vadd.f32 %v20427_v38, %v20426_v34  ;;  %v20449_v42 = vpop.f32.mrf.mxu1  ;;  %20742 = vmatprep.subr.bf16.mxu1 %v22681_v35  ;;  %15910 = vmatprep.mubr.bf16.mxu0 %v1260_v18  ;;  %v22719_v38 = vld [vmem:[%s28769_s1 + $0x18a8] sm:$0xff]   ;;  %v22747_v18 = vld [vmem:[%s28769_s1 + $0x19f0] sm:$0xff]  }
 0x2e7   :  { %v20429_v44 = vpop.f32.mrf.mxu0  ;;  %v20450_v45 = vadd.f32 %v20449_v42, %v20448_v36  ;;  %15950 = vmatprep.mubr.bf16.mxu1 %v1262_v23  ;;  %v22718_v36 = vld [vmem:[%s28769_s1 + $0x18e8] sm:$0xff]   ;;  %v22720_v42 = vld [vmem:[%s28769_s1 + $0x1860] sm:$0xff]  }
 0x2e8   :  { %v15353_v47 = vadd.f32 %v20428_v40, %v25913_v61  ;;  %20721 = vmatpush3.bf16.msra.mxu0 %v22680_v33  ;;  %v20451_v49 = vpop.f32.mrf.mxu1  ;;  %v22695_v61 = vld [vmem:[%s28769_s1 + $0x1750] sm:$0xff]   ;;  %v22717_v33 = vld [vmem:[%s28769_s1 + $0x1828] sm:$0xff]   ;;  %v22721_v44 = vld [vmem:[%s28769_s1 + $0x1820] sm:$0xff]  }
 0x2e9   :  { %v20430_v50 = vpop.f32.mrf.mxu0  ;;  %20722 = vmatprep.subr.bf16.mxu0 %v22683_v39  ;;  %20743 = vmatpush3.bf16.msra.mxu1 %v22682_v37  ;;  %v22725_v49 = vld [vmem:[%s28769_s1 + $0x1818] sm:$0xff]   ;;  %v22749_v23 = vld [vmem:[%s28769_s1 + $0x1968] sm:$0xff]  }
 0x2ea   :  { %v26017_v52 = vadd.f32 %v20450_v45, %v15353_v47  ;;  %v20452_v54 = vpop.f32.mrf.mxu1  ;;  %20744 = vmatprep.subr.bf16.mxu1 %v22685_v46  ;;  %v22722_v46 = vld [vmem:[%s28769_s1 + $0x18e0] sm:$0xff]   ;;  %v22726_v50 = vld [vmem:[%s28769_s1 + $0x18d8] sm:$0xff]  }
 0x2eb   :  { %v22723_v47 = vld [vmem:[%s28769_s1 + $0x18a0] sm:$0xff]   ;;  %v22730_v54 = vld [vmem:[%s28769_s1 + $0x18d0] sm:$0xff]  }
 0x2ec   :  { %20723 = vmatpush3.bf16.msra.mxu0 %v22684_v43 }
 0x2ed   :  { %20724 = vmatprep.subr.bf16.mxu0 %v22687_v51  ;;  %20745 = vmatpush3.bf16.msra.mxu1 %v22686_v48  ;;  %v22724_v48 = vld [vmem:[%s28769_s1 + $0x1858] sm:$0xff]  }
 0x2ee   :  { %20746 = vmatprep.subr.bf16.mxu1 %v22689_v55  ;;  %v22727_v51 = vld [vmem:[%s28769_s1 + $0x1898] sm:$0xff]   ;;  %v22731_v55 = vld [vmem:[%s28769_s1 + $0x1890] sm:$0xff]  }
 0x2f0   :  { %20725 = vmatpush3.bf16.msra.mxu0 %v22688_v53  ;;  %v22729_v53 = vld [vmem:[%s28769_s1 + $0x1810] sm:$0xff]  }
 0x2f1   :  { %20726 = vmatprep.subr.bf16.mxu0 %v22691_v57  ;;  %20747 = vmatpush3.bf16.msra.mxu1 %v22690_v56  ;;  %v22732_v56 = vld [vmem:[%s28769_s1 + $0x1848] sm:$0xff]  }
 0x2f2   :  { %20748 = vmatprep.subr.bf16.mxu1 %v22693_v59  ;;  %v22733_v57 = vld [vmem:[%s28769_s1 + $0x1808] sm:$0xff]  }
 0x2f3   :  { %v22735_v59 = vld [vmem:[%s28769_s1 + $0x1888] sm:$0xff]  }
 0x2f4   :  { %20727 = vmatpush3.bf16.msra.mxu0 %v22692_v58  ;;  %v22734_v58 = vld [vmem:[%s28769_s1 + $0x18c8] sm:$0xff]  }
 0x2f5   :  { %20728 = vmatprep.subr.bf16.mxu0 %v22695_v61  ;;  %20749 = vmatpush3.bf16.msra.mxu1 %v22694_v60  ;;  %v22736_v60 = vld [vmem:[%s28769_s1 + $0x1840] sm:$0xff]  }
 0x2f6   :  { %20750 = vmatprep.subr.bf16.mxu1 %v22697_v63  ;;  %v22737_v61 = vld [vmem:[%s28769_s1 + $0x1800] sm:$0xff]  }
 0x2f7   :  { %v52_v63 = vld [vmem:[%s28768_s0 + $0xc0] sm:$0xff] }
 0x2f8   :  { %20729 = vmatpush3.bf16.msra.mxu0 %v22696_v62  ;;  %v22738_v62 = vld [vmem:[%s28769_s1 + $0x18c0] sm:$0xff]  }
 0x2f9   :  { %20730 = vmatprep.subr.bf16.mxu0 %v22699_v1  ;;  %20751 = vmatpush3.bf16.msra.mxu1 %v22698_v0  ;;  %v543_v0 = vrot.slane %v52_v63, %v23710_v41  ;;  %v22739_v1 = vld [vmem:[%s28769_s1 + $0x1880] sm:$0xff]  }
 0x2fa   :  { %20752 = vmatprep.subr.bf16.mxu1 %v22701_v3  ;;  %v22740_v3 = vld [vmem:[%s28769_s1 + $0x1978] sm:$0xff]  }
 0x2fc   :  { %20731 = vmatpush3.bf16.msra.mxu0 %v22700_v2  ;;  %v536_v2 = vcombine.high %v52_v63, %v52_v63  ;;  %v22776_v63 = vld [vmem:[%s28769_s1 + $0x1af8] sm:$0xff]  }
 0x2fd   :  { %20732 = vmatprep.subr.bf16.mxu0 %v22703_v5  ;;  %20753 = vmatpush3.bf16.msra.mxu1 %v22702_v4  ;;  %v551_v4 = vcombine.high %v543_v0, %v543_v0 }
 0x2fe   :  { %20754 = vmatprep.subr.bf16.mxu1 %v22705_v7  ;;  %v550_v5 = vrot.slane %v536_v2, %v23710_v41  ;;  %v1263_v7 = vpack.c.bf16 %v543_v0, %v543_v0  ;;  %v22777_v2 = vld [vmem:[%s28769_s1 + $0x1ab8] sm:$0xff]  }
 0x2ff   :  { %v1264_v9 = vpack.c.bf16 %v551_v4, %v551_v4  ;;  %v22778_v4 = vld [vmem:[%s28769_s1 + $0x1a70] sm:$0xff]  }
 0x300   :  { %20733 = vmatpush3.bf16.msra.mxu0 %v22704_v6  ;;  %v22742_v6 = vld [vmem:[%s28769_s1 + $0x1938] sm:$0xff]  }
 0x301   :  { %20762 = vmatprep.subr.bf16.mxu0 %v22707_v12  ;;  %20755 = vmatpush3.bf16.msra.mxu1 %v22706_v10  ;;  %v552_v10 = vcombine.high %v550_v5, %v550_v5  ;;  %v1265_v12 = vpack.c.bf16 %v550_v5, %v550_v5 }
 0x302   :  { %20784 = vmatprep.subr.bf16.mxu1 %v22710_v17 }
 0x303   :  { %v20470_v25 = vpop.f32.mrf.mxu0  ;;  %15911 = vmatmul.mubr.bf16.vlgmr.msra.gmra.mxu0 %v1259_v16  ;;  %v22746_v16 = vld [vmem:[%s28769_s1 + $0x1930] sm:$0xff]  }
 0x304   :  { %20763 = vmatpush3.bf16.msra.mxu0 %v22709_v15  ;;  %v20492_v27 = vpop.f32.mrf.mxu1  ;;  %15951 = vmatmul.mubr.bf16.vlgmr.msra.gmra.mxu1 %v1261_v21  ;;  %v1266_v15 = vpack.c.bf16 %v552_v10, %v552_v10 }
 0x305   :  { %v20471_v29 = vpop.f32.mrf.mxu0  ;;  %20764 = vmatprep.subr.bf16.mxu0 %v22712_v22  ;;  %20785 = vmatpush3.bf16.msra.mxu1 %v22711_v20  ;;  %v22748_v20 = vld [vmem:[%s28769_s1 + $0x19b0] sm:$0xff]  }
 0x306   :  { %v20472_v31 = vadd.f32 %v20471_v29, %v20470_v25  ;;  %v20493_v32 = vpop.f32.mrf.mxu1  ;;  %20786 = vmatprep.subr.bf16.mxu1 %v22714_v26  ;;  %15990 = vmatprep.mubr.bf16.mxu0 %v1264_v9  ;;  %v22750_v26 = vld [vmem:[%s28769_s1 + $0x1928] sm:$0xff]   ;;  %v22780_v9 = vld [vmem:[%s28769_s1 + $0x1af0] sm:$0xff]  }
 0x307   :  { %v20473_v34 = vpop.f32.mrf.mxu0  ;;  %v20494_v35 = vadd.f32 %v20493_v32, %v20492_v27  ;;  %16030 = vmatprep.mubr.bf16.mxu1 %v1266_v15 }
 0x308   :  { %v15433_v37 = vadd.f32 %v20472_v31, %v26017_v52  ;;  %20765 = vmatpush3.bf16.msra.mxu0 %v22713_v24  ;;  %v20495_v39 = vpop.f32.mrf.mxu1  ;;  %v22728_v52 = vld [vmem:[%s28769_s1 + $0x1850] sm:$0xff]   ;;  %v22752_v31 = vld [vmem:[%s28769_s1 + $0x19a8] sm:$0xff]  }
 0x309   :  { %v20474_v40 = vpop.f32.mrf.mxu0  ;;  %20766 = vmatprep.subr.bf16.mxu0 %v22716_v30  ;;  %20787 = vmatpush3.bf16.msra.mxu1 %v22715_v28  ;;  %v22751_v28 = vld [vmem:[%s28769_s1 + $0x19e8] sm:$0xff]   ;;  %v22758_v39 = vld [vmem:[%s28769_s1 + $0x1918] sm:$0xff]  }
 0x30a   :  { %v26121_v43 = vadd.f32 %v20494_v35, %v15433_v37  ;;  %v20496_v45 = vpop.f32.mrf.mxu1  ;;  %20788 = vmatprep.subr.bf16.mxu1 %v22718_v36  ;;  %v22754_v35 = vld [vmem:[%s28769_s1 + $0x1920] sm:$0xff]   ;;  %v22759_v40 = vld [vmem:[%s28769_s1 + $0x19d8] sm:$0xff]  }
 0x30b   :  { %v22755_v36 = vld [vmem:[%s28769_s1 + $0x19e0] sm:$0xff]   ;;  %v22763_v45 = vld [vmem:[%s28769_s1 + $0x19d0] sm:$0xff]  }
 0x30c   :  { %20767 = vmatpush3.bf16.msra.mxu0 %v22717_v33  ;;  %v22753_v33 = vld [vmem:[%s28769_s1 + $0x1960] sm:$0xff]  }
 0x30d   :  { %20768 = vmatprep.subr.bf16.mxu0 %v22720_v42  ;;  %20789 = vmatpush3.bf16.msra.mxu1 %v22719_v38  ;;  %v22756_v37 = vld [vmem:[%s28769_s1 + $0x19a0] sm:$0xff]   ;;  %v22757_v38 = vld [vmem:[%s28769_s1 + $0x1958] sm:$0xff]  }
 0x30e   :  { %20790 = vmatprep.subr.bf16.mxu1 %v22722_v46  ;;  %v22760_v42 = vld [vmem:[%s28769_s1 + $0x1998] sm:$0xff]   ;;  %v22764_v46 = vld [vmem:[%s28769_s1 + $0x1990] sm:$0xff]  }
 0x310   :  { %20769 = vmatpush3.bf16.msra.mxu0 %v22721_v44  ;;  %v22762_v44 = vld [vmem:[%s28769_s1 + $0x1910] sm:$0xff]  }
 0x311   :  { %20770 = vmatprep.subr.bf16.mxu0 %v22724_v48  ;;  %20791 = vmatpush3.bf16.msra.mxu1 %v22723_v47  ;;  %v22765_v47 = vld [vmem:[%s28769_s1 + $0x1948] sm:$0xff]  }
 0x312   :  { %20792 = vmatprep.subr.bf16.mxu1 %v22726_v50  ;;  %v22766_v48 = vld [vmem:[%s28769_s1 + $0x1908] sm:$0xff]  }
 0x313   :  { %v22768_v50 = vld [vmem:[%s28769_s1 + $0x1988] sm:$0xff]  }
 0x314   :  { %20771 = vmatpush3.bf16.msra.mxu0 %v22725_v49  ;;  %v22767_v49 = vld [vmem:[%s28769_s1 + $0x19c8] sm:$0xff]  }
 0x315   :  { %20772 = vmatprep.subr.bf16.mxu0 %v22728_v52  ;;  %20793 = vmatpush3.bf16.msra.mxu1 %v22727_v51  ;;  %v22769_v51 = vld [vmem:[%s28769_s1 + $0x1940] sm:$0xff]  }
 0x316   :  { %20794 = vmatprep.subr.bf16.mxu1 %v22730_v54  ;;  %v22770_v52 = vld [vmem:[%s28769_s1 + $0x1900] sm:$0xff]   ;;  %v53_v54 = vld [vmem:[%s28768_s0 + $0xc8] sm:$0xff] }
 0x318   :  { %20773 = vmatpush3.bf16.msra.mxu0 %v22729_v53  ;;  %v22771_v53 = vld [vmem:[%s28769_s1 + $0x19c0] sm:$0xff]  }
 0x319   :  { %20774 = vmatprep.subr.bf16.mxu0 %v22732_v56  ;;  %20795 = vmatpush3.bf16.msra.mxu1 %v22731_v55  ;;  %v560_v55 = vrot.slane %v53_v54, %v23710_v41  ;;  %v22772_v56 = vld [vmem:[%s28769_s1 + $0x1980] sm:$0xff]  }
 0x31a   :  { %20796 = vmatprep.subr.bf16.mxu1 %v22734_v58  ;;  %v22773_v58 = vld [vmem:[%s28769_s1 + $0x1a78] sm:$0xff]  }
 0x31c   :  { %20775 = vmatpush3.bf16.msra.mxu0 %v22733_v57  ;;  %v553_v57 = vcombine.high %v53_v54, %v53_v54  ;;  %v22809_v54 = vld [vmem:[%s28769_s1 + $0x1bf8] sm:$0xff]  }
 0x31d   :  { %20776 = vmatprep.subr.bf16.mxu0 %v22736_v60  ;;  %20797 = vmatpush3.bf16.msra.mxu1 %v22735_v59  ;;  %v568_v59 = vcombine.high %v560_v55, %v560_v55 }
 0x31e   :  { %20798 = vmatprep.subr.bf16.mxu1 %v22738_v62  ;;  %v567_v60 = vrot.slane %v553_v57, %v23710_v41  ;;  %v1267_v62 = vpack.c.bf16 %v560_v55, %v560_v55  ;;  %v22810_v57 = vld [vmem:[%s28769_s1 + $0x1bb8] sm:$0xff]  }
 0x31f   :  { %v1268_v0 = vpack.c.bf16 %v568_v59, %v568_v59  ;;  %v22811_v59 = vld [vmem:[%s28769_s1 + $0x1b70] sm:$0xff]  }
 0x320   :  { %20777 = vmatpush3.bf16.msra.mxu0 %v22737_v61  ;;  %v22775_v61 = vld [vmem:[%s28769_s1 + $0x1a38] sm:$0xff]  }
 0x321   :  { %20806 = vmatprep.subr.bf16.mxu0 %v22740_v3  ;;  %20799 = vmatpush3.bf16.msra.mxu1 %v22739_v1  ;;  %v569_v1 = vcombine.high %v567_v60, %v567_v60  ;;  %v1269_v3 = vpack.c.bf16 %v567_v60, %v567_v60 }
 0x322   :  { %20828 = vmatprep.subr.bf16.mxu1 %v22743_v8 }
 0x323   :  { %v20514_v14 = vpop.f32.mrf.mxu0  ;;  %15991 = vmatmul.mubr.bf16.vlgmr.msra.gmra.mxu0 %v1263_v7  ;;  %v22779_v7 = vld [vmem:[%s28769_s1 + $0x1a30] sm:$0xff]  }
 0x324   :  { %v20536_v17 = vpop.f32.mrf.mxu1  ;;  %20807 = vmatpush3.bf16.msra.mxu0 %v22742_v6  ;;  %16031 = vmatmul.mubr.bf16.vlgmr.msra.gmra.mxu1 %v1265_v12  ;;  %v1270_v6 = vpack.c.bf16 %v569_v1, %v569_v1 }
 0x325   :  { %v20515_v19 = vpop.f32.mrf.mxu0  ;;  %20808 = vmatprep.subr.bf16.mxu0 %v22745_v13  ;;  %20829 = vmatpush3.bf16.msra.mxu1 %v22744_v11  ;;  %v22781_v11 = vld [vmem:[%s28769_s1 + $0x1ab0] sm:$0xff]  }
 0x326   :  { %v20516_v21 = vadd.f32 %v20515_v19, %v20514_v14  ;;  %v20537_v22 = vpop.f32.mrf.mxu1  ;;  %20830 = vmatprep.subr.bf16.mxu1 %v22747_v18  ;;  %16070 = vmatprep.mubr.bf16.mxu0 %v1268_v0  ;;  %v22782_v14 = vld [vmem:[%s28769_s1 + $0x1a68] sm:$0xff]   ;;  %v22813_v0 = vld [vmem:[%s28769_s1 + $0x1bf0] sm:$0xff]  }
 0x327   :  { %v20517_v24 = vpop.f32.mrf.mxu0  ;;  %v20538_v25 = vadd.f32 %v20537_v22, %v20536_v17  ;;  %16110 = vmatprep.mubr.bf16.mxu1 %v1270_v6  ;;  %v22783_v17 = vld [vmem:[%s28769_s1 + $0x1a28] sm:$0xff]  }
 0x328   :  { %v15513_v27 = vadd.f32 %v20516_v21, %v26121_v43  ;;  %v20539_v29 = vpop.f32.mrf.mxu1  ;;  %20809 = vmatpush3.bf16.msra.mxu0 %v22746_v16  ;;  %v22761_v43 = vld [vmem:[%s28769_s1 + $0x1950] sm:$0xff]   ;;  %v22784_v19 = vld [vmem:[%s28769_s1 + $0x1ae8] sm:$0xff]   ;;  %v22786_v24 = vld [vmem:[%s28769_s1 + $0x1a60] sm:$0xff]  }
 0x329   :  { %v20518_v30 = vpop.f32.mrf.mxu0  ;;  %20810 = vmatprep.subr.bf16.mxu0 %v22749_v23  ;;  %20831 = vmatpush3.bf16.msra.mxu1 %v22748_v20  ;;  %v22785_v22 = vld [vmem:[%s28769_s1 + $0x1aa8] sm:$0xff]   ;;  %v22790_v29 = vld [vmem:[%s28769_s1 + $0x1a58] sm:$0xff]  }
 0x32a   :  { %v26222_v32 = vadd.f32 %v20538_v25, %v15513_v27  ;;  %v20540_v34 = vpop.f32.mrf.mxu1  ;;  %20832 = vmatprep.subr.bf16.mxu1 %v22751_v28  ;;  %v22788_v27 = vld [vmem:[%s28769_s1 + $0x1ae0] sm:$0xff]   ;;  %v22791_v30 = vld [vmem:[%s28769_s1 + $0x1a18] sm:$0xff]  }
 0x32b   :  { %v22789_v28 = vld [vmem:[%s28769_s1 + $0x1aa0] sm:$0xff]   ;;  %v22795_v34 = vld [vmem:[%s28769_s1 + $0x1a10] sm:$0xff]  }
 0x32c   :  { %20811 = vmatpush3.bf16.msra.mxu0 %v22750_v26  ;;  %v22787_v26 = vld [vmem:[%s28769_s1 + $0x1a20] sm:$0xff]  }
 0x32d   :  { %20812 = vmatprep.subr.bf16.mxu0 %v22753_v33  ;;  %20833 = vmatpush3.bf16.msra.mxu1 %v22752_v31  ;;  %v22792_v31 = vld [vmem:[%s28769_s1 + $0x1ad8] sm:$0xff]   ;;  %v22794_v33 = vld [vmem:[%s28769_s1 + $0x1a50] sm:$0xff]  }
 0x32e   :  { %20834 = vmatprep.subr.bf16.mxu1 %v22755_v36  ;;  %v22797_v36 = vld [vmem:[%s28769_s1 + $0x1a90] sm:$0xff]  }
 0x330   :  { %20813 = vmatpush3.bf16.msra.mxu0 %v22754_v35  ;;  %v22796_v35 = vld [vmem:[%s28769_s1 + $0x1ad0] sm:$0xff]  }
 0x331   :  { %20814 = vmatprep.subr.bf16.mxu0 %v22757_v38  ;;  %20835 = vmatpush3.bf16.msra.mxu1 %v22756_v37  ;;  %v22798_v37 = vld [vmem:[%s28769_s1 + $0x1a48] sm:$0xff]  }
 0x332   :  { %20836 = vmatprep.subr.bf16.mxu1 %v22759_v40  ;;  %v22799_v38 = vld [vmem:[%s28769_s1 + $0x1a08] sm:$0xff]  }
 0x333   :  { %v22801_v40 = vld [vmem:[%s28769_s1 + $0x1a88] sm:$0xff]  }
 0x334   :  { %20815 = vmatpush3.bf16.msra.mxu0 %v22758_v39  ;;  %v22800_v39 = vld [vmem:[%s28769_s1 + $0x1ac8] sm:$0xff]  }
 0x335   :  { %20816 = vmatprep.subr.bf16.mxu0 %v22761_v43  ;;  %20837 = vmatpush3.bf16.msra.mxu1 %v22760_v42  ;;  %v22802_v42 = vld [vmem:[%s28769_s1 + $0x1a40] sm:$0xff]  }
 0x336   :  { %20838 = vmatprep.subr.bf16.mxu1 %v22763_v45  ;;  %v22803_v43 = vld [vmem:[%s28769_s1 + $0x1a00] sm:$0xff]   ;;  %v54_v45 = vld [vmem:[%s28768_s0 + $0xd0] sm:$0xff] }
 0x338   :  { %20817 = vmatpush3.bf16.msra.mxu0 %v22762_v44  ;;  %v22804_v44 = vld [vmem:[%s28769_s1 + $0x1ac0] sm:$0xff]  }
 0x339   :  { %20818 = vmatprep.subr.bf16.mxu0 %v22765_v47  ;;  %20839 = vmatpush3.bf16.msra.mxu1 %v22764_v46  ;;  %v577_v46 = vrot.slane %v54_v45, %v23710_v41  ;;  %v22805_v47 = vld [vmem:[%s28769_s1 + $0x1a80] sm:$0xff]  }
 0x33a   :  { %20840 = vmatprep.subr.bf16.mxu1 %v22767_v49  ;;  %v22806_v49 = vld [vmem:[%s28769_s1 + $0x1b78] sm:$0xff]  }
 0x33c   :  { %20819 = vmatpush3.bf16.msra.mxu0 %v22766_v48  ;;  %v570_v48 = vcombine.high %v54_v45, %v54_v45  ;;  %v22842_v45 = vld [vmem:[%s28769_s1 + $0x1cf8] sm:$0xff]  }
 0x33d   :  { %20820 = vmatprep.subr.bf16.mxu0 %v22769_v51  ;;  %20841 = vmatpush3.bf16.msra.mxu1 %v22768_v50  ;;  %v585_v50 = vcombine.high %v577_v46, %v577_v46 }
 0x33e   :  { %20842 = vmatprep.subr.bf16.mxu1 %v22771_v53  ;;  %v584_v51 = vrot.slane %v570_v48, %v23710_v41  ;;  %v1271_v53 = vpack.c.bf16 %v577_v46, %v577_v46  ;;  %v22843_v48 = vld [vmem:[%s28769_s1 + $0x1cb8] sm:$0xff]  }
 0x33f   :  { %v1272_v55 = vpack.c.bf16 %v585_v50, %v585_v50 }
 0x340   :  { %20821 = vmatpush3.bf16.msra.mxu0 %v22770_v52  ;;  %v22808_v52 = vld [vmem:[%s28769_s1 + $0x1b38] sm:$0xff]  }
 0x341   :  { %20850 = vmatprep.subr.bf16.mxu0 %v22773_v58  ;;  %20843 = vmatpush3.bf16.msra.mxu1 %v22772_v56  ;;  %v586_v56 = vcombine.high %v584_v51, %v584_v51  ;;  %v1273_v58 = vpack.c.bf16 %v584_v51, %v584_v51  ;;  %v22844_v51 = vld [vmem:[%s28769_s1 + $0x1c70] sm:$0xff]  }
 0x342   :  { %20872 = vmatprep.subr.bf16.mxu1 %v22776_v63 }
 0x343   :  { %v20558_v5 = vpop.f32.mrf.mxu0  ;;  %16071 = vmatmul.mubr.bf16.vlgmr.msra.gmra.mxu0 %v1267_v62  ;;  %v22812_v62 = vld [vmem:[%s28769_s1 + $0x1b30] sm:$0xff]  }
 0x344   :  { %v20580_v8 = vpop.f32.mrf.mxu1  ;;  %20851 = vmatpush3.bf16.msra.mxu0 %v22775_v61  ;;  %16111 = vmatmul.mubr.bf16.vlgmr.msra.gmra.mxu1 %v1269_v3  ;;  %v1274_v61 = vpack.c.bf16 %v586_v56, %v586_v56  ;;  %v22846_v56 = vld [vmem:[%s28769_s1 + $0x1cf0] sm:$0xff]  }
 0x345   :  { %v20559_v10 = vpop.f32.mrf.mxu0  ;;  %20852 = vmatprep.subr.bf16.mxu0 %v22778_v4  ;;  %20873 = vmatpush3.bf16.msra.mxu1 %v22777_v2  ;;  %v22814_v2 = vld [vmem:[%s28769_s1 + $0x1bb0] sm:$0xff]  }
 0x346   :  { %v20560_v12 = vadd.f32 %v20559_v10, %v20558_v5  ;;  %v20581_v13 = vpop.f32.mrf.mxu1  ;;  %20874 = vmatprep.subr.bf16.mxu1 %v22780_v9  ;;  %16150 = vmatprep.mubr.bf16.mxu0 %v1272_v55  ;;  %v22815_v5 = vld [vmem:[%s28769_s1 + $0x1b68] sm:$0xff]  }
 0x347   :  { %v20561_v15 = vpop.f32.mrf.mxu0  ;;  %v20582_v16 = vadd.f32 %v20581_v13, %v20580_v8  ;;  %16190 = vmatprep.mubr.bf16.mxu1 %v1274_v61  ;;  %v22816_v8 = vld [vmem:[%s28769_s1 + $0x1b28] sm:$0xff]  }
 0x348   :  { %v15593_v18 = vadd.f32 %v20560_v12, %v26222_v32  ;;  %v20583_v20 = vpop.f32.mrf.mxu1  ;;  %20853 = vmatpush3.bf16.msra.mxu0 %v22779_v7  ;;  %v22793_v32 = vld [vmem:[%s28769_s1 + $0x1a98] sm:$0xff]   ;;  %v22817_v10 = vld [vmem:[%s28769_s1 + $0x1be8] sm:$0xff]   ;;  %v22819_v15 = vld [vmem:[%s28769_s1 + $0x1b60] sm:$0xff]  }
 0x349   :  { %v20562_v21 = vpop.f32.mrf.mxu0  ;;  %20854 = vmatprep.subr.bf16.mxu0 %v22782_v14  ;;  %20875 = vmatpush3.bf16.msra.mxu1 %v22781_v11  ;;  %v22818_v13 = vld [vmem:[%s28769_s1 + $0x1ba8] sm:$0xff]   ;;  %v22823_v20 = vld [vmem:[%s28769_s1 + $0x1b58] sm:$0xff]  }
 0x34a   :  { %v26326_v23 = vadd.f32 %v20582_v16, %v15593_v18  ;;  %v20584_v25 = vpop.f32.mrf.mxu1  ;;  %20876 = vmatprep.subr.bf16.mxu1 %v22784_v19  ;;  %v22821_v18 = vld [vmem:[%s28769_s1 + $0x1be0] sm:$0xff]   ;;  %v22824_v21 = vld [vmem:[%s28769_s1 + $0x1b18] sm:$0xff]   ;;  %v22848_v61 = vld [vmem:[%s28769_s1 + $0x1c68] sm:$0xff]  }
 0x34b   :  { %v22822_v19 = vld [vmem:[%s28769_s1 + $0x1ba0] sm:$0xff]   ;;  %v22828_v25 = vld [vmem:[%s28769_s1 + $0x1b10] sm:$0xff]  }
 0x34c   :  { %20855 = vmatpush3.bf16.msra.mxu0 %v22783_v17  ;;  %v22820_v17 = vld [vmem:[%s28769_s1 + $0x1b20] sm:$0xff]  }
 0x34d   :  { %20856 = vmatprep.subr.bf16.mxu0 %v22786_v24  ;;  %20877 = vmatpush3.bf16.msra.mxu1 %v22785_v22  ;;  %v22825_v22 = vld [vmem:[%s28769_s1 + $0x1bd8] sm:$0xff]   ;;  %v22827_v24 = vld [vmem:[%s28769_s1 + $0x1b50] sm:$0xff]  }
 0x34e   :  { %20878 = vmatprep.subr.bf16.mxu1 %v22788_v27  ;;  %v22830_v27 = vld [vmem:[%s28769_s1 + $0x1b90] sm:$0xff]  }
 0x350   :  { %20857 = vmatpush3.bf16.msra.mxu0 %v22787_v26  ;;  %v22829_v26 = vld [vmem:[%s28769_s1 + $0x1bd0] sm:$0xff]  }
 0x351   :  { %20858 = vmatprep.subr.bf16.mxu0 %v22790_v29  ;;  %20879 = vmatpush3.bf16.msra.mxu1 %v22789_v28  ;;  %v22831_v28 = vld [vmem:[%s28769_s1 + $0x1b48] sm:$0xff]  }
 0x352   :  { %20880 = vmatprep.subr.bf16.mxu1 %v22792_v31  ;;  %v22832_v29 = vld [vmem:[%s28769_s1 + $0x1b08] sm:$0xff]  }
 0x353   :  { %v22834_v31 = vld [vmem:[%s28769_s1 + $0x1b88] sm:$0xff]  }
 0x354   :  { %20859 = vmatpush3.bf16.msra.mxu0 %v22791_v30  ;;  %v22833_v30 = vld [vmem:[%s28769_s1 + $0x1bc8] sm:$0xff]  }
 0x355   :  { %20860 = vmatprep.subr.bf16.mxu0 %v22794_v33  ;;  %20881 = vmatpush3.bf16.msra.mxu1 %v22793_v32  ;;  %v22835_v32 = vld [vmem:[%s28769_s1 + $0x1b40] sm:$0xff]  }
 0x356   :  { %20882 = vmatprep.subr.bf16.mxu1 %v22796_v35  ;;  %v22836_v33 = vld [vmem:[%s28769_s1 + $0x1b00] sm:$0xff]   ;;  %v55_v35 = vld [vmem:[%s28768_s0 + $0xd8] sm:$0xff] }
 0x358   :  { %20861 = vmatpush3.bf16.msra.mxu0 %v22795_v34  ;;  %v22837_v34 = vld [vmem:[%s28769_s1 + $0x1bc0] sm:$0xff]  }
 0x359   :  { %20862 = vmatprep.subr.bf16.mxu0 %v22798_v37  ;;  %20883 = vmatpush3.bf16.msra.mxu1 %v22797_v36  ;;  %v594_v36 = vrot.slane %v55_v35, %v23710_v41  ;;  %v22838_v37 = vld [vmem:[%s28769_s1 + $0x1b80] sm:$0xff]  }
 0x35a   :  { %20884 = vmatprep.subr.bf16.mxu1 %v22800_v39  ;;  %v22839_v39 = vld [vmem:[%s28769_s1 + $0x1c78] sm:$0xff]  }
 0x35c   :  { %20863 = vmatpush3.bf16.msra.mxu0 %v22799_v38  ;;  %v587_v38 = vcombine.high %v55_v35, %v55_v35  ;;  %v22875_v35 = vld [vmem:[%s28769_s1 + $0x1df8] sm:$0xff]  }
 0x35d   :  { %20864 = vmatprep.subr.bf16.mxu0 %v22802_v42  ;;  %20885 = vmatpush3.bf16.msra.mxu1 %v22801_v40  ;;  %v602_v40 = vcombine.high %v594_v36, %v594_v36 }
 0x35e   :  { %20886 = vmatprep.subr.bf16.mxu1 %v22804_v44  ;;  %v601_v42 = vrot.slane %v587_v38, %v23710_v41  ;;  %v1275_v44 = vpack.c.bf16 %v594_v36, %v594_v36  ;;  %v22876_v38 = vld [vmem:[%s28769_s1 + $0x1db8] sm:$0xff]  }
 0x35f   :  { %v1276_v46 = vpack.c.bf16 %v602_v40, %v602_v40 }
 0x360   :  { %20865 = vmatpush3.bf16.msra.mxu0 %v22803_v43  ;;  %v22841_v43 = vld [vmem:[%s28769_s1 + $0x1c38] sm:$0xff]   ;;  %v1277_v50 = vpack.c.bf16 %v601_v42, %v601_v42 }
 0x361   :  { %20894 = vmatprep.subr.bf16.mxu0 %v22806_v49  ;;  %20887 = vmatpush3.bf16.msra.mxu1 %v22805_v47  ;;  %v603_v47 = vcombine.high %v601_v42, %v601_v42  ;;  %v22877_v42 = vld [vmem:[%s28769_s1 + $0x1d70] sm:$0xff]  }
 0x362   :  { %20916 = vmatprep.subr.bf16.mxu1 %v22809_v54 }
 0x363   :  { %v20602_v60 = vpop.f32.mrf.mxu0  ;;  %16151 = vmatmul.mubr.bf16.vlgmr.msra.gmra.mxu0 %v1271_v53  ;;  %v22845_v53 = vld [vmem:[%s28769_s1 + $0x1c30] sm:$0xff]  }
 0x364   :  { %v20624_v63 = vpop.f32.mrf.mxu1  ;;  %20895 = vmatpush3.bf16.msra.mxu0 %v22808_v52  ;;  %16191 = vmatmul.mubr.bf16.vlgmr.msra.gmra.mxu1 %v1273_v58  ;;  %v1278_v52 = vpack.c.bf16 %v603_v47, %v603_v47  ;;  %v22847_v58 = vld [vmem:[%s28769_s1 + $0x1cb0] sm:$0xff]  }
 0x365   :  { %v20603_v1 = vpop.f32.mrf.mxu0  ;;  %20896 = vmatprep.subr.bf16.mxu0 %v22811_v59  ;;  %20917 = vmatpush3.bf16.msra.mxu1 %v22810_v57  ;;  %v22879_v47 = vld [vmem:[%s28769_s1 + $0x1df0] sm:$0xff]  }
 0x366   :  { %v20604_v3 = vadd.f32 %v20603_v1, %v20602_v60  ;;  %v20625_v4 = vpop.f32.mrf.mxu1  ;;  %20918 = vmatprep.subr.bf16.mxu1 %v22813_v0  ;;  %16230 = vmatprep.mubr.bf16.mxu0 %v1276_v46  ;;  %v22849_v0 = vld [vmem:[%s28769_s1 + $0x1c28] sm:$0xff]  }
 0x367   :  { %v20605_v6 = vpop.f32.mrf.mxu0  ;;  %v20626_v7 = vadd.f32 %v20625_v4, %v20624_v63  ;;  %16270 = vmatprep.mubr.bf16.mxu1 %v1278_v52  ;;  %v22881_v52 = vld [vmem:[%s28769_s1 + $0x1d68] sm:$0xff]  }
 0x368   :  { %v15673_v9 = vadd.f32 %v20604_v3, %v26326_v23  ;;  %v20627_v11 = vpop.f32.mrf.mxu1  ;;  %20897 = vmatpush3.bf16.msra.mxu0 %v22812_v62  ;;  %v22826_v23 = vld [vmem:[%s28769_s1 + $0x1b98] sm:$0xff]   ;;  %v22852_v6 = vld [vmem:[%s28769_s1 + $0x1c60] sm:$0xff]  }
 0x369   :  { %v20606_v12 = vpop.f32.mrf.mxu0  ;;  %20898 = vmatprep.subr.bf16.mxu0 %v22815_v5  ;;  %20919 = vmatpush3.bf16.msra.mxu1 %v22814_v2  ;;  %v22850_v2 = vld [vmem:[%s28769_s1 + $0x1ce8] sm:$0xff]   ;;  %v22856_v11 = vld [vmem:[%s28769_s1 + $0x1c58] sm:$0xff]  }
 0x36a   :  { %v26430_v14 = vadd.f32 %v20626_v7, %v15673_v9  ;;  %v20628_v16 = vpop.f32.mrf.mxu1  ;;  %20920 = vmatprep.subr.bf16.mxu1 %v22817_v10  ;;  %v22851_v5 = vld [vmem:[%s28769_s1 + $0x1ca8] sm:$0xff]   ;;  %v22854_v9 = vld [vmem:[%s28769_s1 + $0x1ce0] sm:$0xff]   ;;  %v22857_v12 = vld [vmem:[%s28769_s1 + $0x1c18] sm:$0xff]  }
 0x36b   :  { %v22855_v10 = vld [vmem:[%s28769_s1 + $0x1ca0] sm:$0xff]   ;;  %v22861_v16 = vld [vmem:[%s28769_s1 + $0x1c10] sm:$0xff]  }
 0x36c   :  { %20899 = vmatpush3.bf16.msra.mxu0 %v22816_v8  ;;  %v22853_v8 = vld [vmem:[%s28769_s1 + $0x1c20] sm:$0xff]  }
 0x36d   :  { %20900 = vmatprep.subr.bf16.mxu0 %v22819_v15  ;;  %20921 = vmatpush3.bf16.msra.mxu1 %v22818_v13  ;;  %v22858_v13 = vld [vmem:[%s28769_s1 + $0x1cd8] sm:$0xff]   ;;  %v22860_v15 = vld [vmem:[%s28769_s1 + $0x1c50] sm:$0xff]  }
 0x36e   :  { %20922 = vmatprep.subr.bf16.mxu1 %v22821_v18  ;;  %v22863_v18 = vld [vmem:[%s28769_s1 + $0x1c90] sm:$0xff]  }
 0x370   :  { %20901 = vmatpush3.bf16.msra.mxu0 %v22820_v17  ;;  %v22862_v17 = vld [vmem:[%s28769_s1 + $0x1cd0] sm:$0xff]  }
 0x371   :  { %20902 = vmatprep.subr.bf16.mxu0 %v22823_v20  ;;  %20923 = vmatpush3.bf16.msra.mxu1 %v22822_v19  ;;  %v22864_v19 = vld [vmem:[%s28769_s1 + $0x1c48] sm:$0xff]  }
 0x372   :  { %20924 = vmatprep.subr.bf16.mxu1 %v22825_v22  ;;  %v22865_v20 = vld [vmem:[%s28769_s1 + $0x1c08] sm:$0xff]  }
 0x373   :  { %v22867_v22 = vld [vmem:[%s28769_s1 + $0x1c88] sm:$0xff]  }
 0x374   :  { %20903 = vmatpush3.bf16.msra.mxu0 %v22824_v21  ;;  %v22866_v21 = vld [vmem:[%s28769_s1 + $0x1cc8] sm:$0xff]  }
 0x375   :  { %20904 = vmatprep.subr.bf16.mxu0 %v22827_v24  ;;  %20925 = vmatpush3.bf16.msra.mxu1 %v22826_v23  ;;  %v22868_v23 = vld [vmem:[%s28769_s1 + $0x1c40] sm:$0xff]  }
 0x376   :  { %20926 = vmatprep.subr.bf16.mxu1 %v22829_v26  ;;  %v22869_v24 = vld [vmem:[%s28769_s1 + $0x1c00] sm:$0xff]  }
 0x377   :  { %v56_v26 = vld [vmem:[%s28768_s0 + $0xe0] sm:$0xff] }
 0x378   :  { %20905 = vmatpush3.bf16.msra.mxu0 %v22828_v25  ;;  %v22870_v25 = vld [vmem:[%s28769_s1 + $0x1cc0] sm:$0xff]  }
 0x379   :  { %20906 = vmatprep.subr.bf16.mxu0 %v22831_v28  ;;  %20927 = vmatpush3.bf16.msra.mxu1 %v22830_v27  ;;  %v611_v27 = vrot.slane %v56_v26, %v23710_v41  ;;  %v22871_v28 = vld [vmem:[%s28769_s1 + $0x1c80] sm:$0xff]  }
 0x37a   :  { %20928 = vmatprep.subr.bf16.mxu1 %v22833_v30  ;;  %v22872_v30 = vld [vmem:[%s28769_s1 + $0x1d78] sm:$0xff]  }
 0x37c   :  { %20907 = vmatpush3.bf16.msra.mxu0 %v22832_v29  ;;  %v604_v29 = vcombine.high %v56_v26, %v56_v26  ;;  %v22908_v26 = vld [vmem:[%s28769_s1 + $0x1ef8] sm:$0xff]  }
 0x37d   :  { %20908 = vmatprep.subr.bf16.mxu0 %v22835_v32  ;;  %20929 = vmatpush3.bf16.msra.mxu1 %v22834_v31  ;;  %v619_v31 = vcombine.high %v611_v27, %v611_v27 }
 0x37e   :  { %20930 = vmatprep.subr.bf16.mxu1 %v22837_v34  ;;  %v618_v32 = vrot.slane %v604_v29, %v23710_v41  ;;  %v1279_v34 = vpack.c.bf16 %v611_v27, %v611_v27  ;;  %v22909_v29 = vld [vmem:[%s28769_s1 + $0x1eb8] sm:$0xff]  }
 0x37f   :  { %v1280_v36 = vpack.c.bf16 %v619_v31, %v619_v31 }
 0x380   :  { %20909 = vmatpush3.bf16.msra.mxu0 %v22836_v33  ;;  %v22874_v33 = vld [vmem:[%s28769_s1 + $0x1d38] sm:$0xff]   ;;  %v1281_v40 = vpack.c.bf16 %v618_v32, %v618_v32 }
 0x381   :  { %20938 = vmatprep.subr.bf16.mxu0 %v22839_v39  ;;  %20931 = vmatpush3.bf16.msra.mxu1 %v22838_v37  ;;  %v620_v37 = vcombine.high %v618_v32, %v618_v32  ;;  %v22910_v32 = vld [vmem:[%s28769_s1 + $0x1e70] sm:$0xff]  }
 0x382   :  { %20960 = vmatprep.subr.bf16.mxu1 %v22842_v45 }
 0x383   :  { %v20646_v49 = vpop.f32.mrf.mxu0  ;;  %16231 = vmatmul.mubr.bf16.vlgmr.msra.gmra.mxu0 %v1275_v44  ;;  %v22878_v44 = vld [vmem:[%s28769_s1 + $0x1d30] sm:$0xff]  }
 0x384   :  { %v20668_v55 = vpop.f32.mrf.mxu1  ;;  %20939 = vmatpush3.bf16.msra.mxu0 %v22841_v43  ;;  %16271 = vmatmul.mubr.bf16.vlgmr.msra.gmra.mxu1 %v1277_v50  ;;  %v1282_v43 = vpack.c.bf16 %v620_v37, %v620_v37  ;;  %v22912_v37 = vld [vmem:[%s28769_s1 + $0x1ef0] sm:$0xff]  }
 0x385   :  { %v20647_v54 = vpop.f32.mrf.mxu0  ;;  %20940 = vmatprep.subr.bf16.mxu0 %v22844_v51  ;;  %20961 = vmatpush3.bf16.msra.mxu1 %v22843_v48 }
 0x386   :  { %v20648_v57 = vadd.f32 %v20647_v54, %v20646_v49  ;;  %v20669_v60 = vpop.f32.mrf.mxu1  ;;  %20962 = vmatprep.subr.bf16.mxu1 %v22846_v56  ;;  %16310 = vmatprep.mubr.bf16.mxu0 %v1280_v36  ;;  %v22880_v49 = vld [vmem:[%s28769_s1 + $0x1db0] sm:$0xff]  }
 0x387   :  { %v20649_v59 = vpop.f32.mrf.mxu0  ;;  %v20670_v63 = vadd.f32 %v20669_v60, %v20668_v55  ;;  %16350 = vmatprep.mubr.bf16.mxu1 %v1282_v43  ;;  %v22882_v55 = vld [vmem:[%s28769_s1 + $0x1d28] sm:$0xff]  }
 0x388   :  { %v15753_v62 = vadd.f32 %v20648_v57, %v26430_v14  ;;  %v20671_v3 = vpop.f32.mrf.mxu1  ;;  %20941 = vmatpush3.bf16.msra.mxu0 %v22845_v53  ;;  %v22859_v14 = vld [vmem:[%s28769_s1 + $0x1c98] sm:$0xff]   ;;  %v22883_v57 = vld [vmem:[%s28769_s1 + $0x1de8] sm:$0xff]  }
 0x389   :  { %v20650_v1 = vpop.f32.mrf.mxu0  ;;  %20942 = vmatprep.subr.bf16.mxu0 %v22848_v61  ;;  %20963 = vmatpush3.bf16.msra.mxu1 %v22847_v58  ;;  %v22884_v60 = vld [vmem:[%s28769_s1 + $0x1da8] sm:$0xff]   ;;  %v22885_v61 = vld [vmem:[%s28769_s1 + $0x1d60] sm:$0xff]   ;;  %v22890_v3 = vld [vmem:[%s28769_s1 + $0x1d18] sm:$0xff]  }
 0x38a   :  { %v26531_v4 = vadd.f32 %v20670_v63, %v15753_v62  ;;  %v20672_v7 = vpop.f32.mrf.mxu1  ;;  %20964 = vmatprep.subr.bf16.mxu1 %v22850_v2  ;;  %v22886_v63 = vld [vmem:[%s28769_s1 + $0x1d20] sm:$0xff]   ;;  %v22889_v2 = vld [vmem:[%s28769_s1 + $0x1d58] sm:$0xff]   ;;  %v22914_v43 = vld [vmem:[%s28769_s1 + $0x1e68] sm:$0xff]  }
 0x38b   :  { %v22888_v1 = vld [vmem:[%s28769_s1 + $0x1da0] sm:$0xff]   ;;  %v22894_v7 = vld [vmem:[%s28769_s1 + $0x1d10] sm:$0xff]  }
 0x38c   :  { %20943 = vmatpush3.bf16.msra.mxu0 %v22849_v0  ;;  %v22887_v0 = vld [vmem:[%s28769_s1 + $0x1de0] sm:$0xff]  }
 0x38d   :  { %20944 = vmatprep.subr.bf16.mxu0 %v22852_v6  ;;  %20965 = vmatpush3.bf16.msra.mxu1 %v22851_v5  ;;  %v22892_v5 = vld [vmem:[%s28769_s1 + $0x1d98] sm:$0xff]   ;;  %v22893_v6 = vld [vmem:[%s28769_s1 + $0x1d50] sm:$0xff]  }
 0x38e   :  { %20966 = vmatprep.subr.bf16.mxu1 %v22854_v9  ;;  %v22896_v9 = vld [vmem:[%s28769_s1 + $0x1d90] sm:$0xff]  }
 0x390   :  { %20945 = vmatpush3.bf16.msra.mxu0 %v22853_v8  ;;  %v22895_v8 = vld [vmem:[%s28769_s1 + $0x1dd0] sm:$0xff]  }
 0x391   :  { %20946 = vmatprep.subr.bf16.mxu0 %v22856_v11  ;;  %20967 = vmatpush3.bf16.msra.mxu1 %v22855_v10  ;;  %v22897_v10 = vld [vmem:[%s28769_s1 + $0x1d48] sm:$0xff]  }
 0x392   :  { %20968 = vmatprep.subr.bf16.mxu1 %v22858_v13  ;;  %v22898_v11 = vld [vmem:[%s28769_s1 + $0x1d08] sm:$0xff]  }
 0x393   :  { %v22900_v13 = vld [vmem:[%s28769_s1 + $0x1d88] sm:$0xff]  }
 0x394   :  { %20947 = vmatpush3.bf16.msra.mxu0 %v22857_v12  ;;  %v22899_v12 = vld [vmem:[%s28769_s1 + $0x1dc8] sm:$0xff]  }
 0x395   :  { %20948 = vmatprep.subr.bf16.mxu0 %v22860_v15  ;;  %20969 = vmatpush3.bf16.msra.mxu1 %v22859_v14  ;;  %v22901_v14 = vld [vmem:[%s28769_s1 + $0x1d40] sm:$0xff]  }
 0x396   :  { %20970 = vmatprep.subr.bf16.mxu1 %v22862_v17  ;;  %v22902_v15 = vld [vmem:[%s28769_s1 + $0x1d00] sm:$0xff]   ;;  %v57_v17 = vld [vmem:[%s28768_s0 + $0xe8] sm:$0xff] }
 0x398   :  { %20949 = vmatpush3.bf16.msra.mxu0 %v22861_v16  ;;  %v22903_v16 = vld [vmem:[%s28769_s1 + $0x1dc0] sm:$0xff]  }
 0x399   :  { %20950 = vmatprep.subr.bf16.mxu0 %v22864_v19  ;;  %20971 = vmatpush3.bf16.msra.mxu1 %v22863_v18  ;;  %v628_v18 = vrot.slane %v57_v17, %v23710_v41  ;;  %v22904_v19 = vld [vmem:[%s28769_s1 + $0x1d80] sm:$0xff]  }
 0x39a   :  { %20972 = vmatprep.subr.bf16.mxu1 %v22866_v21  ;;  %v22905_v21 = vld [vmem:[%s28769_s1 + $0x1e78] sm:$0xff]  }
 0x39c   :  { %20951 = vmatpush3.bf16.msra.mxu0 %v22865_v20  ;;  %v621_v20 = vcombine.high %v57_v17, %v57_v17  ;;  %v22941_v17 = vld [vmem:[%s28769_s1 + $0x1ff8] sm:$0xff]  }
 0x39d   :  { %20952 = vmatprep.subr.bf16.mxu0 %v22868_v23  ;;  %20973 = vmatpush3.bf16.msra.mxu1 %v22867_v22  ;;  %v636_v22 = vcombine.high %v628_v18, %v628_v18 }
 0x39e   :  { %20974 = vmatprep.subr.bf16.mxu1 %v22870_v25  ;;  %v635_v23 = vrot.slane %v621_v20, %v23710_v41  ;;  %v1283_v25 = vpack.c.bf16 %v628_v18, %v628_v18  ;;  %v22942_v20 = vld [vmem:[%s28769_s1 + $0x1fb8] sm:$0xff]  }
 0x39f   :  { %v1284_v27 = vpack.c.bf16 %v636_v22, %v636_v22 }
 0x3a0   :  { %20953 = vmatpush3.bf16.msra.mxu0 %v22869_v24  ;;  %v22907_v24 = vld [vmem:[%s28769_s1 + $0x1e38] sm:$0xff]   ;;  %v1285_v31 = vpack.c.bf16 %v635_v23, %v635_v23 }
 0x3a1   :  { %20982 = vmatprep.subr.bf16.mxu0 %v22872_v30  ;;  %20975 = vmatpush3.bf16.msra.mxu1 %v22871_v28  ;;  %v637_v28 = vcombine.high %v635_v23, %v635_v23  ;;  %v22943_v23 = vld [vmem:[%s28769_s1 + $0x1f70] sm:$0xff]  }
 0x3a2   :  { %21004 = vmatprep.subr.bf16.mxu1 %v22875_v35 }
 0x3a3   :  { %v20690_v39 = vpop.f32.mrf.mxu0  ;;  %16311 = vmatmul.mubr.bf16.vlgmr.msra.gmra.mxu0 %v1279_v34  ;;  %v22911_v34 = vld [vmem:[%s28769_s1 + $0x1e30] sm:$0xff]  }
 0x3a4   :  { %v20712_v46 = vpop.f32.mrf.mxu1  ;;  %20983 = vmatpush3.bf16.msra.mxu0 %v22874_v33  ;;  %16351 = vmatmul.mubr.bf16.vlgmr.msra.gmra.mxu1 %v1281_v40  ;;  %v1286_v33 = vpack.c.bf16 %v637_v28, %v637_v28  ;;  %v22945_v28 = vld [vmem:[%s28769_s1 + $0x1ff0] sm:$0xff]  }
 0x3a5   :  { %v20691_v45 = vpop.f32.mrf.mxu0  ;;  %20984 = vmatprep.subr.bf16.mxu0 %v22877_v42  ;;  %21005 = vmatpush3.bf16.msra.mxu1 %v22876_v38 }
 0x3a6   :  { %v20692_v48 = vadd.f32 %v20691_v45, %v20690_v39  ;;  %v20713_v51 = vpop.f32.mrf.mxu1  ;;  %21006 = vmatprep.subr.bf16.mxu1 %v22879_v47  ;;  %16390 = vmatprep.mubr.bf16.mxu0 %v1284_v27  ;;  %v22913_v39 = vld [vmem:[%s28769_s1 + $0x1eb0] sm:$0xff]  }
 0x3a7   :  { %v20693_v50 = vpop.f32.mrf.mxu0  ;;  %v20714_v54 = vadd.f32 %v20713_v51, %v20712_v46  ;;  %16430 = vmatprep.mubr.bf16.mxu1 %v1286_v33  ;;  %v22915_v46 = vld [vmem:[%s28769_s1 + $0x1e28] sm:$0xff]  }
 0x3a8   :  { %v15833_v53 = vadd.f32 %v20692_v48, %v26531_v4  ;;  %v20715_v58 = vpop.f32.mrf.mxu1  ;;  %20985 = vmatpush3.bf16.msra.mxu0 %v22878_v44  ;;  %v22891_v4 = vld [vmem:[%s28769_s1 + $0x1dd8] sm:$0xff]   ;;  %v22916_v48 = vld [vmem:[%s28769_s1 + $0x1ee8] sm:$0xff]  }
 0x3a9   :  { %v20694_v56 = vpop.f32.mrf.mxu0  ;;  %20986 = vmatprep.subr.bf16.mxu0 %v22881_v52  ;;  %21007 = vmatpush3.bf16.msra.mxu1 %v22880_v49  ;;  %v22917_v51 = vld [vmem:[%s28769_s1 + $0x1ea8] sm:$0xff]   ;;  %v22918_v52 = vld [vmem:[%s28769_s1 + $0x1e60] sm:$0xff]   ;;  %v22923_v58 = vld [vmem:[%s28769_s1 + $0x1e18] sm:$0xff]  }
 0x3aa   :  { %v26635_v59 = vadd.f32 %v20714_v54, %v15833_v53  ;;  %v20716_v62 = vpop.f32.mrf.mxu1  ;;  %21008 = vmatprep.subr.bf16.mxu1 %v22883_v57  ;;  %v22919_v54 = vld [vmem:[%s28769_s1 + $0x1e20] sm:$0xff]   ;;  %v22922_v57 = vld [vmem:[%s28769_s1 + $0x1e58] sm:$0xff]   ;;  %v22947_v33 = vld [vmem:[%s28769_s1 + $0x1f68] sm:$0xff]  }
 0x3ab   :  { %v22921_v56 = vld [vmem:[%s28769_s1 + $0x1ea0] sm:$0xff]   ;;  %v22927_v62 = vld [vmem:[%s28769_s1 + $0x1e10] sm:$0xff]  }
 0x3ac   :  { %20987 = vmatpush3.bf16.msra.mxu0 %v22882_v55  ;;  %v22920_v55 = vld [vmem:[%s28769_s1 + $0x1ee0] sm:$0xff]  }
 0x3ad   :  { %20988 = vmatprep.subr.bf16.mxu0 %v22885_v61  ;;  %21009 = vmatpush3.bf16.msra.mxu1 %v22884_v60  ;;  %v22925_v60 = vld [vmem:[%s28769_s1 + $0x1e98] sm:$0xff]   ;;  %v22926_v61 = vld [vmem:[%s28769_s1 + $0x1e50] sm:$0xff]  }
 0x3ae   :  { %21010 = vmatprep.subr.bf16.mxu1 %v22887_v0  ;;  %v22929_v0 = vld [vmem:[%s28769_s1 + $0x1e90] sm:$0xff]  }
 0x3b0   :  { %20989 = vmatpush3.bf16.msra.mxu0 %v22886_v63  ;;  %v22928_v63 = vld [vmem:[%s28769_s1 + $0x1ed0] sm:$0xff]  }
 0x3b1   :  { %20990 = vmatprep.subr.bf16.mxu0 %v22889_v2  ;;  %21011 = vmatpush3.bf16.msra.mxu1 %v22888_v1  ;;  %v22930_v1 = vld [vmem:[%s28769_s1 + $0x1e48] sm:$0xff]  }
 0x3b2   :  { %21012 = vmatprep.subr.bf16.mxu1 %v22891_v4  ;;  %v22931_v2 = vld [vmem:[%s28769_s1 + $0x1e08] sm:$0xff]  }
 0x3b3   :  { %v22933_v4 = vld [vmem:[%s28769_s1 + $0x1e88] sm:$0xff]  }
 0x3b4   :  { %20991 = vmatpush3.bf16.msra.mxu0 %v22890_v3  ;;  %v22932_v3 = vld [vmem:[%s28769_s1 + $0x1ec8] sm:$0xff]  }
 0x3b5   :  { %20992 = vmatprep.subr.bf16.mxu0 %v22893_v6  ;;  %21013 = vmatpush3.bf16.msra.mxu1 %v22892_v5  ;;  %v22934_v5 = vld [vmem:[%s28769_s1 + $0x1e40] sm:$0xff]  }
 0x3b6   :  { %21014 = vmatprep.subr.bf16.mxu1 %v22895_v8  ;;  %v22935_v6 = vld [vmem:[%s28769_s1 + $0x1e00] sm:$0xff]   ;;  %v58_v8 = vld [vmem:[%s28768_s0 + $0xf0] sm:$0xff] }
 0x3b8   :  { %20993 = vmatpush3.bf16.msra.mxu0 %v22894_v7  ;;  %v22936_v7 = vld [vmem:[%s28769_s1 + $0x1ec0] sm:$0xff]  }
 0x3b9   :  { %20994 = vmatprep.subr.bf16.mxu0 %v22897_v10  ;;  %21015 = vmatpush3.bf16.msra.mxu1 %v22896_v9  ;;  %v645_v9 = vrot.slane %v58_v8, %v23710_v41  ;;  %v22937_v10 = vld [vmem:[%s28769_s1 + $0x1e80] sm:$0xff]  }
 0x3ba   :  { %21016 = vmatprep.subr.bf16.mxu1 %v22899_v12  ;;  %v22938_v12 = vld [vmem:[%s28769_s1 + $0x1f78] sm:$0xff]  }
 0x3bc   :  { %20995 = vmatpush3.bf16.msra.mxu0 %v22898_v11  ;;  %v638_v11 = vcombine.high %v58_v8, %v58_v8  ;;  %v22974_v8 = vld [vmem:[%s28769_s1 + $0x20f8] sm:$0xff]  }
 0x3bd   :  { %20996 = vmatprep.subr.bf16.mxu0 %v22901_v14  ;;  %21017 = vmatpush3.bf16.msra.mxu1 %v22900_v13  ;;  %v653_v13 = vcombine.high %v645_v9, %v645_v9 }
 0x3be   :  { %21018 = vmatprep.subr.bf16.mxu1 %v22903_v16  ;;  %v652_v14 = vrot.slane %v638_v11, %v23710_v41  ;;  %v1287_v16 = vpack.c.bf16 %v645_v9, %v645_v9  ;;  %v22975_v11 = vld [vmem:[%s28769_s1 + $0x20b8] sm:$0xff]  }
 0x3bf   :  { %v1288_v18 = vpack.c.bf16 %v653_v13, %v653_v13 }
 0x3c0   :  { %20997 = vmatpush3.bf16.msra.mxu0 %v22902_v15  ;;  %v22940_v15 = vld [vmem:[%s28769_s1 + $0x1f38] sm:$0xff]   ;;  %v1289_v22 = vpack.c.bf16 %v652_v14, %v652_v14 }
 0x3c1   :  { %21026 = vmatprep.subr.bf16.mxu0 %v22905_v21  ;;  %21019 = vmatpush3.bf16.msra.mxu1 %v22904_v19  ;;  %v654_v19 = vcombine.high %v652_v14, %v652_v14  ;;  %v22976_v14 = vld [vmem:[%s28769_s1 + $0x2070] sm:$0xff]  }
 0x3c2   :  { %21048 = vmatprep.subr.bf16.mxu1 %v22908_v26 }
 0x3c3   :  { %v20734_v30 = vpop.f32.mrf.mxu0  ;;  %16391 = vmatmul.mubr.bf16.vlgmr.msra.gmra.mxu0 %v1283_v25  ;;  %v22944_v25 = vld [vmem:[%s28769_s1 + $0x1f30] sm:$0xff]  }
 0x3c4   :  { %v20756_v36 = vpop.f32.mrf.mxu1  ;;  %21027 = vmatpush3.bf16.msra.mxu0 %v22907_v24  ;;  %16431 = vmatmul.mubr.bf16.vlgmr.msra.gmra.mxu1 %v1285_v31  ;;  %v1290_v24 = vpack.c.bf16 %v654_v19, %v654_v19  ;;  %v22978_v19 = vld [vmem:[%s28769_s1 + $0x20f0] sm:$0xff]  }
 0x3c5   :  { %v20735_v35 = vpop.f32.mrf.mxu0  ;;  %21028 = vmatprep.subr.bf16.mxu0 %v22910_v32  ;;  %21049 = vmatpush3.bf16.msra.mxu1 %v22909_v29 }
 0x3c6   :  { %v20736_v38 = vadd.f32 %v20735_v35, %v20734_v30  ;;  %v20757_v42 = vpop.f32.mrf.mxu1  ;;  %21050 = vmatprep.subr.bf16.mxu1 %v22912_v37  ;;  %16470 = vmatprep.mubr.bf16.mxu0 %v1288_v18  ;;  %v22946_v30 = vld [vmem:[%s28769_s1 + $0x1fb0] sm:$0xff]  }
 0x3c7   :  { %v20737_v40 = vpop.f32.mrf.mxu0  ;;  %v20758_v45 = vadd.f32 %v20757_v42, %v20756_v36  ;;  %16510 = vmatprep.mubr.bf16.mxu1 %v1290_v24  ;;  %v22948_v36 = vld [vmem:[%s28769_s1 + $0x1f28] sm:$0xff]  }
 0x3c8   :  { %v15913_v44 = vadd.f32 %v20736_v38, %v26635_v59  ;;  %v20759_v49 = vpop.f32.mrf.mxu1  ;;  %21029 = vmatpush3.bf16.msra.mxu0 %v22911_v34  ;;  %v22924_v59 = vld [vmem:[%s28769_s1 + $0x1ed8] sm:$0xff]   ;;  %v22949_v38 = vld [vmem:[%s28769_s1 + $0x1fe8] sm:$0xff]  }
 0x3c9   :  { %v20738_v47 = vpop.f32.mrf.mxu0  ;;  %21030 = vmatprep.subr.bf16.mxu0 %v22914_v43  ;;  %21051 = vmatpush3.bf16.msra.mxu1 %v22913_v39  ;;  %v22950_v42 = vld [vmem:[%s28769_s1 + $0x1fa8] sm:$0xff]   ;;  %v22951_v43 = vld [vmem:[%s28769_s1 + $0x1f60] sm:$0xff]   ;;  %v22956_v49 = vld [vmem:[%s28769_s1 + $0x1f18] sm:$0xff]  }
 0x3ca   :  { %v26739_v50 = vadd.f32 %v20758_v45, %v15913_v44  ;;  %v20760_v53 = vpop.f32.mrf.mxu1  ;;  %21052 = vmatprep.subr.bf16.mxu1 %v22916_v48  ;;  %v22952_v45 = vld [vmem:[%s28769_s1 + $0x1f20] sm:$0xff]   ;;  %v22955_v48 = vld [vmem:[%s28769_s1 + $0x1f58] sm:$0xff]   ;;  %v22980_v24 = vld [vmem:[%s28769_s1 + $0x2068] sm:$0xff]  }
 0x3cb   :  { %v22954_v47 = vld [vmem:[%s28769_s1 + $0x1fa0] sm:$0xff]   ;;  %v22960_v53 = vld [vmem:[%s28769_s1 + $0x1f10] sm:$0xff]  }
 0x3cc   :  { %21031 = vmatpush3.bf16.msra.mxu0 %v22915_v46  ;;  %v22953_v46 = vld [vmem:[%s28769_s1 + $0x1fe0] sm:$0xff]  }
 0x3cd   :  { %21032 = vmatprep.subr.bf16.mxu0 %v22918_v52  ;;  %21053 = vmatpush3.bf16.msra.mxu1 %v22917_v51  ;;  %v22958_v51 = vld [vmem:[%s28769_s1 + $0x1f98] sm:$0xff]   ;;  %v22959_v52 = vld [vmem:[%s28769_s1 + $0x1f50] sm:$0xff]  }
 0x3ce   :  { %21054 = vmatprep.subr.bf16.mxu1 %v22920_v55  ;;  %v22962_v55 = vld [vmem:[%s28769_s1 + $0x1f90] sm:$0xff]  }
 0x3d0   :  { %21033 = vmatpush3.bf16.msra.mxu0 %v22919_v54  ;;  %v22961_v54 = vld [vmem:[%s28769_s1 + $0x1fd0] sm:$0xff]  }
 0x3d1   :  { %21034 = vmatprep.subr.bf16.mxu0 %v22922_v57  ;;  %21055 = vmatpush3.bf16.msra.mxu1 %v22921_v56  ;;  %v22963_v56 = vld [vmem:[%s28769_s1 + $0x1f48] sm:$0xff]  }
 0x3d2   :  { %21056 = vmatprep.subr.bf16.mxu1 %v22924_v59  ;;  %v22964_v57 = vld [vmem:[%s28769_s1 + $0x1f08] sm:$0xff]  }
 0x3d3   :  { %v22966_v59 = vld [vmem:[%s28769_s1 + $0x1f88] sm:$0xff]  }
 0x3d4   :  { %21035 = vmatpush3.bf16.msra.mxu0 %v22923_v58  ;;  %v22965_v58 = vld [vmem:[%s28769_s1 + $0x1fc8] sm:$0xff]  }
 0x3d5   :  { %21036 = vmatprep.subr.bf16.mxu0 %v22926_v61  ;;  %21057 = vmatpush3.bf16.msra.mxu1 %v22925_v60  ;;  %v22967_v60 = vld [vmem:[%s28769_s1 + $0x1f40] sm:$0xff]  }
 0x3d6   :  { %21058 = vmatprep.subr.bf16.mxu1 %v22928_v63  ;;  %v22968_v61 = vld [vmem:[%s28769_s1 + $0x1f00] sm:$0xff]   ;;  %v59_v63 = vld [vmem:[%s28768_s0 + $0xf8] sm:$0xff] }
 0x3d8   :  { %21037 = vmatpush3.bf16.msra.mxu0 %v22927_v62  ;;  %v22969_v62 = vld [vmem:[%s28769_s1 + $0x1fc0] sm:$0xff]  }
 0x3d9   :  { %21038 = vmatprep.subr.bf16.mxu0 %v22930_v1  ;;  %21059 = vmatpush3.bf16.msra.mxu1 %v22929_v0  ;;  %v662_v0 = vrot.slane %v59_v63, %v23710_v41  ;;  %v22970_v1 = vld [vmem:[%s28769_s1 + $0x1f80] sm:$0xff]  }
 0x3da   :  { %21060 = vmatprep.subr.bf16.mxu1 %v22932_v3  ;;  %v22971_v3 = vld [vmem:[%s28769_s1 + $0x2078] sm:$0xff]  }
 0x3dc   :  { %21039 = vmatpush3.bf16.msra.mxu0 %v22931_v2  ;;  %v655_v2 = vcombine.high %v59_v63, %v59_v63  ;;  %v23007_v63 = vld [vmem:[%s28769_s1 + $0x21f8] sm:$0xff]  }
 0x3dd   :  { %21040 = vmatprep.subr.bf16.mxu0 %v22934_v5  ;;  %21061 = vmatpush3.bf16.msra.mxu1 %v22933_v4  ;;  %v670_v4 = vcombine.high %v662_v0, %v662_v0 }
 0x3de   :  { %21062 = vmatprep.subr.bf16.mxu1 %v22936_v7  ;;  %v669_v5 = vrot.slane %v655_v2, %v23710_v41  ;;  %v1291_v7 = vpack.c.bf16 %v662_v0, %v662_v0  ;;  %v23008_v2 = vld [vmem:[%s28769_s1 + $0x21b8] sm:$0xff]  }
 0x3df   :  { %v1292_v9 = vpack.c.bf16 %v670_v4, %v670_v4 }
 0x3e0   :  { %21041 = vmatpush3.bf16.msra.mxu0 %v22935_v6  ;;  %v22973_v6 = vld [vmem:[%s28769_s1 + $0x2038] sm:$0xff]   ;;  %v1293_v13 = vpack.c.bf16 %v669_v5, %v669_v5 }
 0x3e1   :  { %21070 = vmatprep.subr.bf16.mxu0 %v22938_v12  ;;  %21063 = vmatpush3.bf16.msra.mxu1 %v22937_v10  ;;  %v671_v10 = vcombine.high %v669_v5, %v669_v5  ;;  %v23009_v5 = vld [vmem:[%s28769_s1 + $0x2170] sm:$0xff]  }
 0x3e2   :  { %21092 = vmatprep.subr.bf16.mxu1 %v22941_v17 }
 0x3e3   :  { %v20778_v21 = vpop.f32.mrf.mxu0  ;;  %16471 = vmatmul.mubr.bf16.vlgmr.msra.gmra.mxu0 %v1287_v16  ;;  %v22977_v16 = vld [vmem:[%s28769_s1 + $0x2030] sm:$0xff]  }
 0x3e4   :  { %v20800_v27 = vpop.f32.mrf.mxu1  ;;  %21071 = vmatpush3.bf16.msra.mxu0 %v22940_v15  ;;  %16511 = vmatmul.mubr.bf16.vlgmr.msra.gmra.mxu1 %v1289_v22  ;;  %v1294_v15 = vpack.c.bf16 %v671_v10, %v671_v10  ;;  %v23011_v10 = vld [vmem:[%s28769_s1 + $0x21f0] sm:$0xff]  }
 0x3e5   :  { %v20779_v26 = vpop.f32.mrf.mxu0  ;;  %21072 = vmatprep.subr.bf16.mxu0 %v22943_v23  ;;  %21093 = vmatpush3.bf16.msra.mxu1 %v22942_v20 }
 0x3e6   :  { %v20780_v29 = vadd.f32 %v20779_v26, %v20778_v21  ;;  %v20801_v32 = vpop.f32.mrf.mxu1  ;;  %21094 = vmatprep.subr.bf16.mxu1 %v22945_v28  ;;  %16550 = vmatprep.mubr.bf16.mxu0 %v1292_v9  ;;  %v22979_v21 = vld [vmem:[%s28769_s1 + $0x20b0] sm:$0xff]  }
 0x3e7   :  { %v20781_v31 = vpop.f32.mrf.mxu0  ;;  %v20802_v35 = vadd.f32 %v20801_v32, %v20800_v27  ;;  %16590 = vmatprep.mubr.bf16.mxu1 %v1294_v15  ;;  %v22981_v27 = vld [vmem:[%s28769_s1 + $0x2028] sm:$0xff]  }
 0x3e8   :  { %v15993_v34 = vadd.f32 %v20780_v29, %v26739_v50  ;;  %v20803_v39 = vpop.f32.mrf.mxu1  ;;  %21073 = vmatpush3.bf16.msra.mxu0 %v22944_v25  ;;  %v22957_v50 = vld [vmem:[%s28769_s1 + $0x1fd8] sm:$0xff]   ;;  %v22982_v29 = vld [vmem:[%s28769_s1 + $0x20e8] sm:$0xff]  }
 0x3e9   :  { %v20782_v37 = vpop.f32.mrf.mxu0  ;;  %21074 = vmatprep.subr.bf16.mxu0 %v22947_v33  ;;  %21095 = vmatpush3.bf16.msra.mxu1 %v22946_v30  ;;  %v22983_v32 = vld [vmem:[%s28769_s1 + $0x20a8] sm:$0xff]   ;;  %v22984_v33 = vld [vmem:[%s28769_s1 + $0x2060] sm:$0xff]   ;;  %v22989_v39 = vld [vmem:[%s28769_s1 + $0x2018] sm:$0xff]  }
 0x3ea   :  { %v26843_v40 = vadd.f32 %v20802_v35, %v15993_v34  ;;  %v20804_v44 = vpop.f32.mrf.mxu1  ;;  %21096 = vmatprep.subr.bf16.mxu1 %v22949_v38  ;;  %v22985_v35 = vld [vmem:[%s28769_s1 + $0x2020] sm:$0xff]   ;;  %v22988_v38 = vld [vmem:[%s28769_s1 + $0x2058] sm:$0xff]   ;;  %v23013_v15 = vld [vmem:[%s28769_s1 + $0x2168] sm:$0xff]  }
 0x3eb   :  { %v22987_v37 = vld [vmem:[%s28769_s1 + $0x20a0] sm:$0xff]   ;;  %v22993_v44 = vld [vmem:[%s28769_s1 + $0x2010] sm:$0xff]  }
 0x3ec   :  { %21075 = vmatpush3.bf16.msra.mxu0 %v22948_v36  ;;  %v22986_v36 = vld [vmem:[%s28769_s1 + $0x20e0] sm:$0xff]  }
 0x3ed   :  { %21076 = vmatprep.subr.bf16.mxu0 %v22951_v43  ;;  %21097 = vmatpush3.bf16.msra.mxu1 %v22950_v42  ;;  %v22991_v42 = vld [vmem:[%s28769_s1 + $0x2098] sm:$0xff]   ;;  %v22992_v43 = vld [vmem:[%s28769_s1 + $0x2050] sm:$0xff]  }
 0x3ee   :  { %21098 = vmatprep.subr.bf16.mxu1 %v22953_v46  ;;  %v22995_v46 = vld [vmem:[%s28769_s1 + $0x2090] sm:$0xff]  }
 0x3f0   :  { %21077 = vmatpush3.bf16.msra.mxu0 %v22952_v45  ;;  %v22994_v45 = vld [vmem:[%s28769_s1 + $0x20d0] sm:$0xff]  }
 0x3f1   :  { %21078 = vmatprep.subr.bf16.mxu0 %v22955_v48  ;;  %21099 = vmatpush3.bf16.msra.mxu1 %v22954_v47  ;;  %v22996_v47 = vld [vmem:[%s28769_s1 + $0x2048] sm:$0xff]  }
 0x3f2   :  { %21100 = vmatprep.subr.bf16.mxu1 %v22957_v50  ;;  %v22997_v48 = vld [vmem:[%s28769_s1 + $0x2008] sm:$0xff]  }
 0x3f3   :  { %v22999_v50 = vld [vmem:[%s28769_s1 + $0x2088] sm:$0xff]  }
 0x3f4   :  { %21079 = vmatpush3.bf16.msra.mxu0 %v22956_v49  ;;  %v22998_v49 = vld [vmem:[%s28769_s1 + $0x20c8] sm:$0xff]  }
 0x3f5   :  { %21080 = vmatprep.subr.bf16.mxu0 %v22959_v52  ;;  %21101 = vmatpush3.bf16.msra.mxu1 %v22958_v51  ;;  %v23000_v51 = vld [vmem:[%s28769_s1 + $0x2040] sm:$0xff]  }
 0x3f6   :  { %21102 = vmatprep.subr.bf16.mxu1 %v22961_v54  ;;  %v23001_v52 = vld [vmem:[%s28769_s1 + $0x2000] sm:$0xff]  }
 0x3f7   :  { %v60_v54 = vld [vmem:[%s28768_s0 + $0x100] sm:$0xff] }
 0x3f8   :  { %21081 = vmatpush3.bf16.msra.mxu0 %v22960_v53  ;;  %v23002_v53 = vld [vmem:[%s28769_s1 + $0x20c0] sm:$0xff]  }
 0x3f9   :  { %21082 = vmatprep.subr.bf16.mxu0 %v22963_v56  ;;  %21103 = vmatpush3.bf16.msra.mxu1 %v22962_v55  ;;  %v679_v55 = vrot.slane %v60_v54, %v23710_v41  ;;  %v23003_v56 = vld [vmem:[%s28769_s1 + $0x2080] sm:$0xff]  }
 0x3fa   :  { %21104 = vmatprep.subr.bf16.mxu1 %v22965_v58  ;;  %v23004_v58 = vld [vmem:[%s28769_s1 + $0x2178] sm:$0xff]  }
 0x3fc   :  { %21083 = vmatpush3.bf16.msra.mxu0 %v22964_v57  ;;  %v672_v57 = vcombine.high %v60_v54, %v60_v54  ;;  %v23040_v54 = vld [vmem:[%s28769_s1 + $0x22f8] sm:$0xff]  }
 0x3fd   :  { %21084 = vmatprep.subr.bf16.mxu0 %v22967_v60  ;;  %21105 = vmatpush3.bf16.msra.mxu1 %v22966_v59  ;;  %v687_v59 = vcombine.high %v679_v55, %v679_v55 }
 0x3fe   :  { %21106 = vmatprep.subr.bf16.mxu1 %v22969_v62  ;;  %v686_v60 = vrot.slane %v672_v57, %v23710_v41  ;;  %v1295_v62 = vpack.c.bf16 %v679_v55, %v679_v55  ;;  %v23041_v57 = vld [vmem:[%s28769_s1 + $0x22b8] sm:$0xff]  }
 0x3ff   :  { %v1296_v0 = vpack.c.bf16 %v687_v59, %v687_v59 }
 0x400   :  { %21085 = vmatpush3.bf16.msra.mxu0 %v22968_v61  ;;  %v23006_v61 = vld [vmem:[%s28769_s1 + $0x2138] sm:$0xff]   ;;  %v1297_v4 = vpack.c.bf16 %v686_v60, %v686_v60 }
 0x401   :  { %21114 = vmatprep.subr.bf16.mxu0 %v22971_v3  ;;  %21107 = vmatpush3.bf16.msra.mxu1 %v22970_v1  ;;  %v688_v1 = vcombine.high %v686_v60, %v686_v60  ;;  %v23042_v60 = vld [vmem:[%s28769_s1 + $0x2270] sm:$0xff]  }
 0x402   :  { %21136 = vmatprep.subr.bf16.mxu1 %v22974_v8 }
 0x403   :  { %v20822_v12 = vpop.f32.mrf.mxu0  ;;  %16551 = vmatmul.mubr.bf16.vlgmr.msra.gmra.mxu0 %v1291_v7  ;;  %v23010_v7 = vld [vmem:[%s28769_s1 + $0x2130] sm:$0xff]  }
 0x404   :  { %v20844_v18 = vpop.f32.mrf.mxu1  ;;  %21115 = vmatpush3.bf16.msra.mxu0 %v22973_v6  ;;  %16591 = vmatmul.mubr.bf16.vlgmr.msra.gmra.mxu1 %v1293_v13  ;;  %v1298_v6 = vpack.c.bf16 %v688_v1, %v688_v1  ;;  %v23044_v1 = vld [vmem:[%s28769_s1 + $0x22f0] sm:$0xff]  }
 0x405   :  { %v20823_v17 = vpop.f32.mrf.mxu0  ;;  %21116 = vmatprep.subr.bf16.mxu0 %v22976_v14  ;;  %21137 = vmatpush3.bf16.msra.mxu1 %v22975_v11 }
 0x406   :  { %v20824_v20 = vadd.f32 %v20823_v17, %v20822_v12  ;;  %v20845_v23 = vpop.f32.mrf.mxu1  ;;  %21138 = vmatprep.subr.bf16.mxu1 %v22978_v19  ;;  %16630 = vmatprep.mubr.bf16.mxu0 %v1296_v0  ;;  %v23012_v12 = vld [vmem:[%s28769_s1 + $0x21b0] sm:$0xff]  }
 0x407   :  { %v20825_v22 = vpop.f32.mrf.mxu0  ;;  %v20846_v26 = vadd.f32 %v20845_v23, %v20844_v18  ;;  %16670 = vmatprep.mubr.bf16.mxu1 %v1298_v6  ;;  %v23014_v18 = vld [vmem:[%s28769_s1 + $0x2128] sm:$0xff]  }
 0x408   :  { %v16073_v25 = vadd.f32 %v20824_v20, %v26843_v40  ;;  %v20847_v30 = vpop.f32.mrf.mxu1  ;;  %21117 = vmatpush3.bf16.msra.mxu0 %v22977_v16  ;;  %v22990_v40 = vld [vmem:[%s28769_s1 + $0x20d8] sm:$0xff]   ;;  %v23015_v20 = vld [vmem:[%s28769_s1 + $0x21e8] sm:$0xff]  }
 0x409   :  { %v20826_v28 = vpop.f32.mrf.mxu0  ;;  %21118 = vmatprep.subr.bf16.mxu0 %v22980_v24  ;;  %21139 = vmatpush3.bf16.msra.mxu1 %v22979_v21  ;;  %v23016_v23 = vld [vmem:[%s28769_s1 + $0x21a8] sm:$0xff]   ;;  %v23017_v24 = vld [vmem:[%s28769_s1 + $0x2160] sm:$0xff]   ;;  %v23022_v30 = vld [vmem:[%s28769_s1 + $0x2118] sm:$0xff]  }
 0x40a   :  { %v26947_v31 = vadd.f32 %v20846_v26, %v16073_v25  ;;  %v20848_v34 = vpop.f32.mrf.mxu1  ;;  %21140 = vmatprep.subr.bf16.mxu1 %v22982_v29  ;;  %v23018_v26 = vld [vmem:[%s28769_s1 + $0x2120] sm:$0xff]   ;;  %v23021_v29 = vld [vmem:[%s28769_s1 + $0x2158] sm:$0xff]   ;;  %v23046_v6 = vld [vmem:[%s28769_s1 + $0x2268] sm:$0xff]  }
 0x40b   :  { %v23020_v28 = vld [vmem:[%s28769_s1 + $0x21a0] sm:$0xff]   ;;  %v23026_v34 = vld [vmem:[%s28769_s1 + $0x2110] sm:$0xff]  }
 0x40c   :  { %21119 = vmatpush3.bf16.msra.mxu0 %v22981_v27  ;;  %v23019_v27 = vld [vmem:[%s28769_s1 + $0x21e0] sm:$0xff]  }
 0x40d   :  { %21120 = vmatprep.subr.bf16.mxu0 %v22984_v33  ;;  %21141 = vmatpush3.bf16.msra.mxu1 %v22983_v32  ;;  %v23024_v32 = vld [vmem:[%s28769_s1 + $0x2198] sm:$0xff]   ;;  %v23025_v33 = vld [vmem:[%s28769_s1 + $0x2150] sm:$0xff]  }
 0x40e   :  { %21142 = vmatprep.subr.bf16.mxu1 %v22986_v36  ;;  %v23028_v36 = vld [vmem:[%s28769_s1 + $0x2190] sm:$0xff]  }
 0x410   :  { %21121 = vmatpush3.bf16.msra.mxu0 %v22985_v35  ;;  %v23027_v35 = vld [vmem:[%s28769_s1 + $0x21d0] sm:$0xff]  }
 0x411   :  { %21122 = vmatprep.subr.bf16.mxu0 %v22988_v38  ;;  %21143 = vmatpush3.bf16.msra.mxu1 %v22987_v37  ;;  %v23029_v37 = vld [vmem:[%s28769_s1 + $0x2148] sm:$0xff]  }
 0x412   :  { %21144 = vmatprep.subr.bf16.mxu1 %v22990_v40  ;;  %v23030_v38 = vld [vmem:[%s28769_s1 + $0x2108] sm:$0xff]  }
 0x413   :  { %v23032_v40 = vld [vmem:[%s28769_s1 + $0x2188] sm:$0xff]  }
 0x414   :  { %21123 = vmatpush3.bf16.msra.mxu0 %v22989_v39  ;;  %v23031_v39 = vld [vmem:[%s28769_s1 + $0x21c8] sm:$0xff]  }
 0x415   :  { %21124 = vmatprep.subr.bf16.mxu0 %v22992_v43  ;;  %21145 = vmatpush3.bf16.msra.mxu1 %v22991_v42  ;;  %v23033_v42 = vld [vmem:[%s28769_s1 + $0x2140] sm:$0xff]  }
 0x416   :  { %21146 = vmatprep.subr.bf16.mxu1 %v22994_v45  ;;  %v23034_v43 = vld [vmem:[%s28769_s1 + $0x2100] sm:$0xff]   ;;  %v61_v45 = vld [vmem:[%s28768_s0 + $0x108] sm:$0xff] }
 0x418   :  { %21125 = vmatpush3.bf16.msra.mxu0 %v22993_v44  ;;  %v23035_v44 = vld [vmem:[%s28769_s1 + $0x21c0] sm:$0xff]  }
 0x419   :  { %21126 = vmatprep.subr.bf16.mxu0 %v22996_v47  ;;  %21147 = vmatpush3.bf16.msra.mxu1 %v22995_v46  ;;  %v696_v46 = vrot.slane %v61_v45, %v23710_v41  ;;  %v23036_v47 = vld [vmem:[%s28769_s1 + $0x2180] sm:$0xff]  }
 0x41a   :  { %21148 = vmatprep.subr.bf16.mxu1 %v22998_v49  ;;  %v23037_v49 = vld [vmem:[%s28769_s1 + $0x2278] sm:$0xff]  }
 0x41c   :  { %21127 = vmatpush3.bf16.msra.mxu0 %v22997_v48  ;;  %v689_v48 = vcombine.high %v61_v45, %v61_v45  ;;  %v23073_v45 = vld [vmem:[%s28769_s1 + $0x23f8] sm:$0xff]  }
 0x41d   :  { %21128 = vmatprep.subr.bf16.mxu0 %v23000_v51  ;;  %21149 = vmatpush3.bf16.msra.mxu1 %v22999_v50  ;;  %v704_v50 = vcombine.high %v696_v46, %v696_v46 }
 0x41e   :  { %21150 = vmatprep.subr.bf16.mxu1 %v23002_v53  ;;  %v703_v51 = vrot.slane %v689_v48, %v23710_v41  ;;  %v1299_v53 = vpack.c.bf16 %v696_v46, %v696_v46  ;;  %v23074_v48 = vld [vmem:[%s28769_s1 + $0x23b8] sm:$0xff]  }
 0x41f   :  { %v1300_v55 = vpack.c.bf16 %v704_v50, %v704_v50 }
 0x420   :  { %21129 = vmatpush3.bf16.msra.mxu0 %v23001_v52  ;;  %v23039_v52 = vld [vmem:[%s28769_s1 + $0x2238] sm:$0xff]   ;;  %v1301_v59 = vpack.c.bf16 %v703_v51, %v703_v51 }
 0x421   :  { %21158 = vmatprep.subr.bf16.mxu0 %v23004_v58  ;;  %21151 = vmatpush3.bf16.msra.mxu1 %v23003_v56  ;;  %v705_v56 = vcombine.high %v703_v51, %v703_v51  ;;  %v23075_v51 = vld [vmem:[%s28769_s1 + $0x2370] sm:$0xff]  }
 0x422   :  { %21180 = vmatprep.subr.bf16.mxu1 %v23007_v63 }
 0x423   :  { %v20866_v3 = vpop.f32.mrf.mxu0  ;;  %16631 = vmatmul.mubr.bf16.vlgmr.msra.gmra.mxu0 %v1295_v62  ;;  %v23043_v62 = vld [vmem:[%s28769_s1 + $0x2230] sm:$0xff]  }
 0x424   :  { %v20888_v9 = vpop.f32.mrf.mxu1  ;;  %21159 = vmatpush3.bf16.msra.mxu0 %v23006_v61  ;;  %16671 = vmatmul.mubr.bf16.vlgmr.msra.gmra.mxu1 %v1297_v4  ;;  %v1302_v61 = vpack.c.bf16 %v705_v56, %v705_v56  ;;  %v23077_v56 = vld [vmem:[%s28769_s1 + $0x23f0] sm:$0xff]  }
 0x425   :  { %v20867_v8 = vpop.f32.mrf.mxu0  ;;  %21160 = vmatprep.subr.bf16.mxu0 %v23009_v5  ;;  %21181 = vmatpush3.bf16.msra.mxu1 %v23008_v2 }
 0x426   :  { %v20868_v11 = vadd.f32 %v20867_v8, %v20866_v3  ;;  %v20889_v14 = vpop.f32.mrf.mxu1  ;;  %21182 = vmatprep.subr.bf16.mxu1 %v23011_v10  ;;  %16710 = vmatprep.mubr.bf16.mxu0 %v1300_v55  ;;  %v23045_v3 = vld [vmem:[%s28769_s1 + $0x22b0] sm:$0xff]  }
 0x427   :  { %v20869_v13 = vpop.f32.mrf.mxu0  ;;  %v20890_v17 = vadd.f32 %v20889_v14, %v20888_v9  ;;  %16750 = vmatprep.mubr.bf16.mxu1 %v1302_v61  ;;  %v23047_v9 = vld [vmem:[%s28769_s1 + $0x2228] sm:$0xff]  }
 0x428   :  { %v16153_v16 = vadd.f32 %v20868_v11, %v26947_v31  ;;  %v20891_v21 = vpop.f32.mrf.mxu1  ;;  %21161 = vmatpush3.bf16.msra.mxu0 %v23010_v7  ;;  %v23023_v31 = vld [vmem:[%s28769_s1 + $0x21d8] sm:$0xff]   ;;  %v23048_v11 = vld [vmem:[%s28769_s1 + $0x22e8] sm:$0xff]  }
 0x429   :  { %v20870_v19 = vpop.f32.mrf.mxu0  ;;  %21162 = vmatprep.subr.bf16.mxu0 %v23013_v15  ;;  %21183 = vmatpush3.bf16.msra.mxu1 %v23012_v12  ;;  %v23049_v14 = vld [vmem:[%s28769_s1 + $0x22a8] sm:$0xff]   ;;  %v23050_v15 = vld [vmem:[%s28769_s1 + $0x2260] sm:$0xff]   ;;  %v23055_v21 = vld [vmem:[%s28769_s1 + $0x2218] sm:$0xff]  }
 0x42a   :  { %v27051_v22 = vadd.f32 %v20890_v17, %v16153_v16  ;;  %v20892_v25 = vpop.f32.mrf.mxu1  ;;  %21184 = vmatprep.subr.bf16.mxu1 %v23015_v20  ;;  %v23051_v17 = vld [vmem:[%s28769_s1 + $0x2220] sm:$0xff]   ;;  %v23054_v20 = vld [vmem:[%s28769_s1 + $0x2258] sm:$0xff]   ;;  %v23079_v61 = vld [vmem:[%s28769_s1 + $0x2368] sm:$0xff]  }
 0x42b   :  { %v23053_v19 = vld [vmem:[%s28769_s1 + $0x22a0] sm:$0xff]   ;;  %v23059_v25 = vld [vmem:[%s28769_s1 + $0x2210] sm:$0xff]  }
 0x42c   :  { %21163 = vmatpush3.bf16.msra.mxu0 %v23014_v18  ;;  %v23052_v18 = vld [vmem:[%s28769_s1 + $0x22e0] sm:$0xff]  }
 0x42d   :  { %21164 = vmatprep.subr.bf16.mxu0 %v23017_v24  ;;  %21185 = vmatpush3.bf16.msra.mxu1 %v23016_v23  ;;  %v23057_v23 = vld [vmem:[%s28769_s1 + $0x2298] sm:$0xff]   ;;  %v23058_v24 = vld [vmem:[%s28769_s1 + $0x2250] sm:$0xff]  }
 0x42e   :  { %21186 = vmatprep.subr.bf16.mxu1 %v23019_v27  ;;  %v23061_v27 = vld [vmem:[%s28769_s1 + $0x2290] sm:$0xff]  }
 0x430   :  { %21165 = vmatpush3.bf16.msra.mxu0 %v23018_v26  ;;  %v23060_v26 = vld [vmem:[%s28769_s1 + $0x22d0] sm:$0xff]  }
 0x431   :  { %21166 = vmatprep.subr.bf16.mxu0 %v23021_v29  ;;  %21187 = vmatpush3.bf16.msra.mxu1 %v23020_v28  ;;  %v23062_v28 = vld [vmem:[%s28769_s1 + $0x2248] sm:$0xff]  }
 0x432   :  { %21188 = vmatprep.subr.bf16.mxu1 %v23023_v31  ;;  %v23063_v29 = vld [vmem:[%s28769_s1 + $0x2208] sm:$0xff]  }
 0x433   :  { %v23065_v31 = vld [vmem:[%s28769_s1 + $0x2288] sm:$0xff]  }
 0x434   :  { %21167 = vmatpush3.bf16.msra.mxu0 %v23022_v30  ;;  %v23064_v30 = vld [vmem:[%s28769_s1 + $0x22c8] sm:$0xff]  }
 0x435   :  { %21168 = vmatprep.subr.bf16.mxu0 %v23025_v33  ;;  %21189 = vmatpush3.bf16.msra.mxu1 %v23024_v32  ;;  %v23066_v32 = vld [vmem:[%s28769_s1 + $0x2240] sm:$0xff]  }
 0x436   :  { %21190 = vmatprep.subr.bf16.mxu1 %v23027_v35  ;;  %v23067_v33 = vld [vmem:[%s28769_s1 + $0x2200] sm:$0xff]   ;;  %v62_v35 = vld [vmem:[%s28768_s0 + $0x110] sm:$0xff] }
 0x438   :  { %21169 = vmatpush3.bf16.msra.mxu0 %v23026_v34  ;;  %v23068_v34 = vld [vmem:[%s28769_s1 + $0x22c0] sm:$0xff]  }
 0x439   :  { %21170 = vmatprep.subr.bf16.mxu0 %v23029_v37  ;;  %21191 = vmatpush3.bf16.msra.mxu1 %v23028_v36  ;;  %v713_v36 = vrot.slane %v62_v35, %v23710_v41  ;;  %v23069_v37 = vld [vmem:[%s28769_s1 + $0x2280] sm:$0xff]  }
 0x43a   :  { %21192 = vmatprep.subr.bf16.mxu1 %v23031_v39  ;;  %v23070_v39 = vld [vmem:[%s28769_s1 + $0x2378] sm:$0xff]  }
 0x43c   :  { %21171 = vmatpush3.bf16.msra.mxu0 %v23030_v38  ;;  %v706_v38 = vcombine.high %v62_v35, %v62_v35  ;;  %v23106_v35 = vld [vmem:[%s28769_s1 + $0x24f8] sm:$0xff]  }
 0x43d   :  { %21172 = vmatprep.subr.bf16.mxu0 %v23033_v42  ;;  %21193 = vmatpush3.bf16.msra.mxu1 %v23032_v40  ;;  %v721_v40 = vcombine.high %v713_v36, %v713_v36 }
 0x43e   :  { %21194 = vmatprep.subr.bf16.mxu1 %v23035_v44  ;;  %v720_v42 = vrot.slane %v706_v38, %v23710_v41  ;;  %v1303_v44 = vpack.c.bf16 %v713_v36, %v713_v36  ;;  %v23107_v38 = vld [vmem:[%s28769_s1 + $0x24b8] sm:$0xff]  }
 0x43f   :  { %v1304_v46 = vpack.c.bf16 %v721_v40, %v721_v40 }
 0x440   :  { %21173 = vmatpush3.bf16.msra.mxu0 %v23034_v43  ;;  %v23072_v43 = vld [vmem:[%s28769_s1 + $0x2338] sm:$0xff]   ;;  %v1305_v50 = vpack.c.bf16 %v720_v42, %v720_v42 }
 0x441   :  { %21202 = vmatprep.subr.bf16.mxu0 %v23037_v49  ;;  %21195 = vmatpush3.bf16.msra.mxu1 %v23036_v47  ;;  %v722_v47 = vcombine.high %v720_v42, %v720_v42  ;;  %v23108_v42 = vld [vmem:[%s28769_s1 + $0x2470] sm:$0xff]  }
 0x442   :  { %21224 = vmatprep.subr.bf16.mxu1 %v23040_v54 }
 0x443   :  { %v20910_v58 = vpop.f32.mrf.mxu0  ;;  %16711 = vmatmul.mubr.bf16.vlgmr.msra.gmra.mxu0 %v1299_v53  ;;  %v23076_v53 = vld [vmem:[%s28769_s1 + $0x2330] sm:$0xff]  }
 0x444   :  { %v20932_v0 = vpop.f32.mrf.mxu1  ;;  %21203 = vmatpush3.bf16.msra.mxu0 %v23039_v52  ;;  %16751 = vmatmul.mubr.bf16.vlgmr.msra.gmra.mxu1 %v1301_v59  ;;  %v1306_v52 = vpack.c.bf16 %v722_v47, %v722_v47  ;;  %v23110_v47 = vld [vmem:[%s28769_s1 + $0x24f0] sm:$0xff]  }
 0x445   :  { %v20911_v63 = vpop.f32.mrf.mxu0  ;;  %21204 = vmatprep.subr.bf16.mxu0 %v23042_v60  ;;  %21225 = vmatpush3.bf16.msra.mxu1 %v23041_v57 }
 0x446   :  { %v20912_v2 = vadd.f32 %v20911_v63, %v20910_v58  ;;  %v20933_v5 = vpop.f32.mrf.mxu1  ;;  %21226 = vmatprep.subr.bf16.mxu1 %v23044_v1  ;;  %16790 = vmatprep.mubr.bf16.mxu0 %v1304_v46  ;;  %v23078_v58 = vld [vmem:[%s28769_s1 + $0x23b0] sm:$0xff]  }
 0x447   :  { %v20913_v4 = vpop.f32.mrf.mxu0  ;;  %v20934_v8 = vadd.f32 %v20933_v5, %v20932_v0  ;;  %16830 = vmatprep.mubr.bf16.mxu1 %v1306_v52  ;;  %v23080_v0 = vld [vmem:[%s28769_s1 + $0x2328] sm:$0xff]  }
 0x448   :  { %v16233_v7 = vadd.f32 %v20912_v2, %v27051_v22  ;;  %v20935_v12 = vpop.f32.mrf.mxu1  ;;  %21205 = vmatpush3.bf16.msra.mxu0 %v23043_v62  ;;  %v23056_v22 = vld [vmem:[%s28769_s1 + $0x22d8] sm:$0xff]   ;;  %v23081_v2 = vld [vmem:[%s28769_s1 + $0x23e8] sm:$0xff]  }
 0x449   :  { %v20914_v10 = vpop.f32.mrf.mxu0  ;;  %21206 = vmatprep.subr.bf16.mxu0 %v23046_v6  ;;  %21227 = vmatpush3.bf16.msra.mxu1 %v23045_v3  ;;  %v23082_v5 = vld [vmem:[%s28769_s1 + $0x23a8] sm:$0xff]   ;;  %v23083_v6 = vld [vmem:[%s28769_s1 + $0x2360] sm:$0xff]   ;;  %v23088_v12 = vld [vmem:[%s28769_s1 + $0x2318] sm:$0xff]  }
 0x44a   :  { %v27155_v13 = vadd.f32 %v20934_v8, %v16233_v7  ;;  %v20936_v16 = vpop.f32.mrf.mxu1  ;;  %21228 = vmatprep.subr.bf16.mxu1 %v23048_v11  ;;  %v23084_v8 = vld [vmem:[%s28769_s1 + $0x2320] sm:$0xff]   ;;  %v23087_v11 = vld [vmem:[%s28769_s1 + $0x2358] sm:$0xff]   ;;  %v23112_v52 = vld [vmem:[%s28769_s1 + $0x2468] sm:$0xff]  }
 0x44b   :  { %v23086_v10 = vld [vmem:[%s28769_s1 + $0x23a0] sm:$0xff]   ;;  %v23092_v16 = vld [vmem:[%s28769_s1 + $0x2310] sm:$0xff]  }
 0x44c   :  { %21207 = vmatpush3.bf16.msra.mxu0 %v23047_v9  ;;  %v23085_v9 = vld [vmem:[%s28769_s1 + $0x23e0] sm:$0xff]  }
 0x44d   :  { %21208 = vmatprep.subr.bf16.mxu0 %v23050_v15  ;;  %21229 = vmatpush3.bf16.msra.mxu1 %v23049_v14  ;;  %v23090_v14 = vld [vmem:[%s28769_s1 + $0x2398] sm:$0xff]   ;;  %v23091_v15 = vld [vmem:[%s28769_s1 + $0x2350] sm:$0xff]  }
 0x44e   :  { %21230 = vmatprep.subr.bf16.mxu1 %v23052_v18  ;;  %v23094_v18 = vld [vmem:[%s28769_s1 + $0x2390] sm:$0xff]  }
 0x450   :  { %21209 = vmatpush3.bf16.msra.mxu0 %v23051_v17  ;;  %v23093_v17 = vld [vmem:[%s28769_s1 + $0x23d0] sm:$0xff]  }
 0x451   :  { %21210 = vmatprep.subr.bf16.mxu0 %v23054_v20  ;;  %21231 = vmatpush3.bf16.msra.mxu1 %v23053_v19  ;;  %v23095_v19 = vld [vmem:[%s28769_s1 + $0x2348] sm:$0xff]  }
 0x452   :  { %21232 = vmatprep.subr.bf16.mxu1 %v23056_v22  ;;  %v23096_v20 = vld [vmem:[%s28769_s1 + $0x2308] sm:$0xff]  }
 0x453   :  { %v23098_v22 = vld [vmem:[%s28769_s1 + $0x2388] sm:$0xff]  }
 0x454   :  { %21211 = vmatpush3.bf16.msra.mxu0 %v23055_v21  ;;  %v23097_v21 = vld [vmem:[%s28769_s1 + $0x23c8] sm:$0xff]  }
 0x455   :  { %21212 = vmatprep.subr.bf16.mxu0 %v23058_v24  ;;  %21233 = vmatpush3.bf16.msra.mxu1 %v23057_v23  ;;  %v23099_v23 = vld [vmem:[%s28769_s1 + $0x2340] sm:$0xff]  }
 0x456   :  { %21234 = vmatprep.subr.bf16.mxu1 %v23060_v26  ;;  %v23100_v24 = vld [vmem:[%s28769_s1 + $0x2300] sm:$0xff]   ;;  %v63_v26 = vld [vmem:[%s28768_s0 + $0x118] sm:$0xff] }
 0x458   :  { %21213 = vmatpush3.bf16.msra.mxu0 %v23059_v25  ;;  %v23101_v25 = vld [vmem:[%s28769_s1 + $0x23c0] sm:$0xff]  }
 0x459   :  { %21214 = vmatprep.subr.bf16.mxu0 %v23062_v28  ;;  %21235 = vmatpush3.bf16.msra.mxu1 %v23061_v27  ;;  %v730_v27 = vrot.slane %v63_v26, %v23710_v41  ;;  %v23102_v28 = vld [vmem:[%s28769_s1 + $0x2380] sm:$0xff]  }
 0x45a   :  { %21236 = vmatprep.subr.bf16.mxu1 %v23064_v30  ;;  %v23103_v30 = vld [vmem:[%s28769_s1 + $0x2478] sm:$0xff]  }
 0x45c   :  { %21215 = vmatpush3.bf16.msra.mxu0 %v23063_v29  ;;  %v723_v29 = vcombine.high %v63_v26, %v63_v26  ;;  %v23139_v26 = vld [vmem:[%s28769_s1 + $0x25f8] sm:$0xff]  }
 0x45d   :  { %21216 = vmatprep.subr.bf16.mxu0 %v23066_v32  ;;  %21237 = vmatpush3.bf16.msra.mxu1 %v23065_v31  ;;  %v738_v31 = vcombine.high %v730_v27, %v730_v27 }
 0x45e   :  { %21238 = vmatprep.subr.bf16.mxu1 %v23068_v34  ;;  %v737_v32 = vrot.slane %v723_v29, %v23710_v41  ;;  %v1307_v34 = vpack.c.bf16 %v730_v27, %v730_v27  ;;  %v23140_v29 = vld [vmem:[%s28769_s1 + $0x25b8] sm:$0xff]  }
 0x45f   :  { %v1308_v36 = vpack.c.bf16 %v738_v31, %v738_v31 }
 0x460   :  { %21217 = vmatpush3.bf16.msra.mxu0 %v23067_v33  ;;  %v23105_v33 = vld [vmem:[%s28769_s1 + $0x2438] sm:$0xff]   ;;  %v1309_v40 = vpack.c.bf16 %v737_v32, %v737_v32 }
 0x461   :  { %21246 = vmatprep.subr.bf16.mxu0 %v23070_v39  ;;  %21239 = vmatpush3.bf16.msra.mxu1 %v23069_v37  ;;  %v739_v37 = vcombine.high %v737_v32, %v737_v32  ;;  %v23141_v32 = vld [vmem:[%s28769_s1 + $0x2570] sm:$0xff]  }
 0x462   :  { %21268 = vmatprep.subr.bf16.mxu1 %v23073_v45 }
 0x463   :  { %v20954_v49 = vpop.f32.mrf.mxu0  ;;  %16791 = vmatmul.mubr.bf16.vlgmr.msra.gmra.mxu0 %v1303_v44  ;;  %v23109_v44 = vld [vmem:[%s28769_s1 + $0x2430] sm:$0xff]  }
 0x464   :  { %v20976_v55 = vpop.f32.mrf.mxu1  ;;  %21247 = vmatpush3.bf16.msra.mxu0 %v23072_v43  ;;  %16831 = vmatmul.mubr.bf16.vlgmr.msra.gmra.mxu1 %v1305_v50  ;;  %v1310_v43 = vpack.c.bf16 %v739_v37, %v739_v37  ;;  %v23143_v37 = vld [vmem:[%s28769_s1 + $0x25f0] sm:$0xff]  }
 0x465   :  { %v20955_v54 = vpop.f32.mrf.mxu0  ;;  %21248 = vmatprep.subr.bf16.mxu0 %v23075_v51  ;;  %21269 = vmatpush3.bf16.msra.mxu1 %v23074_v48 }
 0x466   :  { %v20956_v57 = vadd.f32 %v20955_v54, %v20954_v49  ;;  %v20977_v60 = vpop.f32.mrf.mxu1  ;;  %21270 = vmatprep.subr.bf16.mxu1 %v23077_v56  ;;  %16870 = vmatprep.mubr.bf16.mxu0 %v1308_v36  ;;  %v23111_v49 = vld [vmem:[%s28769_s1 + $0x24b0] sm:$0xff]  }
 0x467   :  { %v20957_v59 = vpop.f32.mrf.mxu0  ;;  %v20978_v63 = vadd.f32 %v20977_v60, %v20976_v55  ;;  %16910 = vmatprep.mubr.bf16.mxu1 %v1310_v43  ;;  %v23113_v55 = vld [vmem:[%s28769_s1 + $0x2428] sm:$0xff]  }
 0x468   :  { %v16313_v62 = vadd.f32 %v20956_v57, %v27155_v13  ;;  %v20979_v3 = vpop.f32.mrf.mxu1  ;;  %21249 = vmatpush3.bf16.msra.mxu0 %v23076_v53  ;;  %v23089_v13 = vld [vmem:[%s28769_s1 + $0x23d8] sm:$0xff]   ;;  %v23114_v57 = vld [vmem:[%s28769_s1 + $0x24e8] sm:$0xff]  }
 0x469   :  { %v20958_v1 = vpop.f32.mrf.mxu0  ;;  %21250 = vmatprep.subr.bf16.mxu0 %v23079_v61  ;;  %21271 = vmatpush3.bf16.msra.mxu1 %v23078_v58  ;;  %v23115_v60 = vld [vmem:[%s28769_s1 + $0x24a8] sm:$0xff]   ;;  %v23116_v61 = vld [vmem:[%s28769_s1 + $0x2460] sm:$0xff]   ;;  %v23121_v3 = vld [vmem:[%s28769_s1 + $0x2418] sm:$0xff]  }
 0x46a   :  { %v27259_v4 = vadd.f32 %v20978_v63, %v16313_v62  ;;  %v20980_v7 = vpop.f32.mrf.mxu1  ;;  %21272 = vmatprep.subr.bf16.mxu1 %v23081_v2  ;;  %v23117_v63 = vld [vmem:[%s28769_s1 + $0x2420] sm:$0xff]   ;;  %v23120_v2 = vld [vmem:[%s28769_s1 + $0x2458] sm:$0xff]   ;;  %v23145_v43 = vld [vmem:[%s28769_s1 + $0x2568] sm:$0xff]  }
 0x46b   :  { %v23119_v1 = vld [vmem:[%s28769_s1 + $0x24a0] sm:$0xff]   ;;  %v23125_v7 = vld [vmem:[%s28769_s1 + $0x2410] sm:$0xff]  }
 0x46c   :  { %21251 = vmatpush3.bf16.msra.mxu0 %v23080_v0  ;;  %v23118_v0 = vld [vmem:[%s28769_s1 + $0x24e0] sm:$0xff]  }
 0x46d   :  { %21252 = vmatprep.subr.bf16.mxu0 %v23083_v6  ;;  %21273 = vmatpush3.bf16.msra.mxu1 %v23082_v5  ;;  %v23123_v5 = vld [vmem:[%s28769_s1 + $0x2498] sm:$0xff]   ;;  %v23124_v6 = vld [vmem:[%s28769_s1 + $0x2450] sm:$0xff]  }
 0x46e   :  { %21274 = vmatprep.subr.bf16.mxu1 %v23085_v9  ;;  %v23127_v9 = vld [vmem:[%s28769_s1 + $0x2490] sm:$0xff]  }
 0x470   :  { %21253 = vmatpush3.bf16.msra.mxu0 %v23084_v8  ;;  %v23126_v8 = vld [vmem:[%s28769_s1 + $0x24d0] sm:$0xff]  }
 0x471   :  { %21254 = vmatprep.subr.bf16.mxu0 %v23087_v11  ;;  %21275 = vmatpush3.bf16.msra.mxu1 %v23086_v10  ;;  %v23128_v10 = vld [vmem:[%s28769_s1 + $0x2448] sm:$0xff]  }
 0x472   :  { %21276 = vmatprep.subr.bf16.mxu1 %v23089_v13  ;;  %v23129_v11 = vld [vmem:[%s28769_s1 + $0x2408] sm:$0xff]  }
 0x473   :  { %v23131_v13 = vld [vmem:[%s28769_s1 + $0x2488] sm:$0xff]  }
 0x474   :  { %21255 = vmatpush3.bf16.msra.mxu0 %v23088_v12  ;;  %v23130_v12 = vld [vmem:[%s28769_s1 + $0x24c8] sm:$0xff]  }
 0x475   :  { %21256 = vmatprep.subr.bf16.mxu0 %v23091_v15  ;;  %21277 = vmatpush3.bf16.msra.mxu1 %v23090_v14  ;;  %v23132_v14 = vld [vmem:[%s28769_s1 + $0x2440] sm:$0xff]  }
 0x476   :  { %21278 = vmatprep.subr.bf16.mxu1 %v23093_v17  ;;  %v23133_v15 = vld [vmem:[%s28769_s1 + $0x2400] sm:$0xff]  }
 0x477   :  { %v64_v17 = vld [vmem:[%s28768_s0 + $0x120] sm:$0xff] }
 0x478   :  { %21257 = vmatpush3.bf16.msra.mxu0 %v23092_v16  ;;  %v23134_v16 = vld [vmem:[%s28769_s1 + $0x24c0] sm:$0xff]  }
 0x479   :  { %21258 = vmatprep.subr.bf16.mxu0 %v23095_v19  ;;  %21279 = vmatpush3.bf16.msra.mxu1 %v23094_v18  ;;  %v747_v18 = vrot.slane %v64_v17, %v23710_v41  ;;  %v23135_v19 = vld [vmem:[%s28769_s1 + $0x2480] sm:$0xff]  }
 0x47a   :  { %21280 = vmatprep.subr.bf16.mxu1 %v23097_v21  ;;  %v23136_v21 = vld [vmem:[%s28769_s1 + $0x2578] sm:$0xff]  }
 0x47c   :  { %21259 = vmatpush3.bf16.msra.mxu0 %v23096_v20  ;;  %v740_v20 = vcombine.high %v64_v17, %v64_v17  ;;  %v23172_v17 = vld [vmem:[%s28769_s1 + $0x26f8] sm:$0xff]  }
 0x47d   :  { %21260 = vmatprep.subr.bf16.mxu0 %v23099_v23  ;;  %21281 = vmatpush3.bf16.msra.mxu1 %v23098_v22  ;;  %v755_v22 = vcombine.high %v747_v18, %v747_v18 }
 0x47e   :  { %21282 = vmatprep.subr.bf16.mxu1 %v23101_v25  ;;  %v754_v23 = vrot.slane %v740_v20, %v23710_v41  ;;  %v1311_v25 = vpack.c.bf16 %v747_v18, %v747_v18  ;;  %v23173_v20 = vld [vmem:[%s28769_s1 + $0x26b8] sm:$0xff]  }
 0x47f   :  { %v1312_v27 = vpack.c.bf16 %v755_v22, %v755_v22 }
 0x480   :  { %21261 = vmatpush3.bf16.msra.mxu0 %v23100_v24  ;;  %v23138_v24 = vld [vmem:[%s28769_s1 + $0x2538] sm:$0xff]   ;;  %v1313_v31 = vpack.c.bf16 %v754_v23, %v754_v23 }
 0x481   :  { %21290 = vmatprep.subr.bf16.mxu0 %v23103_v30  ;;  %21283 = vmatpush3.bf16.msra.mxu1 %v23102_v28  ;;  %v756_v28 = vcombine.high %v754_v23, %v754_v23  ;;  %v23174_v23 = vld [vmem:[%s28769_s1 + $0x2670] sm:$0xff]  }
 0x482   :  { %21312 = vmatprep.subr.bf16.mxu1 %v23106_v35 }
 0x483   :  { %v20998_v39 = vpop.f32.mrf.mxu0  ;;  %16871 = vmatmul.mubr.bf16.vlgmr.msra.gmra.mxu0 %v1307_v34  ;;  %v23142_v34 = vld [vmem:[%s28769_s1 + $0x2530] sm:$0xff]  }
 0x484   :  { %v21020_v46 = vpop.f32.mrf.mxu1  ;;  %21291 = vmatpush3.bf16.msra.mxu0 %v23105_v33  ;;  %16911 = vmatmul.mubr.bf16.vlgmr.msra.gmra.mxu1 %v1309_v40  ;;  %v1314_v33 = vpack.c.bf16 %v756_v28, %v756_v28  ;;  %v23176_v28 = vld [vmem:[%s28769_s1 + $0x26f0] sm:$0xff]  }
 0x485   :  { %v20999_v45 = vpop.f32.mrf.mxu0  ;;  %21292 = vmatprep.subr.bf16.mxu0 %v23108_v42  ;;  %21313 = vmatpush3.bf16.msra.mxu1 %v23107_v38 }
 0x486   :  { %v21000_v48 = vadd.f32 %v20999_v45, %v20998_v39  ;;  %v21021_v51 = vpop.f32.mrf.mxu1  ;;  %21314 = vmatprep.subr.bf16.mxu1 %v23110_v47  ;;  %16950 = vmatprep.mubr.bf16.mxu0 %v1312_v27  ;;  %v23144_v39 = vld [vmem:[%s28769_s1 + $0x25b0] sm:$0xff]  }
 0x487   :  { %v21001_v50 = vpop.f32.mrf.mxu0  ;;  %v21022_v54 = vadd.f32 %v21021_v51, %v21020_v46  ;;  %16990 = vmatprep.mubr.bf16.mxu1 %v1314_v33  ;;  %v23146_v46 = vld [vmem:[%s28769_s1 + $0x2528] sm:$0xff]  }
 0x488   :  { %v16393_v53 = vadd.f32 %v21000_v48, %v27259_v4  ;;  %v21023_v58 = vpop.f32.mrf.mxu1  ;;  %21293 = vmatpush3.bf16.msra.mxu0 %v23109_v44  ;;  %v23122_v4 = vld [vmem:[%s28769_s1 + $0x24d8] sm:$0xff]   ;;  %v23147_v48 = vld [vmem:[%s28769_s1 + $0x25e8] sm:$0xff]  }
 0x489   :  { %v21002_v56 = vpop.f32.mrf.mxu0  ;;  %21294 = vmatprep.subr.bf16.mxu0 %v23112_v52  ;;  %21315 = vmatpush3.bf16.msra.mxu1 %v23111_v49  ;;  %v23148_v51 = vld [vmem:[%s28769_s1 + $0x25a8] sm:$0xff]   ;;  %v23149_v52 = vld [vmem:[%s28769_s1 + $0x2560] sm:$0xff]   ;;  %v23154_v58 = vld [vmem:[%s28769_s1 + $0x2518] sm:$0xff]  }
 0x48a   :  { %v27363_v59 = vadd.f32 %v21022_v54, %v16393_v53  ;;  %v21024_v62 = vpop.f32.mrf.mxu1  ;;  %21316 = vmatprep.subr.bf16.mxu1 %v23114_v57  ;;  %v23150_v54 = vld [vmem:[%s28769_s1 + $0x2520] sm:$0xff]   ;;  %v23153_v57 = vld [vmem:[%s28769_s1 + $0x2558] sm:$0xff]   ;;  %v23178_v33 = vld [vmem:[%s28769_s1 + $0x2668] sm:$0xff]  }
 0x48b   :  { %v23152_v56 = vld [vmem:[%s28769_s1 + $0x25a0] sm:$0xff]   ;;  %v23158_v62 = vld [vmem:[%s28769_s1 + $0x2510] sm:$0xff]  }
 0x48c   :  { %21295 = vmatpush3.bf16.msra.mxu0 %v23113_v55  ;;  %v23151_v55 = vld [vmem:[%s28769_s1 + $0x25e0] sm:$0xff]  }
 0x48d   :  { %21296 = vmatprep.subr.bf16.mxu0 %v23116_v61  ;;  %21317 = vmatpush3.bf16.msra.mxu1 %v23115_v60  ;;  %v23156_v60 = vld [vmem:[%s28769_s1 + $0x2598] sm:$0xff]   ;;  %v23157_v61 = vld [vmem:[%s28769_s1 + $0x2550] sm:$0xff]  }
 0x48e   :  { %21318 = vmatprep.subr.bf16.mxu1 %v23118_v0  ;;  %v23160_v0 = vld [vmem:[%s28769_s1 + $0x2590] sm:$0xff]  }
 0x490   :  { %21297 = vmatpush3.bf16.msra.mxu0 %v23117_v63  ;;  %v23159_v63 = vld [vmem:[%s28769_s1 + $0x25d0] sm:$0xff]  }
 0x491   :  { %21298 = vmatprep.subr.bf16.mxu0 %v23120_v2  ;;  %21319 = vmatpush3.bf16.msra.mxu1 %v23119_v1  ;;  %v23161_v1 = vld [vmem:[%s28769_s1 + $0x2548] sm:$0xff]  }
 0x492   :  { %21320 = vmatprep.subr.bf16.mxu1 %v23122_v4  ;;  %v23162_v2 = vld [vmem:[%s28769_s1 + $0x2508] sm:$0xff]  }
 0x493   :  { %v23164_v4 = vld [vmem:[%s28769_s1 + $0x2588] sm:$0xff]  }
 0x494   :  { %21299 = vmatpush3.bf16.msra.mxu0 %v23121_v3  ;;  %v23163_v3 = vld [vmem:[%s28769_s1 + $0x25c8] sm:$0xff]  }
 0x495   :  { %21300 = vmatprep.subr.bf16.mxu0 %v23124_v6  ;;  %21321 = vmatpush3.bf16.msra.mxu1 %v23123_v5  ;;  %v23165_v5 = vld [vmem:[%s28769_s1 + $0x2540] sm:$0xff]  }
 0x496   :  { %21322 = vmatprep.subr.bf16.mxu1 %v23126_v8  ;;  %v23166_v6 = vld [vmem:[%s28769_s1 + $0x2500] sm:$0xff]   ;;  %v65_v8 = vld [vmem:[%s28768_s0 + $0x128] sm:$0xff] }
 0x498   :  { %21301 = vmatpush3.bf16.msra.mxu0 %v23125_v7  ;;  %v23167_v7 = vld [vmem:[%s28769_s1 + $0x25c0] sm:$0xff]  }
 0x499   :  { %21302 = vmatprep.subr.bf16.mxu0 %v23128_v10  ;;  %21323 = vmatpush3.bf16.msra.mxu1 %v23127_v9  ;;  %v764_v9 = vrot.slane %v65_v8, %v23710_v41  ;;  %v23168_v10 = vld [vmem:[%s28769_s1 + $0x2580] sm:$0xff]  }
 0x49a   :  { %21324 = vmatprep.subr.bf16.mxu1 %v23130_v12  ;;  %v23169_v12 = vld [vmem:[%s28769_s1 + $0x2678] sm:$0xff]  }
 0x49c   :  { %21303 = vmatpush3.bf16.msra.mxu0 %v23129_v11  ;;  %v757_v11 = vcombine.high %v65_v8, %v65_v8  ;;  %v23205_v8 = vld [vmem:[%s28769_s1 + $0x27f8] sm:$0xff]  }
 0x49d   :  { %21304 = vmatprep.subr.bf16.mxu0 %v23132_v14  ;;  %21325 = vmatpush3.bf16.msra.mxu1 %v23131_v13  ;;  %v772_v13 = vcombine.high %v764_v9, %v764_v9 }
 0x49e   :  { %21326 = vmatprep.subr.bf16.mxu1 %v23134_v16  ;;  %v771_v14 = vrot.slane %v757_v11, %v23710_v41  ;;  %v1315_v16 = vpack.c.bf16 %v764_v9, %v764_v9  ;;  %v23206_v11 = vld [vmem:[%s28769_s1 + $0x27b8] sm:$0xff]  }
 0x49f   :  { %v1316_v18 = vpack.c.bf16 %v772_v13, %v772_v13 }
 0x4a0   :  { %21305 = vmatpush3.bf16.msra.mxu0 %v23133_v15  ;;  %v23171_v15 = vld [vmem:[%s28769_s1 + $0x2638] sm:$0xff]   ;;  %v1317_v22 = vpack.c.bf16 %v771_v14, %v771_v14 }
 0x4a1   :  { %21334 = vmatprep.subr.bf16.mxu0 %v23136_v21  ;;  %21327 = vmatpush3.bf16.msra.mxu1 %v23135_v19  ;;  %v773_v19 = vcombine.high %v771_v14, %v771_v14  ;;  %v23207_v14 = vld [vmem:[%s28769_s1 + $0x2770] sm:$0xff]  }
 0x4a2   :  { %21356 = vmatprep.subr.bf16.mxu1 %v23139_v26 }
 0x4a3   :  { %v21042_v30 = vpop.f32.mrf.mxu0  ;;  %16951 = vmatmul.mubr.bf16.vlgmr.msra.gmra.mxu0 %v1311_v25  ;;  %v23175_v25 = vld [vmem:[%s28769_s1 + $0x2630] sm:$0xff]  }
 0x4a4   :  { %v21064_v36 = vpop.f32.mrf.mxu1  ;;  %21335 = vmatpush3.bf16.msra.mxu0 %v23138_v24  ;;  %16991 = vmatmul.mubr.bf16.vlgmr.msra.gmra.mxu1 %v1313_v31  ;;  %v1318_v24 = vpack.c.bf16 %v773_v19, %v773_v19  ;;  %v23209_v19 = vld [vmem:[%s28769_s1 + $0x27f0] sm:$0xff]  }
 0x4a5   :  { %v21043_v35 = vpop.f32.mrf.mxu0  ;;  %21336 = vmatprep.subr.bf16.mxu0 %v23141_v32  ;;  %21357 = vmatpush3.bf16.msra.mxu1 %v23140_v29 }
 0x4a6   :  { %v21044_v38 = vadd.f32 %v21043_v35, %v21042_v30  ;;  %v21065_v42 = vpop.f32.mrf.mxu1  ;;  %21358 = vmatprep.subr.bf16.mxu1 %v23143_v37  ;;  %17030 = vmatprep.mubr.bf16.mxu0 %v1316_v18  ;;  %v23177_v30 = vld [vmem:[%s28769_s1 + $0x26b0] sm:$0xff]  }
 0x4a7   :  { %v21045_v40 = vpop.f32.mrf.mxu0  ;;  %v21066_v45 = vadd.f32 %v21065_v42, %v21064_v36  ;;  %17070 = vmatprep.mubr.bf16.mxu1 %v1318_v24  ;;  %v23179_v36 = vld [vmem:[%s28769_s1 + $0x2628] sm:$0xff]  }
 0x4a8   :  { %v16473_v44 = vadd.f32 %v21044_v38, %v27363_v59  ;;  %v21067_v49 = vpop.f32.mrf.mxu1  ;;  %21337 = vmatpush3.bf16.msra.mxu0 %v23142_v34  ;;  %v23155_v59 = vld [vmem:[%s28769_s1 + $0x25d8] sm:$0xff]   ;;  %v23180_v38 = vld [vmem:[%s28769_s1 + $0x26e8] sm:$0xff]  }
 0x4a9   :  { %v21046_v47 = vpop.f32.mrf.mxu0  ;;  %21338 = vmatprep.subr.bf16.mxu0 %v23145_v43  ;;  %21359 = vmatpush3.bf16.msra.mxu1 %v23144_v39  ;;  %v23181_v42 = vld [vmem:[%s28769_s1 + $0x26a8] sm:$0xff]   ;;  %v23182_v43 = vld [vmem:[%s28769_s1 + $0x2660] sm:$0xff]   ;;  %v23187_v49 = vld [vmem:[%s28769_s1 + $0x2618] sm:$0xff]  }
 0x4aa   :  { %v27467_v50 = vadd.f32 %v21066_v45, %v16473_v44  ;;  %v21068_v53 = vpop.f32.mrf.mxu1  ;;  %21360 = vmatprep.subr.bf16.mxu1 %v23147_v48  ;;  %v23183_v45 = vld [vmem:[%s28769_s1 + $0x2620] sm:$0xff]   ;;  %v23186_v48 = vld [vmem:[%s28769_s1 + $0x2658] sm:$0xff]   ;;  %v23211_v24 = vld [vmem:[%s28769_s1 + $0x2768] sm:$0xff]  }
 0x4ab   :  { %v23185_v47 = vld [vmem:[%s28769_s1 + $0x26a0] sm:$0xff]   ;;  %v23191_v53 = vld [vmem:[%s28769_s1 + $0x2610] sm:$0xff]  }
 0x4ac   :  { %21339 = vmatpush3.bf16.msra.mxu0 %v23146_v46  ;;  %v23184_v46 = vld [vmem:[%s28769_s1 + $0x26e0] sm:$0xff]  }
 0x4ad   :  { %21340 = vmatprep.subr.bf16.mxu0 %v23149_v52  ;;  %21361 = vmatpush3.bf16.msra.mxu1 %v23148_v51  ;;  %v23189_v51 = vld [vmem:[%s28769_s1 + $0x2698] sm:$0xff]   ;;  %v23190_v52 = vld [vmem:[%s28769_s1 + $0x2650] sm:$0xff]  }
 0x4ae   :  { %21362 = vmatprep.subr.bf16.mxu1 %v23151_v55  ;;  %v23193_v55 = vld [vmem:[%s28769_s1 + $0x2690] sm:$0xff]  }
 0x4b0   :  { %21341 = vmatpush3.bf16.msra.mxu0 %v23150_v54  ;;  %v23192_v54 = vld [vmem:[%s28769_s1 + $0x26d0] sm:$0xff]  }
 0x4b1   :  { %21342 = vmatprep.subr.bf16.mxu0 %v23153_v57  ;;  %21363 = vmatpush3.bf16.msra.mxu1 %v23152_v56  ;;  %v23194_v56 = vld [vmem:[%s28769_s1 + $0x2648] sm:$0xff]  }
 0x4b2   :  { %21364 = vmatprep.subr.bf16.mxu1 %v23155_v59  ;;  %v23195_v57 = vld [vmem:[%s28769_s1 + $0x2608] sm:$0xff]  }
 0x4b3   :  { %v23197_v59 = vld [vmem:[%s28769_s1 + $0x2688] sm:$0xff]  }
 0x4b4   :  { %21343 = vmatpush3.bf16.msra.mxu0 %v23154_v58  ;;  %v23196_v58 = vld [vmem:[%s28769_s1 + $0x26c8] sm:$0xff]  }
 0x4b5   :  { %21344 = vmatprep.subr.bf16.mxu0 %v23157_v61  ;;  %21365 = vmatpush3.bf16.msra.mxu1 %v23156_v60  ;;  %v23198_v60 = vld [vmem:[%s28769_s1 + $0x2640] sm:$0xff]  }
 0x4b6   :  { %21366 = vmatprep.subr.bf16.mxu1 %v23159_v63  ;;  %v23199_v61 = vld [vmem:[%s28769_s1 + $0x2600] sm:$0xff]   ;;  %v66_v63 = vld [vmem:[%s28768_s0 + $0x130] sm:$0xff] }
 0x4b8   :  { %21345 = vmatpush3.bf16.msra.mxu0 %v23158_v62  ;;  %v23200_v62 = vld [vmem:[%s28769_s1 + $0x26c0] sm:$0xff]  }
 0x4b9   :  { %21346 = vmatprep.subr.bf16.mxu0 %v23161_v1  ;;  %21367 = vmatpush3.bf16.msra.mxu1 %v23160_v0  ;;  %v781_v0 = vrot.slane %v66_v63, %v23710_v41  ;;  %v23201_v1 = vld [vmem:[%s28769_s1 + $0x2680] sm:$0xff]  }
 0x4ba   :  { %21368 = vmatprep.subr.bf16.mxu1 %v23163_v3  ;;  %v23202_v3 = vld [vmem:[%s28769_s1 + $0x2778] sm:$0xff]  }
 0x4bc   :  { %21347 = vmatpush3.bf16.msra.mxu0 %v23162_v2  ;;  %v774_v2 = vcombine.high %v66_v63, %v66_v63  ;;  %v23238_v63 = vld [vmem:[%s28769_s1 + $0x28f8] sm:$0xff]  }
 0x4bd   :  { %21348 = vmatprep.subr.bf16.mxu0 %v23165_v5  ;;  %21369 = vmatpush3.bf16.msra.mxu1 %v23164_v4  ;;  %v789_v4 = vcombine.high %v781_v0, %v781_v0 }
 0x4be   :  { %21370 = vmatprep.subr.bf16.mxu1 %v23167_v7  ;;  %v788_v5 = vrot.slane %v774_v2, %v23710_v41  ;;  %v1319_v7 = vpack.c.bf16 %v781_v0, %v781_v0  ;;  %v23239_v2 = vld [vmem:[%s28769_s1 + $0x28b8] sm:$0xff]  }
 0x4bf   :  { %v1320_v9 = vpack.c.bf16 %v789_v4, %v789_v4 }
 0x4c0   :  { %21349 = vmatpush3.bf16.msra.mxu0 %v23166_v6  ;;  %v23204_v6 = vld [vmem:[%s28769_s1 + $0x2738] sm:$0xff]   ;;  %v1321_v13 = vpack.c.bf16 %v788_v5, %v788_v5 }
 0x4c1   :  { %21378 = vmatprep.subr.bf16.mxu0 %v23169_v12  ;;  %21371 = vmatpush3.bf16.msra.mxu1 %v23168_v10  ;;  %v790_v10 = vcombine.high %v788_v5, %v788_v5  ;;  %v23240_v5 = vld [vmem:[%s28769_s1 + $0x2870] sm:$0xff]  }
 0x4c2   :  { %21400 = vmatprep.subr.bf16.mxu1 %v23172_v17 }
 0x4c3   :  { %v21086_v21 = vpop.f32.mrf.mxu0  ;;  %17031 = vmatmul.mubr.bf16.vlgmr.msra.gmra.mxu0 %v1315_v16  ;;  %v23208_v16 = vld [vmem:[%s28769_s1 + $0x2730] sm:$0xff]  }
 0x4c4   :  { %v21108_v27 = vpop.f32.mrf.mxu1  ;;  %21379 = vmatpush3.bf16.msra.mxu0 %v23171_v15  ;;  %17071 = vmatmul.mubr.bf16.vlgmr.msra.gmra.mxu1 %v1317_v22  ;;  %v1322_v15 = vpack.c.bf16 %v790_v10, %v790_v10  ;;  %v23242_v10 = vld [vmem:[%s28769_s1 + $0x28f0] sm:$0xff]  }
 0x4c5   :  { %v21087_v26 = vpop.f32.mrf.mxu0  ;;  %21380 = vmatprep.subr.bf16.mxu0 %v23174_v23  ;;  %21401 = vmatpush3.bf16.msra.mxu1 %v23173_v20 }
 0x4c6   :  { %v21088_v29 = vadd.f32 %v21087_v26, %v21086_v21  ;;  %v21109_v32 = vpop.f32.mrf.mxu1  ;;  %21402 = vmatprep.subr.bf16.mxu1 %v23176_v28  ;;  %17110 = vmatprep.mubr.bf16.mxu0 %v1320_v9  ;;  %v23210_v21 = vld [vmem:[%s28769_s1 + $0x27b0] sm:$0xff]  }
 0x4c7   :  { %v21089_v31 = vpop.f32.mrf.mxu0  ;;  %v21110_v35 = vadd.f32 %v21109_v32, %v21108_v27  ;;  %17150 = vmatprep.mubr.bf16.mxu1 %v1322_v15  ;;  %v23212_v27 = vld [vmem:[%s28769_s1 + $0x2728] sm:$0xff]  }
 0x4c8   :  { %v16553_v34 = vadd.f32 %v21088_v29, %v27467_v50  ;;  %v21111_v39 = vpop.f32.mrf.mxu1  ;;  %21381 = vmatpush3.bf16.msra.mxu0 %v23175_v25  ;;  %v23188_v50 = vld [vmem:[%s28769_s1 + $0x26d8] sm:$0xff]   ;;  %v23213_v29 = vld [vmem:[%s28769_s1 + $0x27e8] sm:$0xff]  }
 0x4c9   :  { %v21090_v37 = vpop.f32.mrf.mxu0  ;;  %21382 = vmatprep.subr.bf16.mxu0 %v23178_v33  ;;  %21403 = vmatpush3.bf16.msra.mxu1 %v23177_v30  ;;  %v23214_v32 = vld [vmem:[%s28769_s1 + $0x27a8] sm:$0xff]   ;;  %v23215_v33 = vld [vmem:[%s28769_s1 + $0x2760] sm:$0xff]   ;;  %v23220_v39 = vld [vmem:[%s28769_s1 + $0x2718] sm:$0xff]  }
 0x4ca   :  { %v27571_v40 = vadd.f32 %v21110_v35, %v16553_v34  ;;  %v21112_v44 = vpop.f32.mrf.mxu1  ;;  %21404 = vmatprep.subr.bf16.mxu1 %v23180_v38  ;;  %v23216_v35 = vld [vmem:[%s28769_s1 + $0x2720] sm:$0xff]   ;;  %v23219_v38 = vld [vmem:[%s28769_s1 + $0x2758] sm:$0xff]   ;;  %v23244_v15 = vld [vmem:[%s28769_s1 + $0x2868] sm:$0xff]  }
 0x4cb   :  { %v23218_v37 = vld [vmem:[%s28769_s1 + $0x27a0] sm:$0xff]   ;;  %v23224_v44 = vld [vmem:[%s28769_s1 + $0x2710] sm:$0xff]  }
 0x4cc   :  { %21383 = vmatpush3.bf16.msra.mxu0 %v23179_v36  ;;  %v23217_v36 = vld [vmem:[%s28769_s1 + $0x27e0] sm:$0xff]  }
 0x4cd   :  { %21384 = vmatprep.subr.bf16.mxu0 %v23182_v43  ;;  %21405 = vmatpush3.bf16.msra.mxu1 %v23181_v42  ;;  %v23222_v42 = vld [vmem:[%s28769_s1 + $0x2798] sm:$0xff]   ;;  %v23223_v43 = vld [vmem:[%s28769_s1 + $0x2750] sm:$0xff]  }
 0x4ce   :  { %21406 = vmatprep.subr.bf16.mxu1 %v23184_v46  ;;  %v23226_v46 = vld [vmem:[%s28769_s1 + $0x2790] sm:$0xff]  }
 0x4d0   :  { %21385 = vmatpush3.bf16.msra.mxu0 %v23183_v45  ;;  %v23225_v45 = vld [vmem:[%s28769_s1 + $0x27d0] sm:$0xff]  }
 0x4d1   :  { %21386 = vmatprep.subr.bf16.mxu0 %v23186_v48  ;;  %21407 = vmatpush3.bf16.msra.mxu1 %v23185_v47  ;;  %v23227_v47 = vld [vmem:[%s28769_s1 + $0x2748] sm:$0xff]  }
 0x4d2   :  { %21408 = vmatprep.subr.bf16.mxu1 %v23188_v50  ;;  %v23228_v48 = vld [vmem:[%s28769_s1 + $0x2708] sm:$0xff]  }
 0x4d3   :  { %v23230_v50 = vld [vmem:[%s28769_s1 + $0x2788] sm:$0xff]  }
 0x4d4   :  { %21387 = vmatpush3.bf16.msra.mxu0 %v23187_v49  ;;  %v23229_v49 = vld [vmem:[%s28769_s1 + $0x27c8] sm:$0xff]  }
 0x4d5   :  { %21388 = vmatprep.subr.bf16.mxu0 %v23190_v52  ;;  %21409 = vmatpush3.bf16.msra.mxu1 %v23189_v51  ;;  %v23231_v51 = vld [vmem:[%s28769_s1 + $0x2740] sm:$0xff]  }
 0x4d6   :  { %21410 = vmatprep.subr.bf16.mxu1 %v23192_v54  ;;  %v23232_v52 = vld [vmem:[%s28769_s1 + $0x2700] sm:$0xff]   ;;  %v67_v54 = vld [vmem:[%s28768_s0 + $0x138] sm:$0xff] }
 0x4d8   :  { %21389 = vmatpush3.bf16.msra.mxu0 %v23191_v53  ;;  %v23233_v53 = vld [vmem:[%s28769_s1 + $0x27c0] sm:$0xff]  }
 0x4d9   :  { %21390 = vmatprep.subr.bf16.mxu0 %v23194_v56  ;;  %21411 = vmatpush3.bf16.msra.mxu1 %v23193_v55  ;;  %v798_v55 = vrot.slane %v67_v54, %v23710_v41  ;;  %v23234_v56 = vld [vmem:[%s28769_s1 + $0x2780] sm:$0xff]  }
 0x4da   :  { %21412 = vmatprep.subr.bf16.mxu1 %v23196_v58  ;;  %v23235_v58 = vld [vmem:[%s28769_s1 + $0x2878] sm:$0xff]  }
 0x4dc   :  { %21391 = vmatpush3.bf16.msra.mxu0 %v23195_v57  ;;  %v791_v57 = vcombine.high %v67_v54, %v67_v54  ;;  %v23271_v54 = vld [vmem:[%s28769_s1 + $0x29f8] sm:$0xff]  }
 0x4dd   :  { %21392 = vmatprep.subr.bf16.mxu0 %v23198_v60  ;;  %21413 = vmatpush3.bf16.msra.mxu1 %v23197_v59  ;;  %v806_v59 = vcombine.high %v798_v55, %v798_v55 }
 0x4de   :  { %21414 = vmatprep.subr.bf16.mxu1 %v23200_v62  ;;  %v805_v60 = vrot.slane %v791_v57, %v23710_v41  ;;  %v1323_v62 = vpack.c.bf16 %v798_v55, %v798_v55  ;;  %v23272_v57 = vld [vmem:[%s28769_s1 + $0x29b8] sm:$0xff]  }
 0x4df   :  { %v1324_v0 = vpack.c.bf16 %v806_v59, %v806_v59 }
 0x4e0   :  { %21393 = vmatpush3.bf16.msra.mxu0 %v23199_v61  ;;  %v23237_v61 = vld [vmem:[%s28769_s1 + $0x2838] sm:$0xff]   ;;  %v1325_v4 = vpack.c.bf16 %v805_v60, %v805_v60 }
 0x4e1   :  { %21422 = vmatprep.subr.bf16.mxu0 %v23202_v3  ;;  %21415 = vmatpush3.bf16.msra.mxu1 %v23201_v1  ;;  %v807_v1 = vcombine.high %v805_v60, %v805_v60  ;;  %v23273_v60 = vld [vmem:[%s28769_s1 + $0x2970] sm:$0xff]  }
 0x4e2   :  { %21444 = vmatprep.subr.bf16.mxu1 %v23205_v8 }
 0x4e3   :  { %v21130_v12 = vpop.f32.mrf.mxu0  ;;  %17111 = vmatmul.mubr.bf16.vlgmr.msra.gmra.mxu0 %v1319_v7  ;;  %v23241_v7 = vld [vmem:[%s28769_s1 + $0x2830] sm:$0xff]  }
 0x4e4   :  { %v21152_v18 = vpop.f32.mrf.mxu1  ;;  %21423 = vmatpush3.bf16.msra.mxu0 %v23204_v6  ;;  %17151 = vmatmul.mubr.bf16.vlgmr.msra.gmra.mxu1 %v1321_v13  ;;  %v1326_v6 = vpack.c.bf16 %v807_v1, %v807_v1  ;;  %v23275_v1 = vld [vmem:[%s28769_s1 + $0x29f0] sm:$0xff]  }
 0x4e5   :  { %v21131_v17 = vpop.f32.mrf.mxu0  ;;  %21424 = vmatprep.subr.bf16.mxu0 %v23207_v14  ;;  %21445 = vmatpush3.bf16.msra.mxu1 %v23206_v11 }
 0x4e6   :  { %v21132_v20 = vadd.f32 %v21131_v17, %v21130_v12  ;;  %v21153_v23 = vpop.f32.mrf.mxu1  ;;  %21446 = vmatprep.subr.bf16.mxu1 %v23209_v19  ;;  %17190 = vmatprep.mubr.bf16.mxu0 %v1324_v0  ;;  %v23243_v12 = vld [vmem:[%s28769_s1 + $0x28b0] sm:$0xff]  }
 0x4e7   :  { %v21133_v22 = vpop.f32.mrf.mxu0  ;;  %v21154_v26 = vadd.f32 %v21153_v23, %v21152_v18  ;;  %17230 = vmatprep.mubr.bf16.mxu1 %v1326_v6  ;;  %v23245_v18 = vld [vmem:[%s28769_s1 + $0x2828] sm:$0xff]  }
 0x4e8   :  { %v16633_v25 = vadd.f32 %v21132_v20, %v27571_v40  ;;  %v21155_v30 = vpop.f32.mrf.mxu1  ;;  %21425 = vmatpush3.bf16.msra.mxu0 %v23208_v16  ;;  %v23221_v40 = vld [vmem:[%s28769_s1 + $0x27d8] sm:$0xff]   ;;  %v23246_v20 = vld [vmem:[%s28769_s1 + $0x28e8] sm:$0xff]  }
 0x4e9   :  { %v21134_v28 = vpop.f32.mrf.mxu0  ;;  %21426 = vmatprep.subr.bf16.mxu0 %v23211_v24  ;;  %21447 = vmatpush3.bf16.msra.mxu1 %v23210_v21  ;;  %v23247_v23 = vld [vmem:[%s28769_s1 + $0x28a8] sm:$0xff]   ;;  %v23248_v24 = vld [vmem:[%s28769_s1 + $0x2860] sm:$0xff]   ;;  %v23253_v30 = vld [vmem:[%s28769_s1 + $0x2818] sm:$0xff]  }
 0x4ea   :  { %v27675_v31 = vadd.f32 %v21154_v26, %v16633_v25  ;;  %v21156_v34 = vpop.f32.mrf.mxu1  ;;  %21448 = vmatprep.subr.bf16.mxu1 %v23213_v29  ;;  %v23249_v26 = vld [vmem:[%s28769_s1 + $0x2820] sm:$0xff]   ;;  %v23252_v29 = vld [vmem:[%s28769_s1 + $0x2858] sm:$0xff]   ;;  %v23277_v6 = vld [vmem:[%s28769_s1 + $0x2968] sm:$0xff]  }
 0x4eb   :  { %v23251_v28 = vld [vmem:[%s28769_s1 + $0x28a0] sm:$0xff]   ;;  %v23257_v34 = vld [vmem:[%s28769_s1 + $0x2810] sm:$0xff]  }
 0x4ec   :  { %21427 = vmatpush3.bf16.msra.mxu0 %v23212_v27  ;;  %v23250_v27 = vld [vmem:[%s28769_s1 + $0x28e0] sm:$0xff]  }
 0x4ed   :  { %21428 = vmatprep.subr.bf16.mxu0 %v23215_v33  ;;  %21449 = vmatpush3.bf16.msra.mxu1 %v23214_v32  ;;  %v23255_v32 = vld [vmem:[%s28769_s1 + $0x2898] sm:$0xff]   ;;  %v23256_v33 = vld [vmem:[%s28769_s1 + $0x2850] sm:$0xff]  }
 0x4ee   :  { %21450 = vmatprep.subr.bf16.mxu1 %v23217_v36  ;;  %v23259_v36 = vld [vmem:[%s28769_s1 + $0x2890] sm:$0xff]  }
 0x4f0   :  { %21429 = vmatpush3.bf16.msra.mxu0 %v23216_v35  ;;  %v23258_v35 = vld [vmem:[%s28769_s1 + $0x28d0] sm:$0xff]  }
 0x4f1   :  { %21430 = vmatprep.subr.bf16.mxu0 %v23219_v38  ;;  %21451 = vmatpush3.bf16.msra.mxu1 %v23218_v37  ;;  %v23260_v37 = vld [vmem:[%s28769_s1 + $0x2848] sm:$0xff]  }
 0x4f2   :  { %21452 = vmatprep.subr.bf16.mxu1 %v23221_v40  ;;  %v23261_v38 = vld [vmem:[%s28769_s1 + $0x2808] sm:$0xff]  }
 0x4f3   :  { %v23263_v40 = vld [vmem:[%s28769_s1 + $0x2888] sm:$0xff]  }
 0x4f4   :  { %21431 = vmatpush3.bf16.msra.mxu0 %v23220_v39  ;;  %v23262_v39 = vld [vmem:[%s28769_s1 + $0x28c8] sm:$0xff]  }
 0x4f5   :  { %21432 = vmatprep.subr.bf16.mxu0 %v23223_v43  ;;  %21453 = vmatpush3.bf16.msra.mxu1 %v23222_v42  ;;  %v23264_v42 = vld [vmem:[%s28769_s1 + $0x2840] sm:$0xff]  }
 0x4f6   :  { %21454 = vmatprep.subr.bf16.mxu1 %v23225_v45  ;;  %v23265_v43 = vld [vmem:[%s28769_s1 + $0x2800] sm:$0xff]  }
 0x4f7   :  { %v68_v45 = vld [vmem:[%s28768_s0 + $0x140] sm:$0xff] }
 0x4f8   :  { %21433 = vmatpush3.bf16.msra.mxu0 %v23224_v44  ;;  %v23266_v44 = vld [vmem:[%s28769_s1 + $0x28c0] sm:$0xff]  }
 0x4f9   :  { %21434 = vmatprep.subr.bf16.mxu0 %v23227_v47  ;;  %21455 = vmatpush3.bf16.msra.mxu1 %v23226_v46  ;;  %v815_v46 = vrot.slane %v68_v45, %v23710_v41  ;;  %v23267_v47 = vld [vmem:[%s28769_s1 + $0x2880] sm:$0xff]  }
 0x4fa   :  { %21456 = vmatprep.subr.bf16.mxu1 %v23229_v49  ;;  %v23268_v49 = vld [vmem:[%s28769_s1 + $0x2978] sm:$0xff]  }
 0x4fc   :  { %21435 = vmatpush3.bf16.msra.mxu0 %v23228_v48  ;;  %v808_v48 = vcombine.high %v68_v45, %v68_v45  ;;  %v23304_v45 = vld [vmem:[%s28769_s1 + $0x2af8] sm:$0xff]  }
 0x4fd   :  { %21436 = vmatprep.subr.bf16.mxu0 %v23231_v51  ;;  %21457 = vmatpush3.bf16.msra.mxu1 %v23230_v50  ;;  %v823_v50 = vcombine.high %v815_v46, %v815_v46 }
 0x4fe   :  { %21458 = vmatprep.subr.bf16.mxu1 %v23233_v53  ;;  %v822_v51 = vrot.slane %v808_v48, %v23710_v41  ;;  %v1327_v53 = vpack.c.bf16 %v815_v46, %v815_v46  ;;  %v23305_v48 = vld [vmem:[%s28769_s1 + $0x2ab8] sm:$0xff]  }
 0x4ff   :  { %v1328_v55 = vpack.c.bf16 %v823_v50, %v823_v50 }
 0x500   :  { %21437 = vmatpush3.bf16.msra.mxu0 %v23232_v52  ;;  %v23270_v52 = vld [vmem:[%s28769_s1 + $0x2938] sm:$0xff]   ;;  %v1329_v59 = vpack.c.bf16 %v822_v51, %v822_v51 }
 0x501   :  { %21466 = vmatprep.subr.bf16.mxu0 %v23235_v58  ;;  %21459 = vmatpush3.bf16.msra.mxu1 %v23234_v56  ;;  %v824_v56 = vcombine.high %v822_v51, %v822_v51  ;;  %v23306_v51 = vld [vmem:[%s28769_s1 + $0x2a70] sm:$0xff]  }
 0x502   :  { %21488 = vmatprep.subr.bf16.mxu1 %v23238_v63 }
 0x503   :  { %v21174_v3 = vpop.f32.mrf.mxu0  ;;  %17191 = vmatmul.mubr.bf16.vlgmr.msra.gmra.mxu0 %v1323_v62  ;;  %v23274_v62 = vld [vmem:[%s28769_s1 + $0x2930] sm:$0xff]  }
 0x504   :  { %v21196_v9 = vpop.f32.mrf.mxu1  ;;  %21467 = vmatpush3.bf16.msra.mxu0 %v23237_v61  ;;  %17231 = vmatmul.mubr.bf16.vlgmr.msra.gmra.mxu1 %v1325_v4  ;;  %v1330_v61 = vpack.c.bf16 %v824_v56, %v824_v56  ;;  %v23308_v56 = vld [vmem:[%s28769_s1 + $0x2af0] sm:$0xff]  }
 0x505   :  { %v21175_v8 = vpop.f32.mrf.mxu0  ;;  %21468 = vmatprep.subr.bf16.mxu0 %v23240_v5  ;;  %21489 = vmatpush3.bf16.msra.mxu1 %v23239_v2 }
 0x506   :  { %v21176_v11 = vadd.f32 %v21175_v8, %v21174_v3  ;;  %v21197_v14 = vpop.f32.mrf.mxu1  ;;  %21490 = vmatprep.subr.bf16.mxu1 %v23242_v10  ;;  %17270 = vmatprep.mubr.bf16.mxu0 %v1328_v55  ;;  %v23276_v3 = vld [vmem:[%s28769_s1 + $0x29b0] sm:$0xff]  }
 0x507   :  { %v21177_v13 = vpop.f32.mrf.mxu0  ;;  %v21198_v17 = vadd.f32 %v21197_v14, %v21196_v9  ;;  %17310 = vmatprep.mubr.bf16.mxu1 %v1330_v61  ;;  %v23278_v9 = vld [vmem:[%s28769_s1 + $0x2928] sm:$0xff]  }
 0x508   :  { %v16713_v16 = vadd.f32 %v21176_v11, %v27675_v31  ;;  %v21199_v21 = vpop.f32.mrf.mxu1  ;;  %21469 = vmatpush3.bf16.msra.mxu0 %v23241_v7  ;;  %v23254_v31 = vld [vmem:[%s28769_s1 + $0x28d8] sm:$0xff]   ;;  %v23279_v11 = vld [vmem:[%s28769_s1 + $0x29e8] sm:$0xff]  }
 0x509   :  { %v21178_v19 = vpop.f32.mrf.mxu0  ;;  %21470 = vmatprep.subr.bf16.mxu0 %v23244_v15  ;;  %21491 = vmatpush3.bf16.msra.mxu1 %v23243_v12  ;;  %v23280_v14 = vld [vmem:[%s28769_s1 + $0x29a8] sm:$0xff]   ;;  %v23281_v15 = vld [vmem:[%s28769_s1 + $0x2960] sm:$0xff]   ;;  %v23286_v21 = vld [vmem:[%s28769_s1 + $0x2918] sm:$0xff]  }
 0x50a   :  { %v27779_v22 = vadd.f32 %v21198_v17, %v16713_v16  ;;  %v21200_v25 = vpop.f32.mrf.mxu1  ;;  %21492 = vmatprep.subr.bf16.mxu1 %v23246_v20  ;;  %v23282_v17 = vld [vmem:[%s28769_s1 + $0x2920] sm:$0xff]   ;;  %v23285_v20 = vld [vmem:[%s28769_s1 + $0x2958] sm:$0xff]   ;;  %v23310_v61 = vld [vmem:[%s28769_s1 + $0x2a68] sm:$0xff]  }
 0x50b   :  { %v23284_v19 = vld [vmem:[%s28769_s1 + $0x29a0] sm:$0xff]   ;;  %v23290_v25 = vld [vmem:[%s28769_s1 + $0x2910] sm:$0xff]  }
 0x50c   :  { %21471 = vmatpush3.bf16.msra.mxu0 %v23245_v18  ;;  %v23283_v18 = vld [vmem:[%s28769_s1 + $0x29e0] sm:$0xff]  }
 0x50d   :  { %21472 = vmatprep.subr.bf16.mxu0 %v23248_v24  ;;  %21493 = vmatpush3.bf16.msra.mxu1 %v23247_v23  ;;  %v23288_v23 = vld [vmem:[%s28769_s1 + $0x2998] sm:$0xff]   ;;  %v23289_v24 = vld [vmem:[%s28769_s1 + $0x2950] sm:$0xff]  }
 0x50e   :  { %21494 = vmatprep.subr.bf16.mxu1 %v23250_v27  ;;  %v23292_v27 = vld [vmem:[%s28769_s1 + $0x2990] sm:$0xff]  }
 0x510   :  { %21473 = vmatpush3.bf16.msra.mxu0 %v23249_v26  ;;  %v23291_v26 = vld [vmem:[%s28769_s1 + $0x29d0] sm:$0xff]  }
 0x511   :  { %21474 = vmatprep.subr.bf16.mxu0 %v23252_v29  ;;  %21495 = vmatpush3.bf16.msra.mxu1 %v23251_v28  ;;  %v23293_v28 = vld [vmem:[%s28769_s1 + $0x2948] sm:$0xff]  }
 0x512   :  { %21496 = vmatprep.subr.bf16.mxu1 %v23254_v31  ;;  %v23294_v29 = vld [vmem:[%s28769_s1 + $0x2908] sm:$0xff]  }
 0x513   :  { %v23296_v31 = vld [vmem:[%s28769_s1 + $0x2988] sm:$0xff]  }
 0x514   :  { %21475 = vmatpush3.bf16.msra.mxu0 %v23253_v30  ;;  %v23295_v30 = vld [vmem:[%s28769_s1 + $0x29c8] sm:$0xff]  }
 0x515   :  { %21476 = vmatprep.subr.bf16.mxu0 %v23256_v33  ;;  %21497 = vmatpush3.bf16.msra.mxu1 %v23255_v32  ;;  %v23297_v32 = vld [vmem:[%s28769_s1 + $0x2940] sm:$0xff]  }
 0x516   :  { %21498 = vmatprep.subr.bf16.mxu1 %v23258_v35  ;;  %v23298_v33 = vld [vmem:[%s28769_s1 + $0x2900] sm:$0xff]   ;;  %v69_v35 = vld [vmem:[%s28768_s0 + $0x148] sm:$0xff] }
 0x518   :  { %21477 = vmatpush3.bf16.msra.mxu0 %v23257_v34  ;;  %v23299_v34 = vld [vmem:[%s28769_s1 + $0x29c0] sm:$0xff]  }
 0x519   :  { %21478 = vmatprep.subr.bf16.mxu0 %v23260_v37  ;;  %21499 = vmatpush3.bf16.msra.mxu1 %v23259_v36  ;;  %v832_v36 = vrot.slane %v69_v35, %v23710_v41  ;;  %v23300_v37 = vld [vmem:[%s28769_s1 + $0x2980] sm:$0xff]  }
 0x51a   :  { %21500 = vmatprep.subr.bf16.mxu1 %v23262_v39  ;;  %v23301_v39 = vld [vmem:[%s28769_s1 + $0x2a78] sm:$0xff]  }
 0x51c   :  { %21479 = vmatpush3.bf16.msra.mxu0 %v23261_v38  ;;  %v825_v38 = vcombine.high %v69_v35, %v69_v35  ;;  %v23337_v35 = vld [vmem:[%s28769_s1 + $0x2bf8] sm:$0xff]  }
 0x51d   :  { %21480 = vmatprep.subr.bf16.mxu0 %v23264_v42  ;;  %21501 = vmatpush3.bf16.msra.mxu1 %v23263_v40  ;;  %v840_v40 = vcombine.high %v832_v36, %v832_v36 }
 0x51e   :  { %21502 = vmatprep.subr.bf16.mxu1 %v23266_v44  ;;  %v839_v42 = vrot.slane %v825_v38, %v23710_v41  ;;  %v1331_v44 = vpack.c.bf16 %v832_v36, %v832_v36  ;;  %v23338_v38 = vld [vmem:[%s28769_s1 + $0x2bb8] sm:$0xff]  }
 0x51f   :  { %v1332_v46 = vpack.c.bf16 %v840_v40, %v840_v40 }
 0x520   :  { %21481 = vmatpush3.bf16.msra.mxu0 %v23265_v43  ;;  %v23303_v43 = vld [vmem:[%s28769_s1 + $0x2a38] sm:$0xff]   ;;  %v1333_v50 = vpack.c.bf16 %v839_v42, %v839_v42 }
 0x521   :  { %21510 = vmatprep.subr.bf16.mxu0 %v23268_v49  ;;  %21503 = vmatpush3.bf16.msra.mxu1 %v23267_v47  ;;  %v841_v47 = vcombine.high %v839_v42, %v839_v42  ;;  %v23339_v42 = vld [vmem:[%s28769_s1 + $0x2b70] sm:$0xff]  }
 0x522   :  { %21532 = vmatprep.subr.bf16.mxu1 %v23271_v54 }
 0x523   :  { %v21218_v58 = vpop.f32.mrf.mxu0  ;;  %17271 = vmatmul.mubr.bf16.vlgmr.msra.gmra.mxu0 %v1327_v53  ;;  %v23307_v53 = vld [vmem:[%s28769_s1 + $0x2a30] sm:$0xff]  }
 0x524   :  { %v21240_v0 = vpop.f32.mrf.mxu1  ;;  %21511 = vmatpush3.bf16.msra.mxu0 %v23270_v52  ;;  %17311 = vmatmul.mubr.bf16.vlgmr.msra.gmra.mxu1 %v1329_v59  ;;  %v1334_v52 = vpack.c.bf16 %v841_v47, %v841_v47  ;;  %v23341_v47 = vld [vmem:[%s28769_s1 + $0x2bf0] sm:$0xff]  }
 0x525   :  { %v21219_v63 = vpop.f32.mrf.mxu0  ;;  %21512 = vmatprep.subr.bf16.mxu0 %v23273_v60  ;;  %21533 = vmatpush3.bf16.msra.mxu1 %v23272_v57 }
 0x526   :  { %v21220_v2 = vadd.f32 %v21219_v63, %v21218_v58  ;;  %v21241_v5 = vpop.f32.mrf.mxu1  ;;  %21534 = vmatprep.subr.bf16.mxu1 %v23275_v1  ;;  %17350 = vmatprep.mubr.bf16.mxu0 %v1332_v46  ;;  %v23309_v58 = vld [vmem:[%s28769_s1 + $0x2ab0] sm:$0xff]  }
 0x527   :  { %v21221_v4 = vpop.f32.mrf.mxu0  ;;  %v21242_v8 = vadd.f32 %v21241_v5, %v21240_v0  ;;  %17390 = vmatprep.mubr.bf16.mxu1 %v1334_v52  ;;  %v23311_v0 = vld [vmem:[%s28769_s1 + $0x2a28] sm:$0xff]  }
 0x528   :  { %v16793_v7 = vadd.f32 %v21220_v2, %v27779_v22  ;;  %v21243_v12 = vpop.f32.mrf.mxu1  ;;  %21513 = vmatpush3.bf16.msra.mxu0 %v23274_v62  ;;  %v23287_v22 = vld [vmem:[%s28769_s1 + $0x29d8] sm:$0xff]   ;;  %v23312_v2 = vld [vmem:[%s28769_s1 + $0x2ae8] sm:$0xff]  }
 0x529   :  { %v21222_v10 = vpop.f32.mrf.mxu0  ;;  %21514 = vmatprep.subr.bf16.mxu0 %v23277_v6  ;;  %21535 = vmatpush3.bf16.msra.mxu1 %v23276_v3  ;;  %v23313_v5 = vld [vmem:[%s28769_s1 + $0x2aa8] sm:$0xff]   ;;  %v23314_v6 = vld [vmem:[%s28769_s1 + $0x2a60] sm:$0xff]   ;;  %v23319_v12 = vld [vmem:[%s28769_s1 + $0x2a18] sm:$0xff]  }
 0x52a   :  { %v27883_v13 = vadd.f32 %v21242_v8, %v16793_v7  ;;  %v21244_v16 = vpop.f32.mrf.mxu1  ;;  %21536 = vmatprep.subr.bf16.mxu1 %v23279_v11  ;;  %v23315_v8 = vld [vmem:[%s28769_s1 + $0x2a20] sm:$0xff]   ;;  %v23318_v11 = vld [vmem:[%s28769_s1 + $0x2a58] sm:$0xff]   ;;  %v23343_v52 = vld [vmem:[%s28769_s1 + $0x2b68] sm:$0xff]  }
 0x52b   :  { %v23317_v10 = vld [vmem:[%s28769_s1 + $0x2aa0] sm:$0xff]   ;;  %v23323_v16 = vld [vmem:[%s28769_s1 + $0x2a10] sm:$0xff]  }
 0x52c   :  { %21515 = vmatpush3.bf16.msra.mxu0 %v23278_v9  ;;  %v23316_v9 = vld [vmem:[%s28769_s1 + $0x2ae0] sm:$0xff]  }
 0x52d   :  { %21516 = vmatprep.subr.bf16.mxu0 %v23281_v15  ;;  %21537 = vmatpush3.bf16.msra.mxu1 %v23280_v14  ;;  %v23321_v14 = vld [vmem:[%s28769_s1 + $0x2a98] sm:$0xff]   ;;  %v23322_v15 = vld [vmem:[%s28769_s1 + $0x2a50] sm:$0xff]  }
 0x52e   :  { %21538 = vmatprep.subr.bf16.mxu1 %v23283_v18  ;;  %v23325_v18 = vld [vmem:[%s28769_s1 + $0x2a90] sm:$0xff]  }
 0x530   :  { %21517 = vmatpush3.bf16.msra.mxu0 %v23282_v17  ;;  %v23324_v17 = vld [vmem:[%s28769_s1 + $0x2ad0] sm:$0xff]  }
 0x531   :  { %21518 = vmatprep.subr.bf16.mxu0 %v23285_v20  ;;  %21539 = vmatpush3.bf16.msra.mxu1 %v23284_v19  ;;  %v23326_v19 = vld [vmem:[%s28769_s1 + $0x2a48] sm:$0xff]  }
 0x532   :  { %21540 = vmatprep.subr.bf16.mxu1 %v23287_v22  ;;  %v23327_v20 = vld [vmem:[%s28769_s1 + $0x2a08] sm:$0xff]  }
 0x533   :  { %v23329_v22 = vld [vmem:[%s28769_s1 + $0x2a88] sm:$0xff]  }
 0x534   :  { %21519 = vmatpush3.bf16.msra.mxu0 %v23286_v21  ;;  %v23328_v21 = vld [vmem:[%s28769_s1 + $0x2ac8] sm:$0xff]  }
 0x535   :  { %21520 = vmatprep.subr.bf16.mxu0 %v23289_v24  ;;  %21541 = vmatpush3.bf16.msra.mxu1 %v23288_v23  ;;  %v23330_v23 = vld [vmem:[%s28769_s1 + $0x2a40] sm:$0xff]  }
 0x536   :  { %21542 = vmatprep.subr.bf16.mxu1 %v23291_v26  ;;  %v23331_v24 = vld [vmem:[%s28769_s1 + $0x2a00] sm:$0xff]   ;;  %v70_v26 = vld [vmem:[%s28768_s0 + $0x150] sm:$0xff] }
 0x538   :  { %21521 = vmatpush3.bf16.msra.mxu0 %v23290_v25  ;;  %v23332_v25 = vld [vmem:[%s28769_s1 + $0x2ac0] sm:$0xff]  }
 0x539   :  { %21522 = vmatprep.subr.bf16.mxu0 %v23293_v28  ;;  %21543 = vmatpush3.bf16.msra.mxu1 %v23292_v27  ;;  %v849_v27 = vrot.slane %v70_v26, %v23710_v41  ;;  %v23333_v28 = vld [vmem:[%s28769_s1 + $0x2a80] sm:$0xff]  }
 0x53a   :  { %21544 = vmatprep.subr.bf16.mxu1 %v23295_v30  ;;  %v23334_v30 = vld [vmem:[%s28769_s1 + $0x2b78] sm:$0xff]  }
 0x53c   :  { %21523 = vmatpush3.bf16.msra.mxu0 %v23294_v29  ;;  %v842_v29 = vcombine.high %v70_v26, %v70_v26  ;;  %v23370_v26 = vld [vmem:[%s28769_s1 + $0x2cf8] sm:$0xff]  }
 0x53d   :  { %21524 = vmatprep.subr.bf16.mxu0 %v23297_v32  ;;  %21545 = vmatpush3.bf16.msra.mxu1 %v23296_v31  ;;  %v857_v31 = vcombine.high %v849_v27, %v849_v27 }
 0x53e   :  { %21546 = vmatprep.subr.bf16.mxu1 %v23299_v34  ;;  %v856_v32 = vrot.slane %v842_v29, %v23710_v41  ;;  %v1335_v34 = vpack.c.bf16 %v849_v27, %v849_v27  ;;  %v23371_v29 = vld [vmem:[%s28769_s1 + $0x2cb8] sm:$0xff]  }
 0x53f   :  { %v1336_v36 = vpack.c.bf16 %v857_v31, %v857_v31 }
 0x540   :  { %21525 = vmatpush3.bf16.msra.mxu0 %v23298_v33  ;;  %v23336_v33 = vld [vmem:[%s28769_s1 + $0x2b38] sm:$0xff]   ;;  %v1337_v40 = vpack.c.bf16 %v856_v32, %v856_v32 }
 0x541   :  { %21554 = vmatprep.subr.bf16.mxu0 %v23301_v39  ;;  %21547 = vmatpush3.bf16.msra.mxu1 %v23300_v37  ;;  %v858_v37 = vcombine.high %v856_v32, %v856_v32  ;;  %v23372_v32 = vld [vmem:[%s28769_s1 + $0x2c70] sm:$0xff]  }
 0x542   :  { %21576 = vmatprep.subr.bf16.mxu1 %v23304_v45 }
 0x543   :  { %v21262_v49 = vpop.f32.mrf.mxu0  ;;  %17351 = vmatmul.mubr.bf16.vlgmr.msra.gmra.mxu0 %v1331_v44  ;;  %v23340_v44 = vld [vmem:[%s28769_s1 + $0x2b30] sm:$0xff]  }
 0x544   :  { %v21284_v55 = vpop.f32.mrf.mxu1  ;;  %21555 = vmatpush3.bf16.msra.mxu0 %v23303_v43  ;;  %17391 = vmatmul.mubr.bf16.vlgmr.msra.gmra.mxu1 %v1333_v50  ;;  %v1338_v43 = vpack.c.bf16 %v858_v37, %v858_v37  ;;  %v23374_v37 = vld [vmem:[%s28769_s1 + $0x2cf0] sm:$0xff]  }
 0x545   :  { %v21263_v54 = vpop.f32.mrf.mxu0  ;;  %21556 = vmatprep.subr.bf16.mxu0 %v23306_v51  ;;  %21577 = vmatpush3.bf16.msra.mxu1 %v23305_v48 }
 0x546   :  { %v21264_v57 = vadd.f32 %v21263_v54, %v21262_v49  ;;  %v21285_v60 = vpop.f32.mrf.mxu1  ;;  %21578 = vmatprep.subr.bf16.mxu1 %v23308_v56  ;;  %17430 = vmatprep.mubr.bf16.mxu0 %v1336_v36  ;;  %v23342_v49 = vld [vmem:[%s28769_s1 + $0x2bb0] sm:$0xff]  }
 0x547   :  { %v21265_v59 = vpop.f32.mrf.mxu0  ;;  %v21286_v63 = vadd.f32 %v21285_v60, %v21284_v55  ;;  %17470 = vmatprep.mubr.bf16.mxu1 %v1338_v43  ;;  %v23344_v55 = vld [vmem:[%s28769_s1 + $0x2b28] sm:$0xff]  }
 0x548   :  { %v16873_v62 = vadd.f32 %v21264_v57, %v27883_v13  ;;  %v21287_v3 = vpop.f32.mrf.mxu1  ;;  %21557 = vmatpush3.bf16.msra.mxu0 %v23307_v53  ;;  %v23320_v13 = vld [vmem:[%s28769_s1 + $0x2ad8] sm:$0xff]   ;;  %v23345_v57 = vld [vmem:[%s28769_s1 + $0x2be8] sm:$0xff]  }
 0x549   :  { %v21266_v1 = vpop.f32.mrf.mxu0  ;;  %21558 = vmatprep.subr.bf16.mxu0 %v23310_v61  ;;  %21579 = vmatpush3.bf16.msra.mxu1 %v23309_v58  ;;  %v23346_v60 = vld [vmem:[%s28769_s1 + $0x2ba8] sm:$0xff]   ;;  %v23347_v61 = vld [vmem:[%s28769_s1 + $0x2b60] sm:$0xff]   ;;  %v23352_v3 = vld [vmem:[%s28769_s1 + $0x2b18] sm:$0xff]  }
 0x54a   :  { %v27987_v4 = vadd.f32 %v21286_v63, %v16873_v62  ;;  %v21288_v7 = vpop.f32.mrf.mxu1  ;;  %21580 = vmatprep.subr.bf16.mxu1 %v23312_v2  ;;  %v23348_v63 = vld [vmem:[%s28769_s1 + $0x2b20] sm:$0xff]   ;;  %v23351_v2 = vld [vmem:[%s28769_s1 + $0x2b58] sm:$0xff]   ;;  %v23376_v43 = vld [vmem:[%s28769_s1 + $0x2c68] sm:$0xff]  }
 0x54b   :  { %v23350_v1 = vld [vmem:[%s28769_s1 + $0x2ba0] sm:$0xff]   ;;  %v23356_v7 = vld [vmem:[%s28769_s1 + $0x2b10] sm:$0xff]  }
 0x54c   :  { %21559 = vmatpush3.bf16.msra.mxu0 %v23311_v0  ;;  %v23349_v0 = vld [vmem:[%s28769_s1 + $0x2be0] sm:$0xff]  }
 0x54d   :  { %21560 = vmatprep.subr.bf16.mxu0 %v23314_v6  ;;  %21581 = vmatpush3.bf16.msra.mxu1 %v23313_v5  ;;  %v23354_v5 = vld [vmem:[%s28769_s1 + $0x2b98] sm:$0xff]   ;;  %v23355_v6 = vld [vmem:[%s28769_s1 + $0x2b50] sm:$0xff]  }
 0x54e   :  { %21582 = vmatprep.subr.bf16.mxu1 %v23316_v9  ;;  %v23358_v9 = vld [vmem:[%s28769_s1 + $0x2b90] sm:$0xff]  }
 0x550   :  { %21561 = vmatpush3.bf16.msra.mxu0 %v23315_v8  ;;  %v23357_v8 = vld [vmem:[%s28769_s1 + $0x2bd0] sm:$0xff]  }
 0x551   :  { %21562 = vmatprep.subr.bf16.mxu0 %v23318_v11  ;;  %21583 = vmatpush3.bf16.msra.mxu1 %v23317_v10  ;;  %v23359_v10 = vld [vmem:[%s28769_s1 + $0x2b48] sm:$0xff]  }
 0x552   :  { %21584 = vmatprep.subr.bf16.mxu1 %v23320_v13  ;;  %v23360_v11 = vld [vmem:[%s28769_s1 + $0x2b08] sm:$0xff]  }
 0x553   :  { %v23362_v13 = vld [vmem:[%s28769_s1 + $0x2b88] sm:$0xff]  }
 0x554   :  { %21563 = vmatpush3.bf16.msra.mxu0 %v23319_v12  ;;  %v23361_v12 = vld [vmem:[%s28769_s1 + $0x2bc8] sm:$0xff]  }
 0x555   :  { %21564 = vmatprep.subr.bf16.mxu0 %v23322_v15  ;;  %21585 = vmatpush3.bf16.msra.mxu1 %v23321_v14  ;;  %v23363_v14 = vld [vmem:[%s28769_s1 + $0x2b40] sm:$0xff]  }
 0x556   :  { %21586 = vmatprep.subr.bf16.mxu1 %v23324_v17  ;;  %v23364_v15 = vld [vmem:[%s28769_s1 + $0x2b00] sm:$0xff]   ;;  %v71_v17 = vld [vmem:[%s28768_s0 + $0x158] sm:$0xff] }
 0x558   :  { %21565 = vmatpush3.bf16.msra.mxu0 %v23323_v16  ;;  %v23365_v16 = vld [vmem:[%s28769_s1 + $0x2bc0] sm:$0xff]  }
 0x559   :  { %21566 = vmatprep.subr.bf16.mxu0 %v23326_v19  ;;  %21587 = vmatpush3.bf16.msra.mxu1 %v23325_v18  ;;  %v866_v18 = vrot.slane %v71_v17, %v23710_v41  ;;  %v23366_v19 = vld [vmem:[%s28769_s1 + $0x2b80] sm:$0xff]  }
 0x55a   :  { %21588 = vmatprep.subr.bf16.mxu1 %v23328_v21  ;;  %v23367_v21 = vld [vmem:[%s28769_s1 + $0x2c78] sm:$0xff]  }
 0x55c   :  { %21567 = vmatpush3.bf16.msra.mxu0 %v23327_v20  ;;  %v859_v20 = vcombine.high %v71_v17, %v71_v17  ;;  %v23403_v17 = vld [vmem:[%s28769_s1 + $0x2df8] sm:$0xff]  }
 0x55d   :  { %21568 = vmatprep.subr.bf16.mxu0 %v23330_v23  ;;  %21589 = vmatpush3.bf16.msra.mxu1 %v23329_v22  ;;  %v874_v22 = vcombine.high %v866_v18, %v866_v18 }
 0x55e   :  { %21590 = vmatprep.subr.bf16.mxu1 %v23332_v25  ;;  %v873_v23 = vrot.slane %v859_v20, %v23710_v41  ;;  %v1339_v25 = vpack.c.bf16 %v866_v18, %v866_v18  ;;  %v23404_v20 = vld [vmem:[%s28769_s1 + $0x2db8] sm:$0xff]  }
 0x55f   :  { %v1340_v27 = vpack.c.bf16 %v874_v22, %v874_v22 }
 0x560   :  { %21569 = vmatpush3.bf16.msra.mxu0 %v23331_v24  ;;  %v23369_v24 = vld [vmem:[%s28769_s1 + $0x2c38] sm:$0xff]   ;;  %v1341_v31 = vpack.c.bf16 %v873_v23, %v873_v23 }
 0x561   :  { %21598 = vmatprep.subr.bf16.mxu0 %v23334_v30  ;;  %21591 = vmatpush3.bf16.msra.mxu1 %v23333_v28  ;;  %v875_v28 = vcombine.high %v873_v23, %v873_v23  ;;  %v23405_v23 = vld [vmem:[%s28769_s1 + $0x2d70] sm:$0xff]  }
 0x562   :  { %21620 = vmatprep.subr.bf16.mxu1 %v23337_v35 }
 0x563   :  { %v21306_v39 = vpop.f32.mrf.mxu0  ;;  %17431 = vmatmul.mubr.bf16.vlgmr.msra.gmra.mxu0 %v1335_v34  ;;  %v23373_v34 = vld [vmem:[%s28769_s1 + $0x2c30] sm:$0xff]  }
 0x564   :  { %v21328_v46 = vpop.f32.mrf.mxu1  ;;  %21599 = vmatpush3.bf16.msra.mxu0 %v23336_v33  ;;  %17471 = vmatmul.mubr.bf16.vlgmr.msra.gmra.mxu1 %v1337_v40  ;;  %v1342_v33 = vpack.c.bf16 %v875_v28, %v875_v28  ;;  %v23407_v28 = vld [vmem:[%s28769_s1 + $0x2df0] sm:$0xff]  }
 0x565   :  { %v21307_v45 = vpop.f32.mrf.mxu0  ;;  %21600 = vmatprep.subr.bf16.mxu0 %v23339_v42  ;;  %21621 = vmatpush3.bf16.msra.mxu1 %v23338_v38 }
 0x566   :  { %v21308_v48 = vadd.f32 %v21307_v45, %v21306_v39  ;;  %v21329_v51 = vpop.f32.mrf.mxu1  ;;  %21622 = vmatprep.subr.bf16.mxu1 %v23341_v47  ;;  %17510 = vmatprep.mubr.bf16.mxu0 %v1340_v27  ;;  %v23375_v39 = vld [vmem:[%s28769_s1 + $0x2cb0] sm:$0xff]  }
 0x567   :  { %v21309_v50 = vpop.f32.mrf.mxu0  ;;  %v21330_v54 = vadd.f32 %v21329_v51, %v21328_v46  ;;  %17550 = vmatprep.mubr.bf16.mxu1 %v1342_v33  ;;  %v23377_v46 = vld [vmem:[%s28769_s1 + $0x2c28] sm:$0xff]  }
 0x568   :  { %v16953_v53 = vadd.f32 %v21308_v48, %v27987_v4  ;;  %v21331_v58 = vpop.f32.mrf.mxu1  ;;  %21601 = vmatpush3.bf16.msra.mxu0 %v23340_v44  ;;  %v23353_v4 = vld [vmem:[%s28769_s1 + $0x2bd8] sm:$0xff]   ;;  %v23378_v48 = vld [vmem:[%s28769_s1 + $0x2ce8] sm:$0xff]  }
 0x569   :  { %v21310_v56 = vpop.f32.mrf.mxu0  ;;  %21602 = vmatprep.subr.bf16.mxu0 %v23343_v52  ;;  %21623 = vmatpush3.bf16.msra.mxu1 %v23342_v49  ;;  %v23379_v51 = vld [vmem:[%s28769_s1 + $0x2ca8] sm:$0xff]   ;;  %v23380_v52 = vld [vmem:[%s28769_s1 + $0x2c60] sm:$0xff]   ;;  %v23385_v58 = vld [vmem:[%s28769_s1 + $0x2c18] sm:$0xff]  }
 0x56a   :  { %v28091_v59 = vadd.f32 %v21330_v54, %v16953_v53  ;;  %v21332_v62 = vpop.f32.mrf.mxu1  ;;  %21624 = vmatprep.subr.bf16.mxu1 %v23345_v57  ;;  %v23381_v54 = vld [vmem:[%s28769_s1 + $0x2c20] sm:$0xff]   ;;  %v23384_v57 = vld [vmem:[%s28769_s1 + $0x2c58] sm:$0xff]   ;;  %v23409_v33 = vld [vmem:[%s28769_s1 + $0x2d68] sm:$0xff]  }
 0x56b   :  { %v23383_v56 = vld [vmem:[%s28769_s1 + $0x2ca0] sm:$0xff]   ;;  %v23389_v62 = vld [vmem:[%s28769_s1 + $0x2c10] sm:$0xff]  }
 0x56c   :  { %21603 = vmatpush3.bf16.msra.mxu0 %v23344_v55  ;;  %v23382_v55 = vld [vmem:[%s28769_s1 + $0x2ce0] sm:$0xff]  }
 0x56d   :  { %21604 = vmatprep.subr.bf16.mxu0 %v23347_v61  ;;  %21625 = vmatpush3.bf16.msra.mxu1 %v23346_v60  ;;  %v23387_v60 = vld [vmem:[%s28769_s1 + $0x2c98] sm:$0xff]   ;;  %v23388_v61 = vld [vmem:[%s28769_s1 + $0x2c50] sm:$0xff]  }
 0x56e   :  { %21626 = vmatprep.subr.bf16.mxu1 %v23349_v0  ;;  %v23391_v0 = vld [vmem:[%s28769_s1 + $0x2c90] sm:$0xff]  }
 0x570   :  { %21605 = vmatpush3.bf16.msra.mxu0 %v23348_v63  ;;  %v23390_v63 = vld [vmem:[%s28769_s1 + $0x2cd0] sm:$0xff]  }
 0x571   :  { %21606 = vmatprep.subr.bf16.mxu0 %v23351_v2  ;;  %21627 = vmatpush3.bf16.msra.mxu1 %v23350_v1  ;;  %v23392_v1 = vld [vmem:[%s28769_s1 + $0x2c48] sm:$0xff]  }
 0x572   :  { %21628 = vmatprep.subr.bf16.mxu1 %v23353_v4  ;;  %v23393_v2 = vld [vmem:[%s28769_s1 + $0x2c08] sm:$0xff]  }
 0x573   :  { %v23395_v4 = vld [vmem:[%s28769_s1 + $0x2c88] sm:$0xff]  }
 0x574   :  { %21607 = vmatpush3.bf16.msra.mxu0 %v23352_v3  ;;  %v23394_v3 = vld [vmem:[%s28769_s1 + $0x2cc8] sm:$0xff]  }
 0x575   :  { %21608 = vmatprep.subr.bf16.mxu0 %v23355_v6  ;;  %21629 = vmatpush3.bf16.msra.mxu1 %v23354_v5  ;;  %v23396_v5 = vld [vmem:[%s28769_s1 + $0x2c40] sm:$0xff]  }
 0x576   :  { %21630 = vmatprep.subr.bf16.mxu1 %v23357_v8  ;;  %v23397_v6 = vld [vmem:[%s28769_s1 + $0x2c00] sm:$0xff]  }
 0x577   :  { %v72_v8 = vld [vmem:[%s28768_s0 + $0x160] sm:$0xff] }
 0x578   :  { %21609 = vmatpush3.bf16.msra.mxu0 %v23356_v7  ;;  %v23398_v7 = vld [vmem:[%s28769_s1 + $0x2cc0] sm:$0xff]  }
 0x579   :  { %21610 = vmatprep.subr.bf16.mxu0 %v23359_v10  ;;  %21631 = vmatpush3.bf16.msra.mxu1 %v23358_v9  ;;  %v883_v9 = vrot.slane %v72_v8, %v23710_v41  ;;  %v23399_v10 = vld [vmem:[%s28769_s1 + $0x2c80] sm:$0xff]  }
 0x57a   :  { %21632 = vmatprep.subr.bf16.mxu1 %v23361_v12  ;;  %v23400_v12 = vld [vmem:[%s28769_s1 + $0x2d78] sm:$0xff]  }
 0x57c   :  { %21611 = vmatpush3.bf16.msra.mxu0 %v23360_v11  ;;  %v876_v11 = vcombine.high %v72_v8, %v72_v8  ;;  %v23436_v8 = vld [vmem:[%s28769_s1 + $0x2ef8] sm:$0xff]  }
 0x57d   :  { %21612 = vmatprep.subr.bf16.mxu0 %v23363_v14  ;;  %21633 = vmatpush3.bf16.msra.mxu1 %v23362_v13  ;;  %v891_v13 = vcombine.high %v883_v9, %v883_v9 }
 0x57e   :  { %21634 = vmatprep.subr.bf16.mxu1 %v23365_v16  ;;  %v890_v14 = vrot.slane %v876_v11, %v23710_v41  ;;  %v1343_v16 = vpack.c.bf16 %v883_v9, %v883_v9  ;;  %v23437_v11 = vld [vmem:[%s28769_s1 + $0x2eb8] sm:$0xff]  }
 0x57f   :  { %v1344_v18 = vpack.c.bf16 %v891_v13, %v891_v13 }
 0x580   :  { %21613 = vmatpush3.bf16.msra.mxu0 %v23364_v15  ;;  %v23402_v15 = vld [vmem:[%s28769_s1 + $0x2d38] sm:$0xff]   ;;  %v1345_v22 = vpack.c.bf16 %v890_v14, %v890_v14 }
 0x581   :  { %21642 = vmatprep.subr.bf16.mxu0 %v23367_v21  ;;  %21635 = vmatpush3.bf16.msra.mxu1 %v23366_v19  ;;  %v892_v19 = vcombine.high %v890_v14, %v890_v14  ;;  %v23438_v14 = vld [vmem:[%s28769_s1 + $0x2e70] sm:$0xff]  }
 0x582   :  { %21664 = vmatprep.subr.bf16.mxu1 %v23370_v26 }
 0x583   :  { %v21350_v30 = vpop.f32.mrf.mxu0  ;;  %17511 = vmatmul.mubr.bf16.vlgmr.msra.gmra.mxu0 %v1339_v25  ;;  %v23406_v25 = vld [vmem:[%s28769_s1 + $0x2d30] sm:$0xff]  }
 0x584   :  { %v21372_v36 = vpop.f32.mrf.mxu1  ;;  %21643 = vmatpush3.bf16.msra.mxu0 %v23369_v24  ;;  %17551 = vmatmul.mubr.bf16.vlgmr.msra.gmra.mxu1 %v1341_v31  ;;  %v1346_v24 = vpack.c.bf16 %v892_v19, %v892_v19  ;;  %v23440_v19 = vld [vmem:[%s28769_s1 + $0x2ef0] sm:$0xff]  }
 0x585   :  { %v21351_v35 = vpop.f32.mrf.mxu0  ;;  %21644 = vmatprep.subr.bf16.mxu0 %v23372_v32  ;;  %21665 = vmatpush3.bf16.msra.mxu1 %v23371_v29 }
 0x586   :  { %v21352_v38 = vadd.f32 %v21351_v35, %v21350_v30  ;;  %v21373_v42 = vpop.f32.mrf.mxu1  ;;  %21666 = vmatprep.subr.bf16.mxu1 %v23374_v37  ;;  %17590 = vmatprep.mubr.bf16.mxu0 %v1344_v18  ;;  %v23408_v30 = vld [vmem:[%s28769_s1 + $0x2db0] sm:$0xff]  }
 0x587   :  { %v21353_v40 = vpop.f32.mrf.mxu0  ;;  %v21374_v45 = vadd.f32 %v21373_v42, %v21372_v36  ;;  %17630 = vmatprep.mubr.bf16.mxu1 %v1346_v24  ;;  %v23410_v36 = vld [vmem:[%s28769_s1 + $0x2d28] sm:$0xff]  }
 0x588   :  { %v17033_v44 = vadd.f32 %v21352_v38, %v28091_v59  ;;  %v21375_v49 = vpop.f32.mrf.mxu1  ;;  %21645 = vmatpush3.bf16.msra.mxu0 %v23373_v34  ;;  %v23386_v59 = vld [vmem:[%s28769_s1 + $0x2cd8] sm:$0xff]   ;;  %v23411_v38 = vld [vmem:[%s28769_s1 + $0x2de8] sm:$0xff]  }
 0x589   :  { %v21354_v47 = vpop.f32.mrf.mxu0  ;;  %21646 = vmatprep.subr.bf16.mxu0 %v23376_v43  ;;  %21667 = vmatpush3.bf16.msra.mxu1 %v23375_v39  ;;  %v23412_v42 = vld [vmem:[%s28769_s1 + $0x2da8] sm:$0xff]   ;;  %v23413_v43 = vld [vmem:[%s28769_s1 + $0x2d60] sm:$0xff]   ;;  %v23418_v49 = vld [vmem:[%s28769_s1 + $0x2d18] sm:$0xff]  }
 0x58a   :  { %v28195_v50 = vadd.f32 %v21374_v45, %v17033_v44  ;;  %v21376_v53 = vpop.f32.mrf.mxu1  ;;  %21668 = vmatprep.subr.bf16.mxu1 %v23378_v48  ;;  %v23414_v45 = vld [vmem:[%s28769_s1 + $0x2d20] sm:$0xff]   ;;  %v23417_v48 = vld [vmem:[%s28769_s1 + $0x2d58] sm:$0xff]   ;;  %v23442_v24 = vld [vmem:[%s28769_s1 + $0x2e68] sm:$0xff]  }
 0x58b   :  { %v23416_v47 = vld [vmem:[%s28769_s1 + $0x2da0] sm:$0xff]   ;;  %v23422_v53 = vld [vmem:[%s28769_s1 + $0x2d10] sm:$0xff]  }
 0x58c   :  { %21647 = vmatpush3.bf16.msra.mxu0 %v23377_v46  ;;  %v23415_v46 = vld [vmem:[%s28769_s1 + $0x2de0] sm:$0xff]  }
 0x58d   :  { %21648 = vmatprep.subr.bf16.mxu0 %v23380_v52  ;;  %21669 = vmatpush3.bf16.msra.mxu1 %v23379_v51  ;;  %v23420_v51 = vld [vmem:[%s28769_s1 + $0x2d98] sm:$0xff]   ;;  %v23421_v52 = vld [vmem:[%s28769_s1 + $0x2d50] sm:$0xff]  }
 0x58e   :  { %21670 = vmatprep.subr.bf16.mxu1 %v23382_v55  ;;  %v23424_v55 = vld [vmem:[%s28769_s1 + $0x2d90] sm:$0xff]  }
 0x590   :  { %21649 = vmatpush3.bf16.msra.mxu0 %v23381_v54  ;;  %v23423_v54 = vld [vmem:[%s28769_s1 + $0x2dd0] sm:$0xff]  }
 0x591   :  { %21650 = vmatprep.subr.bf16.mxu0 %v23384_v57  ;;  %21671 = vmatpush3.bf16.msra.mxu1 %v23383_v56  ;;  %v23425_v56 = vld [vmem:[%s28769_s1 + $0x2d48] sm:$0xff]  }
 0x592   :  { %21672 = vmatprep.subr.bf16.mxu1 %v23386_v59  ;;  %v23426_v57 = vld [vmem:[%s28769_s1 + $0x2d08] sm:$0xff]  }
 0x593   :  { %v23428_v59 = vld [vmem:[%s28769_s1 + $0x2d88] sm:$0xff]  }
 0x594   :  { %21651 = vmatpush3.bf16.msra.mxu0 %v23385_v58  ;;  %v23427_v58 = vld [vmem:[%s28769_s1 + $0x2dc8] sm:$0xff]  }
 0x595   :  { %21652 = vmatprep.subr.bf16.mxu0 %v23388_v61  ;;  %21673 = vmatpush3.bf16.msra.mxu1 %v23387_v60  ;;  %v23429_v60 = vld [vmem:[%s28769_s1 + $0x2d40] sm:$0xff]  }
 0x596   :  { %21674 = vmatprep.subr.bf16.mxu1 %v23390_v63  ;;  %v23430_v61 = vld [vmem:[%s28769_s1 + $0x2d00] sm:$0xff]   ;;  %v73_v63 = vld [vmem:[%s28768_s0 + $0x168] sm:$0xff] }
 0x598   :  { %21653 = vmatpush3.bf16.msra.mxu0 %v23389_v62  ;;  %v23431_v62 = vld [vmem:[%s28769_s1 + $0x2dc0] sm:$0xff]  }
 0x599   :  { %21654 = vmatprep.subr.bf16.mxu0 %v23392_v1  ;;  %21675 = vmatpush3.bf16.msra.mxu1 %v23391_v0  ;;  %v900_v0 = vrot.slane %v73_v63, %v23710_v41  ;;  %v23432_v1 = vld [vmem:[%s28769_s1 + $0x2d80] sm:$0xff]  }
 0x59a   :  { %21676 = vmatprep.subr.bf16.mxu1 %v23394_v3  ;;  %v23433_v3 = vld [vmem:[%s28769_s1 + $0x2e78] sm:$0xff]  }
 0x59c   :  { %21655 = vmatpush3.bf16.msra.mxu0 %v23393_v2  ;;  %v893_v2 = vcombine.high %v73_v63, %v73_v63  ;;  %v23469_v63 = vld [vmem:[%s28769_s1 + $0x2ff8] sm:$0xff]  }
 0x59d   :  { %21656 = vmatprep.subr.bf16.mxu0 %v23396_v5  ;;  %21677 = vmatpush3.bf16.msra.mxu1 %v23395_v4  ;;  %v908_v4 = vcombine.high %v900_v0, %v900_v0 }
 0x59e   :  { %21678 = vmatprep.subr.bf16.mxu1 %v23398_v7  ;;  %v907_v5 = vrot.slane %v893_v2, %v23710_v41  ;;  %v1347_v7 = vpack.c.bf16 %v900_v0, %v900_v0  ;;  %v23470_v2 = vld [vmem:[%s28769_s1 + $0x2fb8] sm:$0xff]  }
 0x59f   :  { %v1348_v9 = vpack.c.bf16 %v908_v4, %v908_v4 }
 0x5a0   :  { %21657 = vmatpush3.bf16.msra.mxu0 %v23397_v6  ;;  %v23435_v6 = vld [vmem:[%s28769_s1 + $0x2e38] sm:$0xff]   ;;  %v1349_v13 = vpack.c.bf16 %v907_v5, %v907_v5 }
 0x5a1   :  { %21686 = vmatprep.subr.bf16.mxu0 %v23400_v12  ;;  %21679 = vmatpush3.bf16.msra.mxu1 %v23399_v10  ;;  %v909_v10 = vcombine.high %v907_v5, %v907_v5  ;;  %v23471_v5 = vld [vmem:[%s28769_s1 + $0x2f70] sm:$0xff]  }
 0x5a2   :  { %21708 = vmatprep.subr.bf16.mxu1 %v23403_v17 }
 0x5a3   :  { %v21394_v21 = vpop.f32.mrf.mxu0  ;;  %17591 = vmatmul.mubr.bf16.vlgmr.msra.gmra.mxu0 %v1343_v16  ;;  %v23439_v16 = vld [vmem:[%s28769_s1 + $0x2e30] sm:$0xff]  }
 0x5a4   :  { %v21416_v27 = vpop.f32.mrf.mxu1  ;;  %21687 = vmatpush3.bf16.msra.mxu0 %v23402_v15  ;;  %17631 = vmatmul.mubr.bf16.vlgmr.msra.gmra.mxu1 %v1345_v22  ;;  %v1350_v15 = vpack.c.bf16 %v909_v10, %v909_v10  ;;  %v23473_v10 = vld [vmem:[%s28769_s1 + $0x2ff0] sm:$0xff]  }
 0x5a5   :  { %v21395_v26 = vpop.f32.mrf.mxu0  ;;  %21688 = vmatprep.subr.bf16.mxu0 %v23405_v23  ;;  %21709 = vmatpush3.bf16.msra.mxu1 %v23404_v20 }
 0x5a6   :  { %v21396_v29 = vadd.f32 %v21395_v26, %v21394_v21  ;;  %v21417_v32 = vpop.f32.mrf.mxu1  ;;  %21710 = vmatprep.subr.bf16.mxu1 %v23407_v28  ;;  %17670 = vmatprep.mubr.bf16.mxu0 %v1348_v9  ;;  %v23441_v21 = vld [vmem:[%s28769_s1 + $0x2eb0] sm:$0xff]  }
 0x5a7   :  { %v21397_v31 = vpop.f32.mrf.mxu0  ;;  %v21418_v35 = vadd.f32 %v21417_v32, %v21416_v27  ;;  %17710 = vmatprep.mubr.bf16.mxu1 %v1350_v15  ;;  %v23443_v27 = vld [vmem:[%s28769_s1 + $0x2e28] sm:$0xff]  }
 0x5a8   :  { %v17113_v34 = vadd.f32 %v21396_v29, %v28195_v50  ;;  %v21419_v39 = vpop.f32.mrf.mxu1  ;;  %21689 = vmatpush3.bf16.msra.mxu0 %v23406_v25  ;;  %v23419_v50 = vld [vmem:[%s28769_s1 + $0x2dd8] sm:$0xff]   ;;  %v23444_v29 = vld [vmem:[%s28769_s1 + $0x2ee8] sm:$0xff]  }
 0x5a9   :  { %v21398_v37 = vpop.f32.mrf.mxu0  ;;  %21690 = vmatprep.subr.bf16.mxu0 %v23409_v33  ;;  %21711 = vmatpush3.bf16.msra.mxu1 %v23408_v30  ;;  %v23445_v32 = vld [vmem:[%s28769_s1 + $0x2ea8] sm:$0xff]   ;;  %v23446_v33 = vld [vmem:[%s28769_s1 + $0x2e60] sm:$0xff]   ;;  %v23451_v39 = vld [vmem:[%s28769_s1 + $0x2e18] sm:$0xff]  }
 0x5aa   :  { %v28299_v40 = vadd.f32 %v21418_v35, %v17113_v34  ;;  %v21420_v44 = vpop.f32.mrf.mxu1  ;;  %21712 = vmatprep.subr.bf16.mxu1 %v23411_v38  ;;  %v23447_v35 = vld [vmem:[%s28769_s1 + $0x2e20] sm:$0xff]   ;;  %v23450_v38 = vld [vmem:[%s28769_s1 + $0x2e58] sm:$0xff]   ;;  %v23475_v15 = vld [vmem:[%s28769_s1 + $0x2f68] sm:$0xff]  }
 0x5ab   :  { %v23449_v37 = vld [vmem:[%s28769_s1 + $0x2ea0] sm:$0xff]   ;;  %v23455_v44 = vld [vmem:[%s28769_s1 + $0x2e10] sm:$0xff]  }
 0x5ac   :  { %21691 = vmatpush3.bf16.msra.mxu0 %v23410_v36  ;;  %v23448_v36 = vld [vmem:[%s28769_s1 + $0x2ee0] sm:$0xff]  }
 0x5ad   :  { %21692 = vmatprep.subr.bf16.mxu0 %v23413_v43  ;;  %21713 = vmatpush3.bf16.msra.mxu1 %v23412_v42  ;;  %v23453_v42 = vld [vmem:[%s28769_s1 + $0x2e98] sm:$0xff]   ;;  %v23454_v43 = vld [vmem:[%s28769_s1 + $0x2e50] sm:$0xff]  }
 0x5ae   :  { %21714 = vmatprep.subr.bf16.mxu1 %v23415_v46  ;;  %v23457_v46 = vld [vmem:[%s28769_s1 + $0x2e90] sm:$0xff]  }
 0x5b0   :  { %21693 = vmatpush3.bf16.msra.mxu0 %v23414_v45  ;;  %v23456_v45 = vld [vmem:[%s28769_s1 + $0x2ed0] sm:$0xff]  }
 0x5b1   :  { %21694 = vmatprep.subr.bf16.mxu0 %v23417_v48  ;;  %21715 = vmatpush3.bf16.msra.mxu1 %v23416_v47  ;;  %v23458_v47 = vld [vmem:[%s28769_s1 + $0x2e48] sm:$0xff]  }
 0x5b2   :  { %21716 = vmatprep.subr.bf16.mxu1 %v23419_v50  ;;  %v23459_v48 = vld [vmem:[%s28769_s1 + $0x2e08] sm:$0xff]  }
 0x5b3   :  { %v23461_v50 = vld [vmem:[%s28769_s1 + $0x2e88] sm:$0xff]  }
 0x5b4   :  { %21695 = vmatpush3.bf16.msra.mxu0 %v23418_v49  ;;  %v23460_v49 = vld [vmem:[%s28769_s1 + $0x2ec8] sm:$0xff]  }
 0x5b5   :  { %21696 = vmatprep.subr.bf16.mxu0 %v23421_v52  ;;  %21717 = vmatpush3.bf16.msra.mxu1 %v23420_v51  ;;  %v23462_v51 = vld [vmem:[%s28769_s1 + $0x2e40] sm:$0xff]  }
 0x5b6   :  { %21718 = vmatprep.subr.bf16.mxu1 %v23423_v54  ;;  %v23463_v52 = vld [vmem:[%s28769_s1 + $0x2e00] sm:$0xff]   ;;  %v74_v54 = vld [vmem:[%s28768_s0 + $0x170] sm:$0xff] }
 0x5b8   :  { %21697 = vmatpush3.bf16.msra.mxu0 %v23422_v53  ;;  %v23464_v53 = vld [vmem:[%s28769_s1 + $0x2ec0] sm:$0xff]  }
 0x5b9   :  { %21698 = vmatprep.subr.bf16.mxu0 %v23425_v56  ;;  %21719 = vmatpush3.bf16.msra.mxu1 %v23424_v55  ;;  %v917_v55 = vrot.slane %v74_v54, %v23710_v41  ;;  %v23465_v56 = vld [vmem:[%s28769_s1 + $0x2e80] sm:$0xff]  }
 0x5ba   :  { %21720 = vmatprep.subr.bf16.mxu1 %v23427_v58  ;;  %v23466_v58 = vld [vmem:[%s28769_s1 + $0x2f78] sm:$0xff]  }
 0x5bc   :  { %21699 = vmatpush3.bf16.msra.mxu0 %v23426_v57  ;;  %v910_v57 = vcombine.high %v74_v54, %v74_v54  ;;  %v23502_v54 = vld [vmem:[%s28769_s1 + $0x30f8] sm:$0xff]  }
 0x5bd   :  { %21700 = vmatprep.subr.bf16.mxu0 %v23429_v60  ;;  %21721 = vmatpush3.bf16.msra.mxu1 %v23428_v59  ;;  %v925_v59 = vcombine.high %v917_v55, %v917_v55 }
 0x5be   :  { %21722 = vmatprep.subr.bf16.mxu1 %v23431_v62  ;;  %v924_v60 = vrot.slane %v910_v57, %v23710_v41  ;;  %v1351_v62 = vpack.c.bf16 %v917_v55, %v917_v55  ;;  %v23503_v57 = vld [vmem:[%s28769_s1 + $0x30b8] sm:$0xff]  }
 0x5bf   :  { %v1352_v0 = vpack.c.bf16 %v925_v59, %v925_v59 }
 0x5c0   :  { %21701 = vmatpush3.bf16.msra.mxu0 %v23430_v61  ;;  %v23468_v61 = vld [vmem:[%s28769_s1 + $0x2f38] sm:$0xff]   ;;  %v1353_v4 = vpack.c.bf16 %v924_v60, %v924_v60 }
 0x5c1   :  { %21730 = vmatprep.subr.bf16.mxu0 %v23433_v3  ;;  %21723 = vmatpush3.bf16.msra.mxu1 %v23432_v1  ;;  %v926_v1 = vcombine.high %v924_v60, %v924_v60  ;;  %v23504_v60 = vld [vmem:[%s28769_s1 + $0x3070] sm:$0xff]  }
 0x5c2   :  { %21752 = vmatprep.subr.bf16.mxu1 %v23436_v8 }
 0x5c3   :  { %v21438_v12 = vpop.f32.mrf.mxu0  ;;  %17671 = vmatmul.mubr.bf16.vlgmr.msra.gmra.mxu0 %v1347_v7  ;;  %v23472_v7 = vld [vmem:[%s28769_s1 + $0x2f30] sm:$0xff]  }
 0x5c4   :  { %v21460_v18 = vpop.f32.mrf.mxu1  ;;  %21731 = vmatpush3.bf16.msra.mxu0 %v23435_v6  ;;  %17711 = vmatmul.mubr.bf16.vlgmr.msra.gmra.mxu1 %v1349_v13  ;;  %v1354_v6 = vpack.c.bf16 %v926_v1, %v926_v1  ;;  %v23506_v1 = vld [vmem:[%s28769_s1 + $0x30f0] sm:$0xff]  }
 0x5c5   :  { %v21439_v17 = vpop.f32.mrf.mxu0  ;;  %21732 = vmatprep.subr.bf16.mxu0 %v23438_v14  ;;  %21753 = vmatpush3.bf16.msra.mxu1 %v23437_v11 }
 0x5c6   :  { %v21440_v20 = vadd.f32 %v21439_v17, %v21438_v12  ;;  %v21461_v23 = vpop.f32.mrf.mxu1  ;;  %21754 = vmatprep.subr.bf16.mxu1 %v23440_v19  ;;  %17750 = vmatprep.mubr.bf16.mxu0 %v1352_v0  ;;  %v23474_v12 = vld [vmem:[%s28769_s1 + $0x2fb0] sm:$0xff]  }
 0x5c7   :  { %v21441_v22 = vpop.f32.mrf.mxu0  ;;  %v21462_v26 = vadd.f32 %v21461_v23, %v21460_v18  ;;  %17790 = vmatprep.mubr.bf16.mxu1 %v1354_v6  ;;  %v23476_v18 = vld [vmem:[%s28769_s1 + $0x2f28] sm:$0xff]  }
 0x5c8   :  { %v17193_v25 = vadd.f32 %v21440_v20, %v28299_v40  ;;  %v21463_v30 = vpop.f32.mrf.mxu1  ;;  %21733 = vmatpush3.bf16.msra.mxu0 %v23439_v16  ;;  %v23452_v40 = vld [vmem:[%s28769_s1 + $0x2ed8] sm:$0xff]   ;;  %v23477_v20 = vld [vmem:[%s28769_s1 + $0x2fe8] sm:$0xff]  }
 0x5c9   :  { %v21442_v28 = vpop.f32.mrf.mxu0  ;;  %21734 = vmatprep.subr.bf16.mxu0 %v23442_v24  ;;  %21755 = vmatpush3.bf16.msra.mxu1 %v23441_v21  ;;  %v23478_v23 = vld [vmem:[%s28769_s1 + $0x2fa8] sm:$0xff]   ;;  %v23479_v24 = vld [vmem:[%s28769_s1 + $0x2f60] sm:$0xff]   ;;  %v23484_v30 = vld [vmem:[%s28769_s1 + $0x2f18] sm:$0xff]  }
 0x5ca   :  { %v28403_v31 = vadd.f32 %v21462_v26, %v17193_v25  ;;  %v21464_v34 = vpop.f32.mrf.mxu1  ;;  %21756 = vmatprep.subr.bf16.mxu1 %v23444_v29  ;;  %v23480_v26 = vld [vmem:[%s28769_s1 + $0x2f20] sm:$0xff]   ;;  %v23483_v29 = vld [vmem:[%s28769_s1 + $0x2f58] sm:$0xff]   ;;  %v23508_v6 = vld [vmem:[%s28769_s1 + $0x3068] sm:$0xff]  }
 0x5cb   :  { %v23482_v28 = vld [vmem:[%s28769_s1 + $0x2fa0] sm:$0xff]   ;;  %v23488_v34 = vld [vmem:[%s28769_s1 + $0x2f10] sm:$0xff]  }
 0x5cc   :  { %21735 = vmatpush3.bf16.msra.mxu0 %v23443_v27  ;;  %v23481_v27 = vld [vmem:[%s28769_s1 + $0x2fe0] sm:$0xff]  }
 0x5cd   :  { %21736 = vmatprep.subr.bf16.mxu0 %v23446_v33  ;;  %21757 = vmatpush3.bf16.msra.mxu1 %v23445_v32  ;;  %v23486_v32 = vld [vmem:[%s28769_s1 + $0x2f98] sm:$0xff]   ;;  %v23487_v33 = vld [vmem:[%s28769_s1 + $0x2f50] sm:$0xff]  }
 0x5ce   :  { %21758 = vmatprep.subr.bf16.mxu1 %v23448_v36  ;;  %v23490_v36 = vld [vmem:[%s28769_s1 + $0x2f90] sm:$0xff]  }
 0x5d0   :  { %21737 = vmatpush3.bf16.msra.mxu0 %v23447_v35  ;;  %v23489_v35 = vld [vmem:[%s28769_s1 + $0x2fd0] sm:$0xff]  }
 0x5d1   :  { %21738 = vmatprep.subr.bf16.mxu0 %v23450_v38  ;;  %21759 = vmatpush3.bf16.msra.mxu1 %v23449_v37  ;;  %v23491_v37 = vld [vmem:[%s28769_s1 + $0x2f48] sm:$0xff]  }
 0x5d2   :  { %21760 = vmatprep.subr.bf16.mxu1 %v23452_v40  ;;  %v23492_v38 = vld [vmem:[%s28769_s1 + $0x2f08] sm:$0xff]  }
 0x5d3   :  { %v23494_v40 = vld [vmem:[%s28769_s1 + $0x2f88] sm:$0xff]  }
 0x5d4   :  { %21739 = vmatpush3.bf16.msra.mxu0 %v23451_v39  ;;  %v23493_v39 = vld [vmem:[%s28769_s1 + $0x2fc8] sm:$0xff]  }
 0x5d5   :  { %21740 = vmatprep.subr.bf16.mxu0 %v23454_v43  ;;  %21761 = vmatpush3.bf16.msra.mxu1 %v23453_v42  ;;  %v23495_v42 = vld [vmem:[%s28769_s1 + $0x2f40] sm:$0xff]  }
 0x5d6   :  { %21762 = vmatprep.subr.bf16.mxu1 %v23456_v45  ;;  %v23496_v43 = vld [vmem:[%s28769_s1 + $0x2f00] sm:$0xff]   ;;  %v75_v45 = vld [vmem:[%s28768_s0 + $0x178] sm:$0xff] }
 0x5d8   :  { %21741 = vmatpush3.bf16.msra.mxu0 %v23455_v44  ;;  %v23497_v44 = vld [vmem:[%s28769_s1 + $0x2fc0] sm:$0xff]  }
 0x5d9   :  { %21742 = vmatprep.subr.bf16.mxu0 %v23458_v47  ;;  %21763 = vmatpush3.bf16.msra.mxu1 %v23457_v46  ;;  %v934_v46 = vrot.slane %v75_v45, %v23710_v41  ;;  %v23498_v47 = vld [vmem:[%s28769_s1 + $0x2f80] sm:$0xff]  }
 0x5da   :  { %21764 = vmatprep.subr.bf16.mxu1 %v23460_v49  ;;  %v23499_v49 = vld [vmem:[%s28769_s1 + $0x3078] sm:$0xff]  }
 0x5dc   :  { %21743 = vmatpush3.bf16.msra.mxu0 %v23459_v48  ;;  %v927_v48 = vcombine.high %v75_v45, %v75_v45 }
 0x5dd   :  { %21744 = vmatprep.subr.bf16.mxu0 %v23462_v51  ;;  %21765 = vmatpush3.bf16.msra.mxu1 %v23461_v50  ;;  %v942_v50 = vcombine.high %v934_v46, %v934_v46 }
 0x5de   :  { %21766 = vmatprep.subr.bf16.mxu1 %v23464_v53  ;;  %v941_v51 = vrot.slane %v927_v48, %v23710_v41  ;;  %v1355_v53 = vpack.c.bf16 %v934_v46, %v934_v46  ;;  %v23534_v46 = vld [vmem:[%s28769_s1 + $0x3138] sm:$0xff]  }
 0x5df   :  { %v1356_v55 = vpack.c.bf16 %v942_v50, %v942_v50 }
 0x5e0   :  { %21745 = vmatpush3.bf16.msra.mxu0 %v23463_v52  ;;  %v23501_v52 = vld [vmem:[%s28769_s1 + $0x3038] sm:$0xff]   ;;  %v1357_v59 = vpack.c.bf16 %v941_v51, %v941_v51 }
 0x5e1   :  { %21774 = vmatprep.subr.bf16.mxu0 %v23466_v58  ;;  %21767 = vmatpush3.bf16.msra.mxu1 %v23465_v56  ;;  %v943_v56 = vcombine.high %v941_v51, %v941_v51 }
 0x5e2   :  { %21796 = vmatprep.subr.bf16.mxu1 %v23469_v63 }
 0x5e3   :  { %v21482_v3 = vpop.f32.mrf.mxu0  ;;  %17751 = vmatmul.mubr.bf16.vlgmr.msra.gmra.mxu0 %v1351_v62  ;;  %v23505_v62 = vld [vmem:[%s28769_s1 + $0x3030] sm:$0xff]  }
 0x5e4   :  { %v21504_v9 = vpop.f32.mrf.mxu1  ;;  %21775 = vmatpush3.bf16.msra.mxu0 %v23468_v61  ;;  %17791 = vmatmul.mubr.bf16.vlgmr.msra.gmra.mxu1 %v1353_v4  ;;  %v1358_v61 = vpack.c.bf16 %v943_v56, %v943_v56  ;;  %v23537_v56 = vld [vmem:[%s28769_s1 + $0x3168] sm:$0xff]  }
 0x5e5   :  { %v21483_v8 = vpop.f32.mrf.mxu0  ;;  %21776 = vmatprep.subr.bf16.mxu0 %v23471_v5  ;;  %21797 = vmatpush3.bf16.msra.mxu1 %v23470_v2 }
 0x5e6   :  { %v21484_v11 = vadd.f32 %v21483_v8, %v21482_v3  ;;  %v21505_v14 = vpop.f32.mrf.mxu1  ;;  %21798 = vmatprep.subr.bf16.mxu1 %v23473_v10  ;;  %17830 = vmatprep.mubr.bf16.mxu0 %v1356_v55  ;;  %v23507_v3 = vld [vmem:[%s28769_s1 + $0x30b0] sm:$0xff]  }
 0x5e7   :  { %v21485_v13 = vpop.f32.mrf.mxu0  ;;  %v21506_v17 = vadd.f32 %v21505_v14, %v21504_v9  ;;  %17870 = vmatprep.mubr.bf16.mxu1 %v1358_v61  ;;  %v23509_v9 = vld [vmem:[%s28769_s1 + $0x3028] sm:$0xff]  }
 0x5e8   :  { %v17273_v16 = vadd.f32 %v21484_v11, %v28403_v31  ;;  %v21507_v21 = vpop.f32.mrf.mxu1  ;;  %21777 = vmatpush3.bf16.msra.mxu0 %v23472_v7  ;;  %v23485_v31 = vld [vmem:[%s28769_s1 + $0x2fd8] sm:$0xff]   ;;  %v23510_v11 = vld [vmem:[%s28769_s1 + $0x30e8] sm:$0xff]  }
 0x5e9   :  { %v21486_v19 = vpop.f32.mrf.mxu0  ;;  %21778 = vmatprep.subr.bf16.mxu0 %v23475_v15  ;;  %21799 = vmatpush3.bf16.msra.mxu1 %v23474_v12  ;;  %v23511_v14 = vld [vmem:[%s28769_s1 + $0x30a8] sm:$0xff]   ;;  %v23512_v15 = vld [vmem:[%s28769_s1 + $0x3060] sm:$0xff]   ;;  %v23517_v21 = vld [vmem:[%s28769_s1 + $0x3018] sm:$0xff]  }
 0x5ea   :  { %v28507_v22 = vadd.f32 %v21506_v17, %v17273_v16  ;;  %v21508_v25 = vpop.f32.mrf.mxu1  ;;  %21800 = vmatprep.subr.bf16.mxu1 %v23477_v20  ;;  %v23513_v17 = vld [vmem:[%s28769_s1 + $0x3020] sm:$0xff]   ;;  %v23516_v20 = vld [vmem:[%s28769_s1 + $0x3058] sm:$0xff]  }
 0x5eb   :  { %v23515_v19 = vld [vmem:[%s28769_s1 + $0x30a0] sm:$0xff]   ;;  %v23521_v25 = vld [vmem:[%s28769_s1 + $0x3010] sm:$0xff]  }
 0x5ec   :  { %21779 = vmatpush3.bf16.msra.mxu0 %v23476_v18  ;;  %v23514_v18 = vld [vmem:[%s28769_s1 + $0x30e0] sm:$0xff]  }
 0x5ed   :  { %21780 = vmatprep.subr.bf16.mxu0 %v23479_v24  ;;  %21801 = vmatpush3.bf16.msra.mxu1 %v23478_v23  ;;  %v23519_v23 = vld [vmem:[%s28769_s1 + $0x3098] sm:$0xff]   ;;  %v23520_v24 = vld [vmem:[%s28769_s1 + $0x3050] sm:$0xff]  }
 0x5ee   :  { %21802 = vmatprep.subr.bf16.mxu1 %v23481_v27  ;;  %v23523_v27 = vld [vmem:[%s28769_s1 + $0x3090] sm:$0xff]  }
 0x5f0   :  { %21781 = vmatpush3.bf16.msra.mxu0 %v23480_v26  ;;  %v23522_v26 = vld [vmem:[%s28769_s1 + $0x30d0] sm:$0xff]  }
 0x5f1   :  { %21782 = vmatprep.subr.bf16.mxu0 %v23483_v29  ;;  %21803 = vmatpush3.bf16.msra.mxu1 %v23482_v28  ;;  %v23524_v28 = vld [vmem:[%s28769_s1 + $0x3048] sm:$0xff]  }
 0x5f2   :  { %21804 = vmatprep.subr.bf16.mxu1 %v23485_v31  ;;  %v23525_v29 = vld [vmem:[%s28769_s1 + $0x3008] sm:$0xff]  }
 0x5f3   :  { %v23527_v31 = vld [vmem:[%s28769_s1 + $0x3088] sm:$0xff]  }
 0x5f4   :  { %21783 = vmatpush3.bf16.msra.mxu0 %v23484_v30  ;;  %v23526_v30 = vld [vmem:[%s28769_s1 + $0x30c8] sm:$0xff]  }
 0x5f5   :  { %21784 = vmatprep.subr.bf16.mxu0 %v23487_v33  ;;  %21805 = vmatpush3.bf16.msra.mxu1 %v23486_v32  ;;  %v23528_v32 = vld [vmem:[%s28769_s1 + $0x3040] sm:$0xff]  }
 0x5f6   :  { %21806 = vmatprep.subr.bf16.mxu1 %v23489_v35  ;;  %v23529_v33 = vld [vmem:[%s28769_s1 + $0x3000] sm:$0xff]  }
 0x5f7   :  { %v76_v35 = vld [vmem:[%s28768_s0 + $0x180] sm:$0xff] }
 0x5f8   :  { %21785 = vmatpush3.bf16.msra.mxu0 %v23488_v34  ;;  %v23530_v34 = vld [vmem:[%s28769_s1 + $0x30c0] sm:$0xff]  }
 0x5f9   :  { %21786 = vmatprep.subr.bf16.mxu0 %v23491_v37  ;;  %21807 = vmatpush3.bf16.msra.mxu1 %v23490_v36  ;;  %v951_v36 = vrot.slane %v76_v35, %v23710_v41  ;;  %v23531_v37 = vld [vmem:[%s28769_s1 + $0x3080] sm:$0xff]  }
 0x5fa   :  { %21808 = vmatprep.subr.bf16.mxu1 %v23493_v39  ;;  %v23532_v39 = vld [vmem:[%s28769_s1 + $0x3178] sm:$0xff]  }
 0x5fc   :  { %21787 = vmatpush3.bf16.msra.mxu0 %v23492_v38  ;;  %v944_v38 = vcombine.high %v76_v35, %v76_v35 }
 0x5fd   :  { %21788 = vmatprep.subr.bf16.mxu0 %v23495_v42  ;;  %21809 = vmatpush3.bf16.msra.mxu1 %v23494_v40  ;;  %v959_v40 = vcombine.high %v951_v36, %v951_v36 }
 0x5fe   :  { %21810 = vmatprep.subr.bf16.mxu1 %v23497_v44  ;;  %v958_v42 = vrot.slane %v944_v38, %v23710_v41 }
 0x5ff   :  { %v1360_v44 = vpack.c.bf16 %v959_v40, %v959_v40 }
 0x600   :  { %21789 = vmatpush3.bf16.msra.mxu0 %v23496_v43  ;;  %v1359_v43 = vpack.c.bf16 %v951_v36, %v951_v36  ;;  %v960_v45 = vcombine.high %v958_v42, %v958_v42  ;;  %v1361_v48 = vpack.c.bf16 %v958_v42, %v958_v42 }
 0x601   :  { %21818 = vmatprep.subr.bf16.mxu0 %v23499_v49  ;;  %21811 = vmatpush3.bf16.msra.mxu1 %v23498_v47  ;;  %v23535_v49 = vld [vmem:[%s28769_s1 + $0x3170] sm:$0xff]  }
 0x602   :  { %21840 = vmatprep.subr.bf16.mxu1 %v23502_v54  ;;  %v1362_v50 = vpack.c.bf16 %v960_v45, %v960_v45 }
 0x603   :  { %v21526_v58 = vpop.f32.mrf.mxu0  ;;  %17831 = vmatmul.mubr.bf16.vlgmr.msra.gmra.mxu0 %v1355_v53  ;;  %v23536_v53 = vld [vmem:[%s28769_s1 + $0x3130] sm:$0xff]  }
 0x604   :  { %v21548_v0 = vpop.f32.mrf.mxu1  ;;  %21819 = vmatpush3.bf16.msra.mxu0 %v23501_v52  ;;  %17871 = vmatmul.mubr.bf16.vlgmr.msra.gmra.mxu1 %v1357_v59 }
 0x605   :  { %v21527_v63 = vpop.f32.mrf.mxu0  ;;  %21820 = vmatprep.subr.bf16.mxu0 %v23504_v60  ;;  %21841 = vmatpush3.bf16.msra.mxu1 %v23503_v57 }
 0x606   :  { %v21528_v2 = vadd.f32 %v21527_v63, %v21526_v58  ;;  %v21549_v5 = vpop.f32.mrf.mxu1  ;;  %21842 = vmatprep.subr.bf16.mxu1 %v23506_v1  ;;  %17910 = vmatprep.mubr.bf16.mxu0 %v1360_v44  ;;  %v23539_v63 = vld [vmem:[%s28769_s1 + $0x3160] sm:$0xff]  }
 0x607   :  { %v21529_v4 = vpop.f32.mrf.mxu0  ;;  %v21550_v8 = vadd.f32 %v21549_v5, %v21548_v0  ;;  %17950 = vmatprep.mubr.bf16.mxu1 %v1362_v50  ;;  %v23540_v1 = vld [vmem:[%s28769_s1 + $0x3120] sm:$0xff]  }
 0x608   :  { %v17353_v7 = vadd.f32 %v21528_v2, %v28507_v22  ;;  %v21551_v12 = vpop.f32.mrf.mxu1  ;;  %21821 = vmatpush3.bf16.msra.mxu0 %v23505_v62  ;;  %v23518_v22 = vld [vmem:[%s28769_s1 + $0x30d8] sm:$0xff]   ;;  %v23538_v62 = vld [vmem:[%s28769_s1 + $0x3128] sm:$0xff]  }
 0x609   :  { %v21530_v10 = vpop.f32.mrf.mxu0  ;;  %21822 = vmatprep.subr.bf16.mxu0 %v23508_v6  ;;  %21843 = vmatpush3.bf16.msra.mxu1 %v23507_v3  ;;  %v18118_v2 = vld.sshfl [vmem:[%s28768_s0 + $0x188] sm:$0x33 pattern:$0x76325410]  ;;  %v23541_v3 = vld [vmem:[%s28769_s1 + $0x3158] sm:$0xff]  }
 0x60a   :  { %v28611_v13 = vadd.f32 %v21550_v8, %v17353_v7  ;;  %v21552_v16 = vpop.f32.mrf.mxu1  ;;  %21844 = vmatprep.subr.bf16.mxu1 %v23510_v11  ;;  %v968_v4 = vcombine.high %v18118_v2, %v18118_v2 }
 0x60c   :  { %21823 = vmatpush3.bf16.msra.mxu0 %v23509_v9 }
 0x60d   :  { %21824 = vmatprep.subr.bf16.mxu0 %v23512_v15  ;;  %21845 = vmatpush3.bf16.msra.mxu1 %v23511_v14 }
 0x60e   :  { %21846 = vmatprep.subr.bf16.mxu1 %v23514_v18 }
 0x610   :  { %21825 = vmatpush3.bf16.msra.mxu0 %v23513_v17 }
 0x611   :  { %21826 = vmatprep.subr.bf16.mxu0 %v23516_v20  ;;  %21847 = vmatpush3.bf16.msra.mxu1 %v23515_v19 }
 0x612   :  { %21848 = vmatprep.subr.bf16.mxu1 %v23518_v22 }
 0x614   :  { %21827 = vmatpush3.bf16.msra.mxu0 %v23517_v21 }
 0x615   :  { %21828 = vmatprep.subr.bf16.mxu0 %v23520_v24  ;;  %21849 = vmatpush3.bf16.msra.mxu1 %v23519_v23 }
 0x616   :  { %21850 = vmatprep.subr.bf16.mxu1 %v23522_v26 }
 0x618   :  { %21829 = vmatpush3.bf16.msra.mxu0 %v23521_v25 }
 0x619   :  { %21830 = vmatprep.subr.bf16.mxu0 %v23524_v28  ;;  %21851 = vmatpush3.bf16.msra.mxu1 %v23523_v27 }
 0x61a   :  { %21852 = vmatprep.subr.bf16.mxu1 %v23526_v30 }
 0x61c   :  { %21831 = vmatpush3.bf16.msra.mxu0 %v23525_v29 }
 0x61d   :  { %21832 = vmatprep.subr.bf16.mxu0 %v23528_v32  ;;  %21853 = vmatpush3.bf16.msra.mxu1 %v23527_v31 }
 0x61e   :  { %21854 = vmatprep.subr.bf16.mxu1 %v23530_v34 }
 0x620   :  { %21833 = vmatpush3.bf16.msra.mxu0 %v23529_v33 }
 0x621   :  { %21862 = vmatprep.subr.bf16.mxu0 %v23532_v39  ;;  %21855 = vmatpush3.bf16.msra.mxu1 %v23531_v37 }
 0x623   :  { %v21570_v47 = vpop.f32.mrf.mxu0  ;;  %17911 = vmatmul.mubr.bf16.vlgmr.msra.gmra.mxu0 %v1359_v43 }
 0x624   :  { %v21592_v51 = vpop.f32.mrf.mxu1  ;;  %21863 = vmatpush3.bf16.msra.mxu0 %v23534_v46  ;;  %17951 = vmatmul.mubr.bf16.vlgmr.msra.gmra.mxu1 %v1361_v48 }
 0x625   :  { %v21571_v41 = vpop.f32.mrf.mxu0  ;;  %21864 = vmatprep.subr.bf16.mxu0 %v23535_v49 }
 0x626   :  { %v21572_v52 = vadd.f32 %v21571_v41, %v21570_v47  ;;  %v21593_v55 = vpop.f32.mrf.mxu1 }
 0x627   :  { %v21573_v54 = vpop.f32.mrf.mxu0  ;;  %v21594_v58 = vadd.f32 %v21593_v55, %v21592_v51 }
 0x628   :  { %v17433_v57 = vadd.f32 %v21572_v52, %v28611_v13  ;;  %v21595_v60 = vpop.f32.mrf.mxu1  ;;  %21865 = vmatpush3.bf16.msra.mxu0 %v23536_v53 }
 0x629   :  { %v21574_v59 = vpop.f32.mrf.mxu0  ;;  %21866 = vmatprep.subr.bf16.mxu0 %v23537_v56 }
 0x62a   :  { %v17473_v61 = vadd.f32 %v21594_v58, %v17433_v57  ;;  %v21596_v0 = vpop.f32.mrf.mxu1 }
 0x62c   :  { %21867 = vmatpush3.bf16.msra.mxu0 %v23538_v62 }
 0x62d   :  { %21868 = vmatprep.subr.bf16.mxu0 %v23539_v63 }
 0x62e   :  { %10 = vsyncpa [#allocation4], 0  ;;  %v1364_v5 = vpack.c.bf16 %v968_v4, %v968_v4  ;;  %v23542_v6 = vld [vmem:[%s28769_s1 + $0x3118] sm:$0xff]   ;;  %v23543_v7 = vld [vmem:[%s28769_s1 + $0x3150] sm:$0xff]   ;;  %v1363_v13 = vpack.c.bf16 %v18118_v2, %v18118_v2  ;;  %vm26_vm0 = vcmask 517120   ;;  %v23572_v39 = vmov 0.0  }
 0x62f   :  { %v23544_v8 = vld [vmem:[%s28769_s1 + $0x3110] sm:$0xff]   ;;  %v23545_v9 = vld [vmem:[%s28769_s1 + $0x3148] sm:$0xff]   ;;  %v23547_v11 = vld [vmem:[%s28769_s1 + $0x3140] sm:$0xff]   ;;  %27 = vst.msk [vmem:[#allocation2] sm:$0x3] %vm26_vm0, %v23572_v39  ;;  %21893 = vmatprep.subr.mxu1 %v23572_v39  ;;  %vm23573_vm1 = vmmov 0  }
 0x630   :  { %21869 = vmatpush3.bf16.msra.mxu0 %v23540_v1  ;;  %17990 = vmatprep.mubr.bf16.mxu0 %v1364_v5  ;;  %v23546_v10 = vld [vmem:[%s28769_s1 + $0x3108] sm:$0xff]   ;;  %v23548_v12 = vld [vmem:[%s28769_s1 + $0x3100] sm:$0xff]   ;;  %v18021_v50 = vld [vmem:[%s28771_s3 + $0x38] sm:$0xff]  ;;  %vm18029_vm2 = vcmask 523264   ;;  %s23574_s27 = smov [#allocation3]  }
 0x631   :  { %21870 = vmatprep.subr.bf16.mxu0 %v23541_v3  ;;  %21894 = vmatpush3.msra.mxu1 %v18021_v50  ;;  %v18020_v52 = vld [vmem:[%s28771_s3 + $0x30] sm:$0xff]  ;;  %v18019_v53 = vld [vmem:[%s28771_s3 + $0x28] sm:$0xff]  ;;  %v18018_v54 = vld [vmem:[%s28771_s3 + $0x20] sm:$0xff]  ;;  %s18110_s28 = sshll.u32 %s23574_s27, 4  ;;  %s18111_s28 = int_to_ptr.vmem [resolvable:$true] %s18110_s28 }
 0x632   :  { %21895 = vmatprep.subr.mxu1 %v23572_v39  ;;  %21909 = vmatprep.mubr.msk.f32.mxu1 %vm23573_vm1, %v23572_v39  ;;  %v18017_v55 = vld [vmem:[%s28771_s3 + $0x18] sm:$0xff]  ;;  %v18016_v56 = vld [vmem:[%s28771_s3 + $0x10] sm:$0xff]  ;;  %v18015_v57 = vld [vmem:[%s28771_s3 + $0x8] sm:$0xff]  ;;  %s23549_s29 = scalar_lea.vmem %s18111_s28, 32  ;;  %p23554_p1 = scmp.lt.s32.totalorder %s18111_s28, %s18111_s28 }
 0x633   :  { %21896 = vmatpush3.msra.mxu1 %v18020_v52  ;;  %v18014_v58 = vld [vmem:[%s28771_s3] sm:$0xff]  ;;  %p23550_p0 = scmp.ne.s32.totalorder %s18111_s28, %s23549_s29  ;;  %p23555_p2 = scmp.lt.s32.totalorder %s23549_s29, %s23549_s29 }
 0x634   :  { %21871 = vmatpush3.bf16.msra.mxu0 %v23542_v6  ;;  %21897 = vmatprep.subr.mxu1 %v23572_v39 }
 0x635   :  { %21872 = vmatprep.subr.bf16.mxu0 %v23543_v7  ;;  %21898 = vmatpush3.msra.mxu1 %v18019_v53  ;;  %p23556_p3 = por %p23555_p2, %p23554_p1 }
 0x636   :  { %21899 = vmatprep.subr.mxu1 %v23572_v39 }
 0x637   :  { %21900 = vmatpush3.msra.mxu1 %v18018_v54  ;;  %p23557_p4 = pnand %p23556_p3, %p23550_p0 }
 0x638   :  { %21873 = vmatpush3.bf16.msra.mxu0 %v23544_v8  ;;  %21901 = vmatprep.subr.mxu1 %v23572_v39 }
 0x639   :  { %21874 = vmatprep.subr.bf16.mxu0 %v23545_v9  ;;  %21902 = vmatpush3.msra.mxu1 %v18017_v55 }
 0x63a   :  { %21903 = vmatprep.subr.mxu1 %v23572_v39 }
 0x63b   :  { %21904 = vmatpush3.msra.mxu1 %v18016_v56 }
 0x63c   :  { %21875 = vmatpush3.bf16.msra.mxu0 %v23546_v10  ;;  %21905 = vmatprep.subr.mxu1 %v23572_v39 }
 0x63d   :  { %21876 = vmatprep.subr.bf16.mxu0 %v23547_v11  ;;  %21906 = vmatpush3.msra.mxu1 %v18015_v57 }
 0x63e   :  { %21907 = vmatprep.subr.mxu1 %v23572_v39  ;;  %v19703_v39 = vld [vmem:[%s28770_s2] ss:$0 sm:$0xff] }
 0x63f   :  { %21908 = vmatpush3.msra.mxu1 %v18014_v58 }
 0x640   :  { %21877 = vmatpush3.bf16.msra.mxu0 %v23548_v12 }
 0x643   :  { %v21614_v14 = vpop.f32.mrf.mxu0  ;;  %17991 = vmatmul.mubr.bf16.vlgmr.msra.gmra.mxu0 %v1363_v13 }
 0x644   :  { %v21636_v16 = vpop.f32.mrf.mxu1 }
 0x645   :  { %v21615_v15 = vpop.f32.mrf.mxu0 }
 0x646   :  { %v21616_v17 = vadd.f32 %v21615_v15, %v21614_v14  ;;  %v21637_v19 = vpop.f32.mrf.mxu1 }
 0x647   :  { %v21617_v18 = vpop.f32.mrf.mxu0  ;;  %v21638_v21 = vadd.f32 %v21637_v19, %v21636_v16 }
 0x648   :  { %v17513_v20 = vadd.f32 %v21616_v17, %v17473_v61  ;;  %v21639_v23 = vpop.f32.mrf.mxu1 }
 0x649   :  { %v21618_v22 = vpop.f32.mrf.mxu0 }
 0x64a   :  { %v17553_v24 = vadd.f32 %v21638_v21, %v17513_v20  ;;  %v21640_v25 = vpop.f32.mrf.mxu1 }
 0x663   :  { %v21658_v26 = vpop.f32.mrf.mxu0 }
 0x664   :  { %v21680_v28 = vpop.f32.mrf.mxu1 }
 0x665   :  { %v21659_v27 = vpop.f32.mrf.mxu0 }
 0x666   :  { %v21660_v29 = vadd.f32 %v21659_v27, %v21658_v26  ;;  %v21681_v31 = vpop.f32.mrf.mxu1 }
 0x667   :  { %v21661_v30 = vpop.f32.mrf.mxu0  ;;  %v21682_v33 = vadd.f32 %v21681_v31, %v21680_v28 }
 0x668   :  { %v17593_v32 = vadd.f32 %v21660_v29, %v17553_v24  ;;  %v21683_v35 = vpop.f32.mrf.mxu1 }
 0x669   :  { %v21662_v34 = vpop.f32.mrf.mxu0 }
 0x66a   :  { %v17633_v36 = vadd.f32 %v21682_v33, %v17593_v32  ;;  %v21684_v37 = vpop.f32.mrf.mxu1  ;;  %v4533_v34 = vld [vmem:[#allocation2] sm:$0x3] }
 0x683   :  { %v21702_v38 = vpop.f32.mrf.mxu0 }
 0x684   :  { %v21724_v42 = vpop.f32.mrf.mxu1 }
 0x685   :  { %v21703_v40 = vpop.f32.mrf.mxu0 }
 0x686   :  { %v21704_v43 = vadd.f32 %v21703_v40, %v21702_v38  ;;  %v21725_v45 = vpop.f32.mrf.mxu1 }
 0x687   :  { %v21705_v44 = vpop.f32.mrf.mxu0  ;;  %v21726_v47 = vadd.f32 %v21725_v45, %v21724_v42 }
 0x688   :  { %v17673_v46 = vadd.f32 %v21704_v43, %v17633_v36  ;;  %v21727_v49 = vpop.f32.mrf.mxu1  ;;  %v19704_v44 = vld [vmem:[%s28772_s4] ss:$0 sm:$0xff] }
 0x689   :  { %v21706_v48 = vpop.f32.mrf.mxu0 }
 0x68a   :  { %v17713_v41 = vadd.f32 %v21726_v47, %v17673_v46  ;;  %v21728_v51 = vpop.f32.mrf.mxu1 }
 0x6a3   :  { %v21746_v59 = vpop.f32.mrf.mxu0 }
 0x6a4   :  { %v21768_v61 = vpop.f32.mrf.mxu1 }
 0x6a5   :  { %v21747_v60 = vpop.f32.mrf.mxu0 }
 0x6a6   :  { %v21748_v62 = vadd.f32 %v21747_v60, %v21746_v59  ;;  %v21769_v0 = vpop.f32.mrf.mxu1 }
 0x6a7   :  { %v21749_v63 = vpop.f32.mrf.mxu0  ;;  %v21770_v2 = vadd.f32 %v21769_v0, %v21768_v61 }
 0x6a8   :  { %v17753_v1 = vadd.f32 %v21748_v62, %v17713_v41  ;;  %v21771_v4 = vpop.f32.mrf.mxu1 }
 0x6a9   :  { %v21750_v3 = vpop.f32.mrf.mxu0 }
 0x6aa   :  { %v17793_v5 = vadd.f32 %v21770_v2, %v17753_v1  ;;  %v21772_v6 = vpop.f32.mrf.mxu1 }
 0x6c3   :  { %v21790_v7 = vpop.f32.mrf.mxu0 }
 0x6c4   :  { %v21812_v9 = vpop.f32.mrf.mxu1 }
 0x6c5   :  { %v21791_v8 = vpop.f32.mrf.mxu0 }
 0x6c6   :  { %v21813_v11 = vpop.f32.mrf.mxu1  ;;  %v21792_v23 = vadd.f32 %v21791_v8, %v21790_v7 }
 0x6c7   :  { %v21793_v10 = vpop.f32.mrf.mxu0  ;;  %v21814_v25 = vadd.f32 %v21813_v11, %v21812_v9 }
 0x6c8   :  { %v21815_v13 = vpop.f32.mrf.mxu1  ;;  %v17833_v24 = vadd.f32 %v21792_v23, %v17793_v5 }
 0x6c9   :  { %v21794_v12 = vpop.f32.mrf.mxu0 }
 0x6ca   :  { %v21816_v14 = vpop.f32.mrf.mxu1  ;;  %v17873_v27 = vadd.f32 %v21814_v25, %v17833_v24 }
 0x6e3   :  { %v21834_v15 = vpop.f32.mrf.mxu0 }
 0x6e4   :  { %v21856_v17 = vpop.f32.mrf.mxu1 }
 0x6e5   :  { %v21835_v16 = vpop.f32.mrf.mxu0 }
 0x6e6   :  { %v21857_v19 = vpop.f32.mrf.mxu1  ;;  %v21836_v26 = vadd.f32 %v21835_v16, %v21834_v15 }
 0x6e7   :  { %v21837_v18 = vpop.f32.mrf.mxu0  ;;  %v21858_v29 = vadd.f32 %v21857_v19, %v21856_v17 }
 0x6e8   :  { %v21859_v21 = vpop.f32.mrf.mxu1  ;;  %v17913_v28 = vadd.f32 %v21836_v26, %v17873_v27 }
 0x6e9   :  { %v21838_v20 = vpop.f32.mrf.mxu0 }
 0x6ea   :  { %v21860_v22 = vpop.f32.mrf.mxu1  ;;  %v17953_v32 = vadd.f32 %v21858_v29, %v17913_v28 }
 0x703   :  { %v21878_v30 = vpop.f32.mrf.mxu0 }
 0x705   :  { %v21879_v31 = vpop.f32.mrf.mxu0 }
 0x706   :  { %v21880_v33 = vadd.f32 %v21879_v31, %v21878_v30 }
 0x707   :  { %v21881_v35 = vpop.f32.mrf.mxu0 }
 0x708   :  { %v17993_v36 = vadd.f32 %v21880_v33, %v17953_v32 }
 0x709   :  { %v21882_v37 = vpop.f32.mrf.mxu0 }
 0x70a   :  { %v17998_v38 = vadd.f32 %v17993_v36, %v4533_v34 }
 0x70c   :  { %18000 = vst.msk [vmem:[#allocation2] sm:$0x3] %vm26_vm0, %v17998_v38 }
 0x713   :  { %v18004_v40 = vld [vmem:[#allocation2] sm:$0x3] }
 0x714   :  { %v18012_v42 = vadd.f32 %v19703_v39, %v18004_v40 }
 0x716   :  { %v18013_v43 = vmax.f32 %v18012_v42, 0.0 }
 0x718   :  { %21910 = vmatmul.mubr.msk.f32.vlgmr.msra.gmra.mxu1 %vm18029_vm2, %v18013_v43 }
 0x7d8   :  { %v18099_v45 = vpop.f32.mrf.mxu1 }
 0x7d9   :  { %v18100_v46 = vadd.f32 %v19704_v44, %v18099_v45 }
 0x7da   :  { %v21911_v47 = vpop.f32.mrf.mxu1 }
 0x7db   :  { %18103 = vst [vmem:[#allocation3] sm:$0x3] %v18100_v46 }
 0x7dc   :  { %23560 = shalt.err (!%p23557_p4)
}
 0x7dd   :  { %18113 = dma.vmem_to_hbm [thread:$0]  %s18111_s28, 32, %s28773_s5, [#allocation4]  }
 0x7de   :  { %23569 = dma.done.wait [#allocation4], 32  }
 0x7df   :  { %23570 = vsyncadd [#allocation4], 4294967264 }
 0x7e0   :  { %18117 = vsyncpa [#allocation4], 1 }

</bundles_post_ra>
